<compile_context>
chip_gen: v5e
topology: v5e:2x2
jax: 0.10.0
libtpu: 0.0.40
codegen_flags: <defaults>
</compile_context>

<pallas_src>
import functools

import jax
import jax.numpy as jnp
from jax.experimental import pallas as pl
from jax.experimental.pallas import tpu as pltpu


NEG_INF = -9e15  # same masking constant as the PyTorch reference


# ----------------------------------------------------------------------------
# small in-kernel helpers
# ----------------------------------------------------------------------------
def _mmb(x, w):
    """(..., K) f32 @ (K, M) bf16 -> (..., M) f32 (bf16 MXU operands, f32 acc)."""
    lead = x.shape[:-1]
    y = jnp.dot(x.reshape(-1, x.shape[-1]).astype(jnp.bfloat16), w,
                preferred_element_type=jnp.float32)
    return y.reshape(lead + (w.shape[-1],))


def _elu(x):
    # exp argument clamped to <= 0 so the unselected branch never overflows.
    return jnp.where(x > 0, x, jnp.exp(jnp.minimum(x, 0.0)) - 1.0)


def _gelu(x):
    # TODO(synk): tanh-approximate GELU (EUP tanh); torch nn.GELU uses exact erf.
    c = 0.7978845608028654  # sqrt(2/pi)
    return 0.5 * x * (1.0 + jnp.tanh(c * (x + 0.044715 * x * x * x)))


# ----------------------------------------------------------------------------
# Pallas kernels
# ----------------------------------------------------------------------------
def _embed_kernel(node_ref, time_ref, gamma_ref, beta_ref, ne_ref, emb_ref):
    """Hoisted per-(GCN g, timestep t) tables (computed once per forward):
         ne[g, t]  = LayerNorm_g(node_emb + time_emb[t])          (N, D)
         emb[g, t] = softmax(ne[g, t] @ ne[g, t]^T, axis=-1)      (N, N)
    """
    node = node_ref[...]                                   # (N, D)
    time = time_ref[...]                                   # (T, D)
    gam = gamma_ref[...]                                   # (G, D)
    bet = beta_ref[...]                                    # (G, D)
    G = gam.shape[0]

    base = node[None, :, :] + time[:, None, :]             # (T, N, D)
    mu = jnp.mean(base, axis=-1, keepdims=True)
    var = jnp.mean((base - mu) ** 2, axis=-1, keepdims=True)
    nhat = (base - mu) * jax.lax.rsqrt(var + 1e-12)        # GCN LN eps = 1e-12

    for g in range(G):                                     # G is small: unrolled
        ne = nhat * gam[g:g + 1][None, :, :] + bet[g:g + 1][None, :, :]
        logits = jax.lax.dot_general(ne, ne, (((2,), (2,)), ((0,), (0,))),
                                     preferred_element_type=jnp.float32)
        logits = logits - jnp.max(logits, axis=-1, keepdims=True)
        p = jnp.exp(logits)
        emb_ref[g] = p / jnp.sum(p, axis=-1, keepdims=True)
        ne_ref[g] = ne


def _gru_kernel(x_ref, s_ref, ne_ref, ner_ref, emb_ref, wz_ref, wr_ref, wu_ref,
                out_ref):
    """Fused GRUCell: 3 GCNs (sigmoid / sigmoid / tanh) + gate combine.

    Each GCN  out[b,n,o] =  sum_d   ne[n,d] * bias_pool[d,o]
                          + sum_dc  ne[n,d] * xin[b,n,c]        * pool0[d,c,o]
                          + sum_dc  ne[n,d] * (emb @ xin)[b,n,c]* pool1[d,c,o]
    is evaluated as ONE lane-dense matmul  feat @ W_packed  with
      feat     = [ne | ne_rep * tile(xin, D) | ne_rep * tile(emb@xin, D)]
      W_packed = [bias_pool ; pool0.reshape(D*K, O) ; pool1.reshape(D*K, O)].
    Dropout inside the reference GCN is identity (eval mode).
    """
    x = x_ref[...]                                         # (B, N, Cin)
    s = s_ref[...]                                         # (B, N, H)
    B, N, _ = x.shape
    D = ne_ref.shape[-1]

    def graph_mix(emb, v):                                 # (N,N) x (B,N,K) -> (B,N,K)
        t = jax.lax.dot_general(v, emb, (((1,), (1,)), ((), ())),
                                preferred_element_type=jnp.float32)    # (B, K, N)
        return jnp.transpose(t, (0, 2, 1))

    def gcn(xin, idx, w):
        ne = ne_ref[idx]                                   # (N, D)
        ner = ner_ref[idx]                                 # (N, D*K): ner[n, d*K+c] = ne[n, d]
        gx = graph_mix(emb_ref[idx], xin)                  # adaptive support
        z0 = ner[None] * jnp.concatenate([xin] * D, axis=-1)
        z1 = ner[None] * jnp.concatenate([gx] * D, axis=-1)
        ne_b = jnp.broadcast_to(ne[None], (B, N, D))
        feat = jnp.concatenate([ne_b, z0, z1], axis=-1)    # (B, N, D*(1+2K))
        return _mmb(feat, w)                               # (B, N, H)

    xin = jnp.concatenate([x, s], axis=-1)
    z = jax.nn.sigmoid(gcn(xin, 0, wz_ref[...]))
    r = jax.nn.sigmoid(gcn(xin, 1, wr_ref[...]))
    cand = jnp.concatenate([x, z * s], axis=-1)
    hc = jnp.tanh(gcn(cand, 2, wu_ref[...]))
    out_ref[...] = r * s + (1.0 - r) * hc                  # fused GRU combine


def _gat_kernel(x_ref, xt_ref, s_ref, w_ref, a1_ref, a2_ref, bias_ref,
                w1a_ref, w1b_ref, b1_ref, w2_ref, b2_ref, g_ref, beta_ref,
                out_ref, *, alpha):
    """Fused per-timestep GAT + Mlp + residual add + LayerNorm.

    One grid step per batch element ("parallel" -> both v7x TensorCores).
    Attention/Mlp dropouts are identity (eval mode).
    """
    x = x_ref[...]                                         # (1, N, Din) current
    xt = xt_ref[...]                                       # (1, N, Din) previous
    N = x.shape[1]

    # Wh rows = [prev ; current]  (no explicit node-axis concat of the inputs)
    wh = jnp.concatenate([_mmb(xt, w_ref[...]),
                          _mmb(x, w_ref[...])], axis=1)    # (1, 2N, Hh) f32
    s1 = jnp.sum(wh * a1_ref[...][None], axis=-1)          # (1, 2N)  a[:H]^T Wh_i
    s2 = jnp.sum(wh * a2_ref[...][None], axis=-1)          # (1, 2N)  a[H:]^T Wh_j

    # Transposed logits e^T[b, j, i] = leakyrelu(s1_i + s2_j); the reference's
    # softmax over dim=1 (over i) becomes a cheap lane-axis reduction here.
    e = s2[:, :, None] + s1[:, None, :]
    e = jnp.where(e > 0, e, alpha * e)                     # LeakyReLU(alpha)
    e = e + bias_ref[...][None]                            # additive adjacency mask
    e = e - jnp.max(e, axis=-1, keepdims=True)
    e = jnp.exp(e)
    att_t = e / jnp.sum(e, axis=-1, keepdims=True)         # (1, 2N, 2N) = att^T

    # h'[b,i,o] = sum_j att[b,i,j] Wh[b,j,o] = sum_j att^T[b,j,i] Wh[b,j,o]
    hp = jax.lax.dot_general(att_t.astype(jnp.bfloat16), wh.astype(jnp.bfloat16),
                             (((1,), (1,)), ((0,), (0,))),
                             preferred_element_type=jnp.float32)   # (1, 2N, Hh)
    hp = _elu(hp)                                          # concat=True -> F.elu

    # Mlp on cat([h'[:N], h'[N:]], -1): split fc1 along its input dim instead
    # of concatenating the activations.
    h1 = (_mmb(hp[:, :N, :], w1a_ref[...]) + _mmb(hp[:, N:, :], w1b_ref[...])
          + b1_ref[...][None])
    h1 = _gelu(h1)
    y = _mmb(h1, w2_ref[...]) + b2_ref[...][None]
    att_out = jnp.abs(y)                                   # F.elu(|y|) == |y|

    # DSTRNN: norms[t](state + att)   (nn.LayerNorm default eps = 1e-5)
    v = s_ref[...] + att_out
    mu = jnp.mean(v, axis=-1, keepdims=True)
    var = jnp.mean((v - mu) ** 2, axis=-1, keepdims=True)
    out_ref[...] = ((v - mu) * jax.lax.rsqrt(var + 1e-5)
                    * g_ref[...][None] + beta_ref[...][None])


# ----------------------------------------------------------------------------
# pallas_call builders (cached; each kernel variant is constructed once)
# ----------------------------------------------------------------------------
def _vmem_specs(n):
    return [pl.BlockSpec(memory_space=pltpu.MemorySpace.VMEM) for _ in range(n)]


@functools.lru_cache(maxsize=None)
def _embed_call(G, T, N, D):
    return pl.pallas_call(
        _embed_kernel,
        out_shape=(jax.ShapeDtypeStruct((G, T, N, D), jnp.float32),
                   jax.ShapeDtypeStruct((G, T, N, N), jnp.float32)),
        in_specs=_vmem_specs(4),
        out_specs=(pl.BlockSpec(memory_space=pltpu.MemorySpace.VMEM),
                   pl.BlockSpec(memory_space=pltpu.MemorySpace.VMEM)),
    )


@functools.lru_cache(maxsize=None)
def _gru_call(B, N, H):
    return pl.pallas_call(
        _gru_kernel,
        out_shape=jax.ShapeDtypeStruct((B, N, H), jnp.float32),
        in_specs=_vmem_specs(8),
        out_specs=pl.BlockSpec(memory_space=pltpu.MemorySpace.VMEM),
        input_output_aliases={1: 0},          # new state overwrites old state
    )


@functools.lru_cache(maxsize=None)
def _gat_call(B, N, Din, Hh, Hout, alpha):
    def batched(b):
        return (b, 0, 0)

    def shared(b):
        return (0, 0)

    return pl.pallas_call(
        functools.partial(_gat_kernel, alpha=alpha),
        out_shape=jax.ShapeDtypeStruct((B, N, Hout), jnp.float32),
        grid=(B,),
        in_specs=[
            pl.BlockSpec((1, N, Din), batched),     # x_t (current)
            pl.BlockSpec((1, N, Din), batched),     # prev
            pl.BlockSpec((1, N, Hout), batched),    # GRU state (residual)
            pl.BlockSpec((Din, Hh), shared),        # W            (bf16)
            pl.BlockSpec((1, Hh), shared),          # a[:H]
            pl.BlockSpec((1, Hh), shared),          # a[H:]
            pl.BlockSpec((2 * N, 2 * N), shared),   # additive adjacency bias^T
            pl.BlockSpec((Hh, Hh), shared),         # fc1 weight, prev half (bf16)
            pl.BlockSpec((Hh, Hh), shared),         # fc1 weight, curr half (bf16)
            pl.BlockSpec((1, Hh), shared),          # fc1 bias
            pl.BlockSpec((Hh, Hout), shared),       # fc2 weight   (bf16)
            pl.BlockSpec((1, Hout), shared),        # fc2 bias
            pl.BlockSpec((1, Hout), shared),        # LayerNorm gamma
            pl.BlockSpec((1, Hout), shared),        # LayerNorm beta
        ],
        out_specs=pl.BlockSpec((1, N, Hout), batched),
        compiler_params=pltpu.CompilerParams(
            dimension_semantics=("parallel",)),     # use v7x's 2nd TensorCore
        # TODO(synk): for realistic (N, B) the attention should be key-tiled
        # flash-style with an explicit vmem_limit_bytes for v7x's 64 MiB VMEM.
    )


# ----------------------------------------------------------------------------
# full forward (one jax.jit around everything)
# ----------------------------------------------------------------------------
def dstrnn_forward(params, x, init_state):
    """DSTRNN.forward: returns (stacked states, output_hidden=[])."""
    B, T, N, Din = x.shape
    H = init_state.shape[-1]
    D = params["node_emb"].shape[-1]
    num_gru = len(params["grus"])
    Hh = params["gats"][0]["W"].shape[1]

    # hoisted per-(GCN, t) embedding / adaptive-support tables: ONE launch
    G = params["ln_gamma"].shape[0]
    ne_all, emb_all = _embed_call(G, T, N, D)(
        params["node_emb"], params["time_emb"],
        params["ln_gamma"], params["ln_beta"])
    # lane-repeated copies matching the packed-GCN matmul layout (glue, once)
    k0, k1 = Din + H, 2 * H
    ner0 = jnp.repeat(ne_all[:3], k0, axis=-1)               # (3, T, N, D*K0)
    ner1 = jnp.repeat(ne_all[3:], k1, axis=-1) if num_gru else None

    gru_fn = _gru_call(B, N, H)
    gat_fn = _gat_call(B, N, Din, Hh, H, 0.2)

    def run_gru(cell, gidx, ner_cell, xt, st, t):
        return gru_fn(xt, st,
                      ne_all[gidx:gidx + 3, t], ner_cell[:, t],
                      emb_all[gidx:gidx + 3, t],
                      cell["wz"], cell["wr"], cell["wu"])

    # -- first pass: gru0 + per-step GAT + LayerNorm --------------------------
    state = init_state[0]
    prev = x[:, 0]
    inner = []
    for t in range(T):
        xt = x[:, t]
        state = run_gru(params["gru0"], 0, ner0, xt, state, t)
        gp, nm = params["gats"][t], params["norms"][t]
        inner.append(gat_fn(xt, prev, state,
                            gp["W"], gp["a1"], gp["a2"], params["adj_bias_t"],
                            gp["w1a"], gp["w1b"], gp["b1"], gp["w2"], gp["b2"],
                            nm["g"], nm["b"]))
        prev = xt
    base_state = state
    current = jnp.stack(inner, axis=1)                        # (B, T, N, H)

    # -- second pass over the deeper GRU layers -------------------------------
    states = [init_state[i + 1] for i in range(num_gru)]
    for t in range(T):
        i = t % num_gru
        states[i] = run_gru(params["grus"][i], 3 * (i + 1),
                            ner1[3 * i:3 * i + 3], current[:, t], states[i], t)
    states.append(base_state)
    return jnp.stack(states, axis=1), []                      # (B, num_gru+1, N, H)


# ----------------------------------------------------------------------------
# deterministic synthetic parameters (shapes follow the PyTorch __init__)
# ----------------------------------------------------------------------------
def init_params(key, *, N, Din, Dout, D, T, num_layers, Hh=256):
    num_gru = num_layers - 1
    keys = iter(jax.random.split(key, 4096))

    def nrm(shape, scale=0.1, dtype=jnp.float32):
        return (scale * jax.random.normal(next(keys), shape)).astype(dtype)

    def packed_gcn(K):
        # GCN pools (weights_pool (D,2,K,Dout), bias_pool (D,Dout)) packed into
        # one (D*(1+2K), Dout) bf16 slab: rows [bias ; pool[:,0] ; pool[:,1]].
        bias = nrm((D, Dout))
        wp0 = nrm((D, K, Dout)).reshape(D * K, Dout)
        wp1 = nrm((D, K, Dout)).reshape(D * K, Dout)
        return jnp.concatenate([bias, wp0, wp1], axis=0).astype(jnp.bfloat16)

    def gru_cell(din):
        K = din + Dout
        return dict(wz=packed_gcn(K), wr=packed_gcn(K), wu=packed_gcn(K))

    # static adjacency [[A, I], [0, A]]; stored as a TRANSPOSED additive bias
    # (0 where adj > 0, -9e15 elsewhere).  The `dis` buffer is unused.
    A = (jax.random.uniform(next(keys), (N, N)) < 0.5).astype(jnp.float32)
    I = jnp.eye(N, dtype=jnp.float32)
    adj = jnp.zeros((2 * N, 2 * N), jnp.float32)
    adj = adj.at[:N, :N].set(A).at[:N, N:].set(I).at[N:, N:].set(A)
    adj_bias_t = jnp.where(adj > 0, 0.0, NEG_INF).astype(jnp.float32).T

    def gat():
        return dict(W=nrm((Din, Hh), dtype=jnp.bfloat16),
                    a1=nrm((1, Hh)), a2=nrm((1, Hh)),
                    w1a=nrm((Hh, Hh), dtype=jnp.bfloat16),   # fc1 rows for prev half
                    w1b=nrm((Hh, Hh), dtype=jnp.bfloat16),   # fc1 rows for curr half
                    b1=nrm((1, Hh)),
                    w2=nrm((Hh, Dout), dtype=jnp.bfloat16),
                    b2=nrm((1, Dout)))

    G = 3 * num_layers   # per-GCN LayerNorm params: [cell0.(z,r,u), cell1.(z,r,u), ...]
    return dict(
        node_emb=nrm((N, D), 1.0),
        time_emb=nrm((T, D), 1.0),
        ln_gamma=jnp.ones((G, D), jnp.float32),
        ln_beta=jnp.zeros((G, D), jnp.float32),
        gru0=gru_cell(Din),
        grus=[gru_cell(Dout) for _ in range(num_gru)],
        gats=[gat() for _ in range(T)],
        norms=[dict(g=jnp.ones((1, Dout), jnp.float32),
                    b=jnp.zeros((1, Dout), jnp.float32)) for _ in range(T)],
        adj_bias_t=adj_bias_t,
    )


if __name__ == "__main__":
    key = jax.random.PRNGKey(0)
    B, T, N = 2, 4, 8                 # batch, in_steps, node_num
    Din, Dout, D = 2, 16, 8           # dim_in, dim_out, embed_dim
    num_layers = 2                    # -> num_gru = 1 (forward needs >= 1)

    kp, kx = jax.random.split(key)
    params = init_params(kp, N=N, Din=Din, Dout=Dout, D=D, T=T,
                         num_layers=num_layers, Hh=256)
    x = jax.random.normal(kx, (B, T, N, Din), jnp.float32)
    init_state = jnp.zeros((num_layers, B, N, Dout), jnp.float32)  # init_hidden

    fwd = jax.jit(dstrnn_forward)
    out, _hidden = fwd(params, x, init_state)
    out = jax.block_until_ready(out)
    assert out.shape == (B, num_layers, N, Dout)
    assert bool(jnp.all(jnp.isfinite(out)))
    print("KERNEL_OK")
</pallas_src>

<mosaic_0001>
module attributes {stable_mosaic.version = 11 : i64} {
  func.func @_embed_kernel(%arg0: memref<8x8xf32, #tpu.memory_space<vmem>>, %arg1: memref<4x8xf32, #tpu.memory_space<vmem>>, %arg2: memref<6x8xf32, #tpu.memory_space<vmem>>, %arg3: memref<6x8xf32, #tpu.memory_space<vmem>>, %arg4: memref<6x4x8x8xf32, #tpu.memory_space<vmem>>, %arg5: memref<6x4x8x8xf32, #tpu.memory_space<vmem>>) attributes {dimension_semantics = [], scalar_prefetch = 0 : i64, scratch_operands = 0 : i64, tpu.core_type = #tpu.core_type<tc>} {
    %c0 = arith.constant 0 : index
    %c0_0 = arith.constant 0 : index
    %0 = vector.load %arg0[%c0, %c0_0] : memref<8x8xf32, #tpu.memory_space<vmem>>, vector<8x8xf32>
    %c0_1 = arith.constant 0 : index
    %c0_2 = arith.constant 0 : index
    %1 = vector.load %arg1[%c0_1, %c0_2] : memref<4x8xf32, #tpu.memory_space<vmem>>, vector<4x8xf32>
    %c0_3 = arith.constant 0 : index
    %c0_4 = arith.constant 0 : index
    %2 = vector.load %arg2[%c0_3, %c0_4] : memref<6x8xf32, #tpu.memory_space<vmem>>, vector<6x8xf32>
    %c0_5 = arith.constant 0 : index
    %c0_6 = arith.constant 0 : index
    %3 = vector.load %arg3[%c0_5, %c0_6] : memref<6x8xf32, #tpu.memory_space<vmem>>, vector<6x8xf32>
    %4 = vector.shape_cast %0 : vector<8x8xf32> to vector<1x8x8xf32>
    %5 = vector.shape_cast %1 : vector<4x8xf32> to vector<4x1x8xf32>
    %6 = vector.broadcast %4 : vector<1x8x8xf32> to vector<4x8x8xf32>
    %7 = vector.broadcast %5 : vector<4x1x8xf32> to vector<4x8x8xf32>
    %8 = arith.addf %6, %7 : vector<4x8x8xf32>
    %cst = arith.constant dense<0.000000e+00> : vector<4x8xf32>
    %9 = vector.multi_reduction <add>, %8, %cst [2] : vector<4x8x8xf32> to vector<4x8xf32>
    %10 = vector.shape_cast %9 : vector<4x8xf32> to vector<4x8x1xf32>
    %cst_7 = arith.constant 8.000000e+00 : f32
    %11 = vector.broadcast %cst_7 : f32 to vector<4x8x1xf32>
    %12 = arith.divf %10, %11 : vector<4x8x1xf32>
    %13 = vector.broadcast %12 : vector<4x8x1xf32> to vector<4x8x8xf32>
    %14 = arith.subf %8, %13 : vector<4x8x8xf32>
    %15 = arith.mulf %14, %14 : vector<4x8x8xf32>
    %cst_8 = arith.constant dense<0.000000e+00> : vector<4x8xf32>
    %16 = vector.multi_reduction <add>, %15, %cst_8 [2] : vector<4x8x8xf32> to vector<4x8xf32>
    %17 = vector.shape_cast %16 : vector<4x8xf32> to vector<4x8x1xf32>
    %cst_9 = arith.constant 8.000000e+00 : f32
    %18 = vector.broadcast %cst_9 : f32 to vector<4x8x1xf32>
    %19 = arith.divf %17, %18 : vector<4x8x1xf32>
    %20 = vector.broadcast %12 : vector<4x8x1xf32> to vector<4x8x8xf32>
    %21 = arith.subf %8, %20 : vector<4x8x8xf32>
    %cst_10 = arith.constant 9.99999996E-13 : f32
    %22 = vector.broadcast %cst_10 : f32 to vector<4x8x1xf32>
    %23 = arith.addf %19, %22 : vector<4x8x1xf32>
    %24 = math.rsqrt %23 : vector<4x8x1xf32>
    %25 = vector.broadcast %24 : vector<4x8x1xf32> to vector<4x8x8xf32>
    %26 = arith.mulf %21, %25 : vector<4x8x8xf32>
    %27 = vector.extract_strided_slice %2 {offsets = [0, 0], sizes = [1, 8], strides = [1, 1]} : vector<6x8xf32> to vector<1x8xf32>
    %28 = vector.shape_cast %27 : vector<1x8xf32> to vector<1x1x8xf32>
    %29 = vector.broadcast %28 : vector<1x1x8xf32> to vector<4x8x8xf32>
    %30 = arith.mulf %26, %29 : vector<4x8x8xf32>
    %31 = vector.extract_strided_slice %3 {offsets = [0, 0], sizes = [1, 8], strides = [1, 1]} : vector<6x8xf32> to vector<1x8xf32>
    %32 = vector.shape_cast %31 : vector<1x8xf32> to vector<1x1x8xf32>
    %33 = vector.broadcast %32 : vector<1x1x8xf32> to vector<4x8x8xf32>
    %34 = arith.addf %30, %33 : vector<4x8x8xf32>
    %cst_11 = arith.constant dense<0.000000e+00> : vector<4x8x8xf32>
    %35 = tpu.matmul %34, %34, %cst_11 {dimension_numbers = #tpu.dot_dimension_numbers<[2], [2], [1], [1], [0, 0, 0, 1, 1, 1], [0], [0]>} : vector<4x8x8xf32>, vector<4x8x8xf32>, vector<4x8x8xf32> -> vector<4x8x8xf32>
    %cst_12 = arith.constant dense<0xFF800000> : vector<4x8xf32>
    %36 = vector.multi_reduction <maximumf>, %35, %cst_12 [2] : vector<4x8x8xf32> to vector<4x8xf32>
    %37 = vector.shape_cast %36 : vector<4x8xf32> to vector<4x8x1xf32>
    %38 = vector.broadcast %37 : vector<4x8x1xf32> to vector<4x8x8xf32>
    %39 = arith.subf %35, %38 : vector<4x8x8xf32>
    %40 = math.exp %39 : vector<4x8x8xf32>
    %cst_13 = arith.constant dense<0.000000e+00> : vector<4x8xf32>
    %41 = vector.multi_reduction <add>, %40, %cst_13 [2] : vector<4x8x8xf32> to vector<4x8xf32>
    %42 = vector.shape_cast %41 : vector<4x8xf32> to vector<4x8x1xf32>
    %43 = vector.broadcast %42 : vector<4x8x1xf32> to vector<4x8x8xf32>
    %44 = arith.divf %40, %43 : vector<4x8x8xf32>
    %c0_14 = arith.constant 0 : index
    %c0_15 = arith.constant 0 : index
    %c0_16 = arith.constant 0 : index
    %c0_17 = arith.constant 0 : index
    %45 = vector.load %arg5[%c0_14, %c0_15, %c0_16, %c0_17] : memref<6x4x8x8xf32, #tpu.memory_space<vmem>>, vector<1x4x8x8xf32>
    %46 = vector.shape_cast %45 : vector<1x4x8x8xf32> to vector<4x8x8xf32>
    %47 = vector.shape_cast %44 : vector<4x8x8xf32> to vector<1x4x8x8xf32>
    tpu.vector_store %arg5[%c0_14, %c0_15, %c0_16, %c0_17], %47 {strides = array<i32>} : memref<6x4x8x8xf32, #tpu.memory_space<vmem>>, vector<1x4x8x8xf32>,
    %c0_18 = arith.constant 0 : index
    %c0_19 = arith.constant 0 : index
    %c0_20 = arith.constant 0 : index
    %c0_21 = arith.constant 0 : index
    %48 = vector.load %arg4[%c0_18, %c0_19, %c0_20, %c0_21] : memref<6x4x8x8xf32, #tpu.memory_space<vmem>>, vector<1x4x8x8xf32>
    %49 = vector.shape_cast %48 : vector<1x4x8x8xf32> to vector<4x8x8xf32>
    %50 = vector.shape_cast %34 : vector<4x8x8xf32> to vector<1x4x8x8xf32>
    tpu.vector_store %arg4[%c0_18, %c0_19, %c0_20, %c0_21], %50 {strides = array<i32>} : memref<6x4x8x8xf32, #tpu.memory_space<vmem>>, vector<1x4x8x8xf32>,
    %51 = vector.extract_strided_slice %2 {offsets = [1, 0], sizes = [1, 8], strides = [1, 1]} : vector<6x8xf32> to vector<1x8xf32>
    %52 = vector.shape_cast %51 : vector<1x8xf32> to vector<1x1x8xf32>
    %53 = vector.broadcast %52 : vector<1x1x8xf32> to vector<4x8x8xf32>
    %54 = arith.mulf %26, %53 : vector<4x8x8xf32>
    %55 = vector.extract_strided_slice %3 {offsets = [1, 0], sizes = [1, 8], strides = [1, 1]} : vector<6x8xf32> to vector<1x8xf32>
    %56 = vector.shape_cast %55 : vector<1x8xf32> to vector<1x1x8xf32>
    %57 = vector.broadcast %56 : vector<1x1x8xf32> to vector<4x8x8xf32>
    %58 = arith.addf %54, %57 : vector<4x8x8xf32>
    %cst_22 = arith.constant dense<0.000000e+00> : vector<4x8x8xf32>
    %59 = tpu.matmul %58, %58, %cst_22 {dimension_numbers = #tpu.dot_dimension_numbers<[2], [2], [1], [1], [0, 0, 0, 1, 1, 1], [0], [0]>} : vector<4x8x8xf32>, vector<4x8x8xf32>, vector<4x8x8xf32> -> vector<4x8x8xf32>
    %cst_23 = arith.constant dense<0xFF800000> : vector<4x8xf32>
    %60 = vector.multi_reduction <maximumf>, %59, %cst_23 [2] : vector<4x8x8xf32> to vector<4x8xf32>
    %61 = vector.shape_cast %60 : vector<4x8xf32> to vector<4x8x1xf32>
    %62 = vector.broadcast %61 : vector<4x8x1xf32> to vector<4x8x8xf32>
    %63 = arith.subf %59, %62 : vector<4x8x8xf32>
    %64 = math.exp %63 : vector<4x8x8xf32>
    %cst_24 = arith.constant dense<0.000000e+00> : vector<4x8xf32>
    %65 = vector.multi_reduction <add>, %64, %cst_24 [2] : vector<4x8x8xf32> to vector<4x8xf32>
    %66 = vector.shape_cast %65 : vector<4x8xf32> to vector<4x8x1xf32>
    %67 = vector.broadcast %66 : vector<4x8x1xf32> to vector<4x8x8xf32>
    %68 = arith.divf %64, %67 : vector<4x8x8xf32>
    %c1 = arith.constant 1 : index
    %c0_25 = arith.constant 0 : index
    %c0_26 = arith.constant 0 : index
    %c0_27 = arith.constant 0 : index
    %69 = vector.load %arg5[%c1, %c0_25, %c0_26, %c0_27] : memref<6x4x8x8xf32, #tpu.memory_space<vmem>>, vector<1x4x8x8xf32>
    %70 = vector.shape_cast %69 : vector<1x4x8x8xf32> to vector<4x8x8xf32>
    %71 = vector.shape_cast %68 : vector<4x8x8xf32> to vector<1x4x8x8xf32>
    tpu.vector_store %arg5[%c1, %c0_25, %c0_26, %c0_27], %71 {strides = array<i32>} : memref<6x4x8x8xf32, #tpu.memory_space<vmem>>, vector<1x4x8x8xf32>,
    %c1_28 = arith.constant 1 : index
    %c0_29 = arith.constant 0 : index
    %c0_30 = arith.constant 0 : index
    %c0_31 = arith.constant 0 : index
    %72 = vector.load %arg4[%c1_28, %c0_29, %c0_30, %c0_31] : memref<6x4x8x8xf32, #tpu.memory_space<vmem>>, vector<1x4x8x8xf32>
    %73 = vector.shape_cast %72 : vector<1x4x8x8xf32> to vector<4x8x8xf32>
    %74 = vector.shape_cast %58 : vector<4x8x8xf32> to vector<1x4x8x8xf32>
    tpu.vector_store %arg4[%c1_28, %c0_29, %c0_30, %c0_31], %74 {strides = array<i32>} : memref<6x4x8x8xf32, #tpu.memory_space<vmem>>, vector<1x4x8x8xf32>,
    %75 = vector.extract_strided_slice %2 {offsets = [2, 0], sizes = [1, 8], strides = [1, 1]} : vector<6x8xf32> to vector<1x8xf32>
    %76 = vector.shape_cast %75 : vector<1x8xf32> to vector<1x1x8xf32>
    %77 = vector.broadcast %76 : vector<1x1x8xf32> to vector<4x8x8xf32>
    %78 = arith.mulf %26, %77 : vector<4x8x8xf32>
    %79 = vector.extract_strided_slice %3 {offsets = [2, 0], sizes = [1, 8], strides = [1, 1]} : vector<6x8xf32> to vector<1x8xf32>
    %80 = vector.shape_cast %79 : vector<1x8xf32> to vector<1x1x8xf32>
    %81 = vector.broadcast %80 : vector<1x1x8xf32> to vector<4x8x8xf32>
    %82 = arith.addf %78, %81 : vector<4x8x8xf32>
    %cst_32 = arith.constant dense<0.000000e+00> : vector<4x8x8xf32>
    %83 = tpu.matmul %82, %82, %cst_32 {dimension_numbers = #tpu.dot_dimension_numbers<[2], [2], [1], [1], [0, 0, 0, 1, 1, 1], [0], [0]>} : vector<4x8x8xf32>, vector<4x8x8xf32>, vector<4x8x8xf32> -> vector<4x8x8xf32>
    %cst_33 = arith.constant dense<0xFF800000> : vector<4x8xf32>
    %84 = vector.multi_reduction <maximumf>, %83, %cst_33 [2] : vector<4x8x8xf32> to vector<4x8xf32>
    %85 = vector.shape_cast %84 : vector<4x8xf32> to vector<4x8x1xf32>
    %86 = vector.broadcast %85 : vector<4x8x1xf32> to vector<4x8x8xf32>
    %87 = arith.subf %83, %86 : vector<4x8x8xf32>
    %88 = math.exp %87 : vector<4x8x8xf32>
    %cst_34 = arith.constant dense<0.000000e+00> : vector<4x8xf32>
    %89 = vector.multi_reduction <add>, %88, %cst_34 [2] : vector<4x8x8xf32> to vector<4x8xf32>
    %90 = vector.shape_cast %89 : vector<4x8xf32> to vector<4x8x1xf32>
    %91 = vector.broadcast %90 : vector<4x8x1xf32> to vector<4x8x8xf32>
    %92 = arith.divf %88, %91 : vector<4x8x8xf32>
    %c2 = arith.constant 2 : index
    %c0_35 = arith.constant 0 : index
    %c0_36 = arith.constant 0 : index
    %c0_37 = arith.constant 0 : index
    %93 = vector.load %arg5[%c2, %c0_35, %c0_36, %c0_37] : memref<6x4x8x8xf32, #tpu.memory_space<vmem>>, vector<1x4x8x8xf32>
    %94 = vector.shape_cast %93 : vector<1x4x8x8xf32> to vector<4x8x8xf32>
    %95 = vector.shape_cast %92 : vector<4x8x8xf32> to vector<1x4x8x8xf32>
    tpu.vector_store %arg5[%c2, %c0_35, %c0_36, %c0_37], %95 {strides = array<i32>} : memref<6x4x8x8xf32, #tpu.memory_space<vmem>>, vector<1x4x8x8xf32>,
    %c2_38 = arith.constant 2 : index
    %c0_39 = arith.constant 0 : index
    %c0_40 = arith.constant 0 : index
    %c0_41 = arith.constant 0 : index
    %96 = vector.load %arg4[%c2_38, %c0_39, %c0_40, %c0_41] : memref<6x4x8x8xf32, #tpu.memory_space<vmem>>, vector<1x4x8x8xf32>
    %97 = vector.shape_cast %96 : vector<1x4x8x8xf32> to vector<4x8x8xf32>
    %98 = vector.shape_cast %82 : vector<4x8x8xf32> to vector<1x4x8x8xf32>
    tpu.vector_store %arg4[%c2_38, %c0_39, %c0_40, %c0_41], %98 {strides = array<i32>} : memref<6x4x8x8xf32, #tpu.memory_space<vmem>>, vector<1x4x8x8xf32>,
    %99 = vector.extract_strided_slice %2 {offsets = [3, 0], sizes = [1, 8], strides = [1, 1]} : vector<6x8xf32> to vector<1x8xf32>
    %100 = vector.shape_cast %99 : vector<1x8xf32> to vector<1x1x8xf32>
    %101 = vector.broadcast %100 : vector<1x1x8xf32> to vector<4x8x8xf32>
    %102 = arith.mulf %26, %101 : vector<4x8x8xf32>
    %103 = vector.extract_strided_slice %3 {offsets = [3, 0], sizes = [1, 8], strides = [1, 1]} : vector<6x8xf32> to vector<1x8xf32>
    %104 = vector.shape_cast %103 : vector<1x8xf32> to vector<1x1x8xf32>
    %105 = vector.broadcast %104 : vector<1x1x8xf32> to vector<4x8x8xf32>
    %106 = arith.addf %102, %105 : vector<4x8x8xf32>
    %cst_42 = arith.constant dense<0.000000e+00> : vector<4x8x8xf32>
    %107 = tpu.matmul %106, %106, %cst_42 {dimension_numbers = #tpu.dot_dimension_numbers<[2], [2], [1], [1], [0, 0, 0, 1, 1, 1], [0], [0]>} : vector<4x8x8xf32>, vector<4x8x8xf32>, vector<4x8x8xf32> -> vector<4x8x8xf32>
    %cst_43 = arith.constant dense<0xFF800000> : vector<4x8xf32>
    %108 = vector.multi_reduction <maximumf>, %107, %cst_43 [2] : vector<4x8x8xf32> to vector<4x8xf32>
    %109 = vector.shape_cast %108 : vector<4x8xf32> to vector<4x8x1xf32>
    %110 = vector.broadcast %109 : vector<4x8x1xf32> to vector<4x8x8xf32>
    %111 = arith.subf %107, %110 : vector<4x8x8xf32>
    %112 = math.exp %111 : vector<4x8x8xf32>
    %cst_44 = arith.constant dense<0.000000e+00> : vector<4x8xf32>
    %113 = vector.multi_reduction <add>, %112, %cst_44 [2] : vector<4x8x8xf32> to vector<4x8xf32>
    %114 = vector.shape_cast %113 : vector<4x8xf32> to vector<4x8x1xf32>
    %115 = vector.broadcast %114 : vector<4x8x1xf32> to vector<4x8x8xf32>
    %116 = arith.divf %112, %115 : vector<4x8x8xf32>
    %c3 = arith.constant 3 : index
    %c0_45 = arith.constant 0 : index
    %c0_46 = arith.constant 0 : index
    %c0_47 = arith.constant 0 : index
    %117 = vector.load %arg5[%c3, %c0_45, %c0_46, %c0_47] : memref<6x4x8x8xf32, #tpu.memory_space<vmem>>, vector<1x4x8x8xf32>
    %118 = vector.shape_cast %117 : vector<1x4x8x8xf32> to vector<4x8x8xf32>
    %119 = vector.shape_cast %116 : vector<4x8x8xf32> to vector<1x4x8x8xf32>
    tpu.vector_store %arg5[%c3, %c0_45, %c0_46, %c0_47], %119 {strides = array<i32>} : memref<6x4x8x8xf32, #tpu.memory_space<vmem>>, vector<1x4x8x8xf32>,
    %c3_48 = arith.constant 3 : index
    %c0_49 = arith.constant 0 : index
    %c0_50 = arith.constant 0 : index
    %c0_51 = arith.constant 0 : index
    %120 = vector.load %arg4[%c3_48, %c0_49, %c0_50, %c0_51] : memref<6x4x8x8xf32, #tpu.memory_space<vmem>>, vector<1x4x8x8xf32>
    %121 = vector.shape_cast %120 : vector<1x4x8x8xf32> to vector<4x8x8xf32>
    %122 = vector.shape_cast %106 : vector<4x8x8xf32> to vector<1x4x8x8xf32>
    tpu.vector_store %arg4[%c3_48, %c0_49, %c0_50, %c0_51], %122 {strides = array<i32>} : memref<6x4x8x8xf32, #tpu.memory_space<vmem>>, vector<1x4x8x8xf32>,
    %123 = vector.extract_strided_slice %2 {offsets = [4, 0], sizes = [1, 8], strides = [1, 1]} : vector<6x8xf32> to vector<1x8xf32>
    %124 = vector.shape_cast %123 : vector<1x8xf32> to vector<1x1x8xf32>
    %125 = vector.broadcast %124 : vector<1x1x8xf32> to vector<4x8x8xf32>
    %126 = arith.mulf %26, %125 : vector<4x8x8xf32>
    %127 = vector.extract_strided_slice %3 {offsets = [4, 0], sizes = [1, 8], strides = [1, 1]} : vector<6x8xf32> to vector<1x8xf32>
    %128 = vector.shape_cast %127 : vector<1x8xf32> to vector<1x1x8xf32>
    %129 = vector.broadcast %128 : vector<1x1x8xf32> to vector<4x8x8xf32>
    %130 = arith.addf %126, %129 : vector<4x8x8xf32>
    %cst_52 = arith.constant dense<0.000000e+00> : vector<4x8x8xf32>
    %131 = tpu.matmul %130, %130, %cst_52 {dimension_numbers = #tpu.dot_dimension_numbers<[2], [2], [1], [1], [0, 0, 0, 1, 1, 1], [0], [0]>} : vector<4x8x8xf32>, vector<4x8x8xf32>, vector<4x8x8xf32> -> vector<4x8x8xf32>
    %cst_53 = arith.constant dense<0xFF800000> : vector<4x8xf32>
    %132 = vector.multi_reduction <maximumf>, %131, %cst_53 [2] : vector<4x8x8xf32> to vector<4x8xf32>
    %133 = vector.shape_cast %132 : vector<4x8xf32> to vector<4x8x1xf32>
    %134 = vector.broadcast %133 : vector<4x8x1xf32> to vector<4x8x8xf32>
    %135 = arith.subf %131, %134 : vector<4x8x8xf32>
    %136 = math.exp %135 : vector<4x8x8xf32>
    %cst_54 = arith.constant dense<0.000000e+00> : vector<4x8xf32>
    %137 = vector.multi_reduction <add>, %136, %cst_54 [2] : vector<4x8x8xf32> to vector<4x8xf32>
    %138 = vector.shape_cast %137 : vector<4x8xf32> to vector<4x8x1xf32>
    %139 = vector.broadcast %138 : vector<4x8x1xf32> to vector<4x8x8xf32>
    %140 = arith.divf %136, %139 : vector<4x8x8xf32>
    %c4 = arith.constant 4 : index
    %c0_55 = arith.constant 0 : index
    %c0_56 = arith.constant 0 : index
    %c0_57 = arith.constant 0 : index
    %141 = vector.load %arg5[%c4, %c0_55, %c0_56, %c0_57] : memref<6x4x8x8xf32, #tpu.memory_space<vmem>>, vector<1x4x8x8xf32>
    %142 = vector.shape_cast %141 : vector<1x4x8x8xf32> to vector<4x8x8xf32>
    %143 = vector.shape_cast %140 : vector<4x8x8xf32> to vector<1x4x8x8xf32>
    tpu.vector_store %arg5[%c4, %c0_55, %c0_56, %c0_57], %143 {strides = array<i32>} : memref<6x4x8x8xf32, #tpu.memory_space<vmem>>, vector<1x4x8x8xf32>,
    %c4_58 = arith.constant 4 : index
    %c0_59 = arith.constant 0 : index
    %c0_60 = arith.constant 0 : index
    %c0_61 = arith.constant 0 : index
    %144 = vector.load %arg4[%c4_58, %c0_59, %c0_60, %c0_61] : memref<6x4x8x8xf32, #tpu.memory_space<vmem>>, vector<1x4x8x8xf32>
    %145 = vector.shape_cast %144 : vector<1x4x8x8xf32> to vector<4x8x8xf32>
    %146 = vector.shape_cast %130 : vector<4x8x8xf32> to vector<1x4x8x8xf32>
    tpu.vector_store %arg4[%c4_58, %c0_59, %c0_60, %c0_61], %146 {strides = array<i32>} : memref<6x4x8x8xf32, #tpu.memory_space<vmem>>, vector<1x4x8x8xf32>,
    %147 = vector.extract_strided_slice %2 {offsets = [5, 0], sizes = [1, 8], strides = [1, 1]} : vector<6x8xf32> to vector<1x8xf32>
    %148 = vector.shape_cast %147 : vector<1x8xf32> to vector<1x1x8xf32>
    %149 = vector.broadcast %148 : vector<1x1x8xf32> to vector<4x8x8xf32>
    %150 = arith.mulf %26, %149 : vector<4x8x8xf32>
    %151 = vector.extract_strided_slice %3 {offsets = [5, 0], sizes = [1, 8], strides = [1, 1]} : vector<6x8xf32> to vector<1x8xf32>
    %152 = vector.shape_cast %151 : vector<1x8xf32> to vector<1x1x8xf32>
    %153 = vector.broadcast %152 : vector<1x1x8xf32> to vector<4x8x8xf32>
    %154 = arith.addf %150, %153 : vector<4x8x8xf32>
    %cst_62 = arith.constant dense<0.000000e+00> : vector<4x8x8xf32>
    %155 = tpu.matmul %154, %154, %cst_62 {dimension_numbers = #tpu.dot_dimension_numbers<[2], [2], [1], [1], [0, 0, 0, 1, 1, 1], [0], [0]>} : vector<4x8x8xf32>, vector<4x8x8xf32>, vector<4x8x8xf32> -> vector<4x8x8xf32>
    %cst_63 = arith.constant dense<0xFF800000> : vector<4x8xf32>
    %156 = vector.multi_reduction <maximumf>, %155, %cst_63 [2] : vector<4x8x8xf32> to vector<4x8xf32>
    %157 = vector.shape_cast %156 : vector<4x8xf32> to vector<4x8x1xf32>
    %158 = vector.broadcast %157 : vector<4x8x1xf32> to vector<4x8x8xf32>
    %159 = arith.subf %155, %158 : vector<4x8x8xf32>
    %160 = math.exp %159 : vector<4x8x8xf32>
    %cst_64 = arith.constant dense<0.000000e+00> : vector<4x8xf32>
    %161 = vector.multi_reduction <add>, %160, %cst_64 [2] : vector<4x8x8xf32> to vector<4x8xf32>
    %162 = vector.shape_cast %161 : vector<4x8xf32> to vector<4x8x1xf32>
    %163 = vector.broadcast %162 : vector<4x8x1xf32> to vector<4x8x8xf32>
    %164 = arith.divf %160, %163 : vector<4x8x8xf32>
    %c5 = arith.constant 5 : index
    %c0_65 = arith.constant 0 : index
    %c0_66 = arith.constant 0 : index
    %c0_67 = arith.constant 0 : index
    %165 = vector.load %arg5[%c5, %c0_65, %c0_66, %c0_67] : memref<6x4x8x8xf32, #tpu.memory_space<vmem>>, vector<1x4x8x8xf32>
    %166 = vector.shape_cast %165 : vector<1x4x8x8xf32> to vector<4x8x8xf32>
    %167 = vector.shape_cast %164 : vector<4x8x8xf32> to vector<1x4x8x8xf32>
    tpu.vector_store %arg5[%c5, %c0_65, %c0_66, %c0_67], %167 {strides = array<i32>} : memref<6x4x8x8xf32, #tpu.memory_space<vmem>>, vector<1x4x8x8xf32>,
    %c5_68 = arith.constant 5 : index
    %c0_69 = arith.constant 0 : index
    %c0_70 = arith.constant 0 : index
    %c0_71 = arith.constant 0 : index
    %168 = vector.load %arg4[%c5_68, %c0_69, %c0_70, %c0_71] : memref<6x4x8x8xf32, #tpu.memory_space<vmem>>, vector<1x4x8x8xf32>
    %169 = vector.shape_cast %168 : vector<1x4x8x8xf32> to vector<4x8x8xf32>
    %170 = vector.shape_cast %154 : vector<4x8x8xf32> to vector<1x4x8x8xf32>
    tpu.vector_store %arg4[%c5_68, %c0_69, %c0_70, %c0_71], %170 {strides = array<i32>} : memref<6x4x8x8xf32, #tpu.memory_space<vmem>>, vector<1x4x8x8xf32>,
    return
  }
}

module attributes {stable_mosaic.version = 11 : i64} {
  func.func @_gru_kernel(%arg0: memref<2x8x2xf32, #tpu.memory_space<vmem>>, %arg1: memref<2x8x16xf32, #tpu.memory_space<vmem>>, %arg2: memref<3x8x8xf32, #tpu.memory_space<vmem>>, %arg3: memref<3x8x144xf32, #tpu.memory_space<vmem>>, %arg4: memref<3x8x8xf32, #tpu.memory_space<vmem>>, %arg5: memref<296x16xbf16, #tpu.memory_space<vmem>>, %arg6: memref<296x16xbf16, #tpu.memory_space<vmem>>, %arg7: memref<296x16xbf16, #tpu.memory_space<vmem>>, %arg8: memref<2x8x16xf32, #tpu.memory_space<vmem>>) attributes {dimension_semantics = [], scalar_prefetch = 0 : i64, scratch_operands = 0 : i64, tpu.core_type = #tpu.core_type<tc>} {
    %c0 = arith.constant 0 : index
    %c0_0 = arith.constant 0 : index
    %c0_1 = arith.constant 0 : index
    %0 = vector.load %arg0[%c0, %c0_0, %c0_1] : memref<2x8x2xf32, #tpu.memory_space<vmem>>, vector<2x8x2xf32>
    %c0_2 = arith.constant 0 : index
    %c0_3 = arith.constant 0 : index
    %c0_4 = arith.constant 0 : index
    %1 = vector.load %arg1[%c0_2, %c0_3, %c0_4] : memref<2x8x16xf32, #tpu.memory_space<vmem>>, vector<2x8x16xf32>
    %2 = tpu.concatenate %0, %1 in 2 : vector<2x8x2xf32>, vector<2x8x16xf32> -> vector<2x8x18xf32>
    %c0_5 = arith.constant 0 : index
    %c0_6 = arith.constant 0 : index
    %3 = vector.load %arg5[%c0_5, %c0_6] : memref<296x16xbf16, #tpu.memory_space<vmem>>, vector<296x16xbf16>
    %c0_7 = arith.constant 0 : index
    %c0_8 = arith.constant 0 : index
    %c0_9 = arith.constant 0 : index
    %4 = vector.load %arg2[%c0_7, %c0_8, %c0_9] : memref<3x8x8xf32, #tpu.memory_space<vmem>>, vector<1x8x8xf32>
    %5 = vector.shape_cast %4 : vector<1x8x8xf32> to vector<8x8xf32>
    %c0_10 = arith.constant 0 : index
    %c0_11 = arith.constant 0 : index
    %c0_12 = arith.constant 0 : index
    %6 = vector.load %arg3[%c0_10, %c0_11, %c0_12] : memref<3x8x144xf32, #tpu.memory_space<vmem>>, vector<1x8x144xf32>
    %7 = vector.shape_cast %6 : vector<1x8x144xf32> to vector<8x144xf32>
    %c0_13 = arith.constant 0 : index
    %c0_14 = arith.constant 0 : index
    %c0_15 = arith.constant 0 : index
    %8 = vector.load %arg4[%c0_13, %c0_14, %c0_15] : memref<3x8x8xf32, #tpu.memory_space<vmem>>, vector<1x8x8xf32>
    %9 = vector.shape_cast %8 : vector<1x8x8xf32> to vector<8x8xf32>
    %cst = arith.constant dense<0.000000e+00> : vector<2x18x8xf32>
    %10 = tpu.matmul %2, %9, %cst {dimension_numbers = #tpu.dot_dimension_numbers<[1], [1], [0, 2], [0], [0, 0, 0, 2, 1, 0], [], []>} : vector<2x8x18xf32>, vector<8x8xf32>, vector<2x18x8xf32> -> vector<2x18x8xf32>
    %11 = tpu.transpose %10, [0, 2, 1] : vector<2x18x8xf32> -> vector<2x8x18xf32>
    %12 = vector.shape_cast %7 : vector<8x144xf32> to vector<1x8x144xf32>
    %13 = tpu.concatenate %2, %2, %2, %2, %2, %2, %2, %2 in 2 : vector<2x8x18xf32>, vector<2x8x18xf32>, vector<2x8x18xf32>, vector<2x8x18xf32>, vector<2x8x18xf32>, vector<2x8x18xf32>, vector<2x8x18xf32>, vector<2x8x18xf32> -> vector<2x8x144xf32>
    %14 = vector.broadcast %12 : vector<1x8x144xf32> to vector<2x8x144xf32>
    %15 = arith.mulf %14, %13 : vector<2x8x144xf32>
    %16 = vector.shape_cast %7 : vector<8x144xf32> to vector<1x8x144xf32>
    %17 = tpu.concatenate %11, %11, %11, %11, %11, %11, %11, %11 in 2 : vector<2x8x18xf32>, vector<2x8x18xf32>, vector<2x8x18xf32>, vector<2x8x18xf32>, vector<2x8x18xf32>, vector<2x8x18xf32>, vector<2x8x18xf32>, vector<2x8x18xf32> -> vector<2x8x144xf32>
    %18 = vector.broadcast %16 : vector<1x8x144xf32> to vector<2x8x144xf32>
    %19 = arith.mulf %18, %17 : vector<2x8x144xf32>
    %20 = vector.shape_cast %5 : vector<8x8xf32> to vector<1x8x8xf32>
    %21 = vector.shape_cast %20 : vector<1x8x8xf32> to vector<1x8x8xf32>
    %22 = vector.broadcast %21 : vector<1x8x8xf32> to vector<2x8x8xf32>
    %23 = tpu.concatenate %22, %15, %19 in 2 : vector<2x8x8xf32>, vector<2x8x144xf32>, vector<2x8x144xf32> -> vector<2x8x296xf32>
    %24 = vector.shape_cast %23 : vector<2x8x296xf32> to vector<16x296xf32>
    %25 = arith.truncf %24 : vector<16x296xf32> to vector<16x296xbf16>
    %cst_16 = arith.constant dense<0.000000e+00> : vector<16x16xf32>
    %26 = tpu.matmul %25, %3, %cst_16 {dimension_numbers = #tpu.dot_dimension_numbers<[1], [0], [0], [1], [0, 0, 1, 1], [], []>} : vector<16x296xbf16>, vector<296x16xbf16>, vector<16x16xf32> -> vector<16x16xf32>
    %27 = vector.shape_cast %26 : vector<16x16xf32> to vector<2x8x16xf32>
    %28 = arith.negf %27 : vector<2x8x16xf32>
    %29 = math.exp %28 : vector<2x8x16xf32>
    %cst_17 = arith.constant 1.000000e+00 : f32
    %30 = vector.broadcast %cst_17 : f32 to vector<2x8x16xf32>
    %31 = arith.addf %30, %29 : vector<2x8x16xf32>
    %32 = arith.divf %30, %31 : vector<2x8x16xf32>
    %c0_18 = arith.constant 0 : index
    %c0_19 = arith.constant 0 : index
    %33 = vector.load %arg6[%c0_18, %c0_19] : memref<296x16xbf16, #tpu.memory_space<vmem>>, vector<296x16xbf16>
    %c1 = arith.constant 1 : index
    %c0_20 = arith.constant 0 : index
    %c0_21 = arith.constant 0 : index
    %34 = vector.load %arg2[%c1, %c0_20, %c0_21] : memref<3x8x8xf32, #tpu.memory_space<vmem>>, vector<1x8x8xf32>
    %35 = vector.shape_cast %34 : vector<1x8x8xf32> to vector<8x8xf32>
    %c1_22 = arith.constant 1 : index
    %c0_23 = arith.constant 0 : index
    %c0_24 = arith.constant 0 : index
    %36 = vector.load %arg3[%c1_22, %c0_23, %c0_24] : memref<3x8x144xf32, #tpu.memory_space<vmem>>, vector<1x8x144xf32>
    %37 = vector.shape_cast %36 : vector<1x8x144xf32> to vector<8x144xf32>
    %c1_25 = arith.constant 1 : index
    %c0_26 = arith.constant 0 : index
    %c0_27 = arith.constant 0 : index
    %38 = vector.load %arg4[%c1_25, %c0_26, %c0_27] : memref<3x8x8xf32, #tpu.memory_space<vmem>>, vector<1x8x8xf32>
    %39 = vector.shape_cast %38 : vector<1x8x8xf32> to vector<8x8xf32>
    %cst_28 = arith.constant dense<0.000000e+00> : vector<2x18x8xf32>
    %40 = tpu.matmul %2, %39, %cst_28 {dimension_numbers = #tpu.dot_dimension_numbers<[1], [1], [0, 2], [0], [0, 0, 0, 2, 1, 0], [], []>} : vector<2x8x18xf32>, vector<8x8xf32>, vector<2x18x8xf32> -> vector<2x18x8xf32>
    %41 = tpu.transpose %40, [0, 2, 1] : vector<2x18x8xf32> -> vector<2x8x18xf32>
    %42 = vector.shape_cast %37 : vector<8x144xf32> to vector<1x8x144xf32>
    %43 = tpu.concatenate %2, %2, %2, %2, %2, %2, %2, %2 in 2 : vector<2x8x18xf32>, vector<2x8x18xf32>, vector<2x8x18xf32>, vector<2x8x18xf32>, vector<2x8x18xf32>, vector<2x8x18xf32>, vector<2x8x18xf32>, vector<2x8x18xf32> -> vector<2x8x144xf32>
    %44 = vector.broadcast %42 : vector<1x8x144xf32> to vector<2x8x144xf32>
    %45 = arith.mulf %44, %43 : vector<2x8x144xf32>
    %46 = vector.shape_cast %37 : vector<8x144xf32> to vector<1x8x144xf32>
    %47 = tpu.concatenate %41, %41, %41, %41, %41, %41, %41, %41 in 2 : vector<2x8x18xf32>, vector<2x8x18xf32>, vector<2x8x18xf32>, vector<2x8x18xf32>, vector<2x8x18xf32>, vector<2x8x18xf32>, vector<2x8x18xf32>, vector<2x8x18xf32> -> vector<2x8x144xf32>
    %48 = vector.broadcast %46 : vector<1x8x144xf32> to vector<2x8x144xf32>
    %49 = arith.mulf %48, %47 : vector<2x8x144xf32>
    %50 = vector.shape_cast %35 : vector<8x8xf32> to vector<1x8x8xf32>
    %51 = vector.shape_cast %50 : vector<1x8x8xf32> to vector<1x8x8xf32>
    %52 = vector.broadcast %51 : vector<1x8x8xf32> to vector<2x8x8xf32>
    %53 = tpu.concatenate %52, %45, %49 in 2 : vector<2x8x8xf32>, vector<2x8x144xf32>, vector<2x8x144xf32> -> vector<2x8x296xf32>
    %54 = vector.shape_cast %53 : vector<2x8x296xf32> to vector<16x296xf32>
    %55 = arith.truncf %54 : vector<16x296xf32> to vector<16x296xbf16>
    %cst_29 = arith.constant dense<0.000000e+00> : vector<16x16xf32>
    %56 = tpu.matmul %55, %33, %cst_29 {dimension_numbers = #tpu.dot_dimension_numbers<[1], [0], [0], [1], [0, 0, 1, 1], [], []>} : vector<16x296xbf16>, vector<296x16xbf16>, vector<16x16xf32> -> vector<16x16xf32>
    %57 = vector.shape_cast %56 : vector<16x16xf32> to vector<2x8x16xf32>
    %58 = arith.negf %57 : vector<2x8x16xf32>
    %59 = math.exp %58 : vector<2x8x16xf32>
    %cst_30 = arith.constant 1.000000e+00 : f32
    %60 = vector.broadcast %cst_30 : f32 to vector<2x8x16xf32>
    %61 = arith.addf %60, %59 : vector<2x8x16xf32>
    %62 = arith.divf %60, %61 : vector<2x8x16xf32>
    %63 = arith.mulf %32, %1 : vector<2x8x16xf32>
    %64 = tpu.concatenate %0, %63 in 2 : vector<2x8x2xf32>, vector<2x8x16xf32> -> vector<2x8x18xf32>
    %c0_31 = arith.constant 0 : index
    %c0_32 = arith.constant 0 : index
    %65 = vector.load %arg7[%c0_31, %c0_32] : memref<296x16xbf16, #tpu.memory_space<vmem>>, vector<296x16xbf16>
    %c2 = arith.constant 2 : index
    %c0_33 = arith.constant 0 : index
    %c0_34 = arith.constant 0 : index
    %66 = vector.load %arg2[%c2, %c0_33, %c0_34] : memref<3x8x8xf32, #tpu.memory_space<vmem>>, vector<1x8x8xf32>
    %67 = vector.shape_cast %66 : vector<1x8x8xf32> to vector<8x8xf32>
    %c2_35 = arith.constant 2 : index
    %c0_36 = arith.constant 0 : index
    %c0_37 = arith.constant 0 : index
    %68 = vector.load %arg3[%c2_35, %c0_36, %c0_37] : memref<3x8x144xf32, #tpu.memory_space<vmem>>, vector<1x8x144xf32>
    %69 = vector.shape_cast %68 : vector<1x8x144xf32> to vector<8x144xf32>
    %c2_38 = arith.constant 2 : index
    %c0_39 = arith.constant 0 : index
    %c0_40 = arith.constant 0 : index
    %70 = vector.load %arg4[%c2_38, %c0_39, %c0_40] : memref<3x8x8xf32, #tpu.memory_space<vmem>>, vector<1x8x8xf32>
    %71 = vector.shape_cast %70 : vector<1x8x8xf32> to vector<8x8xf32>
    %cst_41 = arith.constant dense<0.000000e+00> : vector<2x18x8xf32>
    %72 = tpu.matmul %64, %71, %cst_41 {dimension_numbers = #tpu.dot_dimension_numbers<[1], [1], [0, 2], [0], [0, 0, 0, 2, 1, 0], [], []>} : vector<2x8x18xf32>, vector<8x8xf32>, vector<2x18x8xf32> -> vector<2x18x8xf32>
    %73 = tpu.transpose %72, [0, 2, 1] : vector<2x18x8xf32> -> vector<2x8x18xf32>
    %74 = vector.shape_cast %69 : vector<8x144xf32> to vector<1x8x144xf32>
    %75 = tpu.concatenate %64, %64, %64, %64, %64, %64, %64, %64 in 2 : vector<2x8x18xf32>, vector<2x8x18xf32>, vector<2x8x18xf32>, vector<2x8x18xf32>, vector<2x8x18xf32>, vector<2x8x18xf32>, vector<2x8x18xf32>, vector<2x8x18xf32> -> vector<2x8x144xf32>
    %76 = vector.broadcast %74 : vector<1x8x144xf32> to vector<2x8x144xf32>
    %77 = arith.mulf %76, %75 : vector<2x8x144xf32>
    %78 = vector.shape_cast %69 : vector<8x144xf32> to vector<1x8x144xf32>
    %79 = tpu.concatenate %73, %73, %73, %73, %73, %73, %73, %73 in 2 : vector<2x8x18xf32>, vector<2x8x18xf32>, vector<2x8x18xf32>, vector<2x8x18xf32>, vector<2x8x18xf32>, vector<2x8x18xf32>, vector<2x8x18xf32>, vector<2x8x18xf32> -> vector<2x8x144xf32>
    %80 = vector.broadcast %78 : vector<1x8x144xf32> to vector<2x8x144xf32>
    %81 = arith.mulf %80, %79 : vector<2x8x144xf32>
    %82 = vector.shape_cast %67 : vector<8x8xf32> to vector<1x8x8xf32>
    %83 = vector.shape_cast %82 : vector<1x8x8xf32> to vector<1x8x8xf32>
    %84 = vector.broadcast %83 : vector<1x8x8xf32> to vector<2x8x8xf32>
    %85 = tpu.concatenate %84, %77, %81 in 2 : vector<2x8x8xf32>, vector<2x8x144xf32>, vector<2x8x144xf32> -> vector<2x8x296xf32>
    %86 = vector.shape_cast %85 : vector<2x8x296xf32> to vector<16x296xf32>
    %87 = arith.truncf %86 : vector<16x296xf32> to vector<16x296xbf16>
    %cst_42 = arith.constant dense<0.000000e+00> : vector<16x16xf32>
    %88 = tpu.matmul %87, %65, %cst_42 {dimension_numbers = #tpu.dot_dimension_numbers<[1], [0], [0], [1], [0, 0, 1, 1], [], []>} : vector<16x296xbf16>, vector<296x16xbf16>, vector<16x16xf32> -> vector<16x16xf32>
    %89 = vector.shape_cast %88 : vector<16x16xf32> to vector<2x8x16xf32>
    %90 = math.tanh %89 : vector<2x8x16xf32>
    %91 = arith.mulf %62, %1 : vector<2x8x16xf32>
    %cst_43 = arith.constant 1.000000e+00 : f32
    %92 = vector.broadcast %cst_43 : f32 to vector<2x8x16xf32>
    %93 = arith.subf %92, %62 : vector<2x8x16xf32>
    %94 = arith.mulf %93, %90 : vector<2x8x16xf32>
    %95 = arith.addf %91, %94 : vector<2x8x16xf32>
    %c0_44 = arith.constant 0 : index
    %c0_45 = arith.constant 0 : index
    %c0_46 = arith.constant 0 : index
    %96 = vector.load %arg8[%c0_44, %c0_45, %c0_46] : memref<2x8x16xf32, #tpu.memory_space<vmem>>, vector<2x8x16xf32>
    tpu.vector_store %arg8[%c0_44, %c0_45, %c0_46], %95 {strides = array<i32>} : memref<2x8x16xf32, #tpu.memory_space<vmem>>, vector<2x8x16xf32>,
    return
  }
}

module attributes {stable_mosaic.version = 11 : i64} {
  func.func @_gat_kernel(%arg0: i32, %arg1: memref<1x8x2xf32, #tpu.memory_space<vmem>>, %arg2: memref<1x8x2xf32, #tpu.memory_space<vmem>>, %arg3: memref<1x8x16xf32, #tpu.memory_space<vmem>>, %arg4: memref<2x256xbf16, #tpu.memory_space<vmem>>, %arg5: memref<1x256xf32, #tpu.memory_space<vmem>>, %arg6: memref<1x256xf32, #tpu.memory_space<vmem>>, %arg7: memref<16x16xf32, #tpu.memory_space<vmem>>, %arg8: memref<256x256xbf16, #tpu.memory_space<vmem>>, %arg9: memref<256x256xbf16, #tpu.memory_space<vmem>>, %arg10: memref<1x256xf32, #tpu.memory_space<vmem>>, %arg11: memref<256x16xbf16, #tpu.memory_space<vmem>>, %arg12: memref<1x16xf32, #tpu.memory_space<vmem>>, %arg13: memref<1x16xf32, #tpu.memory_space<vmem>>, %arg14: memref<1x16xf32, #tpu.memory_space<vmem>>, %arg15: memref<1x8x16xf32, #tpu.memory_space<vmem>>) attributes {dimension_semantics = [#tpu.dimension_semantics<parallel>], iteration_bounds = array<i64: 2>, scalar_prefetch = 0 : i64, scratch_operands = 0 : i64, tpu.core_type = #tpu.core_type<tc>, window_params = [{transform_indices = @transform_0, window_bounds = array<i64: 1, 8, 2>}, {transform_indices = @transform_1, window_bounds = array<i64: 1, 8, 2>}, {transform_indices = @transform_2, window_bounds = array<i64: 1, 8, 16>}, {pipeline_mode = #tpu.pipeline_mode<synchronous>, transform_indices = @transform_3, window_bounds = array<i64: 2, 256>}, {pipeline_mode = #tpu.pipeline_mode<synchronous>, transform_indices = @transform_4, window_bounds = array<i64: 1, 256>}, {pipeline_mode = #tpu.pipeline_mode<synchronous>, transform_indices = @transform_5, window_bounds = array<i64: 1, 256>}, {pipeline_mode = #tpu.pipeline_mode<synchronous>, transform_indices = @transform_6, window_bounds = array<i64: 16, 16>}, {pipeline_mode = #tpu.pipeline_mode<synchronous>, transform_indices = @transform_7, window_bounds = array<i64: 256, 256>}, {pipeline_mode = #tpu.pipeline_mode<synchronous>, transform_indices = @transform_8, window_bounds = array<i64: 256, 256>}, {pipeline_mode = #tpu.pipeline_mode<synchronous>, transform_indices = @transform_9, window_bounds = array<i64: 1, 256>}, {pipeline_mode = #tpu.pipeline_mode<synchronous>, transform_indices = @transform_10, window_bounds = array<i64: 256, 16>}, {pipeline_mode = #tpu.pipeline_mode<synchronous>, transform_indices = @transform_11, window_bounds = array<i64: 1, 16>}, {pipeline_mode = #tpu.pipeline_mode<synchronous>, transform_indices = @transform_12, window_bounds = array<i64: 1, 16>}, {pipeline_mode = #tpu.pipeline_mode<synchronous>, transform_indices = @transform_13, window_bounds = array<i64: 1, 16>}, {transform_indices = @transform_14, window_bounds = array<i64: 1, 8, 16>}]} {
    %c0 = arith.constant 0 : index
    %c0_0 = arith.constant 0 : index
    %c0_1 = arith.constant 0 : index
    %0 = vector.load %arg1[%c0, %c0_0, %c0_1] : memref<1x8x2xf32, #tpu.memory_space<vmem>>, vector<1x8x2xf32>
    %c0_2 = arith.constant 0 : index
    %c0_3 = arith.constant 0 : index
    %c0_4 = arith.constant 0 : index
    %1 = vector.load %arg2[%c0_2, %c0_3, %c0_4] : memref<1x8x2xf32, #tpu.memory_space<vmem>>, vector<1x8x2xf32>
    %c0_5 = arith.constant 0 : index
    %c0_6 = arith.constant 0 : index
    %2 = vector.load %arg4[%c0_5, %c0_6] : memref<2x256xbf16, #tpu.memory_space<vmem>>, vector<2x256xbf16>
    %3 = vector.shape_cast %1 : vector<1x8x2xf32> to vector<8x2xf32>
    %4 = arith.truncf %3 : vector<8x2xf32> to vector<8x2xbf16>
    %cst = arith.constant dense<0.000000e+00> : vector<8x256xf32>
    %5 = tpu.matmul %4, %2, %cst {dimension_numbers = #tpu.dot_dimension_numbers<[1], [0], [0], [1], [0, 0, 1, 1], [], []>} : vector<8x2xbf16>, vector<2x256xbf16>, vector<8x256xf32> -> vector<8x256xf32>
    %6 = vector.shape_cast %5 : vector<8x256xf32> to vector<1x8x256xf32>
    %c0_7 = arith.constant 0 : index
    %c0_8 = arith.constant 0 : index
    %7 = vector.load %arg4[%c0_7, %c0_8] : memref<2x256xbf16, #tpu.memory_space<vmem>>, vector<2x256xbf16>
    %8 = vector.shape_cast %0 : vector<1x8x2xf32> to vector<8x2xf32>
    %9 = arith.truncf %8 : vector<8x2xf32> to vector<8x2xbf16>
    %cst_9 = arith.constant dense<0.000000e+00> : vector<8x256xf32>
    %10 = tpu.matmul %9, %7, %cst_9 {dimension_numbers = #tpu.dot_dimension_numbers<[1], [0], [0], [1], [0, 0, 1, 1], [], []>} : vector<8x2xbf16>, vector<2x256xbf16>, vector<8x256xf32> -> vector<8x256xf32>
    %11 = vector.shape_cast %10 : vector<8x256xf32> to vector<1x8x256xf32>
    %12 = tpu.concatenate %6, %11 in 1 : vector<1x8x256xf32>, vector<1x8x256xf32> -> vector<1x16x256xf32>
    %c0_10 = arith.constant 0 : index
    %c0_11 = arith.constant 0 : index
    %13 = vector.load %arg5[%c0_10, %c0_11] : memref<1x256xf32, #tpu.memory_space<vmem>>, vector<1x256xf32>
    %14 = vector.shape_cast %13 : vector<1x256xf32> to vector<1x1x256xf32>
    %15 = vector.broadcast %14 : vector<1x1x256xf32> to vector<1x16x256xf32>
    %16 = arith.mulf %12, %15 : vector<1x16x256xf32>
    %cst_12 = arith.constant dense<0.000000e+00> : vector<1x16xf32>
    %17 = vector.multi_reduction <add>, %16, %cst_12 [2] : vector<1x16x256xf32> to vector<1x16xf32>
    %c0_13 = arith.constant 0 : index
    %c0_14 = arith.constant 0 : index
    %18 = vector.load %arg6[%c0_13, %c0_14] : memref<1x256xf32, #tpu.memory_space<vmem>>, vector<1x256xf32>
    %19 = vector.shape_cast %18 : vector<1x256xf32> to vector<1x1x256xf32>
    %20 = vector.broadcast %19 : vector<1x1x256xf32> to vector<1x16x256xf32>
    %21 = arith.mulf %12, %20 : vector<1x16x256xf32>
    %cst_15 = arith.constant dense<0.000000e+00> : vector<1x16xf32>
    %22 = vector.multi_reduction <add>, %21, %cst_15 [2] : vector<1x16x256xf32> to vector<1x16xf32>
    %23 = vector.shape_cast %22 : vector<1x16xf32> to vector<1x16x1xf32>
    %24 = vector.shape_cast %17 : vector<1x16xf32> to vector<1x1x16xf32>
    %25 = vector.broadcast %23 : vector<1x16x1xf32> to vector<1x16x16xf32>
    %26 = vector.broadcast %24 : vector<1x1x16xf32> to vector<1x16x16xf32>
    %27 = arith.addf %25, %26 : vector<1x16x16xf32>
    %cst_16 = arith.constant 0.000000e+00 : f32
    %28 = vector.broadcast %cst_16 : f32 to vector<1x16x16xf32>
    %29 = arith.cmpf ogt, %27, %28 : vector<1x16x16xf32>
    %cst_17 = arith.constant 2.000000e-01 : f32
    %30 = vector.broadcast %cst_17 : f32 to vector<1x16x16xf32>
    %31 = arith.mulf %30, %27 : vector<1x16x16xf32>
    %32 = arith.select %29, %27, %31 : vector<1x16x16xi1>, vector<1x16x16xf32>
    %c0_18 = arith.constant 0 : index
    %c0_19 = arith.constant 0 : index
    %33 = vector.load %arg7[%c0_18, %c0_19] : memref<16x16xf32, #tpu.memory_space<vmem>>, vector<16x16xf32>
    %34 = vector.shape_cast %33 : vector<16x16xf32> to vector<1x16x16xf32>
    %35 = arith.addf %32, %34 : vector<1x16x16xf32>
    %cst_20 = arith.constant dense<0xFF800000> : vector<1x16xf32>
    %36 = vector.multi_reduction <maximumf>, %35, %cst_20 [2] : vector<1x16x16xf32> to vector<1x16xf32>
    %37 = vector.shape_cast %36 : vector<1x16xf32> to vector<1x16x1xf32>
    %38 = vector.broadcast %37 : vector<1x16x1xf32> to vector<1x16x16xf32>
    %39 = arith.subf %35, %38 : vector<1x16x16xf32>
    %40 = math.exp %39 : vector<1x16x16xf32>
    %cst_21 = arith.constant dense<0.000000e+00> : vector<1x16xf32>
    %41 = vector.multi_reduction <add>, %40, %cst_21 [2] : vector<1x16x16xf32> to vector<1x16xf32>
    %42 = vector.shape_cast %41 : vector<1x16xf32> to vector<1x16x1xf32>
    %43 = vector.broadcast %42 : vector<1x16x1xf32> to vector<1x16x16xf32>
    %44 = arith.divf %40, %43 : vector<1x16x16xf32>
    %45 = arith.truncf %44 : vector<1x16x16xf32> to vector<1x16x16xbf16>
    %46 = arith.truncf %12 : vector<1x16x256xf32> to vector<1x16x256xbf16>
    %cst_22 = arith.constant dense<0.000000e+00> : vector<1x16x256xf32>
    %47 = tpu.matmul %45, %46, %cst_22 {dimension_numbers = #tpu.dot_dimension_numbers<[1], [1], [2], [2], [0, 0, 0, 2, 1, 2], [0], [0]>} : vector<1x16x16xbf16>, vector<1x16x256xbf16>, vector<1x16x256xf32> -> vector<1x16x256xf32>
    %cst_23 = arith.constant 0.000000e+00 : f32
    %48 = vector.broadcast %cst_23 : f32 to vector<1x16x256xf32>
    %49 = arith.cmpf ogt, %47, %48 : vector<1x16x256xf32>
    %cst_24 = arith.constant 0.000000e+00 : f32
    %50 = vector.broadcast %cst_24 : f32 to vector<1x16x256xf32>
    %51 = arith.minimumf %47, %50 : vector<1x16x256xf32>
    %52 = math.exp %51 : vector<1x16x256xf32>
    %cst_25 = arith.constant 1.000000e+00 : f32
    %53 = vector.broadcast %cst_25 : f32 to vector<1x16x256xf32>
    %54 = arith.subf %52, %53 : vector<1x16x256xf32>
    %55 = arith.select %49, %47, %54 : vector<1x16x256xi1>, vector<1x16x256xf32>
    %56 = vector.extract_strided_slice %55 {offsets = [0, 0, 0], sizes = [1, 8, 256], strides = [1, 1, 1]} : vector<1x16x256xf32> to vector<1x8x256xf32>
    %c0_26 = arith.constant 0 : index
    %c0_27 = arith.constant 0 : index
    %57 = vector.load %arg8[%c0_26, %c0_27] : memref<256x256xbf16, #tpu.memory_space<vmem>>, vector<256x256xbf16>
    %58 = vector.shape_cast %56 : vector<1x8x256xf32> to vector<8x256xf32>
    %59 = arith.truncf %58 : vector<8x256xf32> to vector<8x256xbf16>
    %cst_28 = arith.constant dense<0.000000e+00> : vector<8x256xf32>
    %60 = tpu.matmul %59, %57, %cst_28 {dimension_numbers = #tpu.dot_dimension_numbers<[1], [0], [0], [1], [0, 0, 1, 1], [], []>} : vector<8x256xbf16>, vector<256x256xbf16>, vector<8x256xf32> -> vector<8x256xf32>
    %61 = vector.shape_cast %60 : vector<8x256xf32> to vector<1x8x256xf32>
    %62 = vector.extract_strided_slice %55 {offsets = [0, 8, 0], sizes = [1, 8, 256], strides = [1, 1, 1]} : vector<1x16x256xf32> to vector<1x8x256xf32>
    %c0_29 = arith.constant 0 : index
    %c0_30 = arith.constant 0 : index
    %63 = vector.load %arg9[%c0_29, %c0_30] : memref<256x256xbf16, #tpu.memory_space<vmem>>, vector<256x256xbf16>
    %64 = vector.shape_cast %62 : vector<1x8x256xf32> to vector<8x256xf32>
    %65 = arith.truncf %64 : vector<8x256xf32> to vector<8x256xbf16>
    %cst_31 = arith.constant dense<0.000000e+00> : vector<8x256xf32>
    %66 = tpu.matmul %65, %63, %cst_31 {dimension_numbers = #tpu.dot_dimension_numbers<[1], [0], [0], [1], [0, 0, 1, 1], [], []>} : vector<8x256xbf16>, vector<256x256xbf16>, vector<8x256xf32> -> vector<8x256xf32>
    %67 = vector.shape_cast %66 : vector<8x256xf32> to vector<1x8x256xf32>
    %68 = arith.addf %61, %67 : vector<1x8x256xf32>
    %c0_32 = arith.constant 0 : index
    %c0_33 = arith.constant 0 : index
    %69 = vector.load %arg10[%c0_32, %c0_33] : memref<1x256xf32, #tpu.memory_space<vmem>>, vector<1x256xf32>
    %70 = vector.shape_cast %69 : vector<1x256xf32> to vector<1x1x256xf32>
    %71 = vector.broadcast %70 : vector<1x1x256xf32> to vector<1x8x256xf32>
    %72 = arith.addf %68, %71 : vector<1x8x256xf32>
    %cst_34 = arith.constant 5.000000e-01 : f32
    %73 = vector.broadcast %cst_34 : f32 to vector<1x8x256xf32>
    %74 = arith.mulf %73, %72 : vector<1x8x256xf32>
    %cst_35 = arith.constant 4.471500e-02 : f32
    %75 = vector.broadcast %cst_35 : f32 to vector<1x8x256xf32>
    %76 = arith.mulf %75, %72 : vector<1x8x256xf32>
    %77 = arith.mulf %76, %72 : vector<1x8x256xf32>
    %78 = arith.mulf %77, %72 : vector<1x8x256xf32>
    %79 = arith.addf %72, %78 : vector<1x8x256xf32>
    %cst_36 = arith.constant 0.797884583 : f32
    %80 = vector.broadcast %cst_36 : f32 to vector<1x8x256xf32>
    %81 = arith.mulf %80, %79 : vector<1x8x256xf32>
    %82 = math.tanh %81 : vector<1x8x256xf32>
    %cst_37 = arith.constant 1.000000e+00 : f32
    %83 = vector.broadcast %cst_37 : f32 to vector<1x8x256xf32>
    %84 = arith.addf %83, %82 : vector<1x8x256xf32>
    %85 = arith.mulf %74, %84 : vector<1x8x256xf32>
    %c0_38 = arith.constant 0 : index
    %c0_39 = arith.constant 0 : index
    %86 = vector.load %arg11[%c0_38, %c0_39] : memref<256x16xbf16, #tpu.memory_space<vmem>>, vector<256x16xbf16>
    %87 = vector.shape_cast %85 : vector<1x8x256xf32> to vector<8x256xf32>
    %88 = arith.truncf %87 : vector<8x256xf32> to vector<8x256xbf16>
    %cst_40 = arith.constant dense<0.000000e+00> : vector<8x16xf32>
    %89 = tpu.matmul %88, %86, %cst_40 {dimension_numbers = #tpu.dot_dimension_numbers<[1], [0], [0], [1], [0, 0, 1, 1], [], []>} : vector<8x256xbf16>, vector<256x16xbf16>, vector<8x16xf32> -> vector<8x16xf32>
    %90 = vector.shape_cast %89 : vector<8x16xf32> to vector<1x8x16xf32>
    %c0_41 = arith.constant 0 : index
    %c0_42 = arith.constant 0 : index
    %91 = vector.load %arg12[%c0_41, %c0_42] : memref<1x16xf32, #tpu.memory_space<vmem>>, vector<1x16xf32>
    %92 = vector.shape_cast %91 : vector<1x16xf32> to vector<1x1x16xf32>
    %93 = vector.broadcast %92 : vector<1x1x16xf32> to vector<1x8x16xf32>
    %94 = arith.addf %90, %93 : vector<1x8x16xf32>
    %95 = math.absf %94 : vector<1x8x16xf32>
    %c0_43 = arith.constant 0 : index
    %c0_44 = arith.constant 0 : index
    %c0_45 = arith.constant 0 : index
    %96 = vector.load %arg3[%c0_43, %c0_44, %c0_45] : memref<1x8x16xf32, #tpu.memory_space<vmem>>, vector<1x8x16xf32>
    %97 = arith.addf %96, %95 : vector<1x8x16xf32>
    %cst_46 = arith.constant dense<0.000000e+00> : vector<1x8xf32>
    %98 = vector.multi_reduction <add>, %97, %cst_46 [2] : vector<1x8x16xf32> to vector<1x8xf32>
    %99 = vector.shape_cast %98 : vector<1x8xf32> to vector<1x8x1xf32>
    %cst_47 = arith.constant 1.600000e+01 : f32
    %100 = vector.broadcast %cst_47 : f32 to vector<1x8x1xf32>
    %101 = arith.divf %99, %100 : vector<1x8x1xf32>
    %102 = vector.broadcast %101 : vector<1x8x1xf32> to vector<1x8x16xf32>
    %103 = arith.subf %97, %102 : vector<1x8x16xf32>
    %104 = arith.mulf %103, %103 : vector<1x8x16xf32>
    %cst_48 = arith.constant dense<0.000000e+00> : vector<1x8xf32>
    %105 = vector.multi_reduction <add>, %104, %cst_48 [2] : vector<1x8x16xf32> to vector<1x8xf32>
    %106 = vector.shape_cast %105 : vector<1x8xf32> to vector<1x8x1xf32>
    %cst_49 = arith.constant 1.600000e+01 : f32
    %107 = vector.broadcast %cst_49 : f32 to vector<1x8x1xf32>
    %108 = arith.divf %106, %107 : vector<1x8x1xf32>
    %109 = vector.broadcast %101 : vector<1x8x1xf32> to vector<1x8x16xf32>
    %110 = arith.subf %97, %109 : vector<1x8x16xf32>
    %cst_50 = arith.constant 9.99999974E-6 : f32
    %111 = vector.broadcast %cst_50 : f32 to vector<1x8x1xf32>
    %112 = arith.addf %108, %111 : vector<1x8x1xf32>
    %113 = math.rsqrt %112 : vector<1x8x1xf32>
    %114 = vector.broadcast %113 : vector<1x8x1xf32> to vector<1x8x16xf32>
    %115 = arith.mulf %110, %114 : vector<1x8x16xf32>
    %c0_51 = arith.constant 0 : index
    %c0_52 = arith.constant 0 : index
    %116 = vector.load %arg13[%c0_51, %c0_52] : memref<1x16xf32, #tpu.memory_space<vmem>>, vector<1x16xf32>
    %117 = vector.shape_cast %116 : vector<1x16xf32> to vector<1x1x16xf32>
    %118 = vector.broadcast %117 : vector<1x1x16xf32> to vector<1x8x16xf32>
    %119 = arith.mulf %115, %118 : vector<1x8x16xf32>
    %c0_53 = arith.constant 0 : index
    %c0_54 = arith.constant 0 : index
    %120 = vector.load %arg14[%c0_53, %c0_54] : memref<1x16xf32, #tpu.memory_space<vmem>>, vector<1x16xf32>
    %121 = vector.shape_cast %120 : vector<1x16xf32> to vector<1x1x16xf32>
    %122 = vector.broadcast %121 : vector<1x1x16xf32> to vector<1x8x16xf32>
    %123 = arith.addf %119, %122 : vector<1x8x16xf32>
    %c0_55 = arith.constant 0 : index
    %c0_56 = arith.constant 0 : index
    %c0_57 = arith.constant 0 : index
    %124 = vector.load %arg15[%c0_55, %c0_56, %c0_57] : memref<1x8x16xf32, #tpu.memory_space<vmem>>, vector<1x8x16xf32>
    tpu.vector_store %arg15[%c0_55, %c0_56, %c0_57], %123 {strides = array<i32>} : memref<1x8x16xf32, #tpu.memory_space<vmem>>, vector<1x8x16xf32>,
    return
  }
  func.func @transform_0(%arg0: i32) -> (i32, i32, i32) {
    %c0_i32 = arith.constant 0 : i32
    %c0_i32_0 = arith.constant 0 : i32
    %c0_i32_1 = arith.constant 0 : i32
    return %arg0, %c0_i32, %c0_i32_0 : i32, i32, i32
  }
  func.func @transform_1(%arg0: i32) -> (i32, i32, i32) {
    %c0_i32 = arith.constant 0 : i32
    %c0_i32_0 = arith.constant 0 : i32
    %c0_i32_1 = arith.constant 0 : i32
    return %arg0, %c0_i32, %c0_i32_0 : i32, i32, i32
  }
  func.func @transform_2(%arg0: i32) -> (i32, i32, i32) {
    %c0_i32 = arith.constant 0 : i32
    %c0_i32_0 = arith.constant 0 : i32
    %c0_i32_1 = arith.constant 0 : i32
    return %arg0, %c0_i32, %c0_i32_0 : i32, i32, i32
  }
  func.func @transform_3(%arg0: i32) -> (i32, i32) {
    %c0_i32 = arith.constant 0 : i32
    %c0_i32_0 = arith.constant 0 : i32
    %c0_i32_1 = arith.constant 0 : i32
    return %c0_i32, %c0_i32_0 : i32, i32
  }
  func.func @transform_4(%arg0: i32) -> (i32, i32) {
    %c0_i32 = arith.constant 0 : i32
    %c0_i32_0 = arith.constant 0 : i32
    %c0_i32_1 = arith.constant 0 : i32
    return %c0_i32, %c0_i32_0 : i32, i32
  }
  func.func @transform_5(%arg0: i32) -> (i32, i32) {
    %c0_i32 = arith.constant 0 : i32
    %c0_i32_0 = arith.constant 0 : i32
    %c0_i32_1 = arith.constant 0 : i32
    return %c0_i32, %c0_i32_0 : i32, i32
  }
  func.func @transform_6(%arg0: i32) -> (i32, i32) {
    %c0_i32 = arith.constant 0 : i32
    %c0_i32_0 = arith.constant 0 : i32
    %c0_i32_1 = arith.constant 0 : i32
    return %c0_i32, %c0_i32_0 : i32, i32
  }
  func.func @transform_7(%arg0: i32) -> (i32, i32) {
    %c0_i32 = arith.constant 0 : i32
    %c0_i32_0 = arith.constant 0 : i32
    %c0_i32_1 = arith.constant 0 : i32
    return %c0_i32, %c0_i32_0 : i32, i32
  }
  func.func @transform_8(%arg0: i32) -> (i32, i32) {
    %c0_i32 = arith.constant 0 : i32
    %c0_i32_0 = arith.constant 0 : i32
    %c0_i32_1 = arith.constant 0 : i32
    return %c0_i32, %c0_i32_0 : i32, i32
  }
  func.func @transform_9(%arg0: i32) -> (i32, i32) {
    %c0_i32 = arith.constant 0 : i32
    %c0_i32_0 = arith.constant 0 : i32
    %c0_i32_1 = arith.constant 0 : i32
    return %c0_i32, %c0_i32_0 : i32, i32
  }
  func.func @transform_10(%arg0: i32) -> (i32, i32) {
    %c0_i32 = arith.constant 0 : i32
    %c0_i32_0 = arith.constant 0 : i32
    %c0_i32_1 = arith.constant 0 : i32
    return %c0_i32, %c0_i32_0 : i32, i32
  }
  func.func @transform_11(%arg0: i32) -> (i32, i32) {
    %c0_i32 = arith.constant 0 : i32
    %c0_i32_0 = arith.constant 0 : i32
    %c0_i32_1 = arith.constant 0 : i32
    return %c0_i32, %c0_i32_0 : i32, i32
  }
  func.func @transform_12(%arg0: i32) -> (i32, i32) {
    %c0_i32 = arith.constant 0 : i32
    %c0_i32_0 = arith.constant 0 : i32
    %c0_i32_1 = arith.constant 0 : i32
    return %c0_i32, %c0_i32_0 : i32, i32
  }
  func.func @transform_13(%arg0: i32) -> (i32, i32) {
    %c0_i32 = arith.constant 0 : i32
    %c0_i32_0 = arith.constant 0 : i32
    %c0_i32_1 = arith.constant 0 : i32
    return %c0_i32, %c0_i32_0 : i32, i32
  }
  func.func @transform_14(%arg0: i32) -> (i32, i32, i32) {
    %c0_i32 = arith.constant 0 : i32
    %c0_i32_0 = arith.constant 0 : i32
    %c0_i32_1 = arith.constant 0 : i32
    return %arg0, %c0_i32, %c0_i32_0 : i32, i32, i32
  }
}

module attributes {stable_mosaic.version = 11 : i64} {
  func.func @_gru_kernel(%arg0: memref<2x8x16xf32, #tpu.memory_space<vmem>>, %arg1: memref<2x8x16xf32, #tpu.memory_space<vmem>>, %arg2: memref<3x8x8xf32, #tpu.memory_space<vmem>>, %arg3: memref<3x8x256xf32, #tpu.memory_space<vmem>>, %arg4: memref<3x8x8xf32, #tpu.memory_space<vmem>>, %arg5: memref<520x16xbf16, #tpu.memory_space<vmem>>, %arg6: memref<520x16xbf16, #tpu.memory_space<vmem>>, %arg7: memref<520x16xbf16, #tpu.memory_space<vmem>>, %arg8: memref<2x8x16xf32, #tpu.memory_space<vmem>>) attributes {dimension_semantics = [], scalar_prefetch = 0 : i64, scratch_operands = 0 : i64, tpu.core_type = #tpu.core_type<tc>} {
    %c0 = arith.constant 0 : index
    %c0_0 = arith.constant 0 : index
    %c0_1 = arith.constant 0 : index
    %0 = vector.load %arg0[%c0, %c0_0, %c0_1] : memref<2x8x16xf32, #tpu.memory_space<vmem>>, vector<2x8x16xf32>
    %c0_2 = arith.constant 0 : index
    %c0_3 = arith.constant 0 : index
    %c0_4 = arith.constant 0 : index
    %1 = vector.load %arg1[%c0_2, %c0_3, %c0_4] : memref<2x8x16xf32, #tpu.memory_space<vmem>>, vector<2x8x16xf32>
    %2 = tpu.concatenate %0, %1 in 2 : vector<2x8x16xf32>, vector<2x8x16xf32> -> vector<2x8x32xf32>
    %c0_5 = arith.constant 0 : index
    %c0_6 = arith.constant 0 : index
    %3 = vector.load %arg5[%c0_5, %c0_6] : memref<520x16xbf16, #tpu.memory_space<vmem>>, vector<520x16xbf16>
    %c0_7 = arith.constant 0 : index
    %c0_8 = arith.constant 0 : index
    %c0_9 = arith.constant 0 : index
    %4 = vector.load %arg2[%c0_7, %c0_8, %c0_9] : memref<3x8x8xf32, #tpu.memory_space<vmem>>, vector<1x8x8xf32>
    %5 = vector.shape_cast %4 : vector<1x8x8xf32> to vector<8x8xf32>
    %c0_10 = arith.constant 0 : index
    %c0_11 = arith.constant 0 : index
    %c0_12 = arith.constant 0 : index
    %6 = vector.load %arg3[%c0_10, %c0_11, %c0_12] : memref<3x8x256xf32, #tpu.memory_space<vmem>>, vector<1x8x256xf32>
    %7 = vector.shape_cast %6 : vector<1x8x256xf32> to vector<8x256xf32>
    %c0_13 = arith.constant 0 : index
    %c0_14 = arith.constant 0 : index
    %c0_15 = arith.constant 0 : index
    %8 = vector.load %arg4[%c0_13, %c0_14, %c0_15] : memref<3x8x8xf32, #tpu.memory_space<vmem>>, vector<1x8x8xf32>
    %9 = vector.shape_cast %8 : vector<1x8x8xf32> to vector<8x8xf32>
    %cst = arith.constant dense<0.000000e+00> : vector<2x32x8xf32>
    %10 = tpu.matmul %2, %9, %cst {dimension_numbers = #tpu.dot_dimension_numbers<[1], [1], [0, 2], [0], [0, 0, 0, 2, 1, 0], [], []>} : vector<2x8x32xf32>, vector<8x8xf32>, vector<2x32x8xf32> -> vector<2x32x8xf32>
    %11 = tpu.transpose %10, [0, 2, 1] : vector<2x32x8xf32> -> vector<2x8x32xf32>
    %12 = vector.shape_cast %7 : vector<8x256xf32> to vector<1x8x256xf32>
    %13 = tpu.concatenate %2, %2, %2, %2, %2, %2, %2, %2 in 2 : vector<2x8x32xf32>, vector<2x8x32xf32>, vector<2x8x32xf32>, vector<2x8x32xf32>, vector<2x8x32xf32>, vector<2x8x32xf32>, vector<2x8x32xf32>, vector<2x8x32xf32> -> vector<2x8x256xf32>
    %14 = vector.broadcast %12 : vector<1x8x256xf32> to vector<2x8x256xf32>
    %15 = arith.mulf %14, %13 : vector<2x8x256xf32>
    %16 = vector.shape_cast %7 : vector<8x256xf32> to vector<1x8x256xf32>
    %17 = tpu.concatenate %11, %11, %11, %11, %11, %11, %11, %11 in 2 : vector<2x8x32xf32>, vector<2x8x32xf32>, vector<2x8x32xf32>, vector<2x8x32xf32>, vector<2x8x32xf32>, vector<2x8x32xf32>, vector<2x8x32xf32>, vector<2x8x32xf32> -> vector<2x8x256xf32>
    %18 = vector.broadcast %16 : vector<1x8x256xf32> to vector<2x8x256xf32>
    %19 = arith.mulf %18, %17 : vector<2x8x256xf32>
    %20 = vector.shape_cast %5 : vector<8x8xf32> to vector<1x8x8xf32>
    %21 = vector.shape_cast %20 : vector<1x8x8xf32> to vector<1x8x8xf32>
    %22 = vector.broadcast %21 : vector<1x8x8xf32> to vector<2x8x8xf32>
    %23 = tpu.concatenate %22, %15, %19 in 2 : vector<2x8x8xf32>, vector<2x8x256xf32>, vector<2x8x256xf32> -> vector<2x8x520xf32>
    %24 = vector.shape_cast %23 : vector<2x8x520xf32> to vector<16x520xf32>
    %25 = arith.truncf %24 : vector<16x520xf32> to vector<16x520xbf16>
    %cst_16 = arith.constant dense<0.000000e+00> : vector<16x16xf32>
    %26 = tpu.matmul %25, %3, %cst_16 {dimension_numbers = #tpu.dot_dimension_numbers<[1], [0], [0], [1], [0, 0, 1, 1], [], []>} : vector<16x520xbf16>, vector<520x16xbf16>, vector<16x16xf32> -> vector<16x16xf32>
    %27 = vector.shape_cast %26 : vector<16x16xf32> to vector<2x8x16xf32>
    %28 = arith.negf %27 : vector<2x8x16xf32>
    %29 = math.exp %28 : vector<2x8x16xf32>
    %cst_17 = arith.constant 1.000000e+00 : f32
    %30 = vector.broadcast %cst_17 : f32 to vector<2x8x16xf32>
    %31 = arith.addf %30, %29 : vector<2x8x16xf32>
    %32 = arith.divf %30, %31 : vector<2x8x16xf32>
    %c0_18 = arith.constant 0 : index
    %c0_19 = arith.constant 0 : index
    %33 = vector.load %arg6[%c0_18, %c0_19] : memref<520x16xbf16, #tpu.memory_space<vmem>>, vector<520x16xbf16>
    %c1 = arith.constant 1 : index
    %c0_20 = arith.constant 0 : index
    %c0_21 = arith.constant 0 : index
    %34 = vector.load %arg2[%c1, %c0_20, %c0_21] : memref<3x8x8xf32, #tpu.memory_space<vmem>>, vector<1x8x8xf32>
    %35 = vector.shape_cast %34 : vector<1x8x8xf32> to vector<8x8xf32>
    %c1_22 = arith.constant 1 : index
    %c0_23 = arith.constant 0 : index
    %c0_24 = arith.constant 0 : index
    %36 = vector.load %arg3[%c1_22, %c0_23, %c0_24] : memref<3x8x256xf32, #tpu.memory_space<vmem>>, vector<1x8x256xf32>
    %37 = vector.shape_cast %36 : vector<1x8x256xf32> to vector<8x256xf32>
    %c1_25 = arith.constant 1 : index
    %c0_26 = arith.constant 0 : index
    %c0_27 = arith.constant 0 : index
    %38 = vector.load %arg4[%c1_25, %c0_26, %c0_27] : memref<3x8x8xf32, #tpu.memory_space<vmem>>, vector<1x8x8xf32>
    %39 = vector.shape_cast %38 : vector<1x8x8xf32> to vector<8x8xf32>
    %cst_28 = arith.constant dense<0.000000e+00> : vector<2x32x8xf32>
    %40 = tpu.matmul %2, %39, %cst_28 {dimension_numbers = #tpu.dot_dimension_numbers<[1], [1], [0, 2], [0], [0, 0, 0, 2, 1, 0], [], []>} : vector<2x8x32xf32>, vector<8x8xf32>, vector<2x32x8xf32> -> vector<2x32x8xf32>
    %41 = tpu.transpose %40, [0, 2, 1] : vector<2x32x8xf32> -> vector<2x8x32xf32>
    %42 = vector.shape_cast %37 : vector<8x256xf32> to vector<1x8x256xf32>
    %43 = tpu.concatenate %2, %2, %2, %2, %2, %2, %2, %2 in 2 : vector<2x8x32xf32>, vector<2x8x32xf32>, vector<2x8x32xf32>, vector<2x8x32xf32>, vector<2x8x32xf32>, vector<2x8x32xf32>, vector<2x8x32xf32>, vector<2x8x32xf32> -> vector<2x8x256xf32>
    %44 = vector.broadcast %42 : vector<1x8x256xf32> to vector<2x8x256xf32>
    %45 = arith.mulf %44, %43 : vector<2x8x256xf32>
    %46 = vector.shape_cast %37 : vector<8x256xf32> to vector<1x8x256xf32>
    %47 = tpu.concatenate %41, %41, %41, %41, %41, %41, %41, %41 in 2 : vector<2x8x32xf32>, vector<2x8x32xf32>, vector<2x8x32xf32>, vector<2x8x32xf32>, vector<2x8x32xf32>, vector<2x8x32xf32>, vector<2x8x32xf32>, vector<2x8x32xf32> -> vector<2x8x256xf32>
    %48 = vector.broadcast %46 : vector<1x8x256xf32> to vector<2x8x256xf32>
    %49 = arith.mulf %48, %47 : vector<2x8x256xf32>
    %50 = vector.shape_cast %35 : vector<8x8xf32> to vector<1x8x8xf32>
    %51 = vector.shape_cast %50 : vector<1x8x8xf32> to vector<1x8x8xf32>
    %52 = vector.broadcast %51 : vector<1x8x8xf32> to vector<2x8x8xf32>
    %53 = tpu.concatenate %52, %45, %49 in 2 : vector<2x8x8xf32>, vector<2x8x256xf32>, vector<2x8x256xf32> -> vector<2x8x520xf32>
    %54 = vector.shape_cast %53 : vector<2x8x520xf32> to vector<16x520xf32>
    %55 = arith.truncf %54 : vector<16x520xf32> to vector<16x520xbf16>
    %cst_29 = arith.constant dense<0.000000e+00> : vector<16x16xf32>
    %56 = tpu.matmul %55, %33, %cst_29 {dimension_numbers = #tpu.dot_dimension_numbers<[1], [0], [0], [1], [0, 0, 1, 1], [], []>} : vector<16x520xbf16>, vector<520x16xbf16>, vector<16x16xf32> -> vector<16x16xf32>
    %57 = vector.shape_cast %56 : vector<16x16xf32> to vector<2x8x16xf32>
    %58 = arith.negf %57 : vector<2x8x16xf32>
    %59 = math.exp %58 : vector<2x8x16xf32>
    %cst_30 = arith.constant 1.000000e+00 : f32
    %60 = vector.broadcast %cst_30 : f32 to vector<2x8x16xf32>
    %61 = arith.addf %60, %59 : vector<2x8x16xf32>
    %62 = arith.divf %60, %61 : vector<2x8x16xf32>
    %63 = arith.mulf %32, %1 : vector<2x8x16xf32>
    %64 = tpu.concatenate %0, %63 in 2 : vector<2x8x16xf32>, vector<2x8x16xf32> -> vector<2x8x32xf32>
    %c0_31 = arith.constant 0 : index
    %c0_32 = arith.constant 0 : index
    %65 = vector.load %arg7[%c0_31, %c0_32] : memref<520x16xbf16, #tpu.memory_space<vmem>>, vector<520x16xbf16>
    %c2 = arith.constant 2 : index
    %c0_33 = arith.constant 0 : index
    %c0_34 = arith.constant 0 : index
    %66 = vector.load %arg2[%c2, %c0_33, %c0_34] : memref<3x8x8xf32, #tpu.memory_space<vmem>>, vector<1x8x8xf32>
    %67 = vector.shape_cast %66 : vector<1x8x8xf32> to vector<8x8xf32>
    %c2_35 = arith.constant 2 : index
    %c0_36 = arith.constant 0 : index
    %c0_37 = arith.constant 0 : index
    %68 = vector.load %arg3[%c2_35, %c0_36, %c0_37] : memref<3x8x256xf32, #tpu.memory_space<vmem>>, vector<1x8x256xf32>
    %69 = vector.shape_cast %68 : vector<1x8x256xf32> to vector<8x256xf32>
    %c2_38 = arith.constant 2 : index
    %c0_39 = arith.constant 0 : index
    %c0_40 = arith.constant 0 : index
    %70 = vector.load %arg4[%c2_38, %c0_39, %c0_40] : memref<3x8x8xf32, #tpu.memory_space<vmem>>, vector<1x8x8xf32>
    %71 = vector.shape_cast %70 : vector<1x8x8xf32> to vector<8x8xf32>
    %cst_41 = arith.constant dense<0.000000e+00> : vector<2x32x8xf32>
    %72 = tpu.matmul %64, %71, %cst_41 {dimension_numbers = #tpu.dot_dimension_numbers<[1], [1], [0, 2], [0], [0, 0, 0, 2, 1, 0], [], []>} : vector<2x8x32xf32>, vector<8x8xf32>, vector<2x32x8xf32> -> vector<2x32x8xf32>
    %73 = tpu.transpose %72, [0, 2, 1] : vector<2x32x8xf32> -> vector<2x8x32xf32>
    %74 = vector.shape_cast %69 : vector<8x256xf32> to vector<1x8x256xf32>
    %75 = tpu.concatenate %64, %64, %64, %64, %64, %64, %64, %64 in 2 : vector<2x8x32xf32>, vector<2x8x32xf32>, vector<2x8x32xf32>, vector<2x8x32xf32>, vector<2x8x32xf32>, vector<2x8x32xf32>, vector<2x8x32xf32>, vector<2x8x32xf32> -> vector<2x8x256xf32>
    %76 = vector.broadcast %74 : vector<1x8x256xf32> to vector<2x8x256xf32>
    %77 = arith.mulf %76, %75 : vector<2x8x256xf32>
    %78 = vector.shape_cast %69 : vector<8x256xf32> to vector<1x8x256xf32>
    %79 = tpu.concatenate %73, %73, %73, %73, %73, %73, %73, %73 in 2 : vector<2x8x32xf32>, vector<2x8x32xf32>, vector<2x8x32xf32>, vector<2x8x32xf32>, vector<2x8x32xf32>, vector<2x8x32xf32>, vector<2x8x32xf32>, vector<2x8x32xf32> -> vector<2x8x256xf32>
    %80 = vector.broadcast %78 : vector<1x8x256xf32> to vector<2x8x256xf32>
    %81 = arith.mulf %80, %79 : vector<2x8x256xf32>
    %82 = vector.shape_cast %67 : vector<8x8xf32> to vector<1x8x8xf32>
    %83 = vector.shape_cast %82 : vector<1x8x8xf32> to vector<1x8x8xf32>
    %84 = vector.broadcast %83 : vector<1x8x8xf32> to vector<2x8x8xf32>
    %85 = tpu.concatenate %84, %77, %81 in 2 : vector<2x8x8xf32>, vector<2x8x256xf32>, vector<2x8x256xf32> -> vector<2x8x520xf32>
    %86 = vector.shape_cast %85 : vector<2x8x520xf32> to vector<16x520xf32>
    %87 = arith.truncf %86 : vector<16x520xf32> to vector<16x520xbf16>
    %cst_42 = arith.constant dense<0.000000e+00> : vector<16x16xf32>
    %88 = tpu.matmul %87, %65, %cst_42 {dimension_numbers = #tpu.dot_dimension_numbers<[1], [0], [0], [1], [0, 0, 1, 1], [], []>} : vector<16x520xbf16>, vector<520x16xbf16>, vector<16x16xf32> -> vector<16x16xf32>
    %89 = vector.shape_cast %88 : vector<16x16xf32> to vector<2x8x16xf32>
    %90 = math.tanh %89 : vector<2x8x16xf32>
    %91 = arith.mulf %62, %1 : vector<2x8x16xf32>
    %cst_43 = arith.constant 1.000000e+00 : f32
    %92 = vector.broadcast %cst_43 : f32 to vector<2x8x16xf32>
    %93 = arith.subf %92, %62 : vector<2x8x16xf32>
    %94 = arith.mulf %93, %90 : vector<2x8x16xf32>
    %95 = arith.addf %91, %94 : vector<2x8x16xf32>
    %c0_44 = arith.constant 0 : index
    %c0_45 = arith.constant 0 : index
    %c0_46 = arith.constant 0 : index
    %96 = vector.load %arg8[%c0_44, %c0_45, %c0_46] : memref<2x8x16xf32, #tpu.memory_space<vmem>>, vector<2x8x16xf32>
    tpu.vector_store %arg8[%c0_44, %c0_45, %c0_46], %95 {strides = array<i32>} : memref<2x8x16xf32, #tpu.memory_space<vmem>>, vector<2x8x16xf32>,
    return
  }
}

</mosaic_0001>

<bundles_post_ra>
// kernel: dstrnn_forward.13
= control target key start
LH: loop header
LB: loop body
LE: loop exit
PB: predicated region body
PF: predicated region fallthrough
CT: control target
= control target key end

     0   :  { %vm39_vm0 = vcmask 64512   ;;  %v1584_v17 = vmov 8.0   ;;  %s2539_s0 = inlined_call_operand.vmem [shape: f32[8,8], index: 0, kind: input, shape index: {}]   ;;  %s2540_s1 = inlined_call_operand.vmem [shape: f32[4,8], index: 1, kind: input, shape index: {}]   ;;  %s2541_s2 = inlined_call_operand.vmem [shape: f32[6,8], index: 2, kind: input, shape index: {}]   ;;  %s2542_s3 = inlined_call_operand.vmem [shape: f32[6,8], index: 3, kind: input, shape index: {}]   ;;  %s2543_s4 = inlined_call_operand.vmem [shape: f32[6,4,8,8], index: 4, kind: output, shape index: {0}]   ;;  %s2544_s5 = inlined_call_operand.vmem [shape: f32[6,4,8,8], index: 5, kind: output, shape index: {1}]  }
   0x1   :  { %v19_v0 = vld [vmem:[%s2539_s0] sm:$0xff]  ;;  %1478 = vrcp.f32 %v1584_v17 }
   0x2   :  { %v20_v1 = vld [vmem:[%s2540_s1] sm:$0xf] }
   0x3   :  { %v27_v2 = vperm.slane %v20_v1, 0  ;;  %v25_v3 = vrot.slane %v20_v1, 2  ;;  %v24_v4 = vrot.slane %v20_v1, 1  ;;  %v26_v5 = vrot.slane %v20_v1, 3  ;;  %v1651_v63 = vld [vmem:[%s2541_s2] sm:$0x3f] }
   0x5   :  { %v35_v6 = vadd.f32 %v27_v2, %v19_v0  ;;  %v29_v7 = vperm.slane %v25_v3, 0  ;;  %v28_v8 = vperm.slane %v24_v4, 0  ;;  %v30_v11 = vperm.slane %v26_v5, 0  ;;  %v1656_v2 = vld [vmem:[%s2542_s3] sm:$0x3f] }
   0x6   :  { %v1659_v4 = vperm.slane %v1651_v63, 0  ;;  %v1662_v5 = vperm.slane %v1651_v63, 1 }
   0x7   :  { %v40_v9 = vsel %vm39_vm0, %v35_v6, 0.0  ;;  %v37_v10 = vadd.f32 %v29_v7, %v19_v0  ;;  %v36_v13 = vadd.f32 %v28_v8, %v19_v0  ;;  %v38_v14 = vadd.f32 %v30_v11, %v19_v0  ;;  %v1479_v18 = vpop.eup %1478 }
   0x8   :  { %41 = vadd.xlane.f32.xlu1 %v40_v9  ;;  %v53_v19 = vmul.f32 8.0, %v1479_v18  ;;  %vm57_vm1 = vweird.f32 %v1479_v18  ;;  %v1668_v11 = vperm.slane %v1656_v2, 1 }
   0x9   :  { %v46_v12 = vsel %vm39_vm0, %v37_v10, 0.0  ;;  %v43_v15 = vsel %vm39_vm0, %v36_v13, 0.0  ;;  %v49_v16 = vsel %vm39_vm0, %v38_v14, 0.0 }
   0xa   :  { %47 = vadd.xlane.f32.xlu0 %v46_v12  ;;  %v54_v20 = vsub.f32 1.0, %v53_v19  ;;  %v1671_v12 = vperm.slane %v1651_v63, 2  ;;  %v1681_v19 = vperm.slane %v1651_v63, 3 }
   0xc   :  { %v55_v21 = vmul.f32 %v1479_v18, %v54_v20  ;;  %v1684_v20 = vperm.slane %v1656_v2, 3 }
   0xe   :  { %v56_v22 = vadd.f32 %v1479_v18, %v55_v21 }
  0x10   :  { %44 = vadd.xlane.f32.xlu1 %v43_v15  ;;  %v58_v23 = vsel %vm57_vm1, %v1479_v18, %v56_v22  ;;  %v1678_v18 = vperm.slane %v1656_v2, 2 }
  0x12   :  { %50 = vadd.xlane.f32.xlu0 %v49_v16 }
  0x7b   :  { %v42_v24 = vpop.xlane.xlu1 %41 }
  0x7c   :  { %v59_v25 = vmul.f32 %v58_v23, %v42_v24 }
  0x7d   :  { %v48_v26 = vpop.xlane.xlu0 %47 }
  0x7e   :  { %v1625_v27 = vsub.f32 %v35_v6, %v59_v25  ;;  %v61_v28 = vmul.f32 %v58_v23, %v48_v26 }
  0x80   :  { %v1627_v29 = vsub.f32 %v37_v10, %v61_v28  ;;  %v67_v30 = vmul.f32 %v1625_v27, %v1625_v27  ;;  %v1665_v10 = vperm.slane %v1656_v2, 0 }
  0x82   :  { %v71_v31 = vsel %vm39_vm0, %v67_v30, 0.0  ;;  %v69_v32 = vmul.f32 %v1627_v29, %v1627_v29 }
  0x83   :  { %72 = vadd.xlane.f32.xlu0 %v71_v31  ;;  %v45_v33 = vpop.xlane.xlu1 %44 }
  0x84   :  { %v60_v34 = vmul.f32 %v58_v23, %v45_v33  ;;  %v77_v35 = vsel %vm39_vm0, %v69_v32, 0.0 }
  0x85   :  { %78 = vadd.xlane.f32.xlu2 %v77_v35  ;;  %v51_v36 = vpop.xlane.xlu0 %50 }
  0x86   :  { %v1635_v37 = vsub.f32 %v36_v13, %v60_v34  ;;  %v62_v38 = vmul.f32 %v58_v23, %v51_v36 }
  0x88   :  { %v1637_v39 = vsub.f32 %v38_v14, %v62_v38  ;;  %v68_v40 = vmul.f32 %v1635_v37, %v1635_v37 }
  0x8a   :  { %v74_v41 = vsel %vm39_vm0, %v68_v40, 0.0  ;;  %v70_v42 = vmul.f32 %v1637_v39, %v1637_v39 }
  0x8b   :  { %75 = vadd.xlane.f32.xlu1 %v74_v41 }
  0x8c   :  { %v80_v43 = vsel %vm39_vm0, %v70_v42, 0.0 }
  0x8d   :  { %81 = vadd.xlane.f32.xlu2 %v80_v43 }
  0xf6   :  { %v73_v44 = vpop.xlane.xlu0 %72 }
  0xf7   :  { %v83_v45 = vmul.f32 %v73_v44, %v58_v23 }
  0xf8   :  { %v79_v46 = vpop.xlane.xlu2 %78 }
  0xf9   :  { %v87_v47 = vadd.f32 1e-12, %v83_v45  ;;  %v85_v48 = vmul.f32 %v79_v46, %v58_v23 }
  0xfb   :  { %1480 = vrsqrt.f32 %v87_v47  ;;  %v89_v49 = vadd.f32 1e-12, %v85_v48  ;;  %vm97_vm2 = vweird.f32 %v87_v47  ;;  %v965_v48 = vperm.slane %v1651_v63, 4 }
  0xfd   :  { %1482 = vrsqrt.f32 %v89_v49  ;;  %vm117_vm6 = vweird.f32 %v89_v49 }
  0xfe   :  { %v76_v50 = vpop.xlane.xlu1 %75 }
  0xff   :  { %v84_v51 = vmul.f32 %v76_v50, %v58_v23 }
 0x100   :  { %v82_v52 = vpop.xlane.xlu2 %81 }
 0x101   :  { %v1481_v53 = vpop.eup %1480  ;;  %v88_v54 = vadd.f32 1e-12, %v84_v51  ;;  %v86_v55 = vmul.f32 %v82_v52, %v58_v23 }
 0x102   :  { %v92_v56 = vmul.f32 %v1481_v53, %v87_v47  ;;  %vm98_vm3 = vweird.f32 %v1481_v53 }
 0x103   :  { %v1483_v57 = vpop.eup %1482  ;;  %1484 = vrsqrt.f32 %v88_v54  ;;  %v1645_v58 = vadd.f32 1e-12, %v86_v55  ;;  %vm99_vm5 = vmor %vm97_vm2, %vm98_vm3  ;;  %vm107_vm8 = vweird.f32 %v88_v54 }
 0x104   :  { %v93_v59 = vmul.f32 %v1481_v53, %v92_v56  ;;  %v112_v60 = vmul.f32 %v1483_v57, %v89_v49  ;;  %vm118_vm4 = vweird.f32 %v1483_v57 }
 0x105   :  { %1486 = vrsqrt.f32 %v1645_v58  ;;  %vm119_vm7 = vmor %vm117_vm6, %vm118_vm4  ;;  %vm127_vm12 = vweird.f32 %v1645_v58 }
 0x106   :  { %v94_v61 = vmul.f32 0.5, %v93_v59  ;;  %v113_v62 = vmul.f32 %v1483_v57, %v112_v60  ;;  %v970_v60 = vperm.slane %v1656_v2, 4 }
 0x108   :  { %v95_v0 = vsub.f32 1.5, %v94_v61  ;;  %v114_v1 = vmul.f32 0.5, %v113_v62 }
 0x109   :  { %v1485_v3 = vpop.eup %1484 }
 0x10a   :  { %v96_v6 = vmul.f32 %v1481_v53, %v95_v0  ;;  %v115_v7 = vsub.f32 1.5, %v114_v1  ;;  %v102_v8 = vmul.f32 %v1485_v3, %v88_v54  ;;  %vm108_vm9 = vweird.f32 %v1485_v3 }
 0x10b   :  { %v1487_v9 = vpop.eup %1486  ;;  %vm109_vm11 = vmor %vm107_vm8, %vm108_vm9  ;;  %v1173_v1 = vperm.slane %v1651_v63, 5 }
 0x10c   :  { %v100_v13 = vsel %vm99_vm5, %v1481_v53, %v96_v6  ;;  %v116_v14 = vmul.f32 %v1483_v57, %v115_v7  ;;  %v103_v15 = vmul.f32 %v1485_v3, %v102_v8  ;;  %v122_v16 = vmul.f32 %v1487_v9, %v1645_v58 }
 0x10d   :  { %v1675_v17 = vmul.f32 %v100_v13, %v1625_v27  ;;  %vm128_vm10 = vweird.f32 %v1487_v9 }
 0x10e   :  { %v120_v21 = vsel %vm119_vm7, %v1483_v57, %v116_v14  ;;  %v104_v22 = vmul.f32 0.5, %v103_v15  ;;  %v123_v23 = vmul.f32 %v1487_v9, %v122_v16  ;;  %vm129_vm13 = vmor %vm127_vm12, %vm128_vm10 }
 0x10f   :  { %v1687_v24 = vmul.f32 %v120_v21, %v1627_v29  ;;  %v136_v25 = vmul.f32 %v1659_v4, %v1675_v17  ;;  %v342_v26 = vmul.f32 %v1662_v5, %v1675_v17  ;;  %v550_v27 = vmul.f32 %v1671_v12, %v1675_v17 }
 0x110   :  { %v105_v28 = vsub.f32 1.5, %v104_v22  ;;  %v124_v30 = vmul.f32 0.5, %v123_v23  ;;  %v758_v38 = vmul.f32 %v1681_v19, %v1675_v17  ;;  %v966_v59 = vmul.f32 %v965_v48, %v1675_v17 }
 0x111   :  { %v141_v31 = vadd.f32 %v1665_v10, %v136_v25  ;;  %v1697_v32 = vadd.f32 %v1668_v11, %v342_v26  ;;  %v138_v29 = vmul.f32 %v1659_v4, %v1687_v24  ;;  %v344_v33 = vmul.f32 %v1662_v5, %v1687_v24 }
 0x112   :  { %v106_v34 = vmul.f32 %v1485_v3, %v105_v28  ;;  %v125_v35 = vsub.f32 1.5, %v124_v30  ;;  %v552_v36 = vmul.f32 %v1671_v12, %v1687_v24  ;;  %v1718_v42 = vadd.f32 %v1678_v18, %v550_v27 }
 0x113   :  { %1389 = vmatpush.xpose.msk.msra.mxu0 %vm39_vm0, %v141_v31  ;;  %337 = vst.msk [vmem:[%s2543_s4] sm:$0xff] %vm39_vm0, %v141_v31  ;;  %v143_v40 = vadd.f32 %v1665_v10, %v138_v29  ;;  %v1715_v41 = vadd.f32 %v1668_v11, %v344_v33  ;;  %v760_v52 = vmul.f32 %v1681_v19, %v1687_v24 }
 0x114   :  { %v110_v43 = vsel %vm109_vm11, %v1485_v3, %v106_v34  ;;  %v126_v44 = vmul.f32 %v1487_v9, %v125_v35  ;;  %1409 = vst.msk [vmem:[%s2543_s4 + $0x20] sm:$0xff] %vm39_vm0, %v1697_v32  ;;  %v1729_v45 = vadd.f32 %v1678_v18, %v552_v36  ;;  %v971_v8 = vadd.f32 %v970_v60, %v966_v59 }
 0x115   :  { %v1732_v46 = vmul.f32 %v110_v43, %v1635_v37  ;;  %1393 = vmatpush.xpose.msk.msra.mxu2 %vm39_vm0, %v143_v40  ;;  %339 = vst.msk [vmem:[%s2543_s4 + $0x10] sm:$0xff] %vm39_vm0, %v143_v40  ;;  %v1749_v37 = vadd.f32 %v1684_v20, %v758_v38  ;;  %v765_v3 = vadd.f32 %v1684_v20, %v760_v52 }
 0x116   :  { %v130_v47 = vsel %vm129_vm13, %v1487_v9, %v126_v44  ;;  %1390 = vmatmul.msk.f32.vlgmr.msra.gmra.mxu0 %vm39_vm0, %v141_v31  ;;  %1411 = vst.msk [vmem:[%s2543_s4 + $0x30] sm:$0xff] %vm39_vm0, %v1715_v41  ;;  %v1174_v9 = vmul.f32 %v1173_v1, %v1675_v17  ;;  %v1176_v13 = vmul.f32 %v1173_v1, %v1687_v24 }
 0x117   :  { %1397 = vmatpush.xpose.msk.msrb.mxu0 %vm39_vm0, %v1697_v32  ;;  %v134_v49 = vmul.f32 %v130_v47, %v1637_v39  ;;  %1425 = vst.msk [vmem:[%s2543_s4 + $0x40] sm:$0xff] %vm39_vm0, %v1718_v42  ;;  %v137_v50 = vmul.f32 %v1659_v4, %v1732_v46  ;;  %v343_v51 = vmul.f32 %v1662_v5, %v1732_v46 }
 0x118   :  { %1394 = vmatmul.msk.f32.vlgmr.msra.gmra.mxu2 %vm39_vm0, %v143_v40  ;;  %1427 = vst.msk [vmem:[%s2543_s4 + $0x50] sm:$0xff] %vm39_vm0, %v1729_v45  ;;  %v551_v39 = vmul.f32 %v1671_v12, %v1732_v46  ;;  %v759_v58 = vmul.f32 %v1681_v19, %v1732_v46  ;;  %v967_v7 = vmul.f32 %v965_v48, %v1732_v46 }
 0x119   :  { %1401 = vmatpush.xpose.msk.msrb.mxu2 %vm39_vm0, %v1715_v41  ;;  %v142_v53 = vadd.f32 %v1665_v10, %v137_v50  ;;  %v348_v54 = vadd.f32 %v1668_v11, %v343_v51  ;;  %v139_v55 = vmul.f32 %v1659_v4, %v134_v49  ;;  %v345_v56 = vmul.f32 %v1662_v5, %v134_v49 }
 0x11a   :  { %1441 = vst.msk [vmem:[%s2543_s4 + $0x60] sm:$0xff] %vm39_vm0, %v1749_v37  ;;  %v553_v57 = vmul.f32 %v1671_v12, %v134_v49  ;;  %v556_v0 = vadd.f32 %v1678_v18, %v551_v39  ;;  %v761_v4 = vmul.f32 %v1681_v19, %v134_v49  ;;  %v968_v5 = vmul.f32 %v965_v48, %v1687_v24 }
 0x11b   :  { %1413 = vmatpush.xpose.msk.msra.mxu0 %vm39_vm0, %v1718_v42  ;;  %1391 = vmatpush.xpose.msk.msra.mxu1 %vm39_vm0, %v142_v53  ;;  %338 = vst.msk [vmem:[%s2543_s4 + $0x8] sm:$0xff] %vm39_vm0, %v142_v53  ;;  %v144_v61 = vadd.f32 %v1665_v10, %v139_v55  ;;  %v350_v62 = vadd.f32 %v1668_v11, %v345_v56  ;;  %v1178_v10 = vperm.slane %v1656_v2, 5 }
 0x11c   :  { %1410 = vst.msk [vmem:[%s2543_s4 + $0x28] sm:$0xff] %vm39_vm0, %v348_v54  ;;  %v558_v63 = vadd.f32 %v1678_v18, %v553_v57  ;;  %v764_v6 = vadd.f32 %v1684_v20, %v759_v58  ;;  %v766_v11 = vadd.f32 %v1684_v20, %v761_v4  ;;  %v969_v12 = vmul.f32 %v965_v48, %v134_v49 }
 0x11d   :  { %1417 = vmatpush.xpose.msk.msra.mxu2 %vm39_vm0, %v1729_v45  ;;  %1395 = vmatpush.xpose.msk.msra.mxu3 %vm39_vm0, %v144_v61  ;;  %340 = vst.msk [vmem:[%s2543_s4 + $0x18] sm:$0xff] %vm39_vm0, %v144_v61  ;;  %v973_v2 = vadd.f32 %v970_v60, %v968_v5  ;;  %v972_v14 = vadd.f32 %v970_v60, %v967_v7 }
 0x11e   :  { %1392 = vmatmul.msk.f32.vlgmr.msra.gmra.mxu1 %vm39_vm0, %v142_v53  ;;  %1398 = vmatmul.msk.f32.vlgmr.msrb.gmra.mxu0 %vm39_vm0, %v1697_v32  ;;  %1412 = vst.msk [vmem:[%s2543_s4 + $0x38] sm:$0xff] %vm39_vm0, %v350_v62  ;;  %v1175_v15 = vmul.f32 %v1173_v1, %v1732_v46  ;;  %v1179_v16 = vadd.f32 %v1178_v10, %v1174_v9 }
 0x11f   :  { %1399 = vmatpush.xpose.msk.msrb.mxu1 %vm39_vm0, %v348_v54  ;;  %1429 = vmatpush.xpose.msk.msrb.mxu0 %vm39_vm0, %v1749_v37  ;;  %1426 = vst.msk [vmem:[%s2543_s4 + $0x48] sm:$0xff] %vm39_vm0, %v556_v0  ;;  %v1177_v17 = vmul.f32 %v1173_v1, %v134_v49  ;;  %v974_v18 = vadd.f32 %v970_v60, %v969_v12 }
 0x120   :  { %1396 = vmatmul.msk.f32.vlgmr.msra.gmra.mxu3 %vm39_vm0, %v144_v61  ;;  %1443 = vst.msk [vmem:[%s2543_s4 + $0x70] sm:$0xff] %vm39_vm0, %v765_v3  ;;  %1402 = vmatmul.msk.f32.vlgmr.msrb.gmra.mxu2 %vm39_vm0, %v1715_v41  ;;  %v1181_v19 = vadd.f32 %v1178_v10, %v1176_v13  ;;  %v1180_v20 = vadd.f32 %v1178_v10, %v1175_v15 }
 0x121   :  { %1403 = vmatpush.xpose.msk.msrb.mxu3 %vm39_vm0, %v350_v62  ;;  %1428 = vst.msk [vmem:[%s2543_s4 + $0x58] sm:$0xff] %vm39_vm0, %v558_v63  ;;  %1433 = vmatpush.xpose.msk.msrb.mxu2 %vm39_vm0, %v765_v3  ;;  %v1182_v21 = vadd.f32 %v1178_v10, %v1177_v17 }
 0x122   :  { %1442 = vst.msk [vmem:[%s2543_s4 + $0x68] sm:$0xff] %vm39_vm0, %v764_v6 }
 0x123   :  { %1415 = vmatpush.xpose.msk.msra.mxu1 %vm39_vm0, %v556_v0  ;;  %1457 = vst.msk [vmem:[%s2543_s4 + $0x80] sm:$0xff] %vm39_vm0, %v971_v8 }
 0x124   :  { %1444 = vst.msk [vmem:[%s2543_s4 + $0x78] sm:$0xff] %vm39_vm0, %v766_v11 }
 0x125   :  { %1419 = vmatpush.xpose.msk.msra.mxu3 %vm39_vm0, %v558_v63  ;;  %1459 = vst.msk [vmem:[%s2543_s4 + $0x90] sm:$0xff] %vm39_vm0, %v973_v2 }
 0x126   :  { %1400 = vmatmul.msk.f32.vlgmr.msrb.gmra.mxu1 %vm39_vm0, %v348_v54  ;;  %1414 = vmatmul.msk.f32.vlgmr.msra.gmra.mxu0 %vm39_vm0, %v1718_v42  ;;  %1458 = vst.msk [vmem:[%s2543_s4 + $0x88] sm:$0xff] %vm39_vm0, %v972_v14 }
 0x127   :  { %1431 = vmatpush.xpose.msk.msrb.mxu1 %vm39_vm0, %v764_v6  ;;  %1445 = vmatpush.xpose.msk.msra.mxu0 %vm39_vm0, %v971_v8  ;;  %1473 = vst.msk [vmem:[%s2543_s4 + $0xa0] sm:$0xff] %vm39_vm0, %v1179_v16 }
 0x128   :  { %1404 = vmatmul.msk.f32.vlgmr.msrb.gmra.mxu3 %vm39_vm0, %v350_v62  ;;  %1460 = vst.msk [vmem:[%s2543_s4 + $0x98] sm:$0xff] %vm39_vm0, %v974_v18  ;;  %1418 = vmatmul.msk.f32.vlgmr.msra.gmra.mxu2 %vm39_vm0, %v1729_v45 }
 0x129   :  { %1435 = vmatpush.xpose.msk.msrb.mxu3 %vm39_vm0, %v766_v11  ;;  %1475 = vst.msk [vmem:[%s2543_s4 + $0xb0] sm:$0xff] %vm39_vm0, %v1181_v19  ;;  %1449 = vmatpush.xpose.msk.msra.mxu2 %vm39_vm0, %v973_v2 }
 0x12a   :  { %1474 = vst.msk [vmem:[%s2543_s4 + $0xa8] sm:$0xff] %vm39_vm0, %v1180_v20 }
 0x12b   :  { %1476 = vst.msk [vmem:[%s2543_s4 + $0xb8] sm:$0xff] %vm39_vm0, %v1182_v21 }
 0x12e   :  { %1416 = vmatmul.msk.f32.vlgmr.msra.gmra.mxu1 %vm39_vm0, %v556_v0  ;;  %1430 = vmatmul.msk.f32.vlgmr.msrb.gmra.mxu0 %vm39_vm0, %v1749_v37 }
 0x12f   :  { %1447 = vmatpush.xpose.msk.msra.mxu1 %vm39_vm0, %v972_v14  ;;  %1461 = vmatpush.xpose.msk.msrb.mxu0 %vm39_vm0, %v1179_v16 }
 0x130   :  { %1420 = vmatmul.msk.f32.vlgmr.msra.gmra.mxu3 %vm39_vm0, %v558_v63  ;;  %1434 = vmatmul.msk.f32.vlgmr.msrb.gmra.mxu2 %vm39_vm0, %v765_v3 }
 0x131   :  { %1451 = vmatpush.xpose.msk.msra.mxu3 %vm39_vm0, %v974_v18  ;;  %1465 = vmatpush.xpose.msk.msrb.mxu2 %vm39_vm0, %v1181_v19 }
 0x136   :  { %1432 = vmatmul.msk.f32.vlgmr.msrb.gmra.mxu1 %vm39_vm0, %v764_v6  ;;  %1446 = vmatmul.msk.f32.vlgmr.msra.gmra.mxu0 %vm39_vm0, %v971_v8 }
 0x137   :  { %1463 = vmatpush.xpose.msk.msrb.mxu1 %vm39_vm0, %v1180_v20 }
 0x138   :  { %1436 = vmatmul.msk.f32.vlgmr.msrb.gmra.mxu3 %vm39_vm0, %v766_v11  ;;  %1450 = vmatmul.msk.f32.vlgmr.msra.gmra.mxu2 %vm39_vm0, %v973_v2 }
 0x139   :  { %1467 = vmatpush.xpose.msk.msrb.mxu3 %vm39_vm0, %v1182_v21 }
 0x13e   :  { %1448 = vmatmul.msk.f32.vlgmr.msra.gmra.mxu1 %vm39_vm0, %v972_v14  ;;  %1462 = vmatmul.msk.f32.vlgmr.msrb.gmra.mxu0 %vm39_vm0, %v1179_v16 }
 0x140   :  { %1452 = vmatmul.msk.f32.vlgmr.msra.gmra.mxu3 %vm39_vm0, %v974_v18  ;;  %1466 = vmatmul.msk.f32.vlgmr.msrb.gmra.mxu2 %vm39_vm0, %v1181_v19 }
 0x146   :  { %1464 = vmatmul.msk.f32.vlgmr.msrb.gmra.mxu1 %vm39_vm0, %v1180_v20 }
 0x148   :  { %1468 = vmatmul.msk.f32.vlgmr.msrb.gmra.mxu3 %vm39_vm0, %v1182_v21 }
 0x193   :  { %v1919_v22 = vpop.f32.mrf.mxu0 }
 0x194   :  { %v237_v23 = vsel %vm39_vm0, %v1919_v22, -inf }
 0x195   :  { %238 = vmax.xlane.f32.xlu2 %v237_v23 }
 0x19b   :  { %v1923_v24 = vpop.f32.mrf.mxu1  ;;  %v1925_v25 = vpop.f32.mrf.mxu2 }
 0x19c   :  { %v243_v26 = vsel %vm39_vm0, %v1925_v25, -inf  ;;  %v240_v27 = vsel %vm39_vm0, %v1923_v24, -inf  ;;  %v1931_v28 = vpop.f32.mrf.mxu0 }
 0x19d   :  { %244 = vmax.xlane.f32.xlu1 %v243_v26  ;;  %241 = vmax.xlane.f32.xlu0 %v240_v27  ;;  %v443_v33 = vsel %vm39_vm0, %v1931_v28, -inf }
 0x1a3   :  { %v1933_v30 = vpop.f32.mrf.mxu3  ;;  %v1935_v31 = vpop.f32.mrf.mxu1 }
 0x1a4   :  { %v1937_v32 = vpop.f32.mrf.mxu2  ;;  %v246_v29 = vsel %vm39_vm0, %v1933_v30, -inf  ;;  %v1945_v35 = vpop.f32.mrf.mxu0  ;;  %v446_v41 = vsel %vm39_vm0, %v1935_v31, -inf }
 0x1a5   :  { %247 = vmax.xlane.f32.xlu2 %v246_v29  ;;  %444 = vmax.xlane.f32.xlu1 %v443_v33  ;;  %v449_v34 = vsel %vm39_vm0, %v1937_v32, -inf  ;;  %v651_v47 = vsel %vm39_vm0, %v1945_v35, -inf }
 0x1a6   :  { %450 = vmax.xlane.f32.xlu0 %v449_v34 }
 0x1ab   :  { %v1947_v36 = vpop.f32.mrf.mxu3  ;;  %v1949_v38 = vpop.f32.mrf.mxu1 }
 0x1ac   :  { %v452_v40 = vsel %vm39_vm0, %v1947_v36, -inf  ;;  %v654_v42 = vsel %vm39_vm0, %v1949_v38, -inf  ;;  %v1957_v43 = vpop.f32.mrf.mxu2  ;;  %v1959_v44 = vpop.f32.mrf.mxu0 }
 0x1ad   :  { %453 = vmax.xlane.f32.xlu1 %v452_v40  ;;  %447 = vmax.xlane.f32.xlu2 %v446_v41  ;;  %v657_v46 = vsel %vm39_vm0, %v1957_v43, -inf  ;;  %v859_v37 = vsel %vm39_vm0, %v1959_v44, -inf }
 0x1ae   :  { %655 = vmax.xlane.f32.xlu0 %v654_v42 }
 0x1b3   :  { %v1961_v45 = vpop.f32.mrf.mxu3  ;;  %v1969_v48 = vpop.f32.mrf.mxu1 }
 0x1b4   :  { %v1971_v49 = vpop.f32.mrf.mxu2  ;;  %v862_v51 = vsel %vm39_vm0, %v1969_v48, -inf  ;;  %v660_v39 = vsel %vm39_vm0, %v1961_v45, -inf  ;;  %v1983_v54 = vpop.f32.mrf.mxu0 }
 0x1b5   :  { %658 = vmax.xlane.f32.xlu1 %v657_v46  ;;  %652 = vmax.xlane.f32.xlu2 %v651_v47  ;;  %v1067_v56 = vsel %vm39_vm0, %v1983_v54, -inf  ;;  %v865_v57 = vsel %vm39_vm0, %v1971_v49, -inf }
 0x1b6   :  { %860 = vmax.xlane.f32.xlu0 %v859_v37 }
 0x1bb   :  { %v1973_v50 = vpop.f32.mrf.mxu3  ;;  %v1981_v53 = vpop.f32.mrf.mxu1 }
 0x1bc   :  { %v868_v52 = vsel %vm39_vm0, %v1973_v50, -inf  ;;  %v1985_v55 = vpop.f32.mrf.mxu2  ;;  %v1070_v62 = vsel %vm39_vm0, %v1981_v53, -inf  ;;  %v2003_v1 = vpop.f32.mrf.mxu0 }
 0x1bd   :  { %863 = vmax.xlane.f32.xlu1 %v862_v51  ;;  %661 = vmax.xlane.f32.xlu2 %v660_v39  ;;  %v1073_v58 = vsel %vm39_vm0, %v1985_v55, -inf  ;;  %v1275_v63 = vsel %vm39_vm0, %v2003_v1, -inf }
 0x1be   :  { %869 = vmax.xlane.f32.xlu0 %v868_v52 }
 0x1c3   :  { %v1993_v59 = vpop.f32.mrf.mxu3  ;;  %v1995_v60 = vpop.f32.mrf.mxu1 }
 0x1c4   :  { %v1076_v61 = vsel %vm39_vm0, %v1993_v59, -inf  ;;  %v1278_v0 = vsel %vm39_vm0, %v1995_v60, -inf  ;;  %v2005_v3 = vpop.f32.mrf.mxu2 }
 0x1c5   :  { %1068 = vmax.xlane.f32.xlu1 %v1067_v56  ;;  %866 = vmax.xlane.f32.xlu2 %v865_v57  ;;  %v1281_v4 = vsel %vm39_vm0, %v2005_v3, -inf }
 0x1c6   :  { %1074 = vmax.xlane.f32.xlu0 %v1073_v58 }
 0x1cb   :  { %v2011_v5 = vpop.f32.mrf.mxu3 }
 0x1cc   :  { %v1284_v6 = vsel %vm39_vm0, %v2011_v5, -inf }
 0x1cd   :  { %1077 = vmax.xlane.f32.xlu1 %v1076_v61  ;;  %1071 = vmax.xlane.f32.xlu2 %v1070_v62 }
 0x1ce   :  { %1279 = vmax.xlane.f32.xlu0 %v1278_v0 }
 0x1d5   :  { %1282 = vmax.xlane.f32.xlu1 %v1281_v4  ;;  %1276 = vmax.xlane.f32.xlu2 %v1275_v63 }
 0x1dd   :  { %1285 = vmax.xlane.f32.xlu2 %v1284_v6 }
 0x208   :  { %v239_v7 = vpop.xlane.xlu2 %238 }
 0x209   :  { %v249_v8 = vsub.f32 %v1919_v22, %v239_v7 }
 0x20b   :  { %v253_v9 = vmul.f32 1.442695, %v249_v8 }
 0x20d   :  { %1488 = vpow2.f32 %v253_v9 }
 0x210   :  { %v242_v10 = vpop.xlane.xlu0 %241  ;;  %v245_v11 = vpop.xlane.xlu1 %244 }
 0x211   :  { %v250_v12 = vsub.f32 %v1923_v24, %v242_v10  ;;  %v251_v2 = vsub.f32 %v1925_v25, %v245_v11 }
 0x213   :  { %v2018_v13 = vpop.eup %1488  ;;  %v255_v14 = vmul.f32 1.442695, %v250_v12  ;;  %v257_v15 = vmul.f32 1.442695, %v251_v2 }
 0x214   :  { %v261_v16 = vsel %vm39_vm0, %v2018_v13, 0.0 }
 0x215   :  { %1490 = vpow2.f32 %v255_v14  ;;  %262 = vadd.xlane.f32.xlu0 %v261_v16 }
 0x216   :  { %1492 = vpow2.f32 %v257_v15 }
 0x218   :  { %v248_v17 = vpop.xlane.xlu2 %247  ;;  %v445_v18 = vpop.xlane.xlu1 %444 }
 0x219   :  { %v252_v19 = vsub.f32 %v1933_v30, %v248_v17  ;;  %v451_v20 = vpop.xlane.xlu0 %450  ;;  %v455_v24 = vsub.f32 %v1931_v28, %v445_v18 }
 0x21a   :  { %v457_v21 = vsub.f32 %v1937_v32, %v451_v20 }
 0x21b   :  { %v2024_v22 = vpop.eup %1490  ;;  %v259_v23 = vmul.f32 1.442695, %v252_v19  ;;  %v459_v30 = vmul.f32 1.442695, %v455_v24 }
 0x21c   :  { %v2027_v25 = vpop.eup %1492  ;;  %v463_v26 = vmul.f32 1.442695, %v457_v21  ;;  %v264_v27 = vsel %vm39_vm0, %v2024_v22, 0.0 }
 0x21d   :  { %1494 = vpow2.f32 %v259_v23  ;;  %265 = vadd.xlane.f32.xlu1 %v264_v27  ;;  %v267_v29 = vsel %vm39_vm0, %v2027_v25, 0.0 }
 0x21e   :  { %1496 = vpow2.f32 %v463_v26  ;;  %268 = vadd.xlane.f32.xlu2 %v267_v29 }
 0x21f   :  { %1498 = vpow2.f32 %v459_v30 }
 0x220   :  { %v448_v32 = vpop.xlane.xlu2 %447  ;;  %v454_v33 = vpop.xlane.xlu1 %453 }
 0x221   :  { %v456_v34 = vsub.f32 %v1935_v31, %v448_v32  ;;  %v656_v40 = vpop.xlane.xlu0 %655  ;;  %v458_v46 = vsub.f32 %v1947_v36, %v454_v33 }
 0x222   :  { %v664_v28 = vsub.f32 %v1949_v38, %v656_v40 }
 0x223   :  { %v2035_v41 = vpop.eup %1494  ;;  %v461_v42 = vmul.f32 1.442695, %v456_v34  ;;  %v465_v38 = vmul.f32 1.442695, %v458_v46 }
 0x224   :  { %v2038_v47 = vpop.eup %1496  ;;  %v669_v37 = vmul.f32 1.442695, %v664_v28  ;;  %v270_v51 = vsel %vm39_vm0, %v2035_v41, 0.0 }
 0x225   :  { %1500 = vpow2.f32 %v461_v42  ;;  %271 = vadd.xlane.f32.xlu0 %v270_v51  ;;  %v473_v31 = vsel %vm39_vm0, %v2038_v47, 0.0  ;;  %v2044_v56 = vpop.eup %1498 }
 0x226   :  { %1502 = vpow2.f32 %v669_v37  ;;  %474 = vadd.xlane.f32.xlu2 %v473_v31  ;;  %v467_v7 = vsel %vm39_vm0, %v2044_v56, 0.0 }
 0x227   :  { %1504 = vpow2.f32 %v465_v38 }
 0x228   :  { %v653_v39 = vpop.xlane.xlu2 %652  ;;  %v659_v52 = vpop.xlane.xlu1 %658 }
 0x229   :  { %v663_v36 = vsub.f32 %v1945_v35, %v653_v39  ;;  %v861_v57 = vpop.xlane.xlu0 %860  ;;  %v665_v0 = vsub.f32 %v1957_v43, %v659_v52 }
 0x22a   :  { %v871_v58 = vsub.f32 %v1959_v44, %v861_v57 }
 0x22b   :  { %v2048_v61 = vpop.eup %1500  ;;  %v667_v62 = vmul.f32 1.442695, %v663_v36  ;;  %v671_v44 = vmul.f32 1.442695, %v665_v0 }
 0x22c   :  { %v2051_v4 = vpop.eup %1502  ;;  %v875_v63 = vmul.f32 1.442695, %v871_v58  ;;  %v470_v6 = vsel %vm39_vm0, %v2048_v61, 0.0 }
 0x22d   :  { %1506 = vpow2.f32 %v667_v62  ;;  %471 = vadd.xlane.f32.xlu1 %v470_v6  ;;  %v678_v35 = vsel %vm39_vm0, %v2051_v4, 0.0  ;;  %468 = vadd.xlane.f32.xlu0 %v467_v7  ;;  %v2059_v9 = vpop.eup %1504 }
 0x22e   :  { %1508 = vpow2.f32 %v875_v63  ;;  %679 = vadd.xlane.f32.xlu2 %v678_v35  ;;  %v476_v19 = vsel %vm39_vm0, %v2059_v9, 0.0 }
 0x22f   :  { %1510 = vpow2.f32 %v671_v44 }
 0x230   :  { %v662_v8 = vpop.xlane.xlu2 %661  ;;  %v864_v43 = vpop.xlane.xlu1 %863 }
 0x231   :  { %v666_v10 = vsub.f32 %v1961_v45, %v662_v8  ;;  %v870_v11 = vpop.xlane.xlu0 %869  ;;  %v872_v15 = vsub.f32 %v1969_v48, %v864_v43 }
 0x232   :  { %v874_v12 = vsub.f32 %v1973_v50, %v870_v11 }
 0x233   :  { %v2063_v2 = vpop.eup %1506  ;;  %v673_v14 = vmul.f32 1.442695, %v666_v10  ;;  %v877_v50 = vmul.f32 1.442695, %v872_v15 }
 0x234   :  { %v2066_v16 = vpop.eup %1508  ;;  %v881_v17 = vmul.f32 1.442695, %v874_v12  ;;  %v675_v18 = vsel %vm39_vm0, %v2063_v2, 0.0 }
 0x235   :  { %1512 = vpow2.f32 %v673_v14  ;;  %676 = vadd.xlane.f32.xlu1 %v675_v18  ;;  %v883_v45 = vsel %vm39_vm0, %v2066_v16, 0.0  ;;  %477 = vadd.xlane.f32.xlu0 %v476_v19  ;;  %v2074_v21 = vpop.eup %1510 }
 0x236   :  { %1514 = vpow2.f32 %v881_v17  ;;  %884 = vadd.xlane.f32.xlu2 %v883_v45  ;;  %v681_v40 = vsel %vm39_vm0, %v2074_v21, 0.0 }
 0x237   :  { %1516 = vpow2.f32 %v877_v50 }
 0x238   :  { %v867_v20 = vpop.xlane.xlu2 %866  ;;  %v1069_v48 = vpop.xlane.xlu1 %1068 }
 0x239   :  { %v873_v23 = vsub.f32 %v1971_v49, %v867_v20  ;;  %v1075_v24 = vpop.xlane.xlu0 %1074  ;;  %v1079_v30 = vsub.f32 %v1983_v54, %v1069_v48 }
 0x23a   :  { %v1081_v26 = vsub.f32 %v1985_v55, %v1075_v24 }
 0x23b   :  { %v2078_v27 = vpop.eup %1512  ;;  %v879_v29 = vmul.f32 1.442695, %v873_v23  ;;  %v1083_v55 = vmul.f32 1.442695, %v1079_v30 }
 0x23c   :  { %v2081_v32 = vpop.eup %1514  ;;  %v1087_v33 = vmul.f32 1.442695, %v1081_v26  ;;  %v684_v34 = vsel %vm39_vm0, %v2078_v27, 0.0 }
 0x23d   :  { %1518 = vpow2.f32 %v879_v29  ;;  %685 = vadd.xlane.f32.xlu1 %v684_v34  ;;  %v892_v49 = vsel %vm39_vm0, %v2081_v32, 0.0  ;;  %682 = vadd.xlane.f32.xlu0 %v681_v40  ;;  %v2089_v42 = vpop.eup %1516 }
 0x23e   :  { %1520 = vpow2.f32 %v1087_v33  ;;  %893 = vadd.xlane.f32.xlu2 %v892_v49  ;;  %v886_v58 = vsel %vm39_vm0, %v2089_v42, 0.0 }
 0x23f   :  { %1522 = vpow2.f32 %v1083_v55 }
 0x240   :  { %v1072_v28 = vpop.xlane.xlu2 %1071  ;;  %v1078_v54 = vpop.xlane.xlu1 %1077 }
 0x241   :  { %v1080_v46 = vsub.f32 %v1981_v53, %v1072_v28  ;;  %v1280_v37 = vpop.xlane.xlu0 %1279  ;;  %v1082_v39 = vsub.f32 %v1993_v59, %v1078_v54 }
 0x242   :  { %v1288_v51 = vsub.f32 %v1995_v60, %v1280_v37 }
 0x243   :  { %v2093_v31 = vpop.eup %1518  ;;  %v1085_v38 = vmul.f32 1.442695, %v1080_v46  ;;  %v1089_v60 = vmul.f32 1.442695, %v1082_v39 }
 0x244   :  { %v2096_v52 = vpop.eup %1520  ;;  %v1293_v36 = vmul.f32 1.442695, %v1288_v51  ;;  %v889_v57 = vsel %vm39_vm0, %v2093_v31, 0.0 }
 0x245   :  { %1524 = vpow2.f32 %v1085_v38  ;;  %890 = vadd.xlane.f32.xlu1 %v889_v57  ;;  %v1097_v53 = vsel %vm39_vm0, %v2096_v52, 0.0  ;;  %887 = vadd.xlane.f32.xlu0 %v886_v58  ;;  %v2104_v0 = vpop.eup %1522 }
 0x246   :  { %1526 = vpow2.f32 %v1293_v36  ;;  %1098 = vadd.xlane.f32.xlu2 %v1097_v53  ;;  %v1091_v43 = vsel %vm39_vm0, %v2104_v0, 0.0 }
 0x247   :  { %1528 = vpow2.f32 %v1089_v60 }
 0x248   :  { %v1277_v62 = vpop.xlane.xlu2 %1276  ;;  %v1283_v59 = vpop.xlane.xlu1 %1282 }
 0x249   :  { %v1287_v63 = vsub.f32 %v2003_v1, %v1277_v62  ;;  %v1289_v35 = vsub.f32 %v2005_v3, %v1283_v59 }
 0x24b   :  { %v2107_v6 = vpop.eup %1524  ;;  %v1291_v7 = vmul.f32 1.442695, %v1287_v63  ;;  %v1295_v1 = vmul.f32 1.442695, %v1289_v35 }
 0x24c   :  { %v2110_v44 = vpop.eup %1526  ;;  %v1094_v8 = vsel %vm39_vm0, %v2107_v6, 0.0 }
 0x24d   :  { %1530 = vpow2.f32 %v1291_v7  ;;  %1095 = vadd.xlane.f32.xlu1 %v1094_v8  ;;  %v1302_v10 = vsel %vm39_vm0, %v2110_v44, 0.0  ;;  %1092 = vadd.xlane.f32.xlu0 %v1091_v43  ;;  %v2118_v12 = vpop.eup %1528 }
 0x24e   :  { %1303 = vadd.xlane.f32.xlu2 %v1302_v10  ;;  %1532 = vpow2.f32 %v1295_v1  ;;  %v1100_v18 = vsel %vm39_vm0, %v2118_v12, 0.0 }
 0x250   :  { %v1286_v11 = vpop.xlane.xlu2 %1285 }
 0x251   :  { %v1290_v3 = vsub.f32 %v2011_v5, %v1286_v11 }
 0x253   :  { %v2121_v14 = vpop.eup %1530  ;;  %v1297_v15 = vmul.f32 1.442695, %v1290_v3 }
 0x254   :  { %v1299_v17 = vsel %vm39_vm0, %v2121_v14, 0.0  ;;  %v2127_v19 = vpop.eup %1532 }
 0x255   :  { %1534 = vpow2.f32 %v1297_v15  ;;  %1300 = vadd.xlane.f32.xlu1 %v1299_v17  ;;  %1101 = vadd.xlane.f32.xlu0 %v1100_v18  ;;  %v1305_v50 = vsel %vm39_vm0, %v2127_v19, 0.0 }
 0x25b   :  { %v2129_v45 = vpop.eup %1534 }
 0x25c   :  { %v1308_v5 = vsel %vm39_vm0, %v2129_v45, 0.0 }
 0x25d   :  { %1309 = vadd.xlane.f32.xlu1 %v1308_v5  ;;  %1306 = vadd.xlane.f32.xlu0 %v1305_v50 }
 0x288   :  { %v263_v20 = vpop.xlane.xlu0 %262 }
 0x289   :  { %1536 = vrcp.f32 %v263_v20  ;;  %v284_v30 = vand.u32 2147483648, %v263_v20  ;;  %v282_v34 = vand.u32 2147483647, %v263_v20  ;;  %vm278_vm15 = vweird.f32 %v263_v20 }
 0x28b   :  { %v285_v55 = vor.u32 1.1754944e-38, %v284_v30  ;;  %vm283_vm2 = vcmp.eq.f32.partialorder %v282_v34, 8.507059e+37 }
 0x28f   :  { %v1537_v48 = vpop.eup %1536 }
 0x290   :  { %v274_v23 = vmul.f32 %v1537_v48, %v263_v20  ;;  %v266_v24 = vpop.xlane.xlu1 %265  ;;  %vm279_vm14 = vweird.f32 %v1537_v48 }
 0x291   :  { %v269_v26 = vpop.xlane.xlu2 %268  ;;  %1538 = vrcp.f32 %v266_v24  ;;  %vm280_vm1 = vmor %vm278_vm15, %vm279_vm14  ;;  %v297_v58 = vand.u32 2147483647, %v266_v24  ;;  %v299_v62 = vand.u32 2147483648, %v266_v24  ;;  %vm293_vm6 = vweird.f32 %v266_v24 }
 0x292   :  { %v275_v29 = vsub.f32 1.0, %v274_v23  ;;  %1540 = vrcp.f32 %v269_v26  ;;  %v312_v60 = vand.u32 2147483647, %v269_v26  ;;  %v314_v59 = vand.u32 2147483648, %v269_v26 }
 0x293   :  { %vm308_vm5 = vweird.f32 %v269_v26  ;;  %vm298_vm9 = vcmp.eq.f32.partialorder %v297_v58, 8.507059e+37  ;;  %v300_v10 = vor.u32 1.1754944e-38, %v299_v62 }
 0x294   :  { %v276_v33 = vmul.f32 %v1537_v48, %v275_v29  ;;  %vm2146_vm7 = vcmp.eq.f32.partialorder %v312_v60, 8.507059e+37  ;;  %v315_v1 = vor.u32 1.1754944e-38, %v314_v59 }
 0x296   :  { %v277_v40 = vadd.f32 %v1537_v48, %v276_v33 }
 0x297   :  { %v1539_v49 = vpop.eup %1538 }
 0x298   :  { %v1541_v28 = vpop.eup %1540  ;;  %v281_v54 = vsel %vm280_vm1, %v1537_v48, %v277_v40  ;;  %v289_v46 = vmul.f32 %v1539_v49, %v266_v24  ;;  %v2135_v37 = vpop.xlane.xlu0 %271  ;;  %vm294_vm3 = vweird.f32 %v1539_v49 }
 0x299   :  { %v286_v51 = vsel %vm283_vm2, %v285_v55, %v281_v54  ;;  %v304_v38 = vmul.f32 %v1541_v28, %v269_v26  ;;  %1542 = vrcp.f32 %v2135_v37  ;;  %v2138_v39 = vpop.xlane.xlu2 %474  ;;  %vm309_vm4 = vweird.f32 %v1541_v28  ;;  %vm295_vm8 = vmor %vm293_vm6, %vm294_vm3 }
 0x29a   :  { %v287_v36 = vmul.f32 %v2018_v13, %v286_v51  ;;  %v290_v57 = vsub.f32 1.0, %v289_v46  ;;  %1544 = vrcp.f32 %v2138_v39  ;;  %vm310_vm10 = vmor %vm308_vm5, %vm309_vm4  ;;  %v327_v15 = vand.u32 2147483647, %v2135_v37 }
 0x29b   :  { %v305_v53 = vsub.f32 1.0, %v304_v38  ;;  %v329_v48 = vand.u32 2147483648, %v2135_v37  ;;  %v518_v34 = vand.u32 2147483647, %v2138_v39  ;;  %v520_v40 = vand.u32 2147483648, %v2138_v39 }
 0x29c   :  { %333 = vst.msk [vmem:[%s2544_s5] sm:$0xff] %vm39_vm0, %v287_v36  ;;  %v291_v63 = vmul.f32 %v1539_v49, %v290_v57  ;;  %vm323_vm12 = vweird.f32 %v2135_v37  ;;  %vm2177_vm13 = vcmp.eq.f32.partialorder %v327_v15, 8.507059e+37  ;;  %vm514_vm14 = vweird.f32 %v2138_v39 }
 0x29d   :  { %v306_v7 = vmul.f32 %v1541_v28, %v305_v53  ;;  %vm2185_vm2 = vcmp.eq.f32.partialorder %v518_v34, 8.507059e+37 }
 0x29e   :  { %v292_v35 = vadd.f32 %v1539_v49, %v291_v63 }
 0x29f   :  { %v1543_v13 = vpop.eup %1542  ;;  %v307_v8 = vadd.f32 %v1541_v28, %v306_v7 }
 0x2a0   :  { %v296_v11 = vsel %vm295_vm8, %v1539_v49, %v292_v35  ;;  %v319_v3 = vmul.f32 %v1543_v13, %v2135_v37  ;;  %v2152_v17 = vpop.xlane.xlu0 %468  ;;  %v2154_v18 = vpop.xlane.xlu1 %471  ;;  %vm324_vm11 = vweird.f32 %v1543_v13  ;;  %v521_v37 = vor.u32 1.1754944e-38, %v520_v40 }
 0x2a1   :  { %v1545_v5 = vpop.eup %1544  ;;  %v311_v50 = vsel %vm310_vm10, %v1541_v28, %v307_v8  ;;  %v301_v20 = vsel %vm298_vm9, %v300_v10, %v296_v11  ;;  %v2157_v23 = vpop.xlane.xlu2 %679  ;;  %1546 = vrcp.f32 %v2152_v17  ;;  %v330_v28 = vor.u32 1.1754944e-38, %v329_v48  ;;  %vm325_vm1 = vmor %vm323_vm12, %vm324_vm11 }
 0x2a2   :  { %v316_v24 = vsel %vm2146_vm7, %v315_v1, %v311_v50  ;;  %v302_v26 = vmul.f32 %v2024_v22, %v301_v20  ;;  %v320_v29 = vsub.f32 1.0, %v319_v3  ;;  %v510_v30 = vmul.f32 %v1545_v5, %v2138_v39 }
 0x2a3   :  { %v317_v33 = vmul.f32 %v2027_v25, %v316_v24  ;;  %1548 = vrcp.f32 %v2157_v23  ;;  %vm515_vm15 = vweird.f32 %v1545_v5  ;;  %v711_v38 = vand.u32 2147483647, %v2157_v23 }
 0x2a4   :  { %334 = vst.msk [vmem:[%s2544_s5 + $0x8] sm:$0xff] %vm39_vm0, %v302_v26  ;;  %v321_v49 = vmul.f32 %v1543_v13, %v320_v29  ;;  %v511_v55 = vsub.f32 1.0, %v510_v30  ;;  %1550 = vrcp.f32 %v2154_v18  ;;  %vm484_vm3 = vweird.f32 %v2152_v17  ;;  %vm516_vm5 = vmor %vm514_vm14, %vm515_vm15 }
 0x2a5   :  { %335 = vst.msk [vmem:[%s2544_s5 + $0x10] sm:$0xff] %vm39_vm0, %v317_v33  ;;  %vm707_vm4 = vweird.f32 %v2157_v23  ;;  %v713_v58 = vand.u32 2147483648, %v2157_v23  ;;  %v488_v63 = vand.u32 2147483647, %v2152_v17  ;;  %v490_v7 = vand.u32 2147483648, %v2152_v17 }
 0x2a6   :  { %v322_v25 = vadd.f32 %v1543_v13, %v321_v49  ;;  %v512_v54 = vmul.f32 %v1545_v5, %v511_v55  ;;  %vm499_vm6 = vweird.f32 %v2154_v18  ;;  %v503_v10 = vand.u32 2147483647, %v2154_v18 }
 0x2a7   :  { %v2183_v46 = vpop.eup %1546  ;;  %v505_v15 = vand.u32 2147483648, %v2154_v18  ;;  %vm2222_vm7 = vcmp.eq.f32.partialorder %v711_v38, 8.507059e+37  ;;  %v714_v48 = vor.u32 1.1754944e-38, %v713_v58  ;;  %vm2229_vm9 = vcmp.eq.f32.partialorder %v488_v63, 8.507059e+37 }
 0x2a8   :  { %v326_v36 = vsel %vm325_vm1, %v1543_v13, %v322_v25  ;;  %v513_v57 = vadd.f32 %v1545_v5, %v512_v54  ;;  %v480_v53 = vmul.f32 %v2183_v46, %v2152_v17  ;;  %v2195_v60 = vpop.xlane.xlu0 %477  ;;  %v2211_v1 = vpop.xlane.xlu1 %676  ;;  %vm485_vm8 = vweird.f32 %v2183_v46 }
 0x2a9   :  { %v1549_v62 = vpop.eup %1548  ;;  %v331_v59 = vsel %vm2177_vm13, %v330_v28, %v326_v36  ;;  %v2204_v35 = vpop.xlane.xlu2 %884  ;;  %1552 = vrcp.f32 %v2195_v60  ;;  %v491_v29 = vor.u32 1.1754944e-38, %v490_v7  ;;  %vm2238_vm11 = vcmp.eq.f32.partialorder %v503_v10, 8.507059e+37  ;;  %vm486_vm12 = vmor %vm484_vm3, %vm485_vm8 }
 0x2aa   :  { %v332_v13 = vmul.f32 %v2035_v41, %v331_v59  ;;  %v517_v8 = vsel %vm516_vm5, %v1545_v5, %v513_v57  ;;  %v703_v43 = vmul.f32 %v1549_v62, %v2157_v23  ;;  %v1551_v39 = vpop.eup %1550  ;;  %v481_v3 = vsub.f32 1.0, %v480_v53 }
 0x2ab   :  { %v522_v11 = vsel %vm2185_vm2, %v521_v37, %v517_v8  ;;  %1554 = vrcp.f32 %v2204_v35  ;;  %v495_v20 = vmul.f32 %v1551_v39, %v2154_v18  ;;  %vm708_vm10 = vweird.f32 %v1549_v62 }
 0x2ac   :  { %336 = vst.msk [vmem:[%s2544_s5 + $0x18] sm:$0xff] %vm39_vm0, %v332_v13  ;;  %v523_v41 = vmul.f32 %v2038_v47, %v522_v11  ;;  %v704_v5 = vsub.f32 1.0, %v703_v43  ;;  %v482_v24 = vmul.f32 %v2183_v46, %v481_v3  ;;  %v506_v49 = vor.u32 1.1754944e-38, %v505_v15  ;;  %vm709_vm14 = vmor %vm707_vm4, %vm708_vm10 }
 0x2ad   :  { %v496_v30 = vsub.f32 1.0, %v495_v20  ;;  %1556 = vrcp.f32 %v2211_v1  ;;  %vm500_vm13 = vweird.f32 %v1551_v39  ;;  %vm900_vm15 = vweird.f32 %v2204_v35 }
 0x2ae   :  { %1407 = vst.msk [vmem:[%s2544_s5 + $0x30] sm:$0xff] %vm39_vm0, %v523_v41  ;;  %v705_v47 = vmul.f32 %v1549_v62, %v704_v5  ;;  %v483_v34 = vadd.f32 %v2183_v46, %v482_v24  ;;  %v904_v37 = vand.u32 2147483647, %v2204_v35  ;;  %v906_v17 = vand.u32 2147483648, %v2204_v35  ;;  %vm501_vm1 = vmor %vm499_vm6, %vm500_vm13 }
 0x2af   :  { %v1553_v33 = vpop.eup %1552  ;;  %v497_v22 = vmul.f32 %v1551_v39, %v496_v30  ;;  %v533_v63 = vand.u32 2147483647, %v2195_v60  ;;  %v535_v8 = vand.u32 2147483648, %v2195_v60  ;;  %vm529_vm5 = vweird.f32 %v2195_v60 }
 0x2b0   :  { %v706_v55 = vadd.f32 %v1549_v62, %v705_v47  ;;  %v525_v25 = vmul.f32 %v1553_v33, %v2195_v60  ;;  %v2246_v28 = vpop.xlane.xlu0 %682  ;;  %v487_v51 = vsel %vm486_vm12, %v2183_v46, %v483_v34  ;;  %v2269_v43 = vpop.xlane.xlu1 %685  ;;  %vm530_vm2 = vweird.f32 %v1553_v33 }
 0x2b1   :  { %v1555_v54 = vpop.eup %1554  ;;  %v2255_v38 = vpop.xlane.xlu2 %893  ;;  %v492_v57 = vsel %vm2229_vm9, %v491_v29, %v487_v51  ;;  %v498_v58 = vadd.f32 %v1551_v39, %v497_v22  ;;  %vm2284_vm4 = vcmp.eq.f32.partialorder %v904_v37, 8.507059e+37  ;;  %v696_v41 = vand.u32 2147483647, %v2211_v1  ;;  %vm531_vm6 = vmor %vm529_vm5, %vm530_vm2 }
 0x2b2   :  { %v710_v36 = vsel %vm709_vm14, %v1549_v62, %v706_v55  ;;  %v896_v53 = vmul.f32 %v1555_v54, %v2204_v35  ;;  %v493_v46 = vmul.f32 %v2044_v56, %v492_v57  ;;  %v526_v59 = vsub.f32 1.0, %v525_v25 }
 0x2b3   :  { %v715_v23 = vsel %vm2222_vm7, %v714_v48, %v710_v36  ;;  %v502_v7 = vsel %vm501_vm1, %v1551_v39, %v498_v58  ;;  %v1557_v10 = vpop.eup %1556  ;;  %1558 = vrcp.f32 %v2255_v38  ;;  %vm901_vm3 = vweird.f32 %v1555_v54 }
 0x2b4   :  { %v716_v62 = vmul.f32 %v2051_v4, %v715_v23  ;;  %v897_v13 = vsub.f32 1.0, %v896_v53  ;;  %1405 = vst.msk [vmem:[%s2544_s5 + $0x20] sm:$0xff] %vm39_vm0, %v493_v46  ;;  %v507_v56 = vsel %vm2238_vm11, %v506_v49, %v502_v7  ;;  %v527_v18 = vmul.f32 %v1553_v33, %v526_v59  ;;  %vm902_vm7 = vmor %vm900_vm15, %vm901_vm3 }
 0x2b5   :  { %v508_v4 = vmul.f32 %v2048_v61, %v507_v56  ;;  %v688_v11 = vmul.f32 %v1557_v10, %v2211_v1  ;;  %v536_v61 = vor.u32 1.1754944e-38, %v535_v8  ;;  %v698_v20 = vand.u32 2147483648, %v2211_v1 }
 0x2b6   :  { %1422 = vst.msk [vmem:[%s2544_s5 + $0x48] sm:$0xff] %vm39_vm0, %v716_v62  ;;  %v898_v39 = vmul.f32 %v1555_v54, %v897_v13  ;;  %v528_v15 = vadd.f32 %v1553_v33, %v527_v18  ;;  %v907_v24 = vor.u32 1.1754944e-38, %v906_v17  ;;  %vm534_vm8 = vcmp.eq.f32.partialorder %v533_v63, 8.507059e+37 }
 0x2b7   :  { %1406 = vst.msk [vmem:[%s2544_s5 + $0x28] sm:$0xff] %vm39_vm0, %v508_v4  ;;  %v689_v50 = vsub.f32 1.0, %v688_v11  ;;  %1560 = vrcp.f32 %v2246_v28  ;;  %vm693_vm9 = vweird.f32 %v1557_v10  ;;  %vm692_vm10 = vweird.f32 %v2211_v1 }
 0x2b8   :  { %v899_v5 = vadd.f32 %v1555_v54, %v898_v39  ;;  %v2295_v48 = vpop.xlane.xlu0 %887  ;;  %v532_v60 = vsel %vm531_vm6, %v1553_v33, %v528_v15  ;;  %vm2304_vm11 = vcmp.eq.f32.partialorder %v696_v41, 8.507059e+37  ;;  %v699_v22 = vor.u32 1.1754944e-38, %v698_v20  ;;  %vm694_vm12 = vmor %vm692_vm10, %vm693_vm9  ;;  %v2326_v37 = vpop.xlane.xlu1 %890 }
 0x2b9   :  { %v537_v47 = vsel %vm534_vm8, %v536_v61, %v532_v60  ;;  %v690_v29 = vmul.f32 %v1557_v10, %v689_v50  ;;  %v1559_v30 = vpop.eup %1558  ;;  %v2308_v33 = vpop.xlane.xlu2 %1098  ;;  %vm945_vm13 = vweird.f32 %v2255_v38  ;;  %v951_v1 = vand.u32 2147483648, %v2255_v38 }
 0x2ba   :  { %v903_v26 = vsel %vm902_vm7, %v1555_v54, %v899_v5  ;;  %v538_v40 = vmul.f32 %v2059_v9, %v537_v47  ;;  %v941_v25 = vmul.f32 %v1559_v30, %v2255_v38  ;;  %v949_v9 = vand.u32 2147483647, %v2255_v38 }
 0x2bb   :  { %v908_v34 = vsel %vm2284_vm4, %v907_v24, %v903_v26  ;;  %v691_v55 = vadd.f32 %v1557_v10, %v690_v29  ;;  %1562 = vrcp.f32 %v2269_v43  ;;  %v726_v51 = vand.u32 2147483647, %v2246_v28 }
 0x2bc   :  { %v909_v49 = vmul.f32 %v2066_v16, %v908_v34  ;;  %1408 = vst.msk [vmem:[%s2544_s5 + $0x38] sm:$0xff] %vm39_vm0, %v538_v40  ;;  %v942_v54 = vsub.f32 1.0, %v941_v25  ;;  %1564 = vrcp.f32 %v2308_v33  ;;  %vm946_vm14 = vweird.f32 %v1559_v30 }
 0x2bd   :  { %v695_v16 = vsel %vm694_vm12, %v1557_v10, %v691_v55  ;;  %v1561_v17 = vpop.eup %1560  ;;  %vm722_vm15 = vweird.f32 %v2246_v28  ;;  %v728_v57 = vand.u32 2147483648, %v2246_v28  ;;  %v741_v46 = vand.u32 2147483647, %v2269_v43  ;;  %vm947_vm4 = vmor %vm945_vm13, %vm946_vm14 }
 0x2be   :  { %1437 = vst.msk [vmem:[%s2544_s5 + $0x60] sm:$0xff] %vm39_vm0, %v909_v49  ;;  %v700_v36 = vsel %vm2304_vm11, %v699_v22, %v695_v16  ;;  %v943_v53 = vmul.f32 %v1559_v30, %v942_v54  ;;  %v718_v23 = vmul.f32 %v1561_v17, %v2246_v28  ;;  %vm2335_vm1 = vcmp.eq.f32.partialorder %v949_v9, 8.507059e+37 }
 0x2bf   :  { %v701_v58 = vmul.f32 %v2063_v2, %v700_v36  ;;  %v952_v63 = vor.u32 1.1754944e-38, %v951_v1  ;;  %v743_v62 = vand.u32 2147483648, %v2269_v43  ;;  %1566 = vrcp.f32 %v2295_v48 }
 0x2c0   :  { %v944_v2 = vadd.f32 %v1559_v30, %v943_v53  ;;  %v719_v7 = vsub.f32 1.0, %v718_v23  ;;  %vm2345_vm2 = vcmp.eq.f32.partialorder %v726_v51, 8.507059e+37  ;;  %vm737_vm3 = vweird.f32 %v2269_v43  ;;  %v2350_v8 = vpop.xlane.xlu0 %1092  ;;  %v2383_v35 = vpop.xlane.xlu1 %1095 }
 0x2c1   :  { %1421 = vst.msk [vmem:[%s2544_s5 + $0x40] sm:$0xff] %vm39_vm0, %v701_v58  ;;  %v1563_v10 = vpop.eup %1562  ;;  %v729_v56 = vor.u32 1.1754944e-38, %v728_v57  ;;  %v1142_v18 = vand.u32 2147483647, %v2308_v33  ;;  %v1144_v4 = vand.u32 2147483648, %v2308_v33  ;;  %1568 = vrcp.f32 %v2326_v37  ;;  %v2381_v28 = vpop.xlane.xlu2 %1303 }
 0x2c2   :  { %v1565_v39 = vpop.eup %1564  ;;  %v948_v11 = vsel %vm947_vm4, %v1559_v30, %v944_v2  ;;  %v720_v3 = vmul.f32 %v1561_v17, %v719_v7  ;;  %vm723_vm5 = vweird.f32 %v1561_v17  ;;  %v733_v15 = vmul.f32 %v1563_v10, %v2269_v43 }
 0x2c3   :  { %vm2359_vm6 = vcmp.eq.f32.partialorder %v741_v46, 8.507059e+37  ;;  %v953_v38 = vsel %vm2335_vm1, %v952_v63, %v948_v11  ;;  %v744_v5 = vor.u32 1.1754944e-38, %v743_v62  ;;  %v1134_v61 = vmul.f32 %v1565_v39, %v2308_v33  ;;  %vm724_vm9 = vmor %vm722_vm15, %vm723_vm5 }
 0x2c4   :  { %vm1138_vm7 = vweird.f32 %v2308_v33  ;;  %v954_v50 = vmul.f32 %v2081_v32, %v953_v38  ;;  %v721_v20 = vadd.f32 %v1561_v17, %v720_v3  ;;  %v734_v24 = vsub.f32 1.0, %v733_v15 }
 0x2c5   :  { %vm915_vm8 = vweird.f32 %v2295_v48  ;;  %v1567_v60 = vpop.eup %1566  ;;  %v1135_v26 = vsub.f32 1.0, %v1134_v61  ;;  %vm2371_vm10 = vcmp.eq.f32.partialorder %v1142_v18, 8.507059e+37  ;;  %v1145_v29 = vor.u32 1.1754944e-38, %v1144_v4 }
 0x2c6   :  { %v919_v30 = vand.u32 2147483647, %v2295_v48  ;;  %1440 = vst.msk [vmem:[%s2544_s5 + $0x78] sm:$0xff] %vm39_vm0, %v954_v50  ;;  %v725_v32 = vsel %vm724_vm9, %v1561_v17, %v721_v20  ;;  %v735_v34 = vmul.f32 %v1563_v10, %v734_v24  ;;  %vm738_vm11 = vweird.f32 %v1563_v10 }
 0x2c7   :  { %v911_v40 = vmul.f32 %v1567_v60, %v2295_v48  ;;  %v1569_v49 = vpop.eup %1568  ;;  %v730_v55 = vsel %vm2345_vm2, %v729_v56, %v725_v32  ;;  %v1136_v22 = vmul.f32 %v1565_v39, %v1135_v26  ;;  %vm1139_vm12 = vweird.f32 %v1565_v39  ;;  %vm739_vm13 = vmor %vm737_vm3, %vm738_vm11 }
 0x2c8   :  { %v921_v25 = vand.u32 2147483648, %v2295_v48  ;;  %v731_v9 = vmul.f32 %v2074_v21, %v730_v55  ;;  %v736_v1 = vadd.f32 %v1563_v10, %v735_v34  ;;  %v926_v54 = vmul.f32 %v1569_v49, %v2326_v37  ;;  %vm1140_vm14 = vmor %vm1138_vm7, %vm1139_vm12  ;;  %v2401_v58 = vpop.xlane.xlu0 %1101  ;;  %v2425_v4 = vpop.xlane.xlu1 %1300 }
 0x2c9   :  { %v912_v16 = vsub.f32 1.0, %v911_v40  ;;  %v1137_v51 = vadd.f32 %v1565_v39, %v1136_v22  ;;  %v934_v17 = vand.u32 2147483647, %v2326_v37  ;;  %v936_v36 = vand.u32 2147483648, %v2326_v37 }
 0x2ca   :  { %1570 = vrcp.f32 %v2381_v28  ;;  %1423 = vst.msk [vmem:[%s2544_s5 + $0x50] sm:$0xff] %vm39_vm0, %v731_v9  ;;  %v740_v21 = vsel %vm739_vm13, %v1563_v10, %v736_v1  ;;  %vm916_vm15 = vweird.f32 %v1567_v60  ;;  %v927_v43 = vsub.f32 1.0, %v926_v54 }
 0x2cb   :  { %v913_v57 = vmul.f32 %v1567_v60, %v912_v16  ;;  %v745_v53 = vsel %vm2359_vm6, %v744_v5, %v740_v21  ;;  %v1141_v23 = vsel %vm1140_vm14, %v1565_v39, %v1137_v51  ;;  %vm931_vm1 = vweird.f32 %v1569_v49  ;;  %vm917_vm2 = vmor %vm915_vm8, %vm916_vm15 }
 0x2cc   :  { %1572 = vrcp.f32 %v2350_v8  ;;  %v746_v46 = vmul.f32 %v2078_v27, %v745_v53  ;;  %v1146_v59 = vsel %vm2371_vm10, %v1145_v29, %v1141_v23  ;;  %v928_v33 = vmul.f32 %v1569_v49, %v927_v43 }
 0x2cd   :  { %v914_v63 = vadd.f32 %v1567_v60, %v913_v57  ;;  %v1147_v62 = vmul.f32 %v2096_v52, %v1146_v59  ;;  %v922_v2 = vor.u32 1.1754944e-38, %v921_v25  ;;  %vm920_vm3 = vcmp.eq.f32.partialorder %v919_v30, 8.507059e+37 }
 0x2ce   :  { %1424 = vst.msk [vmem:[%s2544_s5 + $0x58] sm:$0xff] %vm39_vm0, %v746_v46  ;;  %v929_v13 = vadd.f32 %v1569_v49, %v928_v33  ;;  %vm930_vm4 = vweird.f32 %v2326_v37  ;;  %v937_v48 = vor.u32 1.1754944e-38, %v936_v36  ;;  %1574 = vrcp.f32 %v2383_v35 }
 0x2cf   :  { %v918_v7 = vsel %vm917_vm2, %v1567_v60, %v914_v63  ;;  %1455 = vst.msk [vmem:[%s2544_s5 + $0x90] sm:$0xff] %vm39_vm0, %v1147_v62  ;;  %vm932_vm5 = vmor %vm930_vm4, %vm931_vm1  ;;  %vm935_vm6 = vcmp.eq.f32.partialorder %v934_v17, 8.507059e+37  ;;  %v1335_v11 = vand.u32 2147483647, %v2381_v28  ;;  %v1337_v3 = vand.u32 2147483648, %v2381_v28 }
 0x2d0   :  { %v1571_v27 = vpop.eup %1570  ;;  %v923_v52 = vsel %vm920_vm3, %v922_v2, %v918_v7  ;;  %v933_v56 = vsel %vm932_vm5, %v1569_v49, %v929_v13  ;;  %vm1331_vm7 = vweird.f32 %v2381_v28  ;;  %v1112_v38 = vand.u32 2147483647, %v2350_v8  ;;  %v2473_v21 = vpop.xlane.xlu1 %1309 }
 0x2d1   :  { %v924_v10 = vmul.f32 %v2089_v42, %v923_v52  ;;  %v1327_v18 = vmul.f32 %v1571_v27, %v2381_v28  ;;  %v938_v39 = vsel %vm935_vm6, %v937_v48, %v933_v56  ;;  %v1114_v5 = vand.u32 2147483648, %v2350_v8 }
 0x2d2   :  { %v1573_v37 = vpop.eup %1572  ;;  %v939_v15 = vmul.f32 %v2093_v31, %v938_v39  ;;  %1576 = vrcp.f32 %v2401_v58  ;;  %vm1332_vm8 = vweird.f32 %v1571_v27  ;;  %v2444_v31 = vpop.xlane.xlu0 %1306  ;;  %vm2446_vm9 = vcmp.eq.f32.partialorder %v1335_v11, 8.507059e+37 }
 0x2d3   :  { %1438 = vst.msk [vmem:[%s2544_s5 + $0x68] sm:$0xff] %vm39_vm0, %v924_v10  ;;  %v1328_v42 = vsub.f32 1.0, %v1327_v18  ;;  %v1104_v41 = vmul.f32 %v1573_v37, %v2350_v8  ;;  %1578 = vrcp.f32 %v2425_v4  ;;  %v1338_v60 = vor.u32 1.1754944e-38, %v1337_v3  ;;  %vm1333_vm12 = vmor %vm1331_vm7, %vm1332_vm8 }
 0x2d4   :  { %1439 = vst.msk [vmem:[%s2544_s5 + $0x70] sm:$0xff] %vm39_vm0, %v939_v15  ;;  %v1575_v20 = vpop.eup %1574  ;;  %vm1108_vm10 = vweird.f32 %v2350_v8  ;;  %v1127_v26 = vand.u32 2147483647, %v2383_v35  ;;  %vm1109_vm11 = vweird.f32 %v1573_v37  ;;  %vm2455_vm13 = vcmp.eq.f32.partialorder %v1112_v38, 8.507059e+37 }
 0x2d5   :  { %v1329_v61 = vmul.f32 %v1571_v27, %v1328_v42  ;;  %v1105_v50 = vsub.f32 1.0, %v1104_v41  ;;  %v1119_v30 = vmul.f32 %v1575_v20, %v2383_v35  ;;  %v1115_v34 = vor.u32 1.1754944e-38, %v1114_v5  ;;  %vm1110_vm15 = vmor %vm1108_vm10, %vm1109_vm11 }
 0x2d6   :  { %vm1123_vm14 = vweird.f32 %v2383_v35  ;;  %1580 = vrcp.f32 %v2444_v31  ;;  %v1129_v22 = vand.u32 2147483648, %v2383_v35  ;;  %vm1124_vm1 = vweird.f32 %v1575_v20 }
 0x2d7   :  { %v1330_v47 = vadd.f32 %v1571_v27, %v1329_v61  ;;  %v1106_v29 = vmul.f32 %v1573_v37, %v1105_v50  ;;  %v1120_v55 = vsub.f32 1.0, %v1119_v30  ;;  %vm2466_vm2 = vcmp.eq.f32.partialorder %v1127_v26, 8.507059e+37  ;;  %vm1125_vm4 = vmor %vm1123_vm14, %vm1124_vm1 }
 0x2d8   :  { %v1577_v25 = vpop.eup %1576  ;;  %v1157_v1 = vand.u32 2147483647, %v2401_v58  ;;  %vm1153_vm3 = vweird.f32 %v2401_v58  ;;  %v1159_v57 = vand.u32 2147483648, %v2401_v58  ;;  %v1130_v23 = vor.u32 1.1754944e-38, %v1129_v22 }
 0x2d9   :  { %v1334_v40 = vsel %vm1333_vm12, %v1571_v27, %v1330_v47  ;;  %v1107_v49 = vadd.f32 %v1573_v37, %v1106_v29  ;;  %v1579_v16 = vpop.eup %1578  ;;  %v1121_v17 = vmul.f32 %v1575_v20, %v1120_v55  ;;  %v1149_v36 = vmul.f32 %v1577_v25, %v2401_v58 }
 0x2da   :  { %v1339_v9 = vsel %vm2446_vm9, %v1338_v60, %v1334_v40  ;;  %v1312_v43 = vmul.f32 %v1579_v16, %v2425_v4  ;;  %vm2488_vm5 = vcmp.eq.f32.partialorder %v1157_v1, 8.507059e+37  ;;  %v1322_v62 = vand.u32 2147483648, %v2425_v4 }
 0x2db   :  { %v1340_v54 = vmul.f32 %v2110_v44, %v1339_v9  ;;  %v1111_v51 = vsel %vm1110_vm15, %v1573_v37, %v1107_v49  ;;  %v1122_v53 = vadd.f32 %v1575_v20, %v1121_v17  ;;  %v1150_v46 = vsub.f32 1.0, %v1149_v36 }
 0x2dc   :  { %v1116_v8 = vsel %vm2455_vm13, %v1115_v34, %v1111_v51  ;;  %v1581_v59 = vpop.eup %1580  ;;  %v1313_v33 = vsub.f32 1.0, %v1312_v43  ;;  %1582 = vrcp.f32 %v2473_v21  ;;  %vm1154_vm6 = vweird.f32 %v1577_v25 }
 0x2dd   :  { %1470 = vst.msk [vmem:[%s2544_s5 + $0xa8] sm:$0xff] %vm39_vm0, %v1340_v54  ;;  %v1117_v44 = vmul.f32 %v2104_v0, %v1116_v8  ;;  %v1126_v0 = vsel %vm1125_vm4, %v1575_v20, %v1122_v53  ;;  %v1151_v2 = vmul.f32 %v1577_v25, %v1150_v46  ;;  %v1342_v35 = vmul.f32 %v1581_v59, %v2444_v31  ;;  %vm1155_vm9 = vmor %vm1153_vm3, %vm1154_vm6 }
 0x2de   :  { %v1131_v7 = vsel %vm2466_vm2, %v1130_v23, %v1126_v0  ;;  %v1314_v13 = vmul.f32 %v1579_v16, %v1313_v33  ;;  %vm1317_vm7 = vweird.f32 %v1579_v16  ;;  %v1320_v27 = vand.u32 2147483647, %v2425_v4 }
 0x2df   :  { %1453 = vst.msk [vmem:[%s2544_s5 + $0x80] sm:$0xff] %vm39_vm0, %v1117_v44  ;;  %v1132_v52 = vmul.f32 %v2107_v6, %v1131_v7  ;;  %v1152_v48 = vadd.f32 %v1577_v25, %v1151_v2  ;;  %vm1316_vm8 = vweird.f32 %v2425_v4  ;;  %v1343_v10 = vsub.f32 1.0, %v1342_v35 }
 0x2e0   :  { %v1160_v56 = vor.u32 1.1754944e-38, %v1159_v57  ;;  %v1315_v18 = vadd.f32 %v1579_v16, %v1314_v13  ;;  %v1323_v37 = vor.u32 1.1754944e-38, %v1322_v62  ;;  %v1352_v39 = vand.u32 2147483648, %v2444_v31  ;;  %vm1318_vm10 = vmor %vm1316_vm8, %vm1317_vm7 }
 0x2e1   :  { %1454 = vst.msk [vmem:[%s2544_s5 + $0x88] sm:$0xff] %vm39_vm0, %v1132_v52  ;;  %v1156_v11 = vsel %vm1155_vm9, %v1577_v25, %v1152_v48  ;;  %v1344_v6 = vmul.f32 %v1581_v59, %v1343_v10  ;;  %vm1347_vm11 = vweird.f32 %v1581_v59  ;;  %v1350_v4 = vand.u32 2147483647, %v2444_v31 }
 0x2e2   :  { %v1583_v3 = vpop.eup %1582  ;;  %v1161_v58 = vsel %vm2488_vm5, %v1160_v56, %v1156_v11  ;;  %v1319_v15 = vsel %vm1318_vm10, %v1579_v16, %v1315_v18  ;;  %vm1321_vm12 = vcmp.eq.f32.partialorder %v1320_v27, 8.507059e+37  ;;  %vm1346_vm13 = vweird.f32 %v2444_v31 }
 0x2e3   :  { %v1162_v42 = vmul.f32 %v2118_v12, %v1161_v58  ;;  %v1324_v41 = vsel %vm1321_vm12, %v1323_v37, %v1319_v15  ;;  %v1345_v38 = vadd.f32 %v1581_v59, %v1344_v6  ;;  %v1357_v5 = vmul.f32 %v1583_v3, %v2473_v21  ;;  %vm1348_vm14 = vmor %vm1346_vm13, %vm1347_vm11 }
 0x2e4   :  { %v1325_v61 = vmul.f32 %v2121_v14, %v1324_v41  ;;  %v1353_v50 = vor.u32 1.1754944e-38, %v1352_v39  ;;  %vm1351_vm15 = vcmp.eq.f32.partialorder %v1350_v4, 8.507059e+37  ;;  %v1367_v31 = vand.u32 2147483648, %v2473_v21 }
 0x2e5   :  { %1456 = vst.msk [vmem:[%s2544_s5 + $0x98] sm:$0xff] %vm39_vm0, %v1162_v42  ;;  %v1349_v20 = vsel %vm1348_vm14, %v1581_v59, %v1345_v38  ;;  %v1358_v24 = vsub.f32 1.0, %v1357_v5  ;;  %vm1362_vm1 = vweird.f32 %v1583_v3  ;;  %v1365_v26 = vand.u32 2147483647, %v2473_v21 }
 0x2e6   :  { %1469 = vst.msk [vmem:[%s2544_s5 + $0xa0] sm:$0xff] %vm39_vm0, %v1325_v61  ;;  %v1354_v12 = vsel %vm1351_vm15, %v1353_v50, %v1349_v20  ;;  %vm1361_vm2 = vweird.f32 %v2473_v21  ;;  %v1368_v29 = vor.u32 1.1754944e-38, %v1367_v31 }
 0x2e7   :  { %v1355_v14 = vmul.f32 %v2127_v19, %v1354_v12  ;;  %v1359_v60 = vmul.f32 %v1583_v3, %v1358_v24  ;;  %vm1363_vm3 = vmor %vm1361_vm2, %vm1362_vm1  ;;  %vm1366_vm4 = vcmp.eq.f32.partialorder %v1365_v26, 8.507059e+37 }
 0x2e9   :  { %1471 = vst.msk [vmem:[%s2544_s5 + $0xb0] sm:$0xff] %vm39_vm0, %v1355_v14  ;;  %v1360_v47 = vadd.f32 %v1583_v3, %v1359_v60 }
 0x2eb   :  { %v1364_v30 = vsel %vm1363_vm3, %v1583_v3, %v1360_v47 }
 0x2ec   :  { %v1369_v32 = vsel %vm1366_vm4, %v1368_v29, %v1364_v30 }
 0x2ed   :  { %v1370_v34 = vmul.f32 %v2129_v45, %v1369_v32 }
 0x2ef   :  { %1472 = vst.msk [vmem:[%s2544_s5 + $0xb8] sm:$0xff] %vm39_vm0, %v1370_v34 }

// kernel: dstrnn_forward.15
= control target key start
LH: loop header
LB: loop body
LE: loop exit
PB: predicated region body
PF: predicated region fallthrough
CT: control target
= control target key end

     0   :  { %s2127_s29 = smov 0   ;;  %s2628_s0 = inlined_call_operand.vmem [shape: f32[2,8,2], index: 0, kind: input, shape index: {}, may-alias: {0,1}]   ;;  %s2629_s1 = inlined_call_operand.vmem [shape: f32[2,8,2], index: 1, kind: input, shape index: {}, may-alias: {0,1}]   ;;  %s2630_s2 = inlined_call_operand.vmem [shape: f32[2,8,16], index: 2, kind: input, shape index: {}]   ;;  %s2631_s3 = inlined_call_operand.vmem [shape: bf16[2,256], index: 3, kind: input, shape index: {}]   ;;  %s2632_s4 = inlined_call_operand.vmem [shape: f32[1,256], index: 4, kind: input, shape index: {}]   ;;  %s2633_s5 = inlined_call_operand.vmem [shape: f32[1,256], index: 5, kind: input, shape index: {}]   ;;  %s2634_s6 = inlined_call_operand.vmem [shape: f32[16,16], index: 6, kind: input, shape index: {}]   ;;  %s2635_s7 = inlined_call_operand.vmem [shape: bf16[256,256], index: 7, kind: input, shape index: {}]   ;;  %s2636_s8 = inlined_call_operand.vmem [shape: bf16[256,256], index: 8, kind: input, shape index: {}]   ;;  %s2637_s9 = inlined_call_operand.vmem [shape: f32[1,256], index: 9, kind: input, shape index: {}]   ;;  %s2638_s10 = inlined_call_operand.vmem [shape: bf16[256,16], index: 10, kind: input, shape index: {}]   ;;  %s2639_s11 = inlined_call_operand.vmem [shape: f32[1,16], index: 11, kind: input, shape index: {}]   ;;  %s2640_s12 = inlined_call_operand.vmem [shape: f32[1,16], index: 12, kind: input, shape index: {}]   ;;  %s2641_s13 = inlined_call_operand.vmem [shape: f32[1,16], index: 13, kind: input, shape index: {}]   ;;  %s2642_s14 = inlined_call_operand.vmem [shape: f32[2,8,16], index: 14, kind: output, shape index: {}]  }
   0x1 LB: > { %s1585_s30 = sadd.s32 4294967295, %s2049_s29   ;;  %p1589_p0 = scmp.ge.s32.totalorder %s2049_s29, 1  ;;  %s2049_s29 = sphi %s2127_s29, %s24_s29  }
   0x2   : > { %p429_p1 = scmp.lt.s32.totalorder %s2049_s29, 3 }
   0x4   : > { %p430_p2 = pnand %p1589_p0, %p429_p1 }
   0x5   : > { %p481_p3 = scmp.lt.s32.totalorder (!%p430_p2), %s1585_s30, 1 }
   0x6   : > { %433 = sbr.rel (%p430_p2) target bundleno = 1464 (0x5b8), region = 76 }
   0xb   : > { %v500_v0 = vld [vmem:[%s2631_s3] sm:$0x3]  ;;  %s2644_s30 = smov (!%p481_p3, %s1585_s30), 1  ;;  %vm510_vm0 = vcmask 1040384   ;;  %vm506_vm1 = vcmask 15360   ;;  %v612_v48 = vlaneseq  ;;  %vm617_vm2 = vcmask 130112  }
   0xc   : > { %503 = vst [vmem:[#allocation1] ss:$9 sm:$0xff] %v500_v0  ;;  %s2138_s17 = sshll.u32 %s2644_s30, 3  ;;  %v594_v13 = vld [vmem:[%s2633_s5] sm:$0x3]  ;;  %vm644_vm4 = vcmask 130048  }
   0xd   : > { %s488_s20 = scalar_lea.vmem %s2629_s1, %s2138_s17  ;;  %s484_s23 = scalar_lea.vmem %s2628_s0, %s2138_s17  ;;  %v578_v14 = vld [vmem:[%s2632_s4] sm:$0x3]  ;;  %v596_v15 = vperm.slane %v594_v13, 0  ;;  %v597_v16 = vperm.slane %v594_v13, 1  ;;  %v613_v50 = vand.u32 127, %v612_v48 }
   0xe   : > { %v499_v1 = vld [vmem:[%s488_s20] sm:$0xff]  ;;  %v580_v17 = vperm.slane %v578_v14, 0  ;;  %v581_v18 = vperm.slane %v578_v14, 1  ;;  %v1957_v48 = vld [vmem:[%s2635_s7 + $0xf4] sm:$0xf0]  ;;  %s492_s18 = scalar_lea.vmem %s2630_s2, %s2138_s17  ;;  %s496_s25 = scalar_lea.vmem %s2642_s14, %s2138_s17 }
   0xf   : > { %v501_v6 = vpack.c.bf16 %v499_v1, %v499_v1  ;;  %v498_v7 = vld [vmem:[%s484_s23] sm:$0xff]  ;;  %v615_v51 = vadd.s32 4294967288, %v613_v50 }
  0x10   : > { %v541_v12 = vpack.c.bf16 %v498_v7, %v498_v7  ;;  %v640_v60 = vld [vmem:[%s2634_s6] sm:$0xff] }
  0x13   : > { %v504_v2 = vld [vmem:[#allocation1] sm:$0xff]  ;;  %v505_v3 = vld [vmem:[#allocation1 + $0x9] sm:$0xff] }
  0x14   : > { %v511_v4 = vsel %vm510_vm0, %v504_v2, 0  ;;  %v513_v5 = vsel %vm510_vm0, %v505_v3, 0  ;;  %542 = vst [vmem:[#allocation1] ss:$9 sm:$0xff] %v500_v0  ;;  %v641_v2 = vld [vmem:[%s2634_s6 + $0x8] sm:$0xff] }
  0x15   : > { %522 = vmatpush.bf16.msra.mxu0 %v511_v4  ;;  %535 = vmatpush.bf16.msra.mxu1 %v513_v5 }
  0x18   : > { %1594 = vmatmul.msk.bf16.vlgmr.msra.gmra.mxu0 %vm506_vm1, %v501_v6  ;;  %1595 = vmatmul.msk.bf16.vlgmr.msra.gmra.mxu1 %vm506_vm1, %v501_v6 }
  0x1b   : > { %v543_v8 = vld [vmem:[#allocation1] sm:$0xff]  ;;  %v544_v9 = vld [vmem:[#allocation1 + $0x9] sm:$0xff] }
  0x1c   : > { %v548_v10 = vsel %vm510_vm0, %v543_v8, 0  ;;  %v550_v11 = vsel %vm510_vm0, %v544_v9, 0 }
  0x1d   : > { %559 = vmatpush.bf16.msra.mxu2 %v548_v10  ;;  %572 = vmatpush.bf16.msra.mxu3 %v550_v11 }
  0x20   : > { %1596 = vmatmul.msk.bf16.vlgmr.msra.gmra.mxu2 %vm506_vm1, %v541_v12  ;;  %1597 = vmatmul.msk.bf16.vlgmr.msra.gmra.mxu3 %vm506_vm1, %v541_v12 }
  0x95   : > { %v524_v19 = vpop.f32.mrf.mxu0  ;;  %v537_v20 = vpop.f32.mrf.mxu1 }
  0x96   : > { %v600_v21 = vmul.f32 %v596_v15, %v524_v19  ;;  %v601_v22 = vmul.f32 %v597_v16, %v537_v20  ;;  %v584_v23 = vmul.f32 %v580_v17, %v524_v19  ;;  %v585_v24 = vmul.f32 %v581_v18, %v537_v20 }
  0x97   : > { %v695_v29 = vpack.c.bf16 %v537_v20, %v524_v19 }
  0x98   : > { %v604_v25 = vadd.f32 %v601_v22, %v600_v21  ;;  %v588_v26 = vadd.f32 %v585_v24, %v584_v23 }
  0x99   : > { %v721_v37 = vunpack.c.l.b16 %v695_v29  ;;  %v722_v40 = vunpack.c.h.b16 %v695_v29 }
  0x9a   : > { %605 = vadd.xlane.f32.xlu1 %v604_v25  ;;  %589 = vadd.xlane.f32.xlu0 %v588_v26 }
  0x9d   : > { %v526_v27 = vpop.f32.mrf.mxu0  ;;  %v539_v28 = vpop.f32.mrf.mxu1 }
  0xa3   : > { %v561_v30 = vpop.f32.mrf.mxu2  ;;  %v574_v31 = vpop.f32.mrf.mxu3 }
  0xa4   : > { %v696_v32 = vpack.c.bf16 %v574_v31, %v561_v30  ;;  %v602_v33 = vmul.f32 %v596_v15, %v561_v30  ;;  %v603_v34 = vmul.f32 %v597_v16, %v574_v31  ;;  %v586_v35 = vmul.f32 %v580_v17, %v561_v30 }
  0xa5   : > { %v587_v36 = vmul.f32 %v581_v18, %v574_v31 }
  0xa6   : > { %v607_v38 = vadd.f32 %v603_v34, %v602_v33  ;;  %v723_v39 = vunpack.c.l.b16 %v696_v32  ;;  %v724_v41 = vunpack.c.h.b16 %v696_v32 }
  0xa7   : > { %v591_v42 = vadd.f32 %v587_v36, %v586_v35 }
  0xa8   : > { %608 = vadd.xlane.f32.xlu1 %v607_v38  ;;  %v725_v43 = vpack.c.b16 %v723_v39, %v721_v37  ;;  %v726_v44 = vpack.c.b16 %v724_v41, %v722_v40 }
  0xa9   : > { %592 = vadd.xlane.f32.xlu0 %v591_v42 }
  0xaa   : > { %739 = vmatpush.bf16.msrb.mxu0 %v725_v43  ;;  %753 = vmatpush.bf16.msrb.mxu1 %v726_v44  ;;  %v1662_v44 = vld [vmem:[%s2635_s7 + $0x70] sm:$0xf] }
  0xab   : > { %v563_v45 = vpop.f32.mrf.mxu2  ;;  %v576_v46 = vpop.f32.mrf.mxu3 }
  0xac   : > { %v1941_v45 = vld [vmem:[%s2635_s7 + $0x74] sm:$0xf0]  ;;  %v1726_v46 = vld [vmem:[%s2635_s7 + $0xf0] sm:$0xf] }
 0x10d   : > { %v590_v47 = vpop.xlane.xlu0 %589  ;;  %v606_v49 = vpop.xlane.xlu1 %605 }
 0x10e   : > { %v614_v53 = vperm.slane %v590_v47, %v613_v50  ;;  %v1663_v47 = vor.u32 %v1941_v45, %v1662_v44  ;;  %v1664_v50 = vld [vmem:[%s2635_s7 + $0x78] sm:$0xf0]  ;;  %v1930_v44 = vld [vmem:[%s2635_s7 + $0x24] sm:$0xf]  ;;  %v1624_v45 = vld [vmem:[%s2635_s7 + $0x28] sm:$0xf0] }
 0x110   : > { %978 = vmatpush.bf16.msrb.mxu2 %v1663_v47  ;;  %v1688_v47 = vld [vmem:[%s2635_s7 + $0xa8] sm:$0xf0] }
 0x11b   : > { %v609_v55 = vpop.xlane.xlu1 %608 }
 0x11c   : > { %v593_v52 = vpop.xlane.xlu0 %592 }
 0x11d   : > { %v616_v54 = vperm.slane %v593_v52, %v615_v51  ;;  %v1727_v51 = vor.u32 %v1957_v48, %v1726_v46  ;;  %v1946_v46 = vld [vmem:[%s2635_s7 + $0xa4] sm:$0xf] }
 0x11f   : > { %v618_v56 = vsel %vm617_vm2, %v616_v54, %v614_v53  ;;  %v1956_v53 = vld [vmem:[%s2635_s7 + $0xf4] sm:$0xf]  ;;  %v1728_v54 = vld [vmem:[%s2635_s7 + $0xf8] sm:$0xf0]  ;;  %991 = vmatpush.bf16.msrb.mxu3 %v1727_v51  ;;  %v1614_v51 = vld [vmem:[%s2635_s7 + $0x10] sm:$0xf] }
 0x120   : > { %v632_v57 = vadd.f32 %v618_v56, %v606_v49  ;;  %v633_v58 = vadd.f32 %v618_v56, %v609_v55  ;;  %v1940_v49 = vld [vmem:[%s2635_s7 + $0x74] sm:$0xf]  ;;  %v1654_v55 = vld [vmem:[%s2635_s7 + $0x60] sm:$0xf]  ;;  %v1731_v56 = vor.u32 %v1956_v53, %v1728_v54  ;;  %v1678_v53 = vld [vmem:[%s2635_s7 + $0x90] sm:$0xf]  ;;  %v1691_v54 = vor.u32 %v1946_v46, %v1688_v47 }
 0x121   : > { %v1667_v52 = vor.u32 %v1940_v49, %v1664_v50  ;;  %v1627_v50 = vor.u32 %v1930_v44, %v1624_v45  ;;  %v1984_v46 = vld [vmem:[%s2636_s8 + $0xd4] sm:$0xf]  ;;  %v1840_v47 = vld [vmem:[%s2636_s8 + $0xd8] sm:$0xf0] }
 0x122   : > { %vm634_vm3 = vcmp.gt.f32.partialorder %v632_v57, 0.0  ;;  %v636_v59 = vmul.f32 0.2, %v632_v57  ;;  %v637_v62 = vmul.f32 0.2, %v633_v58  ;;  %vm635_vm5 = vcmp.gt.f32.partialorder %v633_v58, 0.0  ;;  %1017 = vmatpush.bf16.msra.mxu1 %v1731_v56 }
 0x123   : > { %1004 = vmatpush.bf16.msra.mxu0 %v1667_v52  ;;  %v1929_v52 = vld [vmem:[%s2635_s7 + $0x14] sm:$0xf0]  ;;  %v1928_v56 = vld [vmem:[%s2635_s7 + $0x14] sm:$0xf] }
 0x124   : > { %v638_v61 = vsel %vm634_vm3, %v632_v57, %v636_v59  ;;  %v639_v1 = vsel %vm635_vm5, %v633_v58, %v637_v62  ;;  %v1939_v57 = vld [vmem:[%s2635_s7 + $0x64] sm:$0xf0]  ;;  %v1718_v58 = vld [vmem:[%s2635_s7 + $0xe0] sm:$0xf]  ;;  %v1938_v62 = vld [vmem:[%s2635_s7 + $0x64] sm:$0xf] }
 0x125   : > { %v642_v63 = vadd.f32 %v640_v60, %v638_v61  ;;  %v643_v3 = vadd.f32 %v641_v2, %v639_v1  ;;  %v1955_v59 = vld [vmem:[%s2635_s7 + $0xe4] sm:$0xf0]  ;;  %v1655_v60 = vor.u32 %v1939_v57, %v1654_v55  ;;  %v1720_v2 = vld [vmem:[%s2635_s7 + $0xe8] sm:$0xf0]  ;;  %v1945_v55 = vld [vmem:[%s2635_s7 + $0x94] sm:$0xf0] }
 0x126   : > { %v1719_v61 = vor.u32 %v1955_v59, %v1718_v58  ;;  %v1616_v57 = vld [vmem:[%s2635_s7 + $0x18] sm:$0xf0]  ;;  %v1944_v58 = vld [vmem:[%s2635_s7 + $0x94] sm:$0xf] }
 0x127   : > { %v645_v0 = vsel %vm644_vm4, %v642_v63, -inf  ;;  %v648_v4 = vsel %vm644_vm4, %v643_v3, -inf  ;;  %979 = vmatpush.bf16.msrb.mxu2 %v1655_v60  ;;  %v1680_v59 = vld [vmem:[%s2635_s7 + $0x98] sm:$0xf0]  ;;  %v1615_v60 = vor.u32 %v1929_v52, %v1614_v51  ;;  %v1830_v51 = vld [vmem:[%s2636_s8 + $0xc0] sm:$0xf] }
 0x128   : > { %646 = vmax.xlane.f32.xlu2 %v645_v0  ;;  %v1954_v0 = vld [vmem:[%s2635_s7 + $0xe4] sm:$0xf]  ;;  %992 = vmatpush.bf16.msrb.mxu3 %v1719_v61  ;;  %v1679_v61 = vor.u32 %v1945_v55, %v1678_v53  ;;  %v1983_v53 = vld [vmem:[%s2636_s8 + $0xc4] sm:$0xf0]  ;;  %v1768_v55 = vld [vmem:[%s2636_s8 + $0x48] sm:$0xf0] }
 0x130   : > { %649 = vmax.xlane.f32.xlu2 %v648_v4  ;;  %v1937_v4 = vld [vmem:[%s2635_s7 + $0x54] sm:$0xf0] }
 0x19b   : > { %v647_v5 = vpop.xlane.xlu2 %646 }
 0x19c   : > { %v651_v6 = vsub.f32 %v642_v63, %v647_v5  ;;  %v1656_v63 = vld [vmem:[%s2635_s7 + $0x68] sm:$0xf0]  ;;  %v1723_v5 = vor.u32 %v1954_v0, %v1720_v2  ;;  %v1927_v2 = vld [vmem:[%s2635_s7 + $0x4] sm:$0xf0] }
 0x19d   : > { %v1659_v1 = vor.u32 %v1938_v62, %v1656_v63  ;;  %v1619_v62 = vor.u32 %v1928_v56, %v1616_v57  ;;  %v1683_v63 = vor.u32 %v1944_v58, %v1680_v59  ;;  %v1831_v56 = vor.u32 %v1983_v53, %v1830_v51  ;;  %v1982_v58 = vld [vmem:[%s2636_s8 + $0xc4] sm:$0xf]  ;;  %v1832_v59 = vld [vmem:[%s2636_s8 + $0xc8] sm:$0xf0] }
 0x19e   : > { %v653_v7 = vmul.f32 1.442695, %v651_v6  ;;  %v1710_v6 = vld [vmem:[%s2635_s7 + $0xd0] sm:$0xf]  ;;  %1018 = vmatpush.bf16.msra.mxu1 %v1723_v5  ;;  %v1943_v5 = vld [vmem:[%s2635_s7 + $0x84] sm:$0xf0] }
 0x19f   : > { %1005 = vmatpush.bf16.msra.mxu0 %v1659_v1  ;;  %v1606_v1 = vld [vmem:[%s2635_s7] sm:$0xf] }
 0x1a0   : > { %2019 = vpow2.f32 %v653_v7  ;;  %v1953_v7 = vld [vmem:[%s2635_s7 + $0xd4] sm:$0xf0] }
 0x1a3   : > { %v650_v8 = vpop.xlane.xlu2 %649 }
 0x1a4   : > { %v652_v9 = vsub.f32 %v643_v3, %v650_v8  ;;  %v1646_v3 = vld [vmem:[%s2635_s7 + $0x50] sm:$0xf]  ;;  %v1936_v8 = vld [vmem:[%s2635_s7 + $0x54] sm:$0xf] }
 0x1a6   : > { %v2020_v10 = vpop.eup %2019  ;;  %v655_v11 = vmul.f32 1.442695, %v652_v9  ;;  %v1647_v9 = vor.u32 %v1937_v4, %v1646_v3  ;;  %v1670_v3 = vld [vmem:[%s2635_s7 + $0x80] sm:$0xf]  ;;  %v1607_v4 = vor.u32 %v1927_v2, %v1606_v1  ;;  %v1981_v1 = vld [vmem:[%s2636_s8 + $0xb4] sm:$0xf0] }
 0x1a7   : > { %v657_v12 = vsel %vm644_vm4, %v2020_v10, 0.0  ;;  %v1964_v2 = vld [vmem:[%s2636_s8 + $0x34] sm:$0xf] }
 0x1a8   : > { %2021 = vpow2.f32 %v655_v11  ;;  %658 = vadd.xlane.f32.xlu0 %v657_v12  ;;  %v1952_v11 = vld [vmem:[%s2635_s7 + $0xd4] sm:$0xf]  ;;  %v1712_v12 = vld [vmem:[%s2635_s7 + $0xd8] sm:$0xf0]  ;;  %980 = vmatpush.bf16.msrb.mxu2 %v1647_v9 }
 0x1ae   : > { %v2022_v13 = vpop.eup %2021 }
 0x1af   : > { %v660_v14 = vsel %vm644_vm4, %v2022_v13, 0.0 }
 0x1b0   : > { %661 = vadd.xlane.f32.xlu1 %v660_v14 }
 0x21b   : > { %v659_v15 = vpop.xlane.xlu0 %658 }
 0x21c   : > { %2023 = vrcp.f32 %v659_v15  ;;  %v674_v21 = vand.u32 2147483648, %v659_v15  ;;  %vm668_vm7 = vweird.f32 %v659_v15  ;;  %v672_v23 = vand.u32 2147483647, %v659_v15 }
 0x21e   : > { %v675_v27 = vor.u32 1.1754944e-38, %v674_v21  ;;  %vm673_vm9 = vcmp.eq.f32.partialorder %v672_v23, 8.507059e+37  ;;  %v1640_v21 = vld [vmem:[%s2635_s7 + $0x48] sm:$0xf0] }
 0x21f   : > { %v1704_v23 = vld [vmem:[%s2635_s7 + $0xc8] sm:$0xf0] }
 0x222   : > { %v2024_v16 = vpop.eup %2023 }
 0x223   : > { %v664_v17 = vmul.f32 %v2024_v16, %v659_v15  ;;  %v662_v18 = vpop.xlane.xlu1 %661  ;;  %vm669_vm6 = vweird.f32 %v2024_v16  ;;  %v1638_v15 = vld [vmem:[%s2635_s7 + $0x40] sm:$0xf] }
 0x224   : > { %2025 = vrcp.f32 %v662_v18  ;;  %vm670_vm8 = vmor %vm668_vm7, %vm669_vm6  ;;  %v689_v29 = vand.u32 2147483648, %v662_v18  ;;  %v687_v32 = vand.u32 2147483647, %v662_v18  ;;  %vm683_vm11 = vweird.f32 %v662_v18 }
 0x225   : > { %v665_v19 = vsub.f32 1.0, %v664_v17  ;;  %v1702_v17 = vld [vmem:[%s2635_s7 + $0xc0] sm:$0xf] }
 0x226   : > { %v690_v35 = vor.u32 1.1754944e-38, %v689_v29  ;;  %vm688_vm13 = vcmp.eq.f32.partialorder %v687_v32, 8.507059e+37  ;;  %v1694_v29 = vld [vmem:[%s2635_s7 + $0xb0] sm:$0xf]  ;;  %v1932_v32 = vld [vmem:[%s2635_s7 + $0x34] sm:$0xf] }
 0x227   : > { %v666_v20 = vmul.f32 %v2024_v16, %v665_v19  ;;  %v1951_v19 = vld [vmem:[%s2635_s7 + $0xc4] sm:$0xf0] }
 0x229   : > { %v667_v22 = vadd.f32 %v2024_v16, %v666_v20  ;;  %v1934_v20 = vld [vmem:[%s2635_s7 + $0x44] sm:$0xf] }
 0x22a   : > { %v2026_v24 = vpop.eup %2025 }
 0x22b   : > { %v679_v25 = vmul.f32 %v2026_v24, %v662_v18  ;;  %v671_v26 = vsel %vm670_vm8, %v2024_v16, %v667_v22  ;;  %vm684_vm10 = vweird.f32 %v2026_v24  ;;  %v1935_v16 = vld [vmem:[%s2635_s7 + $0x44] sm:$0xf0]  ;;  %v1715_v18 = vor.u32 %v1952_v11, %v1712_v12  ;;  %v1950_v22 = vld [vmem:[%s2635_s7 + $0xc4] sm:$0xf]  ;;  %v1672_v11 = vld [vmem:[%s2635_s7 + $0x88] sm:$0xf0] }
 0x22c   : > { %v676_v30 = vsel %vm673_vm9, %v675_v27, %v671_v26  ;;  %vm685_vm12 = vmor %vm683_vm11, %vm684_vm10  ;;  %v1643_v26 = vor.u32 %v1934_v20, %v1640_v21  ;;  %v1630_v27 = vld [vmem:[%s2635_s7 + $0x30] sm:$0xf]  ;;  %v1792_v20 = vld [vmem:[%s2636_s8 + $0x78] sm:$0xf0] }
 0x22d   : > { %v680_v28 = vsub.f32 1.0, %v679_v25  ;;  %v677_v33 = vmul.f32 %v2020_v10, %v676_v30  ;;  %v1648_v10 = vld [vmem:[%s2635_s7 + $0x58] sm:$0xf0]  ;;  %v1703_v25 = vor.u32 %v1951_v19, %v1702_v17  ;;  %1019 = vmatpush.bf16.msra.mxu1 %v1715_v18  ;;  %v1707_v30 = vor.u32 %v1950_v22, %v1704_v23  ;;  %v1790_v12 = vld [vmem:[%s2636_s8 + $0x70] sm:$0xf] }
 0x22e   : > { %v1651_v14 = vor.u32 %v1936_v8, %v1648_v10  ;;  %v1671_v8 = vor.u32 %v1943_v5, %v1670_v3  ;;  %v1942_v10 = vld [vmem:[%s2635_s7 + $0x84] sm:$0xf]  ;;  %v1972_v19 = vld [vmem:[%s2636_s8 + $0x74] sm:$0xf]  ;;  %v1856_v23 = vld [vmem:[%s2636_s8 + $0xf8] sm:$0xf0] }
 0x22f   : > { %v681_v31 = vmul.f32 %v2026_v24, %v680_v28  ;;  %v693_v39 = vpack.c.bf16 %v677_v33, %v677_v33  ;;  %v1933_v28 = vld [vmem:[%s2635_s7 + $0x34] sm:$0xf0]  ;;  %v1632_v33 = vld [vmem:[%s2635_s7 + $0x38] sm:$0xf0]  ;;  %v1988_v21 = vld [vmem:[%s2636_s8 + $0xf4] sm:$0xf]  ;;  %v1795_v22 = vor.u32 %v1972_v19, %v1792_v20 }
 0x230   : > { %1006 = vmatpush.bf16.msra.mxu0 %v1651_v14  ;;  %v1973_v14 = vld [vmem:[%s2636_s8 + $0x74] sm:$0xf0]  ;;  %v1760_v3 = vld [vmem:[%s2636_s8 + $0x38] sm:$0xf0]  ;;  %v1816_v19 = vld [vmem:[%s2636_s8 + $0xa8] sm:$0xf0] }
 0x231   : > { %v682_v34 = vadd.f32 %v2026_v24, %v681_v31  ;;  %v699_v41 = vunpack.c.l.b16 %v693_v39  ;;  %v1949_v31 = vld [vmem:[%s2635_s7 + $0xb4] sm:$0xf0]  ;;  %v1622_v39 = vld [vmem:[%s2635_s7 + $0x20] sm:$0xf]  ;;  %1020 = vmatpush.bf16.msra.mxu1 %v1707_v30  ;;  %v1791_v17 = vor.u32 %v1973_v14, %v1790_v12  ;;  %v1970_v30 = vld [vmem:[%s2636_s8 + $0x64] sm:$0xf]  ;;  %v1763_v5 = vor.u32 %v1964_v2, %v1760_v3 }
 0x232   : > { %v1962_v14 = vld [vmem:[%s2636_s8 + $0x24] sm:$0xf] }
 0x233   : > { %v686_v36 = vsel %vm685_vm12, %v2026_v24, %v682_v34  ;;  %v1639_v24 = vor.u32 %v1935_v16, %v1638_v15  ;;  %v1948_v34 = vld [vmem:[%s2635_s7 + $0xb4] sm:$0xf]  ;;  %v1854_v15 = vld [vmem:[%s2636_s8 + $0xf0] sm:$0xf]  ;;  %v1989_v16 = vld [vmem:[%s2636_s8 + $0xf4] sm:$0xf0] }
 0x234   : > { %v691_v37 = vsel %vm688_vm13, %v690_v35, %v686_v36  ;;  %v1696_v35 = vld [vmem:[%s2635_s7 + $0xb8] sm:$0xf0]  ;;  %v1631_v36 = vor.u32 %v1933_v28, %v1630_v27  ;;  %1007 = vmatpush.bf16.msra.mxu0 %v1643_v26  ;;  %v1855_v18 = vor.u32 %v1989_v16, %v1854_v15  ;;  %v1859_v26 = vor.u32 %v1988_v21, %v1856_v23  ;;  %v1846_v28 = vld [vmem:[%s2636_s8 + $0xe0] sm:$0xf]  ;;  %v1752_v15 = vld [vmem:[%s2636_s8 + $0x28] sm:$0xf0] }
 0x235   : > { %v692_v38 = vmul.f32 %v2022_v13, %v691_v37  ;;  %v1711_v13 = vor.u32 %v1953_v7, %v1710_v6  ;;  %981 = vmatpush.bf16.msrb.mxu2 %v1639_v24  ;;  %v1695_v37 = vor.u32 %v1949_v31, %v1694_v29  ;;  %v1926_v6 = vld [vmem:[%s2635_s7 + $0x4] sm:$0xf]  ;;  %v1608_v7 = vld [vmem:[%s2635_s7 + $0x8] sm:$0xf0]  ;;  %v1782_v24 = vld [vmem:[%s2636_s8 + $0x60] sm:$0xf] }
 0x236   : > { %v1611_v9 = vor.u32 %v1926_v6, %v1608_v7  ;;  %v1987_v29 = vld [vmem:[%s2636_s8 + $0xe4] sm:$0xf0]  ;;  %v1980_v6 = vld [vmem:[%s2636_s8 + $0xb4] sm:$0xf]  ;;  %v1824_v7 = vld [vmem:[%s2636_s8 + $0xb8] sm:$0xf0] }
 0x237   : > { %v694_v40 = vpack.c.bf16 %v692_v38, %v692_v38  ;;  %993 = vmatpush.bf16.msrb.mxu3 %v1711_v13  ;;  %v1635_v38 = vor.u32 %v1932_v32, %v1632_v33  ;;  %v1675_v13 = vor.u32 %v1942_v10, %v1672_v11  ;;  %v1847_v31 = vor.u32 %v1987_v29, %v1846_v28  ;;  %v1784_v32 = vld [vmem:[%s2636_s8 + $0x68] sm:$0xf0]  ;;  %v1986_v33 = vld [vmem:[%s2636_s8 + $0xe4] sm:$0xf]  ;;  %v1963_v10 = vld [vmem:[%s2636_s8 + $0x24] sm:$0xf0] }
 0x238   : > { %v1814_v11 = vld [vmem:[%s2636_s8 + $0xa0] sm:$0xf]  ;;  %v1742_v21 = vld [vmem:[%s2636_s8 + $0x10] sm:$0xf] }
 0x239   : > { %v700_v42 = vunpack.c.l.b16 %v694_v40  ;;  %v1931_v40 = vld [vmem:[%s2635_s7 + $0x24] sm:$0xf0]  ;;  %982 = vmatpush.bf16.msrb.mxu2 %v1631_v36  ;;  %1008 = vmatpush.bf16.msra.mxu0 %v1635_v38  ;;  %v1969_v38 = vld [vmem:[%s2636_s8 + $0x54] sm:$0xf0]  ;;  %v1806_v23 = vld [vmem:[%s2636_s8 + $0x90] sm:$0xf] }
 0x23a   : > { %v1623_v48 = vor.u32 %v1931_v40, %v1622_v39  ;;  %v1838_v39 = vld [vmem:[%s2636_s8 + $0xd0] sm:$0xf] }
 0x23b   : > { %v701_v43 = vpack.c.b16 %v700_v42, %v699_v41  ;;  %994 = vmatpush.bf16.msrb.mxu3 %v1703_v25  ;;  %v1686_v41 = vld [vmem:[%s2635_s7 + $0xa0] sm:$0xf]  ;;  %v1699_v42 = vor.u32 %v1948_v34, %v1696_v35  ;;  %v1971_v25 = vld [vmem:[%s2636_s8 + $0x64] sm:$0xf0]  ;;  %v1848_v34 = vld [vmem:[%s2636_s8 + $0xe8] sm:$0xf0]  ;;  %v1787_v35 = vor.u32 %v1970_v30, %v1784_v32 }
 0x23c   : > { %v1783_v27 = vor.u32 %v1971_v25, %v1782_v24  ;;  %v1851_v36 = vor.u32 %v1986_v33, %v1848_v34  ;;  %v1977_v25 = vld [vmem:[%s2636_s8 + $0x94] sm:$0xf0]  ;;  %v1976_v30 = vld [vmem:[%s2636_s8 + $0x94] sm:$0xf]  ;;  %v1734_v32 = vld [vmem:[%s2636_s8] sm:$0xf] }
 0x23d   : > { %703 = vxpose.xlu2.c.b16.start.end [1/1] (short) (narrow) %v701_v43, 16  ;;  %v1947_v43 = vld [vmem:[%s2635_s7 + $0xa4] sm:$0xf0]  ;;  %1021 = vmatpush.bf16.msra.mxu1 %v1699_v42  ;;  %v1968_v42 = vld [vmem:[%s2636_s8 + $0x54] sm:$0xf]  ;;  %v1807_v28 = vor.u32 %v1977_v25, %v1806_v23 }
 0x23e   : > { %v1687_v49 = vor.u32 %v1947_v43, %v1686_v41  ;;  %983 = vmatpush.bf16.msrb.mxu2 %v1623_v48  ;;  %1009 = vmatpush.bf16.msra.mxu0 %v1627_v50  ;;  %v1985_v41 = vld [vmem:[%s2636_s8 + $0xd4] sm:$0xf0]  ;;  %v1776_v43 = vld [vmem:[%s2636_s8 + $0x58] sm:$0xf0]  ;;  %v1843_v48 = vor.u32 %v1984_v46, %v1840_v47  ;;  %v1967_v50 = vld [vmem:[%s2636_s8 + $0x44] sm:$0xf0] }
 0x23f   : > { %995 = vmatpush.bf16.msrb.mxu3 %v1695_v37  ;;  %v1774_v37 = vld [vmem:[%s2636_s8 + $0x50] sm:$0xf]  ;;  %v1839_v44 = vor.u32 %v1985_v41, %v1838_v39  ;;  %v1779_v45 = vor.u32 %v1968_v42, %v1776_v43  ;;  %v1959_v34 = vld [vmem:[%s2636_s8 + $0x4] sm:$0xf0]  ;;  %v1974_v39 = vld [vmem:[%s2636_s8 + $0x84] sm:$0xf] }
 0x240   : > { %v1775_v40 = vor.u32 %v1969_v38, %v1774_v37  ;;  %v1958_v37 = vld [vmem:[%s2636_s8 + $0x4] sm:$0xf]  ;;  %v1736_v38 = vld [vmem:[%s2636_s8 + $0x8] sm:$0xf0] }
 0x241   : > { %1022 = vmatpush.bf16.msra.mxu1 %v1691_v54  ;;  %v1966_v54 = vld [vmem:[%s2636_s8 + $0x44] sm:$0xf]  ;;  %v1800_v42 = vld [vmem:[%s2636_s8 + $0x88] sm:$0xf0]  ;;  %v1739_v43 = vor.u32 %v1958_v37, %v1736_v38 }
 0x242   : > { %984 = vmatpush.bf16.msrb.mxu2 %v1615_v60  ;;  %1010 = vmatpush.bf16.msra.mxu0 %v1619_v62  ;;  %v1771_v57 = vor.u32 %v1966_v54, %v1768_v55  ;;  %v1835_v60 = vor.u32 %v1982_v58, %v1832_v59  ;;  %v1965_v62 = vld [vmem:[%s2636_s8 + $0x34] sm:$0xf0] }
 0x243   : > { %996 = vmatpush.bf16.msrb.mxu3 %v1687_v49  ;;  %v1766_v49 = vld [vmem:[%s2636_s8 + $0x40] sm:$0xf] }
 0x244   : > { %v1767_v52 = vor.u32 %v1967_v50, %v1766_v49 }
 0x245   : > { %1023 = vmatpush.bf16.msra.mxu1 %v1683_v63  ;;  %v1822_v63 = vld [vmem:[%s2636_s8 + $0xb0] sm:$0xf] }
 0x246   : > { %985 = vmatpush.bf16.msrb.mxu2 %v1607_v4  ;;  %1011 = vmatpush.bf16.msra.mxu0 %v1611_v9  ;;  %v1823_v4 = vor.u32 %v1981_v1, %v1822_v63  ;;  %v1750_v9 = vld [vmem:[%s2636_s8 + $0x20] sm:$0xf] }
 0x247   : > { %997 = vmatpush.bf16.msrb.mxu3 %v1679_v61  ;;  %v1758_v61 = vld [vmem:[%s2636_s8 + $0x30] sm:$0xf]  ;;  %v1751_v12 = vor.u32 %v1963_v10, %v1750_v9  ;;  %v2005_v9 = vld [vmem:[%s2638_s10 + $0x78] sm:$0xff] }
 0x248   : > { %v2004_v10 = vld [vmem:[%s2638_s10 + $0x70] sm:$0xff] }
 0x249   : > { %1024 = vmatpush.bf16.msra.mxu1 %v1675_v13  ;;  %v1979_v13 = vld [vmem:[%s2636_s8 + $0xa4] sm:$0xf0] }
 0x24a   : > { %1224 = vmatpush.bf16.msra.mxu2 %v1791_v17  ;;  %v1815_v16 = vor.u32 %v1979_v13, %v1814_v11  ;;  %v1755_v17 = vor.u32 %v1962_v14, %v1752_v15  ;;  %v1997_v11 = vld [vmem:[%s2638_s10 + $0x38] sm:$0xff]  ;;  %v1996_v13 = vld [vmem:[%s2638_s10 + $0x30] sm:$0xff]  ;;  %v2002_v14 = vld [vmem:[%s2638_s10 + $0x60] sm:$0xff] }
 0x24b   : > { %998 = vmatpush.bf16.msrb.mxu3 %v1671_v8  ;;  %v1827_v8 = vor.u32 %v1980_v6, %v1824_v7  ;;  %v1995_v15 = vld [vmem:[%s2638_s10 + $0x28] sm:$0xff] }
 0x24e   : > { %1225 = vmatpush.bf16.msra.mxu2 %v1783_v27  ;;  %v1744_v27 = vld [vmem:[%s2636_s8 + $0x18] sm:$0xf0] }
 0x24f   : > { %1237 = vmatpush.bf16.msra.mxu3 %v1855_v18  ;;  %v1978_v18 = vld [vmem:[%s2636_s8 + $0xa4] sm:$0xf] }
 0x250   : > { %v1819_v20 = vor.u32 %v1978_v18, %v1816_v19  ;;  %v2000_v19 = vld [vmem:[%s2638_s10 + $0x50] sm:$0xff] }
 0x252   : > { %1226 = vmatpush.bf16.msra.mxu2 %v1775_v40  ;;  %v1735_v40 = vor.u32 %v1959_v34, %v1734_v32  ;;  %v1278_v32 = vld [vmem:[%s2637_s9] sm:$0x3] }
 0x253   : > { %1238 = vmatpush.bf16.msra.mxu3 %v1847_v31  ;;  %v1808_v31 = vld [vmem:[%s2636_s8 + $0x98] sm:$0xf0]  ;;  %v1281_v38 = vperm.slane %v1278_v32, 1 }
 0x254   : > { %v1811_v33 = vor.u32 %v1976_v30, %v1808_v31 }
 0x256   : > { %1227 = vmatpush.bf16.msra.mxu2 %v1767_v52 }
 0x257   : > { %1239 = vmatpush.bf16.msra.mxu3 %v1839_v44  ;;  %v1803_v44 = vor.u32 %v1974_v39, %v1800_v42 }
 0x25b   : > { %1240 = vmatpush.bf16.msra.mxu3 %v1831_v56 }
 0x25f   : > { %1241 = vmatpush.bf16.msra.mxu3 %v1823_v4 }
 0x263   : > { %1242 = vmatpush.bf16.msra.mxu3 %v1815_v16  ;;  %v2001_v16 = vld [vmem:[%s2638_s10 + $0x58] sm:$0xff] }
 0x267   : > { %1243 = vmatpush.bf16.msra.mxu3 %v1807_v28 }
 0x2de   : > { %v711_v0 = vpop.trf.xlu2 }
 0x2df   : > { %1598 = vmatmul.msk.bf16.vlgmr.msrb.gmra.mxu0 %vm644_vm4, %v711_v0  ;;  %1599 = vmatmul.msk.bf16.vlgmr.msrb.gmra.mxu1 %vm644_vm4, %v711_v0  ;;  %v1759_v0 = vor.u32 %v1965_v62, %v1758_v61 }
 0x2e0   : > { %1250 = vmatpush.bf16.msrb.mxu0 %v1795_v22  ;;  %1263 = vmatpush.bf16.msrb.mxu1 %v1859_v26  ;;  %v1961_v22 = vld [vmem:[%s2636_s8 + $0x14] sm:$0xf0]  ;;  %v1960_v26 = vld [vmem:[%s2636_s8 + $0x14] sm:$0xf] }
 0x2e1   : > { %1228 = vmatpush.bf16.msra.mxu2 %v1759_v0  ;;  %v1743_v24 = vor.u32 %v1961_v22, %v1742_v21  ;;  %v1747_v29 = vor.u32 %v1960_v26, %v1744_v27  ;;  %v1993_v21 = vld [vmem:[%s2638_s10 + $0x18] sm:$0xff]  ;;  %v1999_v22 = vld [vmem:[%s2638_s10 + $0x48] sm:$0xff]  ;;  %v1998_v27 = vld [vmem:[%s2638_s10 + $0x40] sm:$0xff] }
 0x2e4   : > { %1251 = vmatpush.bf16.msrb.mxu0 %v1787_v35  ;;  %1264 = vmatpush.bf16.msrb.mxu1 %v1851_v36  ;;  %v1798_v35 = vld [vmem:[%s2636_s8 + $0x80] sm:$0xf]  ;;  %v1975_v36 = vld [vmem:[%s2636_s8 + $0x84] sm:$0xf0] }
 0x2e5   : > { %1229 = vmatpush.bf16.msra.mxu2 %v1751_v12  ;;  %v1799_v41 = vor.u32 %v1975_v36, %v1798_v35  ;;  %v2003_v12 = vld [vmem:[%s2638_s10 + $0x68] sm:$0xff] }
 0x2e7   : > { %1244 = vmatpush.bf16.msra.mxu3 %v1799_v41 }
 0x2e8   : > { %1252 = vmatpush.bf16.msrb.mxu0 %v1779_v45  ;;  %1265 = vmatpush.bf16.msrb.mxu1 %v1843_v48 }
 0x2e9   : > { %1230 = vmatpush.bf16.msra.mxu2 %v1743_v24  ;;  %v1992_v24 = vld [vmem:[%s2638_s10 + $0x10] sm:$0xff] }
 0x2ec   : > { %1253 = vmatpush.bf16.msrb.mxu0 %v1771_v57  ;;  %1266 = vmatpush.bf16.msrb.mxu1 %v1835_v60 }
 0x2ed   : > { %1231 = vmatpush.bf16.msra.mxu2 %v1735_v40 }
 0x2f0   : > { %1254 = vmatpush.bf16.msrb.mxu0 %v1763_v5  ;;  %1267 = vmatpush.bf16.msrb.mxu1 %v1827_v8 }
 0x2f4   : > { %1255 = vmatpush.bf16.msrb.mxu0 %v1755_v17  ;;  %1268 = vmatpush.bf16.msrb.mxu1 %v1819_v20  ;;  %v1994_v17 = vld [vmem:[%s2638_s10 + $0x20] sm:$0xff] }
 0x2f8   : > { %1256 = vmatpush.bf16.msrb.mxu0 %v1747_v29  ;;  %1269 = vmatpush.bf16.msrb.mxu1 %v1811_v33  ;;  %v1991_v29 = vld [vmem:[%s2638_s10 + $0x8] sm:$0xff]  ;;  %v1990_v33 = vld [vmem:[%s2638_s10] sm:$0xff] }
 0x2fc   : > { %1257 = vmatpush.bf16.msrb.mxu0 %v1739_v43  ;;  %1270 = vmatpush.bf16.msrb.mxu1 %v1803_v44 }
 0x35c   : > { %v741_v45 = vpop.f32.mrf.mxu0  ;;  %v755_v46 = vpop.f32.mrf.mxu1 }
 0x35d   : > { %v764_v47 = vmin.f32 %v741_v45, 0.0  ;;  %v765_v48 = vmin.f32 %v755_v46, 0.0  ;;  %vm760_vm14 = vcmp.gt.f32.partialorder %v741_v45, 0.0  ;;  %vm761_vm15 = vcmp.gt.f32.partialorder %v755_v46, 0.0 }
 0x35f   : > { %v768_v49 = vmul.f32 1.442695, %v764_v47  ;;  %v770_v50 = vmul.f32 1.442695, %v765_v48 }
 0x361   : > { %2027 = vpow2.f32 %v768_v49 }
 0x362   : > { %2029 = vpow2.f32 %v770_v50 }
 0x364   : > { %v743_v51 = vpop.f32.mrf.mxu0  ;;  %v757_v52 = vpop.f32.mrf.mxu1 }
 0x365   : > { %v766_v53 = vmin.f32 %v743_v51, 0.0  ;;  %v767_v54 = vmin.f32 %v757_v52, 0.0  ;;  %vm762_vm0 = vcmp.gt.f32.partialorder %v743_v51, 0.0  ;;  %vm763_vm1 = vcmp.gt.f32.partialorder %v757_v52, 0.0 }
 0x367   : > { %v2028_v55 = vpop.eup %2027  ;;  %v772_v56 = vmul.f32 1.442695, %v766_v53  ;;  %v774_v59 = vmul.f32 1.442695, %v767_v54 }
 0x368   : > { %v2030_v57 = vpop.eup %2029  ;;  %v1600_v58 = vadd.f32 -1.0, %v2028_v55 }
 0x369   : > { %v1601_v60 = vadd.f32 -1.0, %v2030_v57  ;;  %2031 = vpow2.f32 %v772_v56 }
 0x36a   : > { %v780_v61 = vsel %vm760_vm14, %v741_v45, %v1600_v58  ;;  %2033 = vpow2.f32 %v774_v59 }
 0x36b   : > { %v816_v62 = vpack.c.bf16 %v780_v61, %v780_v61  ;;  %v781_v63 = vsel %vm761_vm15, %v755_v46, %v1601_v60  ;;  %v1280_v46 = vperm.slane %v1278_v32, 0 }
 0x36c   : > { %v817_v0 = vpack.c.bf16 %v781_v63, %v781_v63 }
 0x36d   : > { %986 = vmatmul.bf16.vlgmr.msrb.gmra.mxu2 %v816_v62  ;;  %1012 = vmatmul.bf16.vlgmr.msra.gmra.mxu0 %v816_v62 }
 0x36e   : > { %999 = vmatmul.bf16.vlgmr.msrb.gmra.mxu3 %v817_v0  ;;  %1025 = vmatmul.bf16.vlgmr.msra.gmra.mxu1 %v817_v0 }
 0x36f   : > { %v2032_v1 = vpop.eup %2031  ;;  %1447 = vmatpush.bf16.msrb.mxu3 %v2005_v9  ;;  %1434 = vmatpush.bf16.msrb.mxu2 %v1997_v11  ;;  %v2016_v9 = vld [vmem:[%s2639_s11] ss:$0 sm:$0xff] }
 0x370   : > { %v2034_v2 = vpop.eup %2033  ;;  %v1602_v3 = vadd.f32 -1.0, %v2032_v1 }
 0x371   : > { %v1603_v4 = vadd.f32 -1.0, %v2034_v2 }
 0x372   : > { %v782_v5 = vsel %vm762_vm0, %v743_v51, %v1602_v3 }
 0x373   : > { %v783_v6 = vsel %vm763_vm1, %v757_v52, %v1603_v4  ;;  %v1062_v7 = vpack.c.bf16 %v782_v5, %v782_v5  ;;  %1448 = vmatpush.bf16.msrb.mxu3 %v2004_v10  ;;  %1435 = vmatpush.bf16.msrb.mxu2 %v1996_v13 }
 0x374   : > { %v1063_v8 = vpack.c.bf16 %v783_v6, %v783_v6 }
 0x377   : > { %1449 = vmatpush.bf16.msrb.mxu3 %v2003_v12  ;;  %1436 = vmatpush.bf16.msrb.mxu2 %v1995_v15 }
 0x37b   : > { %1450 = vmatpush.bf16.msrb.mxu3 %v2002_v14  ;;  %1437 = vmatpush.bf16.msrb.mxu2 %v1994_v17  ;;  %v1466_v14 = vld [vmem:[%s492_s18] sm:$0xff] }
 0x37d   : > { %1232 = vmatmul.bf16.vlgmr.msra.gmra.mxu2 %v1062_v7  ;;  %1258 = vmatmul.bf16.vlgmr.msrb.gmra.mxu0 %v1062_v7 }
 0x37e   : > { %1245 = vmatmul.bf16.vlgmr.msra.gmra.mxu3 %v1063_v8  ;;  %1271 = vmatmul.bf16.vlgmr.msrb.gmra.mxu1 %v1063_v8 }
 0x37f   : > { %1451 = vmatpush.bf16.msrb.mxu3 %v2001_v16  ;;  %1438 = vmatpush.bf16.msrb.mxu2 %v1993_v21 }
 0x383   : > { %1452 = vmatpush.bf16.msrb.mxu3 %v2000_v19  ;;  %1439 = vmatpush.bf16.msrb.mxu2 %v1992_v24  ;;  %v2051_v19 = vmov 16.0  }
 0x387   : > { %1453 = vmatpush.bf16.msrb.mxu3 %v1999_v22  ;;  %1440 = vmatpush.bf16.msrb.mxu2 %v1991_v29 }
 0x38b   : > { %1454 = vmatpush.bf16.msrb.mxu3 %v1998_v27  ;;  %1441 = vmatpush.bf16.msrb.mxu2 %v1990_v33 }
 0x3ea   : > { %v1013_v18 = vpop.f32.mrf.mxu0 }
 0x3eb   : > { %v1026_v20 = vpop.f32.mrf.mxu1 }
 0x3ec   : > { %v1027_v36 = vadd.f32 %v1026_v20, %v1013_v18 }
 0x3f0   : > { %v987_v23 = vpop.f32.mrf.mxu2 }
 0x3f1   : > { %v1000_v25 = vpop.f32.mrf.mxu3 }
 0x3f2   : > { %v1015_v26 = vpop.f32.mrf.mxu0  ;;  %v1001_v43 = vadd.f32 %v1000_v25, %v987_v23 }
 0x3f3   : > { %v1028_v28 = vpop.f32.mrf.mxu1 }
 0x3f8   : > { %v989_v30 = vpop.f32.mrf.mxu2 }
 0x3f9   : > { %v1002_v31 = vpop.f32.mrf.mxu3 }
 0x3fa   : > { %v1259_v34 = vpop.f32.mrf.mxu0 }
 0x3fb   : > { %v1272_v35 = vpop.f32.mrf.mxu1 }
 0x3fc   : > { %v1273_v37 = vadd.f32 %v1272_v35, %v1259_v34 }
 0x3fe   : > { %v1277_v39 = vadd.f32 %v1273_v37, %v1027_v36 }
 0x400   : > { %v1285_v40 = vadd.f32 %v1281_v38, %v1277_v39  ;;  %v1233_v41 = vpop.f32.mrf.mxu2 }
 0x401   : > { %v1246_v42 = vpop.f32.mrf.mxu3 }
 0x402   : > { %v1289_v44 = vmul.f32 0.044715, %v1285_v40  ;;  %v1247_v45 = vadd.f32 %v1246_v42, %v1233_v41  ;;  %v1261_v47 = vpop.f32.mrf.mxu0  ;;  %v1287_v63 = vmul.f32 0.5, %v1285_v40  ;;  %v2018_v42 = vld [vmem:[%s2641_s13] ss:$0 sm:$0xff] }
 0x403   : > { %v1274_v48 = vpop.f32.mrf.mxu1 }
 0x404   : > { %v1276_v49 = vadd.f32 %v1247_v45, %v1001_v43  ;;  %v1291_v50 = vmul.f32 %v1289_v44, %v1285_v40 }
 0x406   : > { %v1284_v51 = vadd.f32 %v1280_v46, %v1276_v49  ;;  %v1293_v52 = vmul.f32 %v1291_v50, %v1285_v40 }
 0x408   : > { %v1288_v53 = vmul.f32 0.044715, %v1284_v51  ;;  %v1235_v54 = vpop.f32.mrf.mxu2  ;;  %v1295_v55 = vadd.f32 %v1293_v52, %v1285_v40  ;;  %v1286_v4 = vmul.f32 0.5, %v1284_v51  ;;  %v2017_v40 = vld [vmem:[%s2640_s12] ss:$0 sm:$0xff] }
 0x409   : > { %v1248_v56 = vpop.f32.mrf.mxu3 }
 0x40a   : > { %v1297_v57 = vmul.f32 0.7978846, %v1295_v55  ;;  %v1290_v58 = vmul.f32 %v1288_v53, %v1284_v51 }
 0x40c   : > { %2035 = vtanh.f32 %v1297_v57  ;;  %v1292_v59 = vmul.f32 %v1290_v58, %v1284_v51 }
 0x40e   : > { %v1294_v60 = vadd.f32 %v1292_v59, %v1284_v51 }
 0x410   : > { %v1296_v61 = vmul.f32 0.7978846, %v1294_v60 }
 0x412   : > { %v2036_v62 = vpop.eup %2035  ;;  %2037 = vtanh.f32 %v1296_v61 }
 0x413   : > { %v1301_v0 = vadd.f32 1.0, %v2036_v62  ;;  %2039 = vrcp.f32 %v2051_v19 }
 0x415   : > { %v1303_v1 = vmul.f32 %v1301_v0, %v1287_v63 }
 0x417   : > { %v1337_v2 = vpack.c.bf16 %v1303_v1, %v1303_v1 }
 0x418   : > { %v2038_v3 = vpop.eup %2037 }
 0x419   : > { %1455 = vmatmul.bf16.vlgmr.msrb.gmra.mxu3 %v1337_v2  ;;  %v1300_v5 = vadd.f32 1.0, %v2038_v3  ;;  %v2040_v20 = vpop.eup %2039 }
 0x41a   : > { %v1472_v21 = vmul.f32 16.0, %v2040_v20  ;;  %vm1476_vm2 = vweird.f32 %v2040_v20 }
 0x41b   : > { %v1302_v6 = vmul.f32 %v1300_v5, %v1286_v4 }
 0x41c   : > { %v1473_v22 = vsub.f32 1.0, %v1472_v21 }
 0x41d   : > { %v1336_v7 = vpack.c.bf16 %v1302_v6, %v1302_v6 }
 0x41e   : > { %v1474_v23 = vmul.f32 %v2040_v20, %v1473_v22 }
 0x41f   : > { %1442 = vmatmul.bf16.vlgmr.msrb.gmra.mxu2 %v1336_v7 }
 0x420   : > { %v1475_v24 = vadd.f32 %v2040_v20, %v1474_v23 }
 0x422   : > { %v1477_v25 = vsel %vm1476_vm2, %v2040_v20, %v1475_v24 }
 0x49c   : > { %v1456_v8 = vpop.f32.mrf.mxu3 }
 0x4a2   : > { %v1443_v10 = vpop.f32.mrf.mxu2 }
 0x4a3   : > { %v1457_v11 = vadd.f32 %v1456_v8, %v1443_v10 }
 0x4a4   : > { %v1458_v12 = vpop.f32.mrf.mxu3 }
 0x4a5   : > { %v1464_v13 = vadd.f32 %v2016_v9, %v1457_v11 }
 0x4a7   : > { %v1465_v15 = vand.u32 2147483647, %v1464_v13 }
 0x4a9   : > { %v1467_v16 = vadd.f32 %v1466_v14, %v1465_v15 }
 0x4aa   : > { %v1445_v17 = vpop.f32.mrf.mxu2 }
 0x4ab   : > { %v1468_v18 = vsel %vm644_vm4, %v1467_v16, 0.0 }
 0x4ac   : > { %1469 = vadd.xlane.f32.xlu0 %v1468_v18 }
 0x51f   : > { %v1470_v26 = vpop.xlane.xlu0 %1469 }
 0x520   : > { %v1478_v27 = vmul.f32 %v1477_v25, %v1470_v26 }
 0x522   : > { %v1479_v28 = vsub.f32 %v1467_v16, %v1478_v27 }
 0x524   : > { %v1480_v29 = vmul.f32 %v1479_v28, %v1479_v28 }
 0x526   : > { %v1481_v30 = vsel %vm644_vm4, %v1480_v29, 0.0 }
 0x527   : > { %1482 = vadd.xlane.f32.xlu1 %v1481_v30 }
 0x59a   : > { %v1483_v31 = vpop.xlane.xlu1 %1482 }
 0x59b   : > { %v1484_v32 = vmul.f32 %v1483_v31, %v1477_v25 }
 0x59d   : > { %v1485_v33 = vadd.f32 1e-05, %v1484_v32 }
 0x59f   : > { %2041 = vrsqrt.f32 %v1485_v33  ;;  %vm1492_vm5 = vweird.f32 %v1485_v33 }
 0x5a5   : > { %v2042_v34 = vpop.eup %2041 }
 0x5a6   : > { %v1487_v35 = vmul.f32 %v2042_v34, %v1485_v33  ;;  %vm1493_vm3 = vweird.f32 %v2042_v34 }
 0x5a7   : > { %vm1494_vm6 = vmor %vm1492_vm5, %vm1493_vm3 }
 0x5a8   : > { %v1488_v36 = vmul.f32 %v2042_v34, %v1487_v35 }
 0x5aa   : > { %v1489_v37 = vmul.f32 0.5, %v1488_v36 }
 0x5ac   : > { %v1490_v38 = vsub.f32 1.5, %v1489_v37 }
 0x5ae   : > { %v1491_v39 = vmul.f32 %v2042_v34, %v1490_v38 }
 0x5b0   : > { %v1495_v41 = vsel %vm1494_vm6, %v2042_v34, %v1491_v39 }
 0x5b1   : > { %v1496_v43 = vmul.f32 %v1495_v41, %v1479_v28 }
 0x5b3   : > { %v1501_v44 = vmul.f32 %v2017_v40, %v1496_v43 }
 0x5b5   : > { %v1506_v45 = vadd.f32 %v2018_v42, %v1501_v44 }
 0x5b7   : > { %1507 = vst.msk [vmem:[%s496_s25] sm:$0xff] %vm644_vm4, %v1506_v45 }
 0x5b8 PF: > { %s24_s29 = sadd.s32 1, %s2049_s29  }
 0x5b9   : > { %p21_p4 = scmp.ge.s32.totalorder %s24_s29, 4  }
 0x5bb   :  { %23 = sbr.rel (!%p21_p4) target bundleno = 1 (0x1), region = 112 }

// kernel: dstrnn_forward.14
= control target key start
LH: loop header
LB: loop body
LE: loop exit
PB: predicated region body
PF: predicated region fallthrough
CT: control target
= control target key end

     0   :  { %s2354_s29 = smov 2   ;;  %vm42_vm0 = vcmask 15360   ;;  %s2355_s12 = smov 36   ;;  %vm407_vm1 = vcmask 146432   ;;  %vm410_vm2 = vcmask 293888   ;;  %vm413_vm3 = vcmask 441344   ;;  %s3156_s1 = inlined_call_operand.vmem [shape: f32[2,8,16], index: 1, kind: input, shape index: {}, may-alias: {1,8}]   ;;  %s3157_s0 = inlined_call_operand.vmem [shape: f32[2,8,2], index: 0, kind: input, shape index: {}]   ;;  %s3158_s4 = inlined_call_operand.vmem [shape: f32[3,8,8], index: 4, kind: input, shape index: {}]   ;;  %s3159_s3 = inlined_call_operand.vmem [shape: f32[3,8,144], index: 3, kind: input, shape index: {}]   ;;  %s3160_s5 = inlined_call_operand.vmem [shape: bf16[296,16], index: 5, kind: input, shape index: {}]   ;;  %s3161_s6 = inlined_call_operand.vmem [shape: bf16[296,16], index: 6, kind: input, shape index: {}]   ;;  %s3162_s2 = inlined_call_operand.vmem [shape: f32[3,8,8], index: 2, kind: input, shape index: {}]   ;;  %s3163_s7 = inlined_call_operand.vmem [shape: bf16[296,16], index: 7, kind: input, shape index: {}]   ;;  %s3164_s8 = inlined_call_operand.vmem [shape: f32[2,8,16], index: 8, kind: output, shape index: {}, may-alias: {1,8}]  }
   0x1   :  { %v2412_v0 = vld [vmem:[%s3156_s1] sm:$0xff]  ;;  %v2419_v1 = vld [vmem:[%s3156_s1 + $0x8] sm:$0xff]  ;;  %s2356_s13 = smov 18   ;;  %s2357_s16 = smov 90   ;;  %vm416_vm4 = vcmask 588800   ;;  %vm198_vm5 = vcmask 64512  }
   0x2   :  { %36 = vrot.lane.b32.xlu0 %v2412_v0, %s2354_s29  ;;  %v2426_v2 = vld [vmem:[%s3157_s0] sm:$0xff]  ;;  %v2435_v5 = vld [vmem:[%s3157_s0 + $0x8] sm:$0xff]  ;;  %s2358_s17 = smov 54   ;;  %s2359_s18 = smov 126   ;;  %vm419_vm6 = vcmask 736256   ;;  %vm422_vm7 = vcmask 883712  }
   0x3   :  { %s2360_s0 = smov 72   ;;  %s2361_s19 = smov 108   ;;  %v85_v17 = vld [vmem:[%s3158_s4] sm:$0xff]  ;;  %vm425_vm8 = vcmask 1031168   ;;  %v2548_v56 = vld [vmem:[%s3159_s3 + $0x10] sm:$0xff]  ;;  %vm653_vm9 = vcmask 1043456  }
   0x4   :  { %1956 = vmatpush.xpose.msk.msra.mxu0 %vm198_vm5, %v85_v17  ;;  %2259 = vmatpush.xpose.msk.msra.mxu3 %vm198_vm5, %v85_v17  ;;  %s2362_s28 = smov 8   ;;  %s2363_s24 = smov 24   ;;  %vm524_vm10 = vcmask 195584   ;;  %vm3165_vm11 = vcmask 326656  }
   0xa   :  { %38 = vrot.lane.b32.xlu0 %v2419_v1, %s2354_s29 }
  0x74   :  { %v37_v3 = vpop.permute.xlu0 %36 }
  0x75   :  { %v43_v4 = vsel %vm42_vm0, %v2426_v2, %v37_v3 }
  0x76   :  { %371 = vrot.lane.b32.xlu0 %v43_v4, %s2355_s12  ;;  %365 = vrot.lane.b32.xlu2 %v43_v4, %s2356_s13 }
  0x77   :  { %86 = vxpose.xlu1.b32.start.end [1/1] (short) (narrow) %v43_v4, 24 }
  0x7c   :  { %v39_v6 = vpop.permute.xlu0 %38 }
  0x7d   :  { %v2439_v7 = vsel %vm42_vm0, %v2435_v5, %v39_v6 }
  0x7e   :  { %389 = vrot.lane.b32.xlu0 %v43_v4, %s2357_s16  ;;  %373 = vrot.lane.b32.xlu2 %v2439_v7, %s2355_s12 }
  0x86   :  { %377 = vrot.lane.b32.xlu2 %v43_v4, %s2358_s17  ;;  %403 = vrot.lane.b32.xlu0 %v2439_v7, %s2359_s18 }
  0x8e   :  { %383 = vrot.lane.b32.xlu2 %v43_v4, %s2360_s0 }
  0x8f   :  { %118 = vxpose.xlu1.b32.start.end [1/1] (short) (narrow) %v2439_v7, 24 }
  0x96   :  { %391 = vrot.lane.b32.xlu2 %v2439_v7, %s2357_s16 }
  0x9e   :  { %395 = vrot.lane.b32.xlu2 %v43_v4, %s2361_s19 }
  0xd0   :  { %v366_v8 = vpop.permute.xlu2 %365 }
  0xd1   :  { %v408_v11 = vsel %vm407_vm1, %v43_v4, %v366_v8 }
  0xd8   :  { %v2452_v9 = vpop.permute.xlu2 %373 }
  0xe0   :  { %v378_v10 = vpop.permute.xlu2 %377 }
  0xe8   :  { %v372_v12 = vpop.permute.xlu0 %371  ;;  %v384_v15 = vpop.permute.xlu2 %383 }
  0xe9   :  { %v411_v13 = vsel %vm410_vm2, %v408_v11, %v372_v12 }
  0xea   :  { %v414_v14 = vsel %vm413_vm3, %v411_v13, %v378_v10 }
  0xeb   :  { %v2458_v16 = vsel %vm416_vm4, %v414_v14, %v384_v15 }
  0xf0   :  { %v392_v44 = vpop.permute.xlu2 %391  ;;  %v390_v46 = vpop.permute.xlu0 %389 }
  0xf1   :  { %v420_v55 = vsel %vm419_vm6, %v2458_v16, %v390_v46 }
  0xf8   :  { %v396_v53 = vpop.permute.xlu2 %395  ;;  %v2541_v54 = vpop.permute.xlu0 %403 }
  0xf9   :  { %367 = vrot.lane.b32.xlu1 %v2439_v7, %s2356_s13  ;;  %v423_v58 = vsel %vm422_vm7, %v420_v55, %v396_v53  ;;  %v2207_v53 = vld [vmem:[%s3160_s5 + $0x10] sm:$0xff]  ;;  %v2206_v55 = vld [vmem:[%s3160_s5 + $0x8] sm:$0xff] }
 0x101   :  { %379 = vrot.lane.b32.xlu1 %v2439_v7, %s2358_s17 }
 0x109   :  { %385 = vrot.lane.b32.xlu1 %v2439_v7, %s2360_s0 }
 0x111   :  { %397 = vrot.lane.b32.xlu1 %v2439_v7, %s2361_s19 }
 0x119   :  { %401 = vrot.lane.b32.xlu1 %v43_v4, %s2359_s18 }
 0x11b   :  { %v2474_v18 = vpop.trf.xlu1 }
 0x11c   :  { %v156_v19 = vrot.slane %v2474_v18, 2  ;;  %v157_v20 = vrot.slane %v2474_v18, 4  ;;  %v158_v21 = vrot.slane %v2474_v18, 6  ;;  %168 = vst [vmem:[#allocation1] ss:$4 sm:$0xff] %v2474_v18 }
 0x11e   :  { %170 = vst [vmem:[#allocation1 + $0x1] ss:$4 sm:$0xff] %v156_v19 }
 0x11f   :  { %172 = vst [vmem:[#allocation1 + $0x2] ss:$4 sm:$0xff] %v157_v20 }
 0x120   :  { %174 = vst [vmem:[#allocation1 + $0x3] ss:$4 sm:$0xff] %v158_v21 }
 0x123   :  { %v2486_v22 = vpop.trf.xlu1 }
 0x124   :  { %v159_v23 = vrot.slane %v2486_v22, 2  ;;  %v160_v24 = vrot.slane %v2486_v22, 4  ;;  %v161_v25 = vrot.slane %v2486_v22, 6  ;;  %176 = vst [vmem:[#allocation1 + $0x20] ss:$4 sm:$0xff] %v2486_v22 }
 0x126   :  { %178 = vst [vmem:[#allocation1 + $0x21] ss:$4 sm:$0xff] %v159_v23 }
 0x127   :  { %v183_v26 = vld.sshfl [vmem:[#allocation1] sm:$0xff pattern:$0x73625140]  ;;  %180 = vst [vmem:[#allocation1 + $0x22] ss:$4 sm:$0xff] %v160_v24 }
 0x128   :  { %182 = vst [vmem:[#allocation1 + $0x23] ss:$4 sm:$0xff] %v161_v25  ;;  %1957 = vmatmul.msk.f32.vlgmr.msra.gmra.mxu0 %vm198_vm5, %v183_v26 }
 0x12b   :  { %v2499_v27 = vpop.trf.xlu1 }
 0x12c   :  { %185 = vst [vmem:[#allocation1] ss:$4 sm:$0xff] %v2499_v27 }
 0x12f   :  { %v184_v28 = vld.sshfl [vmem:[#allocation1 + $0x20] sm:$0xff pattern:$0x73625140] }
 0x130   :  { %1958 = vmatmul.msk.f32.gmra.mxu0 %vm198_vm5, %v184_v28 }
 0x133   :  { %v2503_v29 = vpop.trf.xlu1 }
 0x134   :  { %v162_v30 = vrot.slane %v2503_v29, 2  ;;  %v163_v31 = vrot.slane %v2503_v29, 4  ;;  %v164_v32 = vrot.slane %v2503_v29, 6  ;;  %186 = vst [vmem:[#allocation1 + $0x1] ss:$4 sm:$0xff] %v2503_v29 }
 0x136   :  { %187 = vst [vmem:[#allocation1 + $0x2] ss:$4 sm:$0xff] %v162_v30 }
 0x137   :  { %188 = vst [vmem:[#allocation1 + $0x3] ss:$4 sm:$0xff] %v163_v31 }
 0x138   :  { %189 = vst [vmem:[#allocation1 + $0x20] ss:$4 sm:$0xff] %v164_v32 }
 0x13b   :  { %v2515_v33 = vpop.trf.xlu1 }
 0x13c   :  { %v165_v34 = vrot.slane %v2515_v33, 2  ;;  %v166_v35 = vrot.slane %v2515_v33, 4  ;;  %v167_v36 = vrot.slane %v2515_v33, 6  ;;  %190 = vst [vmem:[#allocation1 + $0x21] ss:$4 sm:$0xff] %v2515_v33 }
 0x13e   :  { %v193_v37 = vld.sshfl [vmem:[#allocation1] sm:$0xff pattern:$0x73625140]  ;;  %191 = vst [vmem:[#allocation1 + $0x22] ss:$4 sm:$0xff] %v165_v34 }
 0x13f   :  { %192 = vst [vmem:[#allocation1 + $0x23] ss:$4 sm:$0xff] %v166_v35  ;;  %1959 = vmatmul.msk.f32.gmra.mxu0 %vm198_vm5, %v193_v37 }
 0x140   :  { %195 = vst [vmem:[#allocation1] ss:$4 sm:$0xff] %v167_v36 }
 0x143   :  { %v2528_v38 = vpop.trf.xlu1 }
 0x144   :  { %196 = vst [vmem:[#allocation1 + $0x1] ss:$4 sm:$0xff] %v2528_v38 }
 0x146   :  { %v194_v39 = vld.sshfl [vmem:[#allocation1 + $0x20] sm:$0xff pattern:$0x73625140] }
 0x147   :  { %1960 = vmatmul.msk.f32.gmra.mxu0 %vm198_vm5, %v194_v39 }
 0x14b   :  { %v197_v40 = vld.sshfl [vmem:[#allocation1] sm:$0xff pattern:$0x73625140] }
 0x14c   :  { %1961 = vmatmul.msk.f32.vlgmr.msra.gmra.mxu3 %vm198_vm5, %v197_v40 }
 0x16b   :  { %v368_v41 = vpop.permute.xlu1 %367 }
 0x16c   :  { %v409_v45 = vsel %vm407_vm1, %v2439_v7, %v368_v41 }
 0x16d   :  { %v412_v47 = vsel %vm410_vm2, %v409_v45, %v2452_v9 }
 0x173   :  { %v380_v42 = vpop.permute.xlu1 %379 }
 0x174   :  { %v415_v48 = vsel %vm413_vm3, %v412_v47, %v380_v42  ;;  %v2209_v47 = vld [vmem:[%s3160_s5 + $0x20] sm:$0xff] }
 0x17b   :  { %v386_v43 = vpop.permute.xlu1 %385 }
 0x17c   :  { %v418_v49 = vsel %vm416_vm4, %v415_v48, %v386_v43 }
 0x17d   :  { %v421_v51 = vsel %vm419_vm6, %v418_v49, %v392_v44  ;;  %v2208_v49 = vld [vmem:[%s3160_s5 + $0x18] sm:$0xff] }
 0x183   :  { %v398_v50 = vpop.permute.xlu1 %397 }
 0x184   :  { %v424_v52 = vsel %vm422_vm7, %v421_v51, %v398_v50 }
 0x185   :  { %v2552_v57 = vsel %vm425_vm8, %v424_v52, %v2541_v54 }
 0x186   :  { %v2563_v61 = vmul.f32 %v2548_v56, %v2552_v57 }
 0x18b   :  { %v2555_v59 = vpop.permute.xlu1 %401 }
 0x18c   :  { %v2559_v60 = vsel %vm425_vm8, %v423_v58, %v2555_v59 }
 0x18d   :  { %v2567_v62 = vmul.f32 %v2548_v56, %v2559_v60 }
 0x18f   :  { %v2291_v63 = vpack.i.bf16 %v2563_v61, %v2567_v62  ;;  %v2222_v62 = vld [vmem:[%s3160_s5 + $0x88] sm:$0xff] }
 0x1a5   :  { %v229_v3 = vpop.f32.mrf.mxu0 }
 0x1a6   :  { %v249_v4 = vrot.slane %v229_v3, 2  ;;  %v250_v6 = vrot.slane %v229_v3, 4  ;;  %v251_v7 = vrot.slane %v229_v3, 6  ;;  %262 = vst [vmem:[#allocation1] ss:$4 sm:$0xff] %v229_v3 }
 0x1a8   :  { %264 = vst [vmem:[#allocation1 + $0x1] ss:$4 sm:$0xff] %v249_v4 }
 0x1a9   :  { %266 = vst [vmem:[#allocation1 + $0x2] ss:$4 sm:$0xff] %v250_v6  ;;  %v2220_v6 = vld [vmem:[%s3160_s5 + $0x78] sm:$0xff] }
 0x1aa   :  { %268 = vst [vmem:[#allocation1 + $0x3] ss:$4 sm:$0xff] %v251_v7  ;;  %671 = vmatpush.bf16.msra.mxu2 %v2220_v6  ;;  %v2125_v6 = vld [vmem:[%s3158_s4 + $0x10] sm:$0xff] }
 0x1ad   :  { %v232_v8 = vpop.f32.mrf.mxu0 }
 0x1ae   :  { %v252_v9 = vrot.slane %v232_v8, 2  ;;  %v253_v10 = vrot.slane %v232_v8, 4  ;;  %v254_v11 = vrot.slane %v232_v8, 6  ;;  %270 = vst [vmem:[#allocation1 + $0x20] ss:$4 sm:$0xff] %v232_v8 }
 0x1b0   :  { %272 = vst [vmem:[#allocation1 + $0x21] ss:$4 sm:$0xff] %v252_v9 }
 0x1b1   :  { %v277_v12 = vld.sshfl [vmem:[#allocation1] sm:$0xff pattern:$0x73625140]  ;;  %274 = vst [vmem:[#allocation1 + $0x22] ss:$4 sm:$0xff] %v253_v10  ;;  %v2230_v10 = vld [vmem:[%s3161_s6 + $0x38] sm:$0xff] }
 0x1b2   :  { %276 = vst [vmem:[#allocation1 + $0x23] ss:$4 sm:$0xff] %v254_v11  ;;  %299 = vxpose.xlu2.b32.start [1/3] (short) (narrow) %v277_v12, 8  ;;  %v2219_v11 = vld [vmem:[%s3160_s5 + $0x70] sm:$0xff]  ;;  %1201 = vmatpush.bf16.msrb.mxu0 %v2230_v10 }
 0x1b3   :  { %672 = vmatpush.bf16.msra.mxu2 %v2219_v11 }
 0x1b9   :  { %v278_v13 = vld.sshfl [vmem:[#allocation1 + $0x20] sm:$0xff pattern:$0x73625140] }
 0x1ba   :  { %300 = vxpose.xlu2.b32.cont [2/3] (short) (narrow) %v278_v13, 8  ;;  %v2229_v13 = vld [vmem:[%s3161_s6 + $0x30] sm:$0xff] }
 0x1bb   :  { %1202 = vmatpush.bf16.msrb.mxu0 %v2229_v13 }
 0x1bc   :  { %v235_v14 = vpop.f32.mrf.mxu0 }
 0x1bd   :  { %v255_v15 = vrot.slane %v235_v14, 2  ;;  %v256_v16 = vrot.slane %v235_v14, 4  ;;  %v257_v17 = vrot.slane %v235_v14, 6  ;;  %279 = vst [vmem:[#allocation1] ss:$4 sm:$0xff] %v235_v14  ;;  %v2218_v14 = vld [vmem:[%s3160_s5 + $0x68] sm:$0xff] }
 0x1be   :  { %673 = vmatpush.bf16.msra.mxu2 %v2218_v14 }
 0x1bf   :  { %281 = vst [vmem:[#allocation1 + $0x20] ss:$4 sm:$0xff] %v255_v15 }
 0x1c0   :  { %282 = vst [vmem:[#allocation1 + $0x21] ss:$4 sm:$0xff] %v256_v16  ;;  %v2228_v16 = vld [vmem:[%s3161_s6 + $0x28] sm:$0xff] }
 0x1c1   :  { %283 = vst [vmem:[#allocation1 + $0x22] ss:$4 sm:$0xff] %v257_v17  ;;  %1203 = vmatpush.bf16.msrb.mxu0 %v2228_v16 }
 0x1c4   :  { %v280_v26 = vld.sshfl [vmem:[#allocation1] sm:$0xff pattern:$0x73625140]  ;;  %v238_v28 = vpop.f32.mrf.mxu0 }
 0x1c5   :  { %v258_v37 = vrot.slane %v238_v28, 2  ;;  %v259_v39 = vrot.slane %v238_v28, 4  ;;  %v260_v40 = vrot.slane %v238_v28, 6  ;;  %284 = vst [vmem:[#allocation1 + $0x23] ss:$4 sm:$0xff] %v238_v28  ;;  %301 = vxpose.xlu2.b32.end [3/3] (short) (narrow) %v280_v26, 8 }
 0x1c7   :  { %286 = vst [vmem:[#allocation1] ss:$4 sm:$0xff] %v258_v37 }
 0x1c8   :  { %287 = vst [vmem:[#allocation1 + $0x1] ss:$4 sm:$0xff] %v259_v39 }
 0x1c9   :  { %288 = vst [vmem:[#allocation1 + $0x2] ss:$4 sm:$0xff] %v260_v40 }
 0x1cc   :  { %v285_v41 = vld.sshfl [vmem:[#allocation1 + $0x20] sm:$0xff pattern:$0x73625140] }
 0x1cd   :  { %331 = vxpose.xlu0.b32.start [1/3] (short) (narrow) %v285_v41, 8  ;;  %v2217_v41 = vld [vmem:[%s3160_s5 + $0x60] sm:$0xff] }
 0x1ce   :  { %674 = vmatpush.bf16.msra.mxu2 %v2217_v41  ;;  %v2037_v41 = vld [vmem:[%s3162_s2 + $0x8] sm:$0xff] }
 0x1cf   :  { %v241_v42 = vpop.f32.mrf.mxu3 }
 0x1d0   :  { %v261_v43 = vrot.slane %v241_v42, 2  ;;  %289 = vst [vmem:[#allocation1 + $0x3] ss:$4 sm:$0xff] %v241_v42 }
 0x1d2   :  { %290 = vst [vmem:[#allocation1 + $0x20] ss:$4 sm:$0xff] %v261_v43  ;;  %v2227_v43 = vld [vmem:[%s3161_s6 + $0x20] sm:$0xff] }
 0x1d3   :  { %1204 = vmatpush.bf16.msrb.mxu0 %v2227_v43 }
 0x1d7   :  { %v291_v44 = vld.sshfl [vmem:[#allocation1] sm:$0xff pattern:$0x73625140] }
 0x1d8   :  { %781 = vst [vmem:[#allocation1] ss:$4 sm:$0xff] %v2474_v18  ;;  %332 = vxpose.xlu0.b32.cont [2/3] (short) (narrow) %v291_v44, 8 }
 0x1d9   :  { %v292_v45 = vld.sshfl [vmem:[#allocation1 + $0x20] sm:$0xff pattern:$0x73625140]  ;;  %783 = vst [vmem:[#allocation1 + $0x1] ss:$4 sm:$0xff] %v156_v19 }
 0x1da   :  { %785 = vst [vmem:[#allocation1 + $0x2] ss:$4 sm:$0xff] %v157_v20 }
 0x1db   :  { %787 = vst [vmem:[#allocation1 + $0x3] ss:$4 sm:$0xff] %v158_v21 }
 0x1dc   :  { %789 = vst [vmem:[#allocation1 + $0x20] ss:$4 sm:$0xff] %v2486_v22  ;;  %v2632_v22 = vld [vmem:[%s3159_s3] sm:$0xff] }
 0x1dd   :  { %791 = vst [vmem:[#allocation1 + $0x21] ss:$4 sm:$0xff] %v159_v23  ;;  %v84_v23 = vld [vmem:[%s3159_s3 + $0x8] sm:$0xff] }
 0x1de   :  { %793 = vst [vmem:[#allocation1 + $0x22] ss:$4 sm:$0xff] %v160_v24  ;;  %v430_v24 = vmul.f32 %v2552_v57, %v2632_v22 }
 0x1df   :  { %795 = vst [vmem:[#allocation1 + $0x23] ss:$4 sm:$0xff] %v161_v25  ;;  %v431_v25 = vmul.f32 %v2541_v54, %v84_v23 }
 0x1e0   :  { %333 = vxpose.xlu0.b32.end [3/3] (short) (narrow) %v292_v45, 8 }
 0x1e2   :  { %v2585_v46 = vld.sshfl [vmem:[#allocation1] sm:$0xff pattern:$0x73625140] }
 0x1e3   :  { %798 = vst [vmem:[#allocation1] ss:$4 sm:$0xff] %v2499_v27  ;;  %v2276_v27 = vpack.i.bf16 %v431_v25, %v430_v24 }
 0x1e4   :  { %799 = vst [vmem:[#allocation1 + $0x1] ss:$4 sm:$0xff] %v2503_v29  ;;  %v428_v29 = vmul.f32 %v2559_v60, %v2632_v22  ;;  %v2205_v60 = vld [vmem:[%s3160_s5] sm:$0xff] }
 0x1e5   :  { %800 = vst [vmem:[#allocation1 + $0x2] ss:$4 sm:$0xff] %v162_v30  ;;  %v429_v30 = vmul.f32 %v2555_v59, %v84_v23 }
 0x1e6   :  { %v2591_v18 = vld.sshfl [vmem:[#allocation1 + $0x20] sm:$0xff pattern:$0x73625140]  ;;  %801 = vst [vmem:[#allocation1 + $0x3] ss:$4 sm:$0xff] %v163_v31 }
 0x1e7   :  { %802 = vst [vmem:[#allocation1 + $0x20] ss:$4 sm:$0xff] %v164_v32  ;;  %v2271_v31 = vpack.i.bf16 %v429_v30, %v428_v29  ;;  %v2215_v30 = vld [vmem:[%s3160_s5 + $0x50] sm:$0xff] }
 0x1e8   :  { %803 = vst [vmem:[#allocation1 + $0x21] ss:$4 sm:$0xff] %v2515_v33 }
 0x1e9   :  { %804 = vst [vmem:[#allocation1 + $0x22] ss:$4 sm:$0xff] %v165_v34  ;;  %v2212_v34 = vld [vmem:[%s3160_s5 + $0x38] sm:$0xff] }
 0x1ea   :  { %805 = vst [vmem:[#allocation1 + $0x23] ss:$4 sm:$0xff] %v166_v35  ;;  %657 = vmatpush.bf16.msra.mxu1 %v2212_v34  ;;  %v2211_v35 = vld [vmem:[%s3160_s5 + $0x30] sm:$0xff] }
 0x1ed   :  { %v2602_v19 = vld.sshfl [vmem:[#allocation1] sm:$0xff pattern:$0x73625140] }
 0x1ee   :  { %808 = vst [vmem:[#allocation1] ss:$4 sm:$0xff] %v167_v36  ;;  %658 = vmatpush.bf16.msra.mxu1 %v2211_v35 }
 0x1ef   :  { %809 = vst [vmem:[#allocation1 + $0x1] ss:$4 sm:$0xff] %v2528_v38  ;;  %v2210_v38 = vld [vmem:[%s3160_s5 + $0x28] sm:$0xff] }
 0x1f2   :  { %659 = vmatpush.bf16.msra.mxu1 %v2210_v38 }
 0x1f6   :  { %660 = vmatpush.bf16.msra.mxu1 %v2209_v47 }
 0x1fa   :  { %661 = vmatpush.bf16.msra.mxu1 %v2208_v49 }
 0x1fe   :  { %662 = vmatpush.bf16.msra.mxu1 %v2207_v53  ;;  %v2213_v53 = vld [vmem:[%s3160_s5 + $0x40] sm:$0xff] }
 0x202   :  { %663 = vmatpush.bf16.msra.mxu1 %v2206_v55  ;;  %v2225_v55 = vld [vmem:[%s3161_s6 + $0x10] sm:$0xff] }
 0x206   :  { %664 = vmatpush.bf16.msra.mxu1 %v2205_v60  ;;  %v2221_v60 = vld [vmem:[%s3160_s5 + $0x80] sm:$0xff] }
 0x24e   :  { %v2607_v20 = vpop.trf.xlu2 }
 0x24f   :  { %452 = vrot.lane.b32.xlu1 %v2607_v20, %s2360_s0  ;;  %434 = vrot.lane.b32.xlu2 %v2607_v20, %s2356_s13 }
 0x250   :  { %458 = vrot.lane.b32.xlu0 %v2607_v20, %s2357_s16 }
 0x257   :  { %440 = vrot.lane.b32.xlu2 %v2607_v20, %s2355_s12 }
 0x25f   :  { %446 = vrot.lane.b32.xlu2 %v2607_v20, %s2358_s17 }
 0x267   :  { %464 = vrot.lane.b32.xlu2 %v2607_v20, %s2361_s19 }
 0x274   :  { %v2621_v21 = vpop.trf.xlu0 }
 0x275   :  { %460 = vrot.lane.b32.xlu2 %v2621_v21, %s2357_s16  ;;  %454 = vrot.lane.b32.xlu0 %v2621_v21, %s2360_s0 }
 0x276   :  { %436 = vrot.lane.b32.xlu1 %v2621_v21, %s2356_s13 }
 0x27d   :  { %472 = vrot.lane.b32.xlu2 %v2621_v21, %s2359_s18  ;;  %470 = vrot.lane.b32.xlu0 %v2607_v20, %s2359_s18 }
 0x27e   :  { %442 = vrot.lane.b32.xlu1 %v2621_v21, %s2355_s12 }
 0x285   :  { %2277 = vrot.lane.b32.xlu0 %v2276_v27, %s2362_s28 }
 0x286   :  { %448 = vrot.lane.b32.xlu1 %v2621_v21, %s2358_s17 }
 0x28e   :  { %466 = vrot.lane.b32.xlu1 %v2621_v21, %s2361_s19 }
 0x296   :  { %2272 = vrot.lane.b32.xlu1 %v2271_v31, %s2362_s28 }
 0x2a9   :  { %v435_v32 = vpop.permute.xlu2 %434 }
 0x2aa   :  { %v476_v15 = vsel %vm407_vm1, %v2607_v20, %v435_v32  ;;  %v2216_v20 = vld [vmem:[%s3160_s5 + $0x58] sm:$0xff] }
 0x2ab   :  { %675 = vmatpush.bf16.msra.mxu2 %v2216_v20 }
 0x2af   :  { %676 = vmatpush.bf16.msra.mxu2 %v2215_v30 }
 0x2b1   :  { %v441_v33 = vpop.permute.xlu2 %440 }
 0x2b2   :  { %v478_v17 = vsel %vm410_vm2, %v476_v15, %v441_v33 }
 0x2b9   :  { %v447_v36 = vpop.permute.xlu2 %446 }
 0x2ba   :  { %v480_v26 = vsel %vm413_vm3, %v478_v17, %v447_v36  ;;  %v2214_v36 = vld [vmem:[%s3160_s5 + $0x48] sm:$0xff] }
 0x2bb   :  { %677 = vmatpush.bf16.msra.mxu2 %v2214_v36 }
 0x2bf   :  { %678 = vmatpush.bf16.msra.mxu2 %v2213_v53 }
 0x2c1   :  { %v465_v48 = vpop.permute.xlu2 %464  ;;  %v453_v51 = vpop.permute.xlu1 %452 }
 0x2c2   :  { %v459_v50 = vpop.permute.xlu0 %458  ;;  %v482_v39 = vsel %vm416_vm4, %v480_v26, %v453_v51 }
 0x2c3   :  { %v484_v44 = vsel %vm419_vm6, %v482_v39, %v459_v50 }
 0x2cf   :  { %v461_v52 = vpop.permute.xlu2 %460 }
 0x2d7   :  { %v473_v3 = vpop.permute.xlu2 %472 }
 0x2d8   :  { %v493_v7 = vmul.f32 %v473_v3, %v84_v23 }
 0x2e7   :  { %v455_v57 = vpop.permute.xlu0 %454 }
 0x2e8   :  { %v437_v58 = vpop.permute.xlu1 %436 }
 0x2e9   :  { %v477_v28 = vsel %vm407_vm1, %v2621_v21, %v437_v58  ;;  %v2226_v21 = vld [vmem:[%s3161_s6 + $0x18] sm:$0xff] }
 0x2ea   :  { %1205 = vmatpush.bf16.msrb.mxu0 %v2226_v21 }
 0x2ee   :  { %1206 = vmatpush.bf16.msrb.mxu0 %v2225_v55 }
 0x2ef   :  { %v471_v4 = vpop.permute.xlu0 %470 }
 0x2f0   :  { %v491_v8 = vmul.f32 %v471_v4, %v84_v23  ;;  %v443_v9 = vpop.permute.xlu1 %442  ;;  %v486_v23 = vsel %vm422_vm7, %v484_v44, %v465_v48  ;;  %v82_v48 = vld [vmem:[%s3162_s2] sm:$0xff] }
 0x2f1   :  { %v479_v40 = vsel %vm410_vm2, %v477_v28, %v443_v9  ;;  %v488_v24 = vsel %vm425_vm8, %v486_v23, %v471_v4  ;;  %v2040_v4 = vld [vmem:[%s3158_s4 + $0x8] sm:$0xff]  ;;  %v807_v23 = vld.sshfl [vmem:[#allocation1 + $0x20] sm:$0xff pattern:$0x73625140] }
 0x2f2   :  { %v2286_v12 = vpack.i.bf16 %v493_v7, %v491_v8  ;;  %v490_v32 = vmul.f32 %v488_v24, %v2632_v22  ;;  %v810_v24 = vld.sshfl [vmem:[#allocation1] sm:$0xff pattern:$0x73625140] }
 0x2f4   :  { %2287 = vrot.lane.b32.xlu1 %v2286_v12, %s2363_s24 }
 0x2f7   :  { %v2278_v34 = vpop.permute.xlu0 %2277 }
 0x2f8   :  { %v449_v37 = vpop.permute.xlu1 %448  ;;  %v2279_v38 = vunpack.i.l.bf16 %v2278_v34  ;;  %v2280_v7 = vunpack.i.h.bf16 %v2278_v34 }
 0x2f9   :  { %v481_v42 = vsel %vm413_vm3, %v479_v40, %v449_v37 }
 0x2fa   :  { %v483_v45 = vsel %vm416_vm4, %v481_v42, %v455_v57  ;;  %v507_v13 = vsel %vm198_vm5, %v2279_v38, %v2280_v7 }
 0x2fb   :  { %v485_v25 = vsel %vm419_vm6, %v483_v45, %v461_v52  ;;  %v81_v52 = vld [vmem:[%s3160_s5 + $0x90] sm:$0xf] }
 0x2fc   :  { %v611_v57 = vunpack.c.l.b16 %v81_v52 }
 0x2fe   :  { %v630_v58 = vpack.c.b16 %v611_v57, %v611_v57 }
 0x300   :  { %v467_v27 = vpop.permute.xlu1 %466  ;;  %v655_v61 = vsel %vm653_vm9, %v630_v58, 0 }
 0x301   :  { %v487_v29 = vsel %vm422_vm7, %v485_v25, %v467_v27  ;;  %690 = vmatpush.bf16.msrb.mxu3 %v655_v61 }
 0x302   :  { %v489_v31 = vsel %vm425_vm8, %v487_v29, %v473_v3  ;;  %v2223_v3 = vld [vmem:[%s3161_s6] sm:$0xff] }
 0x303   :  { %v492_v33 = vmul.f32 %v489_v31, %v2632_v22  ;;  %v532_v22 = vsel %vm198_vm5, %v82_v48, %v2279_v38 }
 0x305   :  { %v2281_v35 = vpack.i.bf16 %v492_v33, %v490_v32  ;;  %691 = vmatpush.bf16.msrb.mxu3 %v2222_v62 }
 0x307   :  { %2282 = vrot.lane.b32.xlu2 %v2281_v35, %s2363_s24 }
 0x308   :  { %v2273_v47 = vpop.permute.xlu1 %2272 }
 0x309   :  { %v2274_v49 = vunpack.i.l.bf16 %v2273_v47  ;;  %692 = vmatpush.bf16.msrb.mxu3 %v2221_v60  ;;  %v2275_v8 = vunpack.i.h.bf16 %v2273_v47 }
 0x30b   :  { %v531_v50 = vsel %vm198_vm5, %v82_v48, %v2274_v49  ;;  %v506_v12 = vsel %vm198_vm5, %v2274_v49, %v2275_v8 }
 0x30c   :  { %v535_v51 = vpack.c.bf16 %v532_v22, %v531_v50 }
 0x30d   :  { %2041 = vmatpush.xpose.msk.msra.mxu3 %vm198_vm5, %v2040_v4 }
 0x30e   :  { %665 = vmatmul.bf16.vlgmr.msra.gmra.mxu1 %v535_v51 }
 0x30f   :  { %2292 = vrot.lane.b32.xlu2 %v2291_v63, %s2362_s28  ;;  %v2224_v63 = vld [vmem:[%s3161_s6 + $0x8] sm:$0xff] }
 0x310   :  { %1207 = vmatpush.bf16.msrb.mxu0 %v2224_v63 }
 0x314   :  { %1208 = vmatpush.bf16.msrb.mxu0 %v2223_v3 }
 0x318   :  { %2126 = vmatpush.xpose.msk.msra.mxu0 %vm198_vm5, %v2125_v6 }
 0x361   :  { %v2283_v9 = vpop.permute.xlu2 %2282 }
 0x362   :  { %v2285_v10 = vunpack.i.h.bf16 %v2283_v9  ;;  %v2284_v11 = vunpack.i.l.bf16 %v2283_v9 }
 0x364   :  { %v533_v14 = vsel %vm524_vm10, %v506_v12, %v2284_v11  ;;  %v534_v15 = vsel %vm524_vm10, %v507_v13, %v2285_v10 }
 0x365   :  { %v536_v16 = vpack.c.bf16 %v534_v15, %v533_v14 }
 0x366   :  { %v2288_v17 = vpop.permute.xlu1 %2287 }
 0x367   :  { %v2290_v26 = vunpack.i.h.bf16 %v2288_v17  ;;  %v2289_v28 = vunpack.i.l.bf16 %v2288_v17  ;;  %679 = vmatmul.bf16.vlgmr.msra.gmra.mxu2 %v536_v16 }
 0x369   :  { %v526_v37 = vsel %vm524_vm10, %v2285_v10, %v2290_v26  ;;  %v525_v39 = vsel %vm524_vm10, %v2284_v11, %v2289_v28  ;;  %v2780_v40 = vpop.permute.xlu2 %2292 }
 0x36a   :  { %v537_v42 = vpack.c.bf16 %v526_v37, %v525_v39  ;;  %v2295_v43 = vunpack.i.h.bf16 %v2780_v40  ;;  %v2294_v44 = vunpack.i.l.bf16 %v2780_v40 }
 0x36c   :  { %2034 = vmatmul.msk.bf16.vlgmr.msrb.gmra.mxu3 %vm3165_vm11, %v537_v42  ;;  %v1077_v45 = vsel %vm198_vm5, %v2037_v41, %v2294_v44  ;;  %v1078_v20 = vsel %vm198_vm5, %v2037_v41, %v2295_v43 }
 0x36d   :  { %v1081_v21 = vpack.c.bf16 %v1078_v20, %v1077_v45 }
 0x36f   :  { %1209 = vmatmul.bf16.vlgmr.msrb.gmra.mxu0 %v1081_v21 }
 0x37c   :  { %2042 = vmatmul.msk.f32.vlgmr.msra.gmra.mxu3 %vm198_vm5, %v2585_v46 }
 0x384   :  { %2043 = vmatmul.msk.f32.gmra.mxu3 %vm198_vm5, %v2591_v18 }
 0x38b   :  { %v666_v27 = vpop.f32.mrf.mxu1 }
 0x38c   :  { %2044 = vmatmul.msk.f32.gmra.mxu3 %vm198_vm5, %v2602_v19 }
 0x393   :  { %v668_v46 = vpop.f32.mrf.mxu1 }
 0x394   :  { %2045 = vmatmul.msk.f32.gmra.mxu3 %vm198_vm5, %v807_v23 }
 0x39c   :  { %2046 = vmatmul.msk.f32.gmra.mxu3 %vm198_vm5, %v810_v24 }
 0x3ea   :  { %v680_v25 = vpop.f32.mrf.mxu2 }
 0x3eb   :  { %v681_v29 = vadd.f32 %v680_v25, %v666_v27 }
 0x3ef   :  { %v694_v30 = vpop.f32.mrf.mxu3 }
 0x3f0   :  { %v695_v31 = vadd.f32 %v694_v30, %v681_v29 }
 0x3f2   :  { %v2035_v32 = vmul.f32 -1.442695, %v695_v31  ;;  %v682_v33 = vpop.f32.mrf.mxu2 }
 0x3f3   :  { %v683_v34 = vadd.f32 %v682_v33, %v668_v46 }
 0x3f4   :  { %2331 = vpow2.f32 %v2035_v32 }
 0x3f7   :  { %v696_v18 = vpop.f32.mrf.mxu3 }
 0x3f8   :  { %v697_v35 = vadd.f32 %v696_v18, %v683_v34 }
 0x3fa   :  { %v2332_v36 = vpop.eup %2331  ;;  %v2036_v19 = vmul.f32 -1.442695, %v697_v35 }
 0x3fb   :  { %v705_v38 = vadd.f32 1.0, %v2332_v36 }
 0x3fc   :  { %2333 = vpow2.f32 %v2036_v19 }
 0x3fd   :  { %2335 = vrcp.f32 %v705_v38  ;;  %v716_v58 = vand.u32 2147483647, %v705_v38  ;;  %v718_v61 = vand.u32 2147483648, %v705_v38  ;;  %vm712_vm13 = vweird.f32 %v705_v38 }
 0x3ff   :  { %v841_v47 = vpop.f32.mrf.mxu3  ;;  %v719_v7 = vor.u32 1.1754944e-38, %v718_v61  ;;  %vm717_vm15 = vcmp.eq.f32.partialorder %v716_v58, 8.507059e+37 }
 0x400   :  { %v861_v48 = vrot.slane %v841_v47, 2  ;;  %v862_v49 = vrot.slane %v841_v47, 4  ;;  %v863_v50 = vrot.slane %v841_v47, 6  ;;  %874 = vst [vmem:[#allocation1] ss:$4 sm:$0xff] %v841_v47 }
 0x402   :  { %v2334_v22 = vpop.eup %2333  ;;  %876 = vst [vmem:[#allocation1 + $0x1] ss:$4 sm:$0xff] %v861_v48 }
 0x403   :  { %v2336_v51 = vpop.eup %2335  ;;  %v706_v52 = vadd.f32 1.0, %v2334_v22  ;;  %878 = vst [vmem:[#allocation1 + $0x2] ss:$4 sm:$0xff] %v862_v49 }
 0x404   :  { %v708_v53 = vmul.f32 %v2336_v51, %v705_v38  ;;  %880 = vst [vmem:[#allocation1 + $0x3] ss:$4 sm:$0xff] %v863_v50  ;;  %vm713_vm12 = vweird.f32 %v2336_v51 }
 0x405   :  { %2337 = vrcp.f32 %v706_v52  ;;  %vm714_vm14 = vmor %vm712_vm13, %vm713_vm12  ;;  %v733_v15 = vand.u32 2147483648, %v706_v52  ;;  %v731_v26 = vand.u32 2147483647, %v706_v52  ;;  %vm727_vm12 = vweird.f32 %v706_v52 }
 0x406   :  { %v709_v55 = vsub.f32 1.0, %v708_v53 }
 0x407   :  { %v844_v57 = vpop.f32.mrf.mxu3  ;;  %v734_v42 = vor.u32 1.1754944e-38, %v733_v15 }
 0x408   :  { %v864_v62 = vrot.slane %v844_v57, 2  ;;  %v865_v63 = vrot.slane %v844_v57, 4  ;;  %v866_v60 = vrot.slane %v844_v57, 6  ;;  %882 = vst [vmem:[#allocation1 + $0x20] ss:$4 sm:$0xff] %v844_v57  ;;  %v710_v3 = vmul.f32 %v2336_v51, %v709_v55 }
 0x40a   :  { %884 = vst [vmem:[#allocation1 + $0x21] ss:$4 sm:$0xff] %v864_v62  ;;  %v711_v4 = vadd.f32 %v2336_v51, %v710_v3 }
 0x40b   :  { %v2338_v6 = vpop.eup %2337  ;;  %886 = vst [vmem:[#allocation1 + $0x22] ss:$4 sm:$0xff] %v865_v63  ;;  %v889_v13 = vld.sshfl [vmem:[#allocation1] sm:$0xff pattern:$0x73625140] }
 0x40c   :  { %v723_v8 = vmul.f32 %v2338_v6, %v706_v52  ;;  %888 = vst [vmem:[#allocation1 + $0x23] ss:$4 sm:$0xff] %v866_v60  ;;  %v715_v9 = vsel %vm714_vm14, %v2336_v51, %v711_v4  ;;  %vm728_vm11 = vweird.f32 %v2338_v6  ;;  %vm732_vm14 = vcmp.eq.f32.partialorder %v731_v26, 8.507059e+37 }
 0x40d   :  { %v720_v10 = vsel %vm717_vm15, %v719_v7, %v715_v9  ;;  %vm729_vm13 = vmor %vm727_vm12, %vm728_vm11 }
 0x40e   :  { %v1281_v11 = vmul.f32 %v720_v10, %v2412_v0  ;;  %v724_v12 = vsub.f32 1.0, %v723_v8 }
 0x40f   :  { %v847_v14 = vpop.f32.mrf.mxu3 }
 0x410   :  { %v867_v16 = vrot.slane %v847_v14, 2  ;;  %891 = vst [vmem:[#allocation1] ss:$4 sm:$0xff] %v847_v14  ;;  %1285 = vrot.lane.b32.xlu0 %v1281_v11, %s2354_s29  ;;  %v725_v17 = vmul.f32 %v2338_v6, %v724_v12  ;;  %v868_v28 = vrot.slane %v847_v14, 4  ;;  %v869_v37 = vrot.slane %v847_v14, 6 }
 0x412   :  { %v726_v39 = vadd.f32 %v2338_v6, %v725_v17 }
 0x413   :  { %v890_v41 = vld.sshfl [vmem:[#allocation1 + $0x20] sm:$0xff pattern:$0x73625140] }
 0x414   :  { %893 = vst [vmem:[#allocation1 + $0x20] ss:$4 sm:$0xff] %v867_v16  ;;  %v730_v0 = vsel %vm729_vm13, %v2338_v6, %v726_v39  ;;  %v2862_v6 = vld [vmem:[%s3159_s3 + $0x18] sm:$0xff] }
 0x415   :  { %894 = vst [vmem:[#allocation1 + $0x21] ss:$4 sm:$0xff] %v868_v28  ;;  %v735_v45 = vsel %vm732_vm14, %v734_v42, %v730_v0 }
 0x416   :  { %895 = vst [vmem:[#allocation1 + $0x22] ss:$4 sm:$0xff] %v869_v37  ;;  %v1282_v20 = vmul.f32 %v735_v45, %v2419_v1 }
 0x417   :  { %v850_v21 = vpop.f32.mrf.mxu3  ;;  %v892_v27 = vld.sshfl [vmem:[#allocation1] sm:$0xff pattern:$0x73625140] }
 0x418   :  { %v870_v23 = vrot.slane %v850_v21, 2  ;;  %v871_v24 = vrot.slane %v850_v21, 4  ;;  %v872_v25 = vrot.slane %v850_v21, 6  ;;  %896 = vst [vmem:[#allocation1 + $0x23] ss:$4 sm:$0xff] %v850_v21  ;;  %1287 = vrot.lane.b32.xlu1 %v1282_v20, %s2354_s29 }
 0x41a   :  { %898 = vst [vmem:[#allocation1] ss:$4 sm:$0xff] %v870_v23 }
 0x41b   :  { %899 = vst [vmem:[#allocation1 + $0x1] ss:$4 sm:$0xff] %v871_v24  ;;  %v2887_v24 = vld [vmem:[%s3159_s3 + $0x28] sm:$0xff] }
 0x41c   :  { %900 = vst [vmem:[#allocation1 + $0x2] ss:$4 sm:$0xff] %v872_v25 }
 0x41f   :  { %v853_v29 = vpop.f32.mrf.mxu3  ;;  %v897_v31 = vld.sshfl [vmem:[#allocation1 + $0x20] sm:$0xff pattern:$0x73625140] }
 0x420   :  { %v873_v30 = vrot.slane %v853_v29, 2  ;;  %901 = vst [vmem:[#allocation1 + $0x3] ss:$4 sm:$0xff] %v853_v29 }
 0x422   :  { %902 = vst [vmem:[#allocation1 + $0x20] ss:$4 sm:$0xff] %v873_v30  ;;  %v2892_v30 = vld [vmem:[%s3159_s3 + $0x20] sm:$0xff] }
 0x427   :  { %v903_v32 = vld.sshfl [vmem:[#allocation1] sm:$0xff pattern:$0x73625140] }
 0x429   :  { %v904_v1 = vld.sshfl [vmem:[#allocation1 + $0x20] sm:$0xff pattern:$0x73625140] }
 0x432   :  { %943 = vxpose.xlu0.b32.start [1/3] (short) (narrow) %v897_v31, 8 }
 0x43a   :  { %944 = vxpose.xlu0.b32.cont [2/3] (short) (narrow) %v903_v32, 8 }
 0x442   :  { %945 = vxpose.xlu0.b32.end [3/3] (short) (narrow) %v904_v1, 8 }
 0x44d   :  { %911 = vxpose.xlu1.b32.start [1/3] (short) (narrow) %v889_v13, 8 }
 0x455   :  { %912 = vxpose.xlu1.b32.cont [2/3] (short) (narrow) %v890_v41, 8 }
 0x45d   :  { %913 = vxpose.xlu1.b32.end [3/3] (short) (narrow) %v892_v27, 8 }
 0x482   :  { %v1286_v46 = vpop.permute.xlu0 %1285 }
 0x483   :  { %v1291_v35 = vsel %vm42_vm0, %v2426_v2, %v1286_v46 }
 0x48a   :  { %v1288_v33 = vpop.permute.xlu1 %1287 }
 0x48b   :  { %v2827_v36 = vsel %vm42_vm0, %v2435_v5, %v1288_v33  ;;  %vm3166_vm0 = vcmask 326656  }
 0x4d6   :  { %v959_v18 = vpop.trf.xlu0 }
 0x4f1   :  { %v927_v34 = vpop.trf.xlu1 }
 0x4f2   :  { %993 = vrot.lane.b32.xlu1 %v927_v34, %s2358_s17  ;;  %981 = vrot.lane.b32.xlu2 %v927_v34, %s2356_s13 }
 0x4f3   :  { %987 = vrot.lane.b32.xlu0 %v927_v34, %s2355_s12 }
 0x4fa   :  { %999 = vrot.lane.b32.xlu1 %v927_v34, %s2360_s0  ;;  %989 = vrot.lane.b32.xlu2 %v959_v18, %s2355_s12 }
 0x502   :  { %1005 = vrot.lane.b32.xlu1 %v927_v34, %s2357_s16  ;;  %995 = vrot.lane.b32.xlu2 %v959_v18, %s2358_s17 }
 0x50a   :  { %1001 = vrot.lane.b32.xlu2 %v959_v18, %s2360_s0  ;;  %983 = vrot.lane.b32.xlu1 %v959_v18, %s2356_s13 }
 0x512   :  { %1011 = vrot.lane.b32.xlu2 %v927_v34, %s2361_s19  ;;  %1013 = vrot.lane.b32.xlu1 %v959_v18, %s2361_s19 }
 0x515   :  { %1337 = vxpose.xlu0.b32.start.end [1/1] (short) (narrow) %v1291_v35, 24 }
 0x51a   :  { %1627 = vrot.lane.b32.xlu2 %v1291_v35, %s2358_s17  ;;  %1017 = vrot.lane.b32.xlu1 %v927_v34, %s2359_s18 }
 0x522   :  { %1019 = vrot.lane.b32.xlu1 %v959_v18, %s2359_s18 }
 0x52a   :  { %1615 = vrot.lane.b32.xlu1 %v1291_v35, %s2356_s13 }
 0x532   :  { %1621 = vrot.lane.b32.xlu1 %v1291_v35, %s2355_s12 }
 0x53a   :  { %1633 = vrot.lane.b32.xlu1 %v1291_v35, %s2360_s0 }
 0x540   :  { %1369 = vxpose.xlu2.b32.start.end [1/1] (short) (narrow) %v2827_v36, 24 }
 0x542   :  { %1639 = vrot.lane.b32.xlu1 %v1291_v35, %s2357_s16 }
 0x54a   :  { %1645 = vrot.lane.b32.xlu1 %v1291_v35, %s2361_s19 }
 0x54c   :  { %v982_v2 = vpop.permute.xlu2 %981 }
 0x54d   :  { %v1023_v5 = vsel %vm407_vm1, %v927_v34, %v982_v2 }
 0x552   :  { %1651 = vrot.lane.b32.xlu1 %v1291_v35, %s2359_s18 }
 0x554   :  { %v990_v19 = vpop.permute.xlu2 %989 }
 0x55a   :  { %1617 = vrot.lane.b32.xlu1 %v2827_v36, %s2356_s13 }
 0x55c   :  { %v996_v38 = vpop.permute.xlu2 %995 }
 0x562   :  { %1623 = vrot.lane.b32.xlu1 %v2827_v36, %s2355_s12 }
 0x564   :  { %v994_v47 = vpop.permute.xlu1 %993  ;;  %v1002_v22 = vpop.permute.xlu2 %1001 }
 0x565   :  { %v988_v48 = vpop.permute.xlu0 %987 }
 0x566   :  { %v1025_v49 = vsel %vm410_vm2, %v1023_v5, %v988_v48 }
 0x567   :  { %v1027_v50 = vsel %vm413_vm3, %v1025_v49, %v994_v47 }
 0x56a   :  { %1629 = vrot.lane.b32.xlu1 %v2827_v36, %s2358_s17 }
 0x56c   :  { %v1000_v51 = vpop.permute.xlu1 %999  ;;  %v1012_v55 = vpop.permute.xlu2 %1011 }
 0x56d   :  { %v1029_v52 = vsel %vm416_vm4, %v1027_v50, %v1000_v51 }
 0x572   :  { %1635 = vrot.lane.b32.xlu1 %v2827_v36, %s2360_s0 }
 0x574   :  { %v1006_v53 = vpop.permute.xlu1 %1005  ;;  %v1628_v16 = vpop.permute.xlu2 %1627 }
 0x575   :  { %v1031_v57 = vsel %vm419_vm6, %v1029_v52, %v1006_v53 }
 0x576   :  { %v1033_v58 = vsel %vm422_vm7, %v1031_v57, %v1012_v55  ;;  %v2908_v55 = vpop.f32.mrf.mxu0 }
 0x57a   :  { %1641 = vrot.lane.b32.xlu1 %v2827_v36, %s2357_s16 }
 0x57c   :  { %v984_v61 = vpop.permute.xlu1 %983 }
 0x57d   :  { %v1024_v62 = vsel %vm407_vm1, %v959_v18, %v984_v61 }
 0x57e   :  { %v1026_v63 = vsel %vm410_vm2, %v1024_v62, %v990_v19  ;;  %v2910_v57 = vpop.f32.mrf.mxu0 }
 0x57f   :  { %v1028_v60 = vsel %vm413_vm3, %v1026_v63, %v996_v38 }
 0x580   :  { %v2853_v3 = vsel %vm416_vm4, %v1028_v60, %v1002_v22 }
 0x582   :  { %1647 = vrot.lane.b32.xlu1 %v2827_v36, %s2361_s19 }
 0x584   :  { %v2857_v4 = vpop.permute.xlu1 %1013 }
 0x58c   :  { %v1018_v7 = vpop.permute.xlu1 %1017 }
 0x58d   :  { %v1035_v8 = vsel %vm425_vm8, %v1033_v58, %v1018_v7  ;;  %v2866_v9 = vmul.f32 %v2862_v6, %v1018_v7 }
 0x58e   :  { %v2869_v10 = vmul.f32 %v2548_v56, %v1035_v8 }
 0x590   :  { %v2296_v11 = vpack.i.bf16 %v2866_v9, %v2869_v10 }
 0x593   :  { %1007 = vrot.lane.b32.xlu0 %v959_v18, %s2357_s16 }
 0x594   :  { %v2874_v12 = vpop.permute.xlu1 %1019 }
 0x59c   :  { %v1616_v13 = vpop.permute.xlu1 %1615 }
 0x59d   :  { %v1657_v14 = vsel %vm407_vm1, %v1291_v35, %v1616_v13 }
 0x5a4   :  { %v1622_v15 = vpop.permute.xlu1 %1621 }
 0x5a5   :  { %v1659_v17 = vsel %vm410_vm2, %v1657_v14, %v1622_v15 }
 0x5a6   :  { %v1661_v26 = vsel %vm413_vm3, %v1659_v17, %v1628_v16 }
 0x5ac   :  { %v1634_v28 = vpop.permute.xlu1 %1633 }
 0x5ad   :  { %v1663_v56 = vsel %vm416_vm4, %v1661_v26, %v1634_v28 }
 0x5b4   :  { %v1640_v37 = vpop.permute.xlu1 %1639 }
 0x5b5   :  { %v1665_v39 = vsel %vm419_vm6, %v1663_v56, %v1640_v37 }
 0x5b9   :  { %1653 = vrot.lane.b32.xlu2 %v2827_v36, %s2359_s18  ;;  %v1353_v41 = vpop.trf.xlu0 }
 0x5ba   :  { %v1407_v42 = vrot.slane %v1353_v41, 2  ;;  %v1408_v0 = vrot.slane %v1353_v41, 4  ;;  %v1409_v45 = vrot.slane %v1353_v41, 6  ;;  %1419 = vst [vmem:[#allocation1] ss:$4 sm:$0xff] %v1353_v41 }
 0x5bc   :  { %v1646_v20 = vpop.permute.xlu1 %1645  ;;  %1421 = vst [vmem:[#allocation1 + $0x1] ss:$4 sm:$0xff] %v1407_v42 }
 0x5bd   :  { %v1667_v21 = vsel %vm422_vm7, %v1665_v39, %v1646_v20  ;;  %1423 = vst [vmem:[#allocation1 + $0x2] ss:$4 sm:$0xff] %v1408_v0 }
 0x5be   :  { %1425 = vst [vmem:[#allocation1 + $0x3] ss:$4 sm:$0xff] %v1409_v45 }
 0x5c1   :  { %v1354_v23 = vpop.trf.xlu0 }
 0x5c2   :  { %v1410_v25 = vrot.slane %v1354_v23, 2  ;;  %v1411_v27 = vrot.slane %v1354_v23, 4  ;;  %v1412_v29 = vrot.slane %v1354_v23, 6  ;;  %1427 = vst [vmem:[#allocation1 + $0x20] ss:$4 sm:$0xff] %v1354_v23 }
 0x5c4   :  { %v1652_v31 = vpop.permute.xlu1 %1651  ;;  %1429 = vst [vmem:[#allocation1 + $0x21] ss:$4 sm:$0xff] %v1410_v25 }
 0x5c5   :  { %v1669_v32 = vsel %vm425_vm8, %v1667_v21, %v1652_v31  ;;  %v2896_v1 = vmul.f32 %v2887_v24, %v1652_v31  ;;  %1431 = vst [vmem:[#allocation1 + $0x22] ss:$4 sm:$0xff] %v1411_v27  ;;  %v1434_v33 = vld.sshfl [vmem:[#allocation1] sm:$0xff pattern:$0x73625140] }
 0x5c6   :  { %v2899_v46 = vmul.f32 %v2892_v30, %v1669_v32  ;;  %1433 = vst [vmem:[#allocation1 + $0x23] ss:$4 sm:$0xff] %v1412_v29  ;;  %2127 = vmatmul.msk.f32.vlgmr.msra.gmra.mxu0 %vm198_vm5, %v1434_v33 }
 0x5c8   :  { %v2311_v34 = vpack.i.bf16 %v2896_v1, %v2899_v46  ;;  %v2237_v46 = vld [vmem:[%s3161_s6 + $0x70] sm:$0xff] }
 0x5c9   :  { %v1355_v18 = vpop.trf.xlu0 }
 0x5ca   :  { %1436 = vst [vmem:[#allocation1] ss:$4 sm:$0xff] %v1355_v18 }
 0x5cc   :  { %v1618_v25 = vpop.permute.xlu1 %1617 }
 0x5cd   :  { %v1435_v35 = vld.sshfl [vmem:[#allocation1 + $0x20] sm:$0xff pattern:$0x73625140] }
 0x5ce   :  { %2128 = vmatmul.msk.f32.gmra.mxu0 %vm198_vm5, %v1435_v35 }
 0x5d4   :  { %v1624_v27 = vpop.permute.xlu1 %1623 }
 0x5d9   :  { %v1385_v2 = vpop.trf.xlu2 }
 0x5da   :  { %v1413_v19 = vrot.slane %v1385_v2, 2  ;;  %v1414_v38 = vrot.slane %v1385_v2, 4  ;;  %v1415_v47 = vrot.slane %v1385_v2, 6  ;;  %1437 = vst [vmem:[#allocation1 + $0x1] ss:$4 sm:$0xff] %v1385_v2 }
 0x5dc   :  { %1438 = vst [vmem:[#allocation1 + $0x2] ss:$4 sm:$0xff] %v1413_v19  ;;  %v1630_v29 = vpop.permute.xlu1 %1629 }
 0x5dd   :  { %1439 = vst [vmem:[#allocation1 + $0x3] ss:$4 sm:$0xff] %v1414_v38 }
 0x5de   :  { %1440 = vst [vmem:[#allocation1 + $0x20] ss:$4 sm:$0xff] %v1415_v47  ;;  %v1658_v47 = vsel %vm407_vm1, %v2827_v36, %v1618_v25 }
 0x5e1   :  { %v1386_v5 = vpop.trf.xlu2 }
 0x5e2   :  { %v1416_v48 = vrot.slane %v1386_v5, 2  ;;  %v1417_v49 = vrot.slane %v1386_v5, 4  ;;  %v1418_v50 = vrot.slane %v1386_v5, 6  ;;  %1441 = vst [vmem:[#allocation1 + $0x21] ss:$4 sm:$0xff] %v1386_v5  ;;  %v2351_v5 = vld [vmem:[%s3159_s3 + $0x10] sm:$0xff] }
 0x5e4   :  { %1442 = vst [vmem:[#allocation1 + $0x22] ss:$4 sm:$0xff] %v1416_v48  ;;  %v1444_v22 = vld.sshfl [vmem:[#allocation1] sm:$0xff pattern:$0x73625140]  ;;  %v1636_v31 = vpop.permute.xlu1 %1635 }
 0x5e5   :  { %1443 = vst [vmem:[#allocation1 + $0x23] ss:$4 sm:$0xff] %v1417_v49  ;;  %2129 = vmatmul.msk.f32.gmra.mxu0 %vm198_vm5, %v1444_v22 }
 0x5e6   :  { %1446 = vst [vmem:[#allocation1] ss:$4 sm:$0xff] %v1418_v50  ;;  %v1040_v50 = vmul.f32 %v2862_v6, %v2874_v12 }
 0x5e9   :  { %v1387_v51 = vpop.trf.xlu2 }
 0x5ea   :  { %1447 = vst [vmem:[#allocation1 + $0x1] ss:$4 sm:$0xff] %v1387_v51 }
 0x5ec   :  { %v1445_v52 = vld.sshfl [vmem:[#allocation1 + $0x20] sm:$0xff pattern:$0x73625140]  ;;  %v1642_v18 = vpop.permute.xlu1 %1641 }
 0x5ed   :  { %2130 = vmatmul.msk.f32.gmra.mxu0 %vm198_vm5, %v1445_v52 }
 0x5f1   :  { %v1448_v53 = vld.sshfl [vmem:[#allocation1] sm:$0xff pattern:$0x73625140] }
 0x5f4   :  { %v1648_v49 = vpop.permute.xlu1 %1647 }
 0x5f5   :  { %2131 = vmatmul.msk.f32.gmra.mxu0 %vm198_vm5, %v1448_v53 }
 0x605   :  { %v1008_v32 = vpop.permute.xlu0 %1007 }
 0x606   :  { %v1032_v35 = vsel %vm419_vm6, %v2853_v3, %v1008_v32  ;;  %v1660_v3 = vsel %vm410_vm2, %v1658_v47, %v1624_v27  ;;  %v2244_v32 = vld [vmem:[%s3163_s7 + $0x18] sm:$0xff]  ;;  %v2239_v47 = vld [vmem:[%s3161_s6 + $0x80] sm:$0xff] }
 0x607   :  { %v1034_v2 = vsel %vm422_vm7, %v1032_v35, %v2857_v4  ;;  %v1662_v48 = vsel %vm413_vm3, %v1660_v3, %v1630_v29  ;;  %v2242_v3 = vld [vmem:[%s3163_s7 + $0x8] sm:$0xff] }
 0x608   :  { %v1036_v38 = vsel %vm425_vm8, %v1034_v2, %v2874_v12  ;;  %v1664_v22 = vsel %vm416_vm4, %v1662_v48, %v1636_v31  ;;  %v2232_v31 = vld [vmem:[%s3161_s6 + $0x48] sm:$0xff]  ;;  %v2241_v48 = vld [vmem:[%s3163_s7] sm:$0xff] }
 0x609   :  { %v1039_v4 = vmul.f32 %v2351_v5, %v1036_v38  ;;  %v1666_v36 = vsel %vm419_vm6, %v1664_v22, %v1642_v18  ;;  %v2243_v38 = vld [vmem:[%s3163_s7 + $0x10] sm:$0xff] }
 0x60a   :  { %v1668_v52 = vsel %vm422_vm7, %v1666_v36, %v1648_v49 }
 0x60b   :  { %v2301_v53 = vpack.i.bf16 %v1040_v50, %v1039_v4 }
 0x613   :  { %v1654_v19 = vpop.permute.xlu2 %1653 }
 0x643   :  { %v1479_v58 = vpop.f32.mrf.mxu0 }
 0x644   :  { %v1499_v61 = vrot.slane %v1479_v58, 2  ;;  %v1500_v62 = vrot.slane %v1479_v58, 4  ;;  %v1501_v63 = vrot.slane %v1479_v58, 6  ;;  %1512 = vst [vmem:[#allocation1] ss:$4 sm:$0xff] %v1479_v58  ;;  %v1670_v58 = vsel %vm425_vm8, %v1668_v52, %v1654_v19 }
 0x645   :  { %v1673_v12 = vmul.f32 %v2892_v30, %v1670_v58 }
 0x646   :  { %1514 = vst [vmem:[#allocation1 + $0x1] ss:$4 sm:$0xff] %v1499_v61  ;;  %v1674_v61 = vmul.f32 %v2887_v24, %v1654_v19  ;;  %v2231_v19 = vld [vmem:[%s3161_s6 + $0x40] sm:$0xff] }
 0x647   :  { %1516 = vst [vmem:[#allocation1 + $0x2] ss:$4 sm:$0xff] %v1500_v62 }
 0x648   :  { %1518 = vst [vmem:[#allocation1 + $0x3] ss:$4 sm:$0xff] %v1501_v63  ;;  %v2316_v62 = vpack.i.bf16 %v1674_v61, %v1673_v12  ;;  %v976_v63 = vmul.f32 %v2862_v6, %v2555_v59 }
 0x64b   :  { %v1482_v60 = vpop.f32.mrf.mxu0 }
 0x64c   :  { %v1502_v7 = vrot.slane %v1482_v60, 2  ;;  %v1503_v8 = vrot.slane %v1482_v60, 4  ;;  %v1504_v13 = vrot.slane %v1482_v60, 6  ;;  %1520 = vst [vmem:[#allocation1 + $0x20] ss:$4 sm:$0xff] %v1482_v60  ;;  %v978_v60 = vmul.f32 %v2862_v6, %v2541_v54 }
 0x64e   :  { %1522 = vst [vmem:[#allocation1 + $0x21] ss:$4 sm:$0xff] %v1502_v7  ;;  %v2306_v7 = vpack.i.bf16 %v978_v60, %v976_v63 }
 0x64f   :  { %1524 = vst [vmem:[#allocation1 + $0x22] ss:$4 sm:$0xff] %v1503_v8  ;;  %v1527_v14 = vld.sshfl [vmem:[#allocation1] sm:$0xff pattern:$0x73625140] }
 0x650   :  { %1526 = vst [vmem:[#allocation1 + $0x23] ss:$4 sm:$0xff] %v1504_v13  ;;  %1549 = vxpose.xlu0.b32.start [1/3] (short) (narrow) %v1527_v14, 8 }
 0x657   :  { %v1528_v15 = vld.sshfl [vmem:[#allocation1 + $0x20] sm:$0xff pattern:$0x73625140] }
 0x658   :  { %1550 = vxpose.xlu0.b32.cont [2/3] (short) (narrow) %v1528_v15, 8 }
 0x662   :  { %v1485_v16 = vpop.f32.mrf.mxu0 }
 0x663   :  { %v1505_v17 = vrot.slane %v1485_v16, 2  ;;  %v1506_v26 = vrot.slane %v1485_v16, 4  ;;  %v1507_v28 = vrot.slane %v1485_v16, 6  ;;  %1529 = vst [vmem:[#allocation1] ss:$4 sm:$0xff] %v1485_v16 }
 0x665   :  { %1531 = vst [vmem:[#allocation1 + $0x20] ss:$4 sm:$0xff] %v1505_v17  ;;  %v2236_v17 = vld [vmem:[%s3161_s6 + $0x68] sm:$0xff] }
 0x666   :  { %1532 = vst [vmem:[#allocation1 + $0x21] ss:$4 sm:$0xff] %v1506_v26 }
 0x667   :  { %1533 = vst [vmem:[#allocation1 + $0x22] ss:$4 sm:$0xff] %v1507_v28  ;;  %v2235_v28 = vld [vmem:[%s3161_s6 + $0x60] sm:$0xff] }
 0x66a   :  { %v1488_v56 = vpop.f32.mrf.mxu0  ;;  %v1530_v37 = vld.sshfl [vmem:[#allocation1] sm:$0xff pattern:$0x73625140] }
 0x66b   :  { %v1508_v39 = vrot.slane %v1488_v56, 2  ;;  %v1509_v41 = vrot.slane %v1488_v56, 4  ;;  %v1510_v42 = vrot.slane %v1488_v56, 6  ;;  %1534 = vst [vmem:[#allocation1 + $0x23] ss:$4 sm:$0xff] %v1488_v56  ;;  %1551 = vxpose.xlu0.b32.end [3/3] (short) (narrow) %v1530_v37, 8 }
 0x66c   :  { %v2247_v56 = vld [vmem:[%s3163_s7 + $0x30] sm:$0xff]  ;;  %v2246_v37 = vld [vmem:[%s3163_s7 + $0x28] sm:$0xff] }
 0x66d   :  { %1536 = vst [vmem:[#allocation1] ss:$4 sm:$0xff] %v1508_v39 }
 0x66e   :  { %1537 = vst [vmem:[#allocation1 + $0x1] ss:$4 sm:$0xff] %v1509_v41  ;;  %v2234_v41 = vld [vmem:[%s3161_s6 + $0x58] sm:$0xff] }
 0x66f   :  { %1538 = vst [vmem:[#allocation1 + $0x2] ss:$4 sm:$0xff] %v1510_v42 }
 0x672   :  { %v1491_v0 = vpop.f32.mrf.mxu0  ;;  %v1535_v45 = vld.sshfl [vmem:[#allocation1 + $0x20] sm:$0xff pattern:$0x73625140] }
 0x673   :  { %v1511_v20 = vrot.slane %v1491_v0, 2  ;;  %1539 = vst [vmem:[#allocation1 + $0x3] ss:$4 sm:$0xff] %v1491_v0  ;;  %1581 = vxpose.xlu2.b32.start [1/3] (short) (narrow) %v1535_v45, 8  ;;  %v2233_v0 = vld [vmem:[%s3161_s6 + $0x50] sm:$0xff] }
 0x674   :  { %v773_v45 = vld [vmem:[%s3161_s6 + $0x90] sm:$0xf] }
 0x675   :  { %1540 = vst [vmem:[#allocation1 + $0x20] ss:$4 sm:$0xff] %v1511_v20  ;;  %v2245_v20 = vld [vmem:[%s3163_s7 + $0x20] sm:$0xff] }
 0x67a   :  { %v1541_v21 = vld.sshfl [vmem:[#allocation1] sm:$0xff pattern:$0x73625140] }
 0x67b   :  { %1582 = vxpose.xlu2.b32.cont [2/3] (short) (narrow) %v1541_v21, 8 }
 0x67c   :  { %v1542_v23 = vld.sshfl [vmem:[#allocation1 + $0x20] sm:$0xff pattern:$0x73625140] }
 0x683   :  { %1583 = vxpose.xlu2.b32.end [3/3] (short) (narrow) %v1542_v23, 8  ;;  %v1157_v23 = vunpack.c.l.b16 %v773_v45 }
 0x685   :  { %v1176_v29 = vpack.c.b16 %v1157_v23, %v1157_v23  ;;  %v1329_v23 = vld [vmem:[%s3163_s7 + $0x90] sm:$0xf] }
 0x687   :  { %v1199_v2 = vsel %vm653_vm9, %v1176_v29, 0  ;;  %v2258_v29 = vld [vmem:[%s3163_s7 + $0x88] sm:$0xff] }
 0x688   :  { %1234 = vmatpush.bf16.msrb.mxu2 %v1199_v2  ;;  %v2249_v2 = vld [vmem:[%s3163_s7 + $0x40] sm:$0xff] }
 0x6ff   :  { %v2912_v33 = vpop.trf.xlu0 }
 0x700   :  { %1707 = vrot.lane.b32.xlu0 %v2912_v33, %s2361_s19  ;;  %1701 = vrot.lane.b32.xlu2 %v2912_v33, %s2357_s16 }
 0x701   :  { %1677 = vrot.lane.b32.xlu1 %v2912_v33, %s2356_s13 }
 0x708   :  { %1713 = vrot.lane.b32.xlu2 %v2912_v33, %s2359_s18 }
 0x709   :  { %1683 = vrot.lane.b32.xlu1 %v2912_v33, %s2355_s12 }
 0x70c   :  { %v2940_v51 = vpop.trf.xlu2 }
 0x70d   :  { %1679 = vrot.lane.b32.xlu0 %v2940_v51, %s2356_s13 }
 0x710   :  { %2302 = vrot.lane.b32.xlu2 %v2301_v53, %s2363_s24 }
 0x711   :  { %1689 = vrot.lane.b32.xlu1 %v2912_v33, %s2358_s17 }
 0x715   :  { %1703 = vrot.lane.b32.xlu0 %v2940_v51, %s2357_s16 }
 0x718   :  { %2317 = vrot.lane.b32.xlu2 %v2316_v62, %s2362_s28 }
 0x719   :  { %1695 = vrot.lane.b32.xlu1 %v2912_v33, %s2360_s0 }
 0x71d   :  { %1715 = vrot.lane.b32.xlu0 %v2940_v51, %s2359_s18 }
 0x721   :  { %1685 = vrot.lane.b32.xlu1 %v2940_v51, %s2355_s12 }
 0x725   :  { %2307 = vrot.lane.b32.xlu0 %v2306_v7, %s2362_s28 }
 0x729   :  { %1691 = vrot.lane.b32.xlu1 %v2940_v51, %s2358_s17 }
 0x731   :  { %1697 = vrot.lane.b32.xlu1 %v2940_v51, %s2360_s0 }
 0x739   :  { %1709 = vrot.lane.b32.xlu1 %v2940_v51, %s2361_s19 }
 0x741   :  { %2297 = vrot.lane.b32.xlu1 %v2296_v11, %s2363_s24  ;;  %v2238_v11 = vld [vmem:[%s3161_s6 + $0x78] sm:$0xff] }
 0x742   :  { %1215 = vmatpush.bf16.msrb.mxu1 %v2238_v11 }
 0x746   :  { %1216 = vmatpush.bf16.msrb.mxu1 %v2237_v46 }
 0x749   :  { %2312 = vrot.lane.b32.xlu1 %v2311_v34, %s2362_s28  ;;  %v2248_v34 = vld [vmem:[%s3163_s7 + $0x38] sm:$0xff] }
 0x74a   :  { %1897 = vmatpush.bf16.msrb.mxu3 %v2248_v34  ;;  %1217 = vmatpush.bf16.msrb.mxu1 %v2236_v17 }
 0x74e   :  { %1898 = vmatpush.bf16.msrb.mxu3 %v2247_v56  ;;  %1218 = vmatpush.bf16.msrb.mxu1 %v2235_v28 }
 0x752   :  { %1899 = vmatpush.bf16.msrb.mxu3 %v2246_v37  ;;  %1219 = vmatpush.bf16.msrb.mxu1 %v2234_v41 }
 0x756   :  { %1220 = vmatpush.bf16.msrb.mxu1 %v2233_v0  ;;  %1900 = vmatpush.bf16.msrb.mxu3 %v2245_v20  ;;  %v2256_v20 = vld [vmem:[%s3163_s7 + $0x78] sm:$0xff] }
 0x75a   :  { %v2980_v54 = vpop.permute.xlu2 %1701  ;;  %1221 = vmatpush.bf16.msrb.mxu1 %v2232_v31  ;;  %1901 = vmatpush.bf16.msrb.mxu3 %v2244_v32  ;;  %v2253_v31 = vld [vmem:[%s3163_s7 + $0x60] sm:$0xff]  ;;  %v2252_v32 = vld [vmem:[%s3163_s7 + $0x58] sm:$0xff] }
 0x75e   :  { %1222 = vmatpush.bf16.msrb.mxu1 %v2231_v19  ;;  %1902 = vmatpush.bf16.msrb.mxu3 %v2243_v38 }
 0x762   :  { %v2982_v59 = vpop.permute.xlu2 %1713  ;;  %1903 = vmatpush.bf16.msrb.mxu3 %v2242_v3 }
 0x763   :  { %v1734_v25 = vmul.f32 %v2887_v24, %v2982_v59 }
 0x766   :  { %1904 = vmatpush.bf16.msrb.mxu3 %v2241_v48 }
 0x76a   :  { %v2984_v6 = vpop.permute.xlu2 %2302 }
 0x76b   :  { %v2305_v46 = vunpack.i.h.bf16 %v2984_v6  ;;  %v2304_v34 = vunpack.i.l.bf16 %v2984_v6 }
 0x76d   :  { %v1072_v28 = vsel %vm524_vm10, %v2304_v34, %v2305_v46 }
 0x772   :  { %v2986_v8 = vpop.permute.xlu2 %2317  ;;  %v2995_v10 = vpop.permute.xlu0 %1707 }
 0x773   :  { %v2320_v13 = vunpack.i.h.bf16 %v2986_v8  ;;  %v2319_v14 = vunpack.i.l.bf16 %v2986_v8  ;;  %v1678_v15 = vpop.permute.xlu1 %1677  ;;  %v1853_v8 = vunpack.c.l.b16 %v1329_v23 }
 0x774   :  { %v1719_v4 = vsel %vm407_vm1, %v2912_v33, %v1678_v15 }
 0x775   :  { %v2993_v9 = vsel %vm198_vm5, %v2319_v14, %v2320_v13 }
 0x77b   :  { %v1684_v1 = vpop.permute.xlu1 %1683 }
 0x77c   :  { %v1721_v49 = vsel %vm410_vm2, %v1719_v4, %v1684_v1 }
 0x77f   :  { %v1680_v16 = vpop.permute.xlu0 %1679 }
 0x780   :  { %v1720_v52 = vsel %vm407_vm1, %v2940_v51, %v1680_v16  ;;  %vm3167_vm1 = vmmov %vm3166_vm0 }
 0x783   :  { %v1690_v26 = vpop.permute.xlu1 %1689 }
 0x784   :  { %v1723_v50 = vsel %vm413_vm3, %v1721_v49, %v1690_v26 }
 0x787   :  { %v1704_v39 = vpop.permute.xlu0 %1703 }
 0x78b   :  { %v1696_v42 = vpop.permute.xlu1 %1695 }
 0x78c   :  { %v1725_v22 = vsel %vm416_vm4, %v1723_v50, %v1696_v42 }
 0x78d   :  { %v1727_v53 = vsel %vm419_vm6, %v1725_v22, %v2980_v54 }
 0x78e   :  { %v1729_v12 = vsel %vm422_vm7, %v1727_v53, %v2995_v10 }
 0x78f   :  { %v1716_v21 = vpop.permute.xlu0 %1715  ;;  %v1731_v60 = vsel %vm425_vm8, %v1729_v12, %v2982_v59 }
 0x790   :  { %v1736_v27 = vmul.f32 %v2887_v24, %v1716_v21  ;;  %v2240_v24 = vld [vmem:[%s3161_s6 + $0x88] sm:$0xff]  ;;  %v1733_v15 = vmul.f32 %v2892_v30, %v1731_v60 }
 0x791   :  { %1235 = vmatpush.bf16.msrb.mxu2 %v2240_v24  ;;  %v2257_v24 = vld [vmem:[%s3163_s7 + $0x80] sm:$0xff] }
 0x792   :  { %v2326_v18 = vpack.i.bf16 %v1736_v27, %v1734_v25  ;;  %v1872_v25 = vpack.c.b16 %v1853_v8, %v1853_v8 }
 0x793   :  { %v1686_v35 = vpop.permute.xlu1 %1685 }
 0x794   :  { %2327 = vrot.lane.b32.xlu1 %v2326_v18, %s2363_s24  ;;  %v1722_v33 = vsel %vm410_vm2, %v1720_v52, %v1686_v35  ;;  %v1895_v27 = vsel %vm653_vm9, %v1872_v25, 0  ;;  %v2251_v18 = vld [vmem:[%s3163_s7 + $0x50] sm:$0xff]  ;;  %v2250_v35 = vld [vmem:[%s3163_s7 + $0x48] sm:$0xff]  ;;  %vm1949_vm9 = vcmask 130048  }
 0x795   :  { %1236 = vmatpush.bf16.msrb.mxu2 %v2239_v47  ;;  %1930 = vmatpush.bf16.msra.mxu1 %v1895_v27 }
 0x797   :  { %v2308_v7 = vpop.permute.xlu0 %2307 }
 0x798   :  { %v2310_v11 = vunpack.i.h.bf16 %v2308_v7  ;;  %v2309_v10 = vunpack.i.l.bf16 %v2308_v7 }
 0x799   :  { %1911 = vmatpush.bf16.msra.mxu2 %v2256_v20  ;;  %1931 = vmatpush.bf16.msra.mxu1 %v2258_v29  ;;  %v2352_v29 = vld [vmem:[%s3156_s1] sm:$0xff] }
 0x79a   :  { %v1054_v59 = vsel %vm198_vm5, %v2295_v43, %v2310_v11  ;;  %v2122_v43 = vld [vmem:[%s3162_s2 + $0x10] sm:$0xff] }
 0x79b   :  { %v1692_v5 = vpop.permute.xlu1 %1691  ;;  %v1080_v6 = vsel %vm524_vm10, %v1054_v59, %v2304_v34 }
 0x79c   :  { %v1724_v58 = vsel %vm413_vm3, %v1722_v33, %v1692_v5 }
 0x79d   :  { %1932 = vmatpush.bf16.msra.mxu1 %v2257_v24 }
 0x7a3   :  { %v1698_v36 = vpop.permute.xlu1 %1697 }
 0x7a4   :  { %v1726_v61 = vsel %vm416_vm4, %v1724_v58, %v1698_v36 }
 0x7a5   :  { %v1728_v62 = vsel %vm419_vm6, %v1726_v61, %v1704_v39 }
 0x7ab   :  { %v1710_v63 = vpop.permute.xlu1 %1709 }
 0x7ac   :  { %v1730_v51 = vsel %vm422_vm7, %v1728_v62, %v1710_v63 }
 0x7ad   :  { %v1732_v54 = vsel %vm425_vm8, %v1730_v51, %v1716_v21  ;;  %v2255_v21 = vld [vmem:[%s3163_s7 + $0x70] sm:$0xff] }
 0x7ae   :  { %v1735_v13 = vmul.f32 %v2892_v30, %v1732_v54  ;;  %v1053_v30 = vsel %vm198_vm5, %v2294_v44, %v2309_v10  ;;  %v1774_v44 = vsel %vm198_vm5, %v2122_v43, %v2319_v14  ;;  %1912 = vmatpush.bf16.msra.mxu2 %v2255_v21  ;;  %v2254_v14 = vld [vmem:[%s3163_s7 + $0x68] sm:$0xff] }
 0x7b0   :  { %v2321_v1 = vpack.i.bf16 %v1735_v13, %v1733_v15 }
 0x7b2   :  { %2322 = vrot.lane.b32.xlu0 %v2321_v1, %s2363_s24  ;;  %1913 = vmatpush.bf16.msra.mxu2 %v2254_v14 }
 0x7b3   :  { %v2298_v16 = vpop.permute.xlu1 %2297 }
 0x7b4   :  { %v2300_v17 = vunpack.i.h.bf16 %v2298_v16  ;;  %v2299_v26 = vunpack.i.l.bf16 %v2298_v16 }
 0x7b6   :  { %v1071_v56 = vsel %vm524_vm10, %v2299_v26, %v2300_v17  ;;  %v1079_v37 = vsel %vm524_vm10, %v1053_v30, %v2299_v26  ;;  %1914 = vmatpush.bf16.msra.mxu2 %v2253_v31 }
 0x7b7   :  { %v1083_v39 = vpack.c.bf16 %v1072_v28, %v1071_v56  ;;  %v1082_v41 = vpack.c.bf16 %v1080_v6, %v1079_v37 }
 0x7b9   :  { %1223 = vmatmul.bf16.vlgmr.msrb.gmra.mxu1 %v1082_v41  ;;  %2119 = vmatmul.msk.bf16.vlgmr.msrb.gmra.mxu2 %vm3166_vm0, %v1083_v39 }
 0x7ba   :  { %1915 = vmatpush.bf16.msra.mxu2 %v2252_v32 }
 0x7bb   :  { %v2313_v40 = vpop.permute.xlu1 %2312 }
 0x7bc   :  { %v2314_v42 = vunpack.i.l.bf16 %v2313_v40  ;;  %v2315_v19 = vunpack.i.h.bf16 %v2313_v40 }
 0x7be   :  { %v1773_v0 = vsel %vm198_vm5, %v2122_v43, %v2314_v42  ;;  %1916 = vmatpush.bf16.msra.mxu2 %v2251_v18  ;;  %v1749_v49 = vsel %vm198_vm5, %v2314_v42, %v2315_v19 }
 0x7bf   :  { %v1777_v45 = vpack.c.bf16 %v1774_v44, %v1773_v0 }
 0x7c1   :  { %1905 = vmatmul.bf16.vlgmr.msrb.gmra.mxu3 %v1777_v45 }
 0x7c2   :  { %1917 = vmatpush.bf16.msra.mxu2 %v2250_v35 }
 0x7c6   :  { %1918 = vmatpush.bf16.msra.mxu2 %v2249_v2 }
 0x806   :  { %v2328_v38 = vpop.permute.xlu1 %2327 }
 0x807   :  { %v2330_v3 = vunpack.i.h.bf16 %v2328_v38  ;;  %v2329_v5 = vunpack.i.l.bf16 %v2328_v38 }
 0x824   :  { %v2323_v47 = vpop.permute.xlu0 %2322 }
 0x825   :  { %v2325_v4 = vunpack.i.h.bf16 %v2323_v47  ;;  %v2324_v48 = vunpack.i.l.bf16 %v2323_v47 }
 0x827   :  { %v1776_v50 = vsel %vm524_vm10, %v2993_v9, %v2325_v4  ;;  %v1767_v22 = vsel %vm524_vm10, %v2324_v48, %v2329_v5  ;;  %v1768_v36 = vsel %vm524_vm10, %v2325_v4, %v2330_v3  ;;  %v1775_v52 = vsel %vm524_vm10, %v1749_v49, %v2324_v48 }
 0x828   :  { %v1778_v53 = vpack.c.bf16 %v1776_v50, %v1775_v52  ;;  %v1779_v33 = vpack.c.bf16 %v1768_v36, %v1767_v22 }
 0x82a   :  { %1919 = vmatmul.bf16.vlgmr.msra.gmra.mxu2 %v1778_v53  ;;  %2204 = vmatmul.msk.bf16.vlgmr.msra.gmra.mxu1 %vm3167_vm1, %v1779_v33 }
 0x836   :  { %v1224_v58 = vpop.f32.mrf.mxu1 }
 0x837   :  { %v1225_v61 = vadd.f32 %v1224_v58, %v2908_v55 }
 0x83c   :  { %v1238_v12 = vpop.f32.mrf.mxu2 }
 0x83d   :  { %v1239_v62 = vadd.f32 %v1238_v12, %v1225_v61 }
 0x83e   :  { %v1226_v63 = vpop.f32.mrf.mxu1 }
 0x83f   :  { %v2120_v60 = vmul.f32 -1.442695, %v1239_v62  ;;  %v1227_v9 = vadd.f32 %v1226_v63, %v2910_v57 }
 0x841   :  { %2339 = vpow2.f32 %v2120_v60 }
 0x844   :  { %v1240_v7 = vpop.f32.mrf.mxu2  ;;  %v1906_v17 = vpop.f32.mrf.mxu3 }
 0x845   :  { %v1241_v51 = vadd.f32 %v1240_v7, %v1227_v9 }
 0x847   :  { %v2121_v54 = vmul.f32 -1.442695, %v1241_v51  ;;  %v2340_v13 = vpop.eup %2339 }
 0x848   :  { %v1249_v15 = vadd.f32 1.0, %v2340_v13 }
 0x849   :  { %2341 = vpow2.f32 %v2121_v54 }
 0x84a   :  { %2343 = vrcp.f32 %v1249_v15  ;;  %v1262_v56 = vand.u32 2147483648, %v1249_v15  ;;  %vm1256_vm3 = vweird.f32 %v1249_v15  ;;  %v1260_v6 = vand.u32 2147483647, %v1249_v15 }
 0x84c   :  { %v1263_v40 = vor.u32 1.1754944e-38, %v1262_v56  ;;  %vm1261_vm5 = vcmp.eq.f32.partialorder %v1260_v6, 8.507059e+37  ;;  %v1908_v44 = vpop.f32.mrf.mxu3 }
 0x84f   :  { %v2342_v11 = vpop.eup %2341 }
 0x850   :  { %v1250_v1 = vadd.f32 1.0, %v2342_v11  ;;  %v2344_v10 = vpop.eup %2343 }
 0x851   :  { %v1252_v46 = vmul.f32 %v2344_v10, %v1249_v15  ;;  %vm1257_vm2 = vweird.f32 %v2344_v10 }
 0x852   :  { %2345 = vrcp.f32 %v1250_v1  ;;  %vm1258_vm4 = vmor %vm1256_vm3, %vm1257_vm2  ;;  %v1277_v20 = vand.u32 2147483648, %v1250_v1  ;;  %vm1271_vm7 = vweird.f32 %v1250_v1  ;;  %v1275_v25 = vand.u32 2147483647, %v1250_v1 }
 0x853   :  { %v1253_v34 = vsub.f32 1.0, %v1252_v46 }
 0x854   :  { %v1278_v35 = vor.u32 1.1754944e-38, %v1277_v20  ;;  %vm1276_vm10 = vcmp.eq.f32.partialorder %v1275_v25, 8.507059e+37 }
 0x855   :  { %v1254_v59 = vmul.f32 %v2344_v10, %v1253_v34 }
 0x857   :  { %v1255_v30 = vadd.f32 %v2344_v10, %v1254_v59 }
 0x858   :  { %v2346_v55 = vpop.eup %2345 }
 0x859   :  { %v1267_v16 = vmul.f32 %v2346_v55, %v1250_v1  ;;  %v1259_v43 = vsel %vm1258_vm4, %v2344_v10, %v1255_v30  ;;  %vm1272_vm6 = vweird.f32 %v2346_v55 }
 0x85a   :  { %v1264_v42 = vsel %vm1261_vm5, %v1263_v40, %v1259_v43  ;;  %vm1273_vm8 = vmor %vm1271_vm7, %vm1272_vm6 }
 0x85b   :  { %v1268_v26 = vsub.f32 1.0, %v1267_v16  ;;  %v1943_v23 = vsub.f32 1.0, %v1264_v42  ;;  %v1941_v31 = vmul.f32 %v2352_v29, %v1264_v42 }
 0x85d   :  { %v1269_v41 = vmul.f32 %v2346_v55, %v1268_v26 }
 0x85f   :  { %v1270_v0 = vadd.f32 %v2346_v55, %v1269_v41 }
 0x861   :  { %v1274_v18 = vsel %vm1273_vm8, %v2346_v55, %v1270_v0 }
 0x862   :  { %v1279_v24 = vsel %vm1276_vm10, %v1278_v35, %v1274_v18 }
 0x863   :  { %v1944_v19 = vsub.f32 1.0, %v1279_v24 }
 0x8a7   :  { %v1934_v57 = vpop.f32.mrf.mxu1 }
 0x8ad   :  { %v1920_v28 = vpop.f32.mrf.mxu2 }
 0x8ae   :  { %v1921_v37 = vadd.f32 %v1920_v28, %v1906_v17 }
 0x8af   :  { %v1936_v8 = vpop.f32.mrf.mxu1 }
 0x8b0   :  { %v1935_v39 = vadd.f32 %v1934_v57, %v1921_v37 }
 0x8b2   :  { %2347 = vtanh.f32 %v1935_v39 }
 0x8b5   :  { %v1922_v45 = vpop.f32.mrf.mxu2 }
 0x8b6   :  { %v1923_v21 = vadd.f32 %v1922_v45, %v1908_v44 }
 0x8b8   :  { %v2348_v14 = vpop.eup %2347  ;;  %v1937_v27 = vadd.f32 %v1936_v8, %v1923_v21 }
 0x8b9   :  { %v1945_v32 = vmul.f32 %v2348_v14, %v1943_v23 }
 0x8ba   :  { %2349 = vtanh.f32 %v1937_v27 }
 0x8bb   :  { %v1947_v2 = vadd.f32 %v1945_v32, %v1941_v31 }
 0x8bd   :  { %1950 = vst.msk [vmem:[%s3164_s8] sm:$0xff] %vm1949_vm9, %v1947_v2 }
 0x8c0   :  { %v2350_v38 = vpop.eup %2349 }
 0x8c1   :  { %v1946_v5 = vmul.f32 %v2350_v38, %v1944_v19 }
 0x8c4   :  { %v2353_v47 = vld [vmem:[%s3156_s1 + $0x8] sm:$0xff] }
 0x8c5   :  { %v1942_v3 = vmul.f32 %v2353_v47, %v1279_v24 }
 0x8c7   :  { %v1948_v4 = vadd.f32 %v1946_v5, %v1942_v3 }
 0x8c9   :  { %1951 = vst.msk [vmem:[%s3164_s8 + $0x8] sm:$0xff] %vm1949_vm9, %v1948_v4 }

// kernel: dstrnn_forward.22
= control target key start
LH: loop header
LB: loop body
LE: loop exit
PB: predicated region body
PF: predicated region fallthrough
CT: control target
= control target key end

     0   :  { %s2591_s29 = smov 16   ;;  %vm42_vm0 = vcmask 130048   ;;  %s2592_s12 = smov 32   ;;  %vm178_vm1 = vcmask 64512   ;;  %vm331_vm2 = vcmask 261120   ;;  %vm334_vm3 = vcmask 523264   ;;  %s3307_s1 = inlined_call_operand.vmem [shape: f32[2,8,16], index: 1, kind: input, shape index: {}, may-alias: {1,8}]   ;;  %s3308_s0 = inlined_call_operand.vmem [shape: f32[2,8,16], index: 0, kind: input, shape index: {}]   ;;  %s3309_s4 = inlined_call_operand.vmem [shape: f32[3,8,8], index: 4, kind: input, shape index: {}]   ;;  %s3310_s3 = inlined_call_operand.vmem [shape: f32[3,8,256], index: 3, kind: input, shape index: {}]   ;;  %s3311_s5 = inlined_call_operand.vmem [shape: bf16[520,16], index: 5, kind: input, shape index: {}]   ;;  %s3312_s2 = inlined_call_operand.vmem [shape: f32[3,8,8], index: 2, kind: input, shape index: {}]   ;;  %s3313_s6 = inlined_call_operand.vmem [shape: bf16[520,16], index: 6, kind: input, shape index: {}]   ;;  %s3314_s7 = inlined_call_operand.vmem [shape: bf16[520,16], index: 7, kind: input, shape index: {}]   ;;  %s3315_s8 = inlined_call_operand.vmem [shape: f32[2,8,16], index: 8, kind: output, shape index: {}, may-alias: {1,8}]  }
   0x1   :  { %v2644_v0 = vld [vmem:[%s3307_s1] sm:$0xff]  ;;  %v2651_v1 = vld [vmem:[%s3307_s1 + $0x8] sm:$0xff]  ;;  %s2593_s17 = smov 96   ;;  %vm337_vm4 = vcmask 785408   ;;  %v2752_v37 = vld [vmem:[%s3310_s3 + $0x10] sm:$0xff]  ;;  %s2595_s26 = smov 8  }
   0x2   :  { %36 = vrot.lane.b32.xlu0 %v2644_v0, %s2591_s29  ;;  %v2658_v2 = vld [vmem:[%s3308_s0] sm:$0xff]  ;;  %v2670_v6 = vld [vmem:[%s3308_s0 + $0x8] sm:$0xff]  ;;  %s2594_s0 = smov 64   ;;  %v2757_v38 = vld [vmem:[%s3310_s3 + $0x18] sm:$0xff]  ;;  %vm621_vm5 = vcmask 1043456  }
   0x3   :  { %v113_v8 = vld [vmem:[%s3309_s4] sm:$0xff]  ;;  %v112_v35 = vld [vmem:[%s3310_s3 + $0x8] sm:$0xff]  ;;  %v2414_v55 = vld [vmem:[%s3311_s5 + $0x38] sm:$0xff] }
   0x4   :  { %1981 = vmatpush.xpose.msk.msra.mxu0 %vm178_vm1, %v113_v8  ;;  %v111_v36 = vld [vmem:[%s3310_s3] sm:$0xff]  ;;  %625 = vmatpush.bf16.msra.mxu1 %v2414_v55  ;;  %v2413_v56 = vld [vmem:[%s3311_s5 + $0x30] sm:$0xff]  ;;  %v2412_v57 = vld [vmem:[%s3311_s5 + $0x28] sm:$0xff] }
   0x5   :  { %v2422_v58 = vld [vmem:[%s3311_s5 + $0x78] sm:$0xff]  ;;  %v2411_v59 = vld [vmem:[%s3311_s5 + $0x20] sm:$0xff]  ;;  %v2409_v63 = vld [vmem:[%s3311_s5 + $0x10] sm:$0xff] }
   0x6   :  { %639 = vmatpush.bf16.msra.mxu2 %v2422_v58  ;;  %v2410_v60 = vld [vmem:[%s3311_s5 + $0x18] sm:$0xff]  ;;  %v2427_v58 = vld [vmem:[%s3311_s5 + $0xa0] sm:$0xff] }
   0x8   :  { %626 = vmatpush.bf16.msra.mxu1 %v2413_v56  ;;  %v2428_v56 = vld [vmem:[%s3311_s5 + $0xa8] sm:$0xff] }
   0xa   :  { %38 = vrot.lane.b32.xlu0 %v2651_v1, %s2591_s29 }
   0xc   :  { %627 = vmatpush.bf16.msra.mxu1 %v2412_v57  ;;  %v2436_v57 = vld [vmem:[%s3311_s5 + $0xe8] sm:$0xff] }
  0x10   :  { %628 = vmatpush.bf16.msra.mxu1 %v2411_v59  ;;  %v2435_v59 = vld [vmem:[%s3311_s5 + $0xe0] sm:$0xff] }
  0x14   :  { %629 = vmatpush.bf16.msra.mxu1 %v2410_v60  ;;  %v2426_v60 = vld [vmem:[%s3311_s5 + $0x98] sm:$0xff] }
  0x18   :  { %630 = vmatpush.bf16.msra.mxu1 %v2409_v63  ;;  %v2433_v63 = vld [vmem:[%s3311_s5 + $0xd0] sm:$0xff] }
  0x74   :  { %v37_v3 = vpop.permute.xlu0 %36 }
  0x75   :  { %v2662_v4 = vsel %vm42_vm0, %v2658_v2, %v37_v3 }
  0x76   :  { %313 = vrot.lane.b32.xlu2 %v2662_v4, %s2592_s12  ;;  %114 = vxpose.xlu1.b32.start.end [1/1] (short) (narrow) %v2662_v4, 32 }
  0x7c   :  { %v39_v5 = vpop.permute.xlu0 %38 }
  0x7d   :  { %v2674_v7 = vsel %vm42_vm0, %v2670_v6, %v39_v5 }
  0x96   :  { %146 = vxpose.xlu1.b32.start.end [1/1] (short) (narrow) %v2674_v7, 32 }
  0xd0   :  { %v314_v25 = vpop.permute.xlu2 %313 }
  0xd1   :  { %v332_v31 = vsel %vm331_vm2, %v2662_v4, %v314_v25  ;;  %v2420_v25 = vld [vmem:[%s3311_s5 + $0x68] sm:$0xff] }
 0x108   :  { %315 = vrot.lane.b32.xlu1 %v2674_v7, %s2592_s12 }
 0x110   :  { %325 = vrot.lane.b32.xlu1 %v2662_v4, %s2593_s17 }
 0x11a   :  { %v2685_v9 = vpop.trf.xlu1 }
 0x11b   :  { %1982 = vmatmul.msk.f32.vlgmr.msra.gmra.mxu0 %vm178_vm1, %v2685_v9 }
 0x122   :  { %v2689_v10 = vpop.trf.xlu1 }
 0x123   :  { %1983 = vmatmul.msk.f32.gmra.mxu0 %vm178_vm1, %v2689_v10 }
 0x12a   :  { %v2693_v11 = vpop.trf.xlu1 }
 0x12b   :  { %1984 = vmatmul.msk.f32.gmra.mxu0 %vm178_vm1, %v2693_v11 }
 0x132   :  { %v2697_v12 = vpop.trf.xlu1 }
 0x133   :  { %1985 = vmatmul.msk.f32.gmra.mxu0 %vm178_vm1, %v2697_v12 }
 0x13a   :  { %v2701_v13 = vpop.trf.xlu1 }
 0x13b   :  { %1986 = vmatmul.msk.f32.gmra.mxu0 %vm178_vm1, %v2701_v13 }
 0x142   :  { %v2705_v14 = vpop.trf.xlu1 }
 0x143   :  { %1987 = vmatmul.msk.f32.gmra.mxu0 %vm178_vm1, %v2705_v14 }
 0x14a   :  { %v2709_v15 = vpop.trf.xlu1 }
 0x14b   :  { %1988 = vmatmul.msk.f32.gmra.mxu0 %vm178_vm1, %v2709_v15 }
 0x152   :  { %v2713_v16 = vpop.trf.xlu1 }
 0x153   :  { %1989 = vmatmul.msk.f32.gmra.mxu0 %vm178_vm1, %v2713_v16 }
 0x17a   :  { %v316_v29 = vpop.permute.xlu1 %315 }
 0x17b   :  { %v333_v39 = vsel %vm331_vm2, %v2674_v7, %v316_v29 }
 0x182   :  { %v326_v33 = vpop.permute.xlu1 %325 }
 0x198   :  { %v223_v17 = vpop.f32.mrf.mxu0 }
 0x199   :  { %247 = vxpose.xlu2.b32.start [1/4] (short) (narrow) %v223_v17, 8 }
 0x1a0   :  { %v226_v18 = vpop.f32.mrf.mxu0 }
 0x1a1   :  { %248 = vxpose.xlu2.b32.cont [2/4] (short) (narrow) %v226_v18, 8  ;;  %v2407_v18 = vld [vmem:[%s3311_s5] sm:$0xff] }
 0x1a8   :  { %v229_v19 = vpop.f32.mrf.mxu0 }
 0x1a9   :  { %249 = vxpose.xlu2.b32.cont [3/4] (short) (narrow) %v229_v19, 8  ;;  %v2421_v19 = vld [vmem:[%s3311_s5 + $0x70] sm:$0xff] }
 0x1aa   :  { %640 = vmatpush.bf16.msra.mxu2 %v2421_v19 }
 0x1ae   :  { %641 = vmatpush.bf16.msra.mxu2 %v2420_v25  ;;  %v2431_v25 = vld [vmem:[%s3311_s5 + $0xc0] sm:$0xff] }
 0x1b0   :  { %v232_v20 = vpop.f32.mrf.mxu0 }
 0x1b1   :  { %250 = vxpose.xlu2.b32.end [4/4] (short) (narrow) %v232_v20, 8 }
 0x1b8   :  { %v235_v21 = vpop.f32.mrf.mxu0 }
 0x1b9   :  { %279 = vxpose.xlu0.b32.start [1/4] (short) (narrow) %v235_v21, 8 }
 0x1c0   :  { %v238_v22 = vpop.f32.mrf.mxu0 }
 0x1c1   :  { %280 = vxpose.xlu0.b32.cont [2/4] (short) (narrow) %v238_v22, 8 }
 0x1c8   :  { %v241_v23 = vpop.f32.mrf.mxu0 }
 0x1c9   :  { %281 = vxpose.xlu0.b32.cont [3/4] (short) (narrow) %v241_v23, 8 }
 0x1d0   :  { %v244_v24 = vpop.f32.mrf.mxu0 }
 0x1d1   :  { %282 = vxpose.xlu0.b32.end [4/4] (short) (narrow) %v244_v24, 8 }
 0x21a   :  { %319 = vrot.lane.b32.xlu2 %v2662_v4, %s2594_s0  ;;  %v2408_v4 = vld [vmem:[%s3311_s5 + $0x8] sm:$0xff] }
 0x21b   :  { %631 = vmatpush.bf16.msra.mxu1 %v2408_v4  ;;  %v2432_v4 = vld [vmem:[%s3311_s5 + $0xc8] sm:$0xff] }
 0x21f   :  { %632 = vmatpush.bf16.msra.mxu1 %v2407_v18 }
 0x222   :  { %321 = vrot.lane.b32.xlu2 %v2674_v7, %s2594_s0 }
 0x22a   :  { %327 = vrot.lane.b32.xlu2 %v2674_v7, %s2593_s17 }
 0x232   :  { %v2723_v26 = vpop.trf.xlu2 }
 0x233   :  { %352 = vrot.lane.b32.xlu1 %v2723_v26, %s2594_s0 }
 0x23b   :  { %358 = vrot.lane.b32.xlu1 %v2723_v26, %s2593_s17 }
 0x23f   :  { %346 = vrot.lane.b32.xlu0 %v2723_v26, %s2592_s12 }
 0x25d   :  { %v2731_v27 = vpop.trf.xlu0 }
 0x25e   :  { %348 = vrot.lane.b32.xlu2 %v2731_v27, %s2592_s12 }
 0x266   :  { %354 = vrot.lane.b32.xlu2 %v2731_v27, %s2594_s0 }
 0x26e   :  { %360 = vrot.lane.b32.xlu2 %v2731_v27, %s2593_s17 }
 0x274   :  { %v320_v28 = vpop.permute.xlu2 %319 }
 0x275   :  { %v335_v32 = vsel %vm334_vm3, %v332_v31, %v320_v28 }
 0x276   :  { %v338_v34 = vsel %vm337_vm4, %v335_v32, %v326_v33  ;;  %v2418_v33 = vld [vmem:[%s3311_s5 + $0x58] sm:$0xff] }
 0x277   :  { %v341_v42 = vmul.f32 %v338_v34, %v112_v35  ;;  %v340_v44 = vmul.f32 %v338_v34, %v111_v36  ;;  %v2764_v45 = vmul.f32 %v2757_v38, %v338_v34  ;;  %v2767_v46 = vmul.f32 %v2752_v37, %v338_v34  ;;  %v2417_v34 = vld [vmem:[%s3311_s5 + $0x50] sm:$0xff] }
 0x27c   :  { %v322_v30 = vpop.permute.xlu2 %321 }
 0x27d   :  { %v336_v40 = vsel %vm334_vm3, %v333_v39, %v322_v30  ;;  %v2430_v39 = vld [vmem:[%s3311_s5 + $0xb8] sm:$0xff] }
 0x27e   :  { %653 = vmatpush.bf16.msra.mxu3 %v2430_v39 }
 0x284   :  { %v328_v41 = vpop.permute.xlu2 %327 }
 0x285   :  { %v339_v43 = vsel %vm337_vm4, %v336_v40, %v328_v41  ;;  %v2438_v40 = vld [vmem:[%s3311_s5 + $0xf8] sm:$0xff] }
 0x286   :  { %v342_v47 = vmul.f32 %v339_v43, %v111_v36  ;;  %v343_v48 = vmul.f32 %v339_v43, %v112_v35  ;;  %v2770_v49 = vmul.f32 %v2752_v37, %v339_v43  ;;  %v2773_v50 = vmul.f32 %v2757_v38, %v339_v43  ;;  %667 = vmatpush.bf16.msrb.mxu1 %v2438_v40  ;;  %v2429_v43 = vld [vmem:[%s3311_s5 + $0xb0] sm:$0xff] }
 0x287   :  { %654 = vmatpush.bf16.msra.mxu3 %v2429_v43 }
 0x288   :  { %v2509_v51 = vpack.i.bf16 %v343_v48, %v341_v42  ;;  %v2519_v52 = vpack.i.bf16 %v342_v47, %v340_v44  ;;  %v2529_v53 = vpack.i.bf16 %v2773_v50, %v2764_v45  ;;  %v2539_v54 = vpack.i.bf16 %v2770_v49, %v2767_v46  ;;  %v110_v42 = vld [vmem:[%s3312_s2] sm:$0xff]  ;;  %v2437_v44 = vld [vmem:[%s3311_s5 + $0xf0] sm:$0xff]  ;;  %v2446_v46 = vld [vmem:[%s3313_s6 + $0x38] sm:$0xff] }
 0x289   :  { %v2454_v49 = vld [vmem:[%s3313_s6 + $0x78] sm:$0xff]  ;;  %1197 = vmatpush.bf16.msrb.mxu0 %v2446_v46 }
 0x28a   :  { %2510 = vrot.lane.b32.xlu1 %v2509_v51, %s2595_s26  ;;  %2520 = vrot.lane.b32.xlu2 %v2519_v52, %s2595_s26 }
 0x28b   :  { %668 = vmatpush.bf16.msrb.mxu1 %v2437_v44  ;;  %655 = vmatpush.bf16.msra.mxu3 %v2428_v56 }
 0x28f   :  { %669 = vmatpush.bf16.msrb.mxu1 %v2436_v57  ;;  %656 = vmatpush.bf16.msra.mxu3 %v2427_v58 }
 0x293   :  { %670 = vmatpush.bf16.msrb.mxu1 %v2435_v59  ;;  %657 = vmatpush.bf16.msra.mxu3 %v2426_v60 }
 0x2a5   :  { %v353_v62 = vpop.permute.xlu1 %352 }
 0x2ad   :  { %v359_v17 = vpop.permute.xlu1 %358 }
 0x2b1   :  { %v347_v3 = vpop.permute.xlu0 %346 }
 0x2b2   :  { %v364_v7 = vsel %vm331_vm2, %v2723_v26, %v347_v3  ;;  %v2424_v3 = vld [vmem:[%s3311_s5 + $0x88] sm:$0xff] }
 0x2b3   :  { %v366_v8 = vsel %vm334_vm3, %v364_v7, %v353_v62  ;;  %v2425_v62 = vld [vmem:[%s3311_s5 + $0x90] sm:$0xff] }
 0x2b4   :  { %v368_v20 = vsel %vm337_vm4, %v366_v8, %v359_v17  ;;  %658 = vmatpush.bf16.msra.mxu3 %v2425_v62 }
 0x2b5   :  { %v370_v26 = vmul.f32 %v368_v20, %v111_v36  ;;  %v371_v28 = vmul.f32 %v368_v20, %v112_v35  ;;  %v109_v20 = vld [vmem:[%s3311_s5 + $0x100] sm:$0xf] }
 0x2b8   :  { %v349_v61 = vpop.permute.xlu2 %348  ;;  %659 = vmatpush.bf16.msra.mxu3 %v2424_v3 }
 0x2b9   :  { %v365_v21 = vsel %vm331_vm2, %v2731_v27, %v349_v61  ;;  %v2419_v27 = vld [vmem:[%s3311_s5 + $0x60] sm:$0xff]  ;;  %v2434_v61 = vld [vmem:[%s3311_s5 + $0xd8] sm:$0xff] }
 0x2ba   :  { %642 = vmatpush.bf16.msra.mxu2 %v2419_v27  ;;  %671 = vmatpush.bf16.msrb.mxu1 %v2434_v61 }
 0x2be   :  { %643 = vmatpush.bf16.msra.mxu2 %v2418_v33  ;;  %672 = vmatpush.bf16.msrb.mxu1 %v2433_v63 }
 0x2c0   :  { %v355_v5 = vpop.permute.xlu2 %354 }
 0x2c1   :  { %v367_v22 = vsel %vm334_vm3, %v365_v21, %v355_v5  ;;  %v552_v21 = vunpack.c.l.b16 %v109_v20 }
 0x2c2   :  { %644 = vmatpush.bf16.msra.mxu2 %v2417_v34  ;;  %673 = vmatpush.bf16.msrb.mxu1 %v2432_v4 }
 0x2c6   :  { %674 = vmatpush.bf16.msrb.mxu1 %v2431_v25 }
 0x2c8   :  { %v361_v23 = vpop.permute.xlu2 %360 }
 0x2c9   :  { %v369_v24 = vsel %vm337_vm4, %v367_v22, %v361_v23  ;;  %v585_v22 = vpack.c.b16 %v552_v21, %v552_v21 }
 0x2ca   :  { %v372_v29 = vmul.f32 %v369_v24, %v111_v36  ;;  %v373_v30 = vmul.f32 %v369_v24, %v112_v35  ;;  %v2416_v35 = vld [vmem:[%s3311_s5 + $0x48] sm:$0xff]  ;;  %v2415_v36 = vld [vmem:[%s3311_s5 + $0x40] sm:$0xff] }
 0x2cb   :  { %645 = vmatpush.bf16.msra.mxu2 %v2416_v35  ;;  %v623_v23 = vsel %vm621_vm5, %v585_v22, 0  ;;  %v2423_v24 = vld [vmem:[%s3311_s5 + $0x80] sm:$0xff] }
 0x2cc   :  { %v2524_v31 = vpack.i.bf16 %v373_v30, %v371_v28  ;;  %v2514_v32 = vpack.i.bf16 %v372_v29, %v370_v26  ;;  %660 = vmatpush.bf16.msra.mxu3 %v2423_v24  ;;  %v2124_v26 = vld [vmem:[%s3309_s4 + $0x8] sm:$0xff] }
 0x2ce   :  { %2525 = vrot.lane.b32.xlu1 %v2524_v31, %s2595_s26  ;;  %2515 = vrot.lane.b32.xlu0 %v2514_v32, %s2595_s26 }
 0x2cf   :  { %646 = vmatpush.bf16.msra.mxu2 %v2415_v36 }
 0x2d0   :  { %2125 = vmatpush.xpose.msk.msrb.mxu3 %vm178_vm1, %v2124_v26 }
 0x2d3   :  { %688 = vmatpush.bf16.msrb.mxu2 %v623_v23 }
 0x2e4   :  { %v2521_v41 = vpop.permute.xlu2 %2520 }
 0x2e5   :  { %v2523_v47 = vunpack.i.h.bf16 %v2521_v41  ;;  %v2522_v48 = vunpack.i.l.bf16 %v2521_v41 }
 0x2e7   :  { %v414_v51 = vsel %vm178_vm1, %v110_v42, %v2522_v48  ;;  %v415_v52 = vsel %vm178_vm1, %v110_v42, %v2523_v47 }
 0x2e8   :  { %v418_v55 = vpack.c.bf16 %v415_v52, %v414_v51 }
 0x2ea   :  { %633 = vmatmul.bf16.vlgmr.msra.gmra.mxu1 %v418_v55 }
 0x2fc   :  { %v2511_v5 = vpop.permute.xlu1 %2510 }
 0x2fd   :  { %v2513_v7 = vunpack.i.h.bf16 %v2511_v5  ;;  %v2512_v8 = vunpack.i.l.bf16 %v2511_v5 }
 0x2ff   :  { %v386_v17 = vsel %vm178_vm1, %v2522_v48, %v2512_v8  ;;  %v387_v18 = vsel %vm178_vm1, %v2523_v47, %v2513_v7 }
 0x300   :  { %v419_v19 = vpack.c.bf16 %v387_v18, %v386_v17 }
 0x302   :  { %647 = vmatmul.bf16.vlgmr.msra.gmra.mxu2 %v419_v19 }
 0x303   :  { %1211 = vmatpush.bf16.msra.mxu2 %v2454_v49 }
 0x340   :  { %v2516_v28 = vpop.permute.xlu0 %2515  ;;  %v2526_v29 = vpop.permute.xlu1 %2525 }
 0x341   :  { %v2518_v30 = vunpack.i.h.bf16 %v2516_v28  ;;  %v2517_v27 = vunpack.i.l.bf16 %v2516_v28  ;;  %v2528_v31 = vunpack.i.h.bf16 %v2526_v29  ;;  %v2527_v32 = vunpack.i.l.bf16 %v2526_v29 }
 0x343   :  { %v422_v33 = vpack.c.bf16 %v2528_v31, %v2527_v32  ;;  %v416_v34 = vsel %vm178_vm1, %v2512_v8, %v2517_v27  ;;  %v417_v35 = vsel %vm178_vm1, %v2513_v7, %v2518_v30  ;;  %v406_v36 = vsel %vm178_vm1, %v2517_v27, %v2527_v32 }
 0x344   :  { %v420_v39 = vpack.c.bf16 %v417_v35, %v416_v34  ;;  %v407_v40 = vsel %vm178_vm1, %v2518_v30, %v2528_v31 }
 0x345   :  { %2118 = vmatmul.msk.bf16.vlgmr.msrb.gmra.mxu2 %vm178_vm1, %v422_v33  ;;  %v421_v41 = vpack.c.bf16 %v407_v40, %v406_v36 }
 0x346   :  { %661 = vmatmul.bf16.vlgmr.msra.gmra.mxu3 %v420_v39 }
 0x347   :  { %675 = vmatmul.bf16.vlgmr.msrb.gmra.mxu1 %v421_v41 }
 0x356   :  { %2126 = vmatmul.msk.f32.vlgmr.msrb.gmra.mxu3 %vm178_vm1, %v2685_v9 }
 0x35e   :  { %2127 = vmatmul.msk.f32.gmra.mxu3 %vm178_vm1, %v2689_v10 }
 0x366   :  { %2128 = vmatmul.msk.f32.gmra.mxu3 %vm178_vm1, %v2693_v11 }
 0x367   :  { %v634_v42 = vpop.f32.mrf.mxu1 }
 0x36e   :  { %2129 = vmatmul.msk.f32.gmra.mxu3 %vm178_vm1, %v2697_v12 }
 0x36f   :  { %v636_v9 = vpop.f32.mrf.mxu1 }
 0x376   :  { %2130 = vmatmul.msk.f32.gmra.mxu3 %vm178_vm1, %v2701_v13 }
 0x37e   :  { %2131 = vmatmul.msk.f32.gmra.mxu3 %vm178_vm1, %v2705_v14 }
 0x385   :  { %v648_v43 = vpop.f32.mrf.mxu2 }
 0x386   :  { %v649_v44 = vadd.f32 %v648_v43, %v634_v42  ;;  %2132 = vmatmul.msk.f32.gmra.mxu3 %vm178_vm1, %v2709_v15 }
 0x38d   :  { %v650_v10 = vpop.f32.mrf.mxu2 }
 0x38e   :  { %2133 = vmatmul.msk.f32.gmra.mxu3 %vm178_vm1, %v2713_v16  ;;  %v651_v60 = vadd.f32 %v650_v10, %v636_v9 }
 0x3c4   :  { %v676_v12 = vpop.f32.mrf.mxu1 }
 0x3c8   :  { %v690_v51 = vpop.f32.mrf.mxu2 }
 0x3c9   :  { %v662_v11 = vpop.f32.mrf.mxu3 }
 0x3ca   :  { %v663_v47 = vadd.f32 %v662_v11, %v649_v44 }
 0x3cc   :  { %v677_v48 = vadd.f32 %v676_v12, %v663_v47  ;;  %v678_v62 = vpop.f32.mrf.mxu1 }
 0x3ce   :  { %v691_v13 = vadd.f32 %v690_v51, %v677_v48 }
 0x3d0   :  { %v692_v3 = vpop.f32.mrf.mxu2  ;;  %v2119_v30 = vmul.f32 -1.442695, %v691_v13 }
 0x3d1   :  { %v664_v52 = vpop.f32.mrf.mxu3 }
 0x3d2   :  { %v665_v61 = vadd.f32 %v664_v52, %v651_v60  ;;  %v2462_v60 = vld [vmem:[%s3313_s6 + $0xb8] sm:$0xff] }
 0x3d3   :  { %1225 = vmatpush.bf16.msra.mxu1 %v2462_v60 }
 0x3d4   :  { %v679_v63 = vadd.f32 %v678_v62, %v665_v61  ;;  %v2460_v61 = vld [vmem:[%s3313_s6 + $0xa8] sm:$0xff]  ;;  %v2458_v62 = vld [vmem:[%s3313_s6 + $0x98] sm:$0xff] }
 0x3d6   :  { %v693_v4 = vadd.f32 %v692_v3, %v679_v63  ;;  %v2457_v63 = vld [vmem:[%s3313_s6 + $0x90] sm:$0xff]  ;;  %v2456_v3 = vld [vmem:[%s3313_s6 + $0x88] sm:$0xff] }
 0x3d8   :  { %v2120_v5 = vmul.f32 -1.442695, %v693_v4  ;;  %v2268_v4 = vld [vmem:[%s3309_s4 + $0x10] sm:$0xff] }
 0x3d9   :  { %v825_v55 = vpop.f32.mrf.mxu3 }
 0x3da   :  { %849 = vxpose.xlu0.b32.start [1/4] (short) (narrow) %v825_v55, 8  ;;  %2569 = vpow2.f32 %v2120_v5  ;;  %v2445_v5 = vld [vmem:[%s3313_s6 + $0x30] sm:$0xff] }
 0x3db   :  { %1198 = vmatpush.bf16.msrb.mxu0 %v2445_v5 }
 0x3e0   :  { %v2570_v7 = vpop.eup %2569 }
 0x3e1   :  { %v828_v14 = vpop.f32.mrf.mxu3  ;;  %v702_v8 = vadd.f32 1.0, %v2570_v7  ;;  %v2453_v7 = vld [vmem:[%s3313_s6 + $0x70] sm:$0xff] }
 0x3e2   :  { %850 = vxpose.xlu0.b32.cont [2/4] (short) (narrow) %v828_v14, 8  ;;  %1212 = vmatpush.bf16.msra.mxu2 %v2453_v7 }
 0x3e3   :  { %2571 = vrcp.f32 %v702_v8  ;;  %v729_v22 = vand.u32 2147483648, %v702_v8  ;;  %vm723_vm7 = vweird.f32 %v702_v8  ;;  %v727_v23 = vand.u32 2147483647, %v702_v8 }
 0x3e4   :  { %2573 = vpow2.f32 %v2119_v30  ;;  %v2447_v30 = vld [vmem:[%s3313_s6 + $0x40] sm:$0xff] }
 0x3e5   :  { %v730_v25 = vor.u32 1.1754944e-38, %v729_v22  ;;  %vm728_vm9 = vcmp.eq.f32.partialorder %v727_v23, 8.507059e+37  ;;  %v2441_v23 = vld [vmem:[%s3313_s6 + $0x10] sm:$0xff] }
 0x3e9   :  { %v831_v56 = vpop.f32.mrf.mxu3  ;;  %v2572_v17 = vpop.eup %2571 }
 0x3ea   :  { %851 = vxpose.xlu0.b32.cont [3/4] (short) (narrow) %v831_v56, 8  ;;  %v719_v18 = vmul.f32 %v2572_v17, %v702_v8  ;;  %vm724_vm6 = vweird.f32 %v2572_v17  ;;  %v2574_v27 = vpop.eup %2573  ;;  %v2444_v8 = vld [vmem:[%s3313_s6 + $0x28] sm:$0xff] }
 0x3eb   :  { %vm725_vm8 = vmor %vm723_vm7, %vm724_vm6  ;;  %v701_v31 = vadd.f32 1.0, %v2574_v27  ;;  %1199 = vmatpush.bf16.msrb.mxu0 %v2444_v8  ;;  %v3121_v8 = vld [vmem:[%s3310_s3 + $0x28] sm:$0xff] }
 0x3ec   :  { %v720_v19 = vsub.f32 1.0, %v719_v18  ;;  %v2443_v18 = vld [vmem:[%s3313_s6 + $0x20] sm:$0xff] }
 0x3ed   :  { %2575 = vrcp.f32 %v701_v31  ;;  %v714_v39 = vand.u32 2147483648, %v701_v31  ;;  %vm708_vm11 = vweird.f32 %v701_v31  ;;  %v712_v40 = vand.u32 2147483647, %v701_v31 }
 0x3ee   :  { %v721_v20 = vmul.f32 %v2572_v17, %v720_v19  ;;  %v2451_v19 = vld [vmem:[%s3313_s6 + $0x60] sm:$0xff] }
 0x3ef   :  { %v715_v42 = vor.u32 1.1754944e-38, %v714_v39  ;;  %vm713_vm13 = vcmp.eq.f32.partialorder %v712_v40, 8.507059e+37  ;;  %1200 = vmatpush.bf16.msrb.mxu0 %v2443_v18 }
 0x3f0   :  { %v722_v21 = vadd.f32 %v2572_v17, %v721_v20  ;;  %v2442_v20 = vld [vmem:[%s3313_s6 + $0x18] sm:$0xff] }
 0x3f1   :  { %v834_v57 = vpop.f32.mrf.mxu3 }
 0x3f2   :  { %852 = vxpose.xlu0.b32.end [4/4] (short) (narrow) %v834_v57, 8  ;;  %v726_v24 = vsel %vm725_vm8, %v2572_v17, %v722_v21  ;;  %v2452_v17 = vld [vmem:[%s3313_s6 + $0x68] sm:$0xff]  ;;  %v2450_v21 = vld [vmem:[%s3313_s6 + $0x58] sm:$0xff] }
 0x3f3   :  { %v731_v26 = vsel %vm728_vm9, %v730_v25, %v726_v24  ;;  %v2576_v33 = vpop.eup %2575  ;;  %1213 = vmatpush.bf16.msra.mxu2 %v2452_v17  ;;  %1201 = vmatpush.bf16.msrb.mxu0 %v2442_v20  ;;  %v2449_v24 = vld [vmem:[%s3313_s6 + $0x50] sm:$0xff]  ;;  %v2440_v25 = vld [vmem:[%s3313_s6 + $0x8] sm:$0xff] }
 0x3f4   :  { %v1306_v28 = vmul.f32 %v731_v26, %v2651_v1  ;;  %v704_v1 = vmul.f32 %v2576_v33, %v701_v31  ;;  %vm709_vm10 = vweird.f32 %v2576_v33  ;;  %v2448_v26 = vld [vmem:[%s3313_s6 + $0x48] sm:$0xff] }
 0x3f5   :  { %vm710_vm12 = vmor %vm708_vm11, %vm709_vm10 }
 0x3f6   :  { %v705_v34 = vsub.f32 1.0, %v704_v1 }
 0x3f7   :  { %1214 = vmatpush.bf16.msra.mxu2 %v2451_v19  ;;  %1202 = vmatpush.bf16.msrb.mxu0 %v2441_v23  ;;  %v2469_v23 = vld [vmem:[%s3313_s6 + $0xf0] sm:$0xff] }
 0x3f8   :  { %v706_v35 = vmul.f32 %v2576_v33, %v705_v34 }
 0x3f9   :  { %v837_v15 = vpop.f32.mrf.mxu3 }
 0x3fa   :  { %881 = vxpose.xlu2.b32.start [1/4] (short) (narrow) %v837_v15, 8  ;;  %v707_v36 = vadd.f32 %v2576_v33, %v706_v35 }
 0x3fb   :  { %1215 = vmatpush.bf16.msra.mxu2 %v2450_v21  ;;  %1203 = vmatpush.bf16.msrb.mxu0 %v2440_v25  ;;  %v2467_v25 = vld [vmem:[%s3313_s6 + $0xe0] sm:$0xff] }
 0x3fc   :  { %v711_v41 = vsel %vm710_vm12, %v2576_v33, %v707_v36 }
 0x3fd   :  { %v716_v43 = vsel %vm713_vm13, %v715_v42, %v711_v41 }
 0x3fe   :  { %v1305_v44 = vmul.f32 %v716_v43, %v2644_v0 }
 0x3ff   :  { %1216 = vmatpush.bf16.msra.mxu2 %v2449_v24  ;;  %v2468_v24 = vld [vmem:[%s3313_s6 + $0xe8] sm:$0xff] }
 0x401   :  { %v840_v16 = vpop.f32.mrf.mxu3 }
 0x402   :  { %882 = vxpose.xlu2.b32.cont [2/4] (short) (narrow) %v840_v16, 8 }
 0x403   :  { %1217 = vmatpush.bf16.msra.mxu2 %v2448_v26  ;;  %v2478_v26 = vld [vmem:[%s3314_s7 + $0x38] sm:$0xff] }
 0x404   :  { %1895 = vmatpush.bf16.msra.mxu3 %v2478_v26 }
 0x407   :  { %1218 = vmatpush.bf16.msra.mxu2 %v2447_v30  ;;  %v797_v30 = vld [vmem:[%s3313_s6 + $0x100] sm:$0xf] }
 0x409   :  { %v843_v58 = vpop.f32.mrf.mxu3 }
 0x40a   :  { %883 = vxpose.xlu2.b32.cont [3/4] (short) (narrow) %v843_v58, 8 }
 0x411   :  { %v846_v59 = vpop.f32.mrf.mxu3 }
 0x412   :  { %884 = vxpose.xlu2.b32.end [4/4] (short) (narrow) %v846_v59, 8 }
 0x47b   :  { %1311 = vrot.lane.b32.xlu2 %v1306_v28, %s2591_s29 }
 0x47e   :  { %v865_v29 = vpop.trf.xlu0 }
 0x47f   :  { %919 = vrot.lane.b32.xlu1 %v865_v29, %s2592_s12 }
 0x487   :  { %925 = vrot.lane.b32.xlu1 %v865_v29, %s2594_s0 }
 0x48f   :  { %931 = vrot.lane.b32.xlu1 %v865_v29, %s2593_s17 }
 0x493   :  { %v897_v32 = vpop.trf.xlu2 }
 0x497   :  { %921 = vrot.lane.b32.xlu1 %v897_v32, %s2592_s12 }
 0x49f   :  { %927 = vrot.lane.b32.xlu1 %v897_v32, %s2594_s0 }
 0x4a7   :  { %933 = vrot.lane.b32.xlu1 %v897_v32, %s2593_s17 }
 0x4af   :  { %2530 = vrot.lane.b32.xlu1 %v2529_v53, %s2595_s26 }
 0x4b7   :  { %1309 = vrot.lane.b32.xlu1 %v1305_v44, %s2591_s29 }
 0x4f1   :  { %v920_v9 = vpop.permute.xlu1 %919 }
 0x4f2   :  { %v937_v48 = vsel %vm331_vm2, %v865_v29, %v920_v9  ;;  %v2439_v29 = vld [vmem:[%s3313_s6] sm:$0xff] }
 0x4f3   :  { %1204 = vmatpush.bf16.msrb.mxu0 %v2439_v29  ;;  %v2477_v29 = vld [vmem:[%s3314_s7 + $0x30] sm:$0xff] }
 0x4f4   :  { %1896 = vmatpush.bf16.msra.mxu3 %v2477_v29  ;;  %v2493_v29 = vld [vmem:[%s3314_s7 + $0xb0] sm:$0xff] }
 0x4f9   :  { %v926_v10 = vpop.permute.xlu1 %925 }
 0x4fa   :  { %v939_v51 = vsel %vm334_vm3, %v937_v48, %v926_v10 }
 0x501   :  { %v932_v11 = vpop.permute.xlu1 %931 }
 0x502   :  { %v941_v45 = vsel %vm337_vm4, %v939_v51, %v932_v11 }
 0x503   :  { %v943_v52 = vmul.f32 %v2752_v37, %v941_v45  ;;  %v2945_v55 = vmul.f32 %v2757_v38, %v941_v45 }
 0x509   :  { %v922_v47 = vpop.permute.xlu1 %921 }
 0x50a   :  { %v938_v50 = vsel %vm331_vm2, %v897_v32, %v922_v47  ;;  %v2121_v47 = vld [vmem:[%s3312_s2 + $0x8] sm:$0xff] }
 0x511   :  { %v928_v12 = vpop.permute.xlu1 %927 }
 0x512   :  { %v940_v53 = vsel %vm334_vm3, %v938_v50, %v928_v12 }
 0x519   :  { %v934_v13 = vpop.permute.xlu1 %933 }
 0x51a   :  { %v942_v0 = vsel %vm337_vm4, %v940_v53, %v934_v13 }
 0x51b   :  { %v945_v14 = vmul.f32 %v2752_v37, %v942_v0  ;;  %v2949_v56 = vmul.f32 %v2757_v38, %v942_v0  ;;  %v1312_v37 = vpop.permute.xlu2 %1311 }
 0x51c   :  { %v2965_v38 = vsel %vm42_vm0, %v2670_v6, %v1312_v37  ;;  %v2459_v6 = vld [vmem:[%s3313_s6 + $0xa0] sm:$0xff] }
 0x51d   :  { %v2534_v57 = vpack.i.bf16 %v945_v14, %v943_v52  ;;  %v2544_v15 = vpack.i.bf16 %v2949_v56, %v2945_v55 }
 0x51f   :  { %2535 = vrot.lane.b32.xlu0 %v2534_v57, %s2595_s26 }
 0x521   :  { %v2954_v16 = vpop.permute.xlu1 %2530 }
 0x522   :  { %v2533_v31 = vunpack.i.h.bf16 %v2954_v16  ;;  %v2532_v32 = vunpack.i.l.bf16 %v2954_v16 }
 0x529   :  { %v1310_v58 = vpop.permute.xlu1 %1309 }
 0x52a   :  { %v2958_v59 = vsel %vm42_vm0, %v2658_v2, %v1310_v58  ;;  %v2461_v2 = vld [vmem:[%s3313_s6 + $0xb0] sm:$0xff] }
 0x52b   :  { %1587 = vrot.lane.b32.xlu2 %v2958_v59, %s2592_s12  ;;  %1389 = vxpose.xlu1.b32.start.end [1/1] (short) (narrow) %v2958_v59, 32 }
 0x52c   :  { %1226 = vmatpush.bf16.msra.mxu1 %v2461_v2 }
 0x530   :  { %1227 = vmatpush.bf16.msra.mxu1 %v2460_v61 }
 0x533   :  { %1589 = vrot.lane.b32.xlu2 %v2965_v38, %s2592_s12 }
 0x534   :  { %1228 = vmatpush.bf16.msra.mxu1 %v2459_v6 }
 0x538   :  { %1229 = vmatpush.bf16.msra.mxu1 %v2458_v62 }
 0x53b   :  { %1593 = vrot.lane.b32.xlu2 %v2958_v59, %s2594_s0 }
 0x53c   :  { %1230 = vmatpush.bf16.msra.mxu1 %v2457_v63 }
 0x540   :  { %1231 = vmatpush.bf16.msra.mxu1 %v2456_v3 }
 0x543   :  { %1595 = vrot.lane.b32.xlu2 %v2965_v38, %s2594_s0 }
 0x54b   :  { %1599 = vrot.lane.b32.xlu2 %v2958_v59, %s2593_s17  ;;  %1421 = vxpose.xlu1.b32.start.end [1/1] (short) (narrow) %v2965_v38, 32 }
 0x553   :  { %2540 = vrot.lane.b32.xlu2 %v2539_v54, %s2595_s26  ;;  %v2455_v54 = vld [vmem:[%s3313_s6 + $0x80] sm:$0xff] }
 0x554   :  { %1232 = vmatpush.bf16.msra.mxu1 %v2455_v54 }
 0x558   :  { %2269 = vmatpush.xpose.msk.msrb.mxu1 %vm178_vm1, %v2268_v4 }
 0x585   :  { %v1588_v22 = vpop.permute.xlu2 %1587 }
 0x586   :  { %v1605_v36 = vsel %vm331_vm2, %v2958_v59, %v1588_v22  ;;  %v2470_v22 = vld [vmem:[%s3313_s6 + $0xf8] sm:$0xff] }
 0x587   :  { %1239 = vmatpush.bf16.msra.mxu0 %v2470_v22 }
 0x58b   :  { %1240 = vmatpush.bf16.msra.mxu0 %v2469_v23 }
 0x58d   :  { %v1590_v28 = vpop.permute.xlu2 %1589 }
 0x58e   :  { %v1606_v42 = vsel %vm331_vm2, %v2965_v38, %v1590_v28  ;;  %v2466_v28 = vld [vmem:[%s3313_s6 + $0xd8] sm:$0xff] }
 0x58f   :  { %1241 = vmatpush.bf16.msra.mxu0 %v2468_v24 }
 0x591   :  { %v3056_v27 = vpop.permute.xlu0 %2535 }
 0x592   :  { %v2538_v33 = vunpack.i.h.bf16 %v3056_v27  ;;  %v2537_v1 = vunpack.i.l.bf16 %v3056_v27 }
 0x593   :  { %1242 = vmatpush.bf16.msra.mxu0 %v2467_v25 }
 0x594   :  { %v989_v34 = vsel %vm178_vm1, %v2532_v32, %v2537_v1  ;;  %v990_v35 = vsel %vm178_vm1, %v2533_v31, %v2538_v33 }
 0x595   :  { %v993_v39 = vpack.c.bf16 %v990_v35, %v989_v34  ;;  %v1594_v40 = vpop.permute.xlu2 %1593  ;;  %v2465_v35 = vld [vmem:[%s3313_s6 + $0xd0] sm:$0xff] }
 0x596   :  { %v1607_v41 = vsel %vm334_vm3, %v1605_v36, %v1594_v40  ;;  %v2476_v36 = vld [vmem:[%s3314_s7 + $0x28] sm:$0xff] }
 0x597   :  { %1233 = vmatmul.bf16.vlgmr.msra.gmra.mxu1 %v993_v39  ;;  %1243 = vmatpush.bf16.msra.mxu0 %v2466_v28  ;;  %v2486_v39 = vld [vmem:[%s3314_s7 + $0x78] sm:$0xff] }
 0x598   :  { %1897 = vmatpush.bf16.msra.mxu3 %v2476_v36  ;;  %v2499_v36 = vld [vmem:[%s3314_s7 + $0xe0] sm:$0xff] }
 0x59b   :  { %1244 = vmatpush.bf16.msra.mxu0 %v2465_v35  ;;  %v2491_v35 = vld [vmem:[%s3314_s7 + $0xa0] sm:$0xff] }
 0x59d   :  { %v1596_v43 = vpop.permute.xlu2 %1595 }
 0x59e   :  { %v3074_v44 = vsel %vm334_vm3, %v1606_v42, %v1596_v43  ;;  %v2475_v42 = vld [vmem:[%s3314_s7 + $0x20] sm:$0xff]  ;;  %v2485_v43 = vld [vmem:[%s3314_s7 + $0x70] sm:$0xff] }
 0x59f   :  { %1898 = vmatpush.bf16.msra.mxu3 %v2475_v42  ;;  %v2498_v42 = vld [vmem:[%s3314_s7 + $0xd8] sm:$0xff] }
 0x5a5   :  { %v1600_v9 = vpop.permute.xlu2 %1599 }
 0x5a6   :  { %v1609_v10 = vsel %vm337_vm4, %v1607_v41, %v1600_v9  ;;  %v2464_v41 = vld [vmem:[%s3313_s6 + $0xc8] sm:$0xff] }
 0x5a7   :  { %v1612_v20 = vmul.f32 %v3121_v8, %v1609_v10  ;;  %1245 = vmatpush.bf16.msra.mxu0 %v2464_v41  ;;  %v2490_v41 = vld [vmem:[%s3314_s7 + $0x98] sm:$0xff] }
 0x5ad   :  { %v2541_v11 = vpop.permute.xlu2 %2540 }
 0x5ae   :  { %v2543_v12 = vunpack.i.h.bf16 %v2541_v11  ;;  %v2542_v48 = vunpack.i.l.bf16 %v2541_v11 }
 0x5b0   :  { %v960_v51 = vsel %vm178_vm1, %v2543_v12, %v2533_v31  ;;  %v959_v45 = vsel %vm178_vm1, %v2542_v48, %v2532_v32  ;;  %v987_v50 = vsel %vm178_vm1, %v2121_v47, %v2542_v48  ;;  %v988_v53 = vsel %vm178_vm1, %v2121_v47, %v2543_v12  ;;  %v2463_v47 = vld [vmem:[%s3313_s6 + $0xc0] sm:$0xff]  ;;  %v2474_v48 = vld [vmem:[%s3314_s7 + $0x18] sm:$0xff] }
 0x5b1   :  { %v992_v13 = vpack.c.bf16 %v960_v51, %v959_v45  ;;  %v991_v0 = vpack.c.bf16 %v988_v53, %v987_v50  ;;  %v1125_v31 = vunpack.c.l.b16 %v797_v30  ;;  %v2484_v51 = vld [vmem:[%s3314_s7 + $0x68] sm:$0xff]  ;;  %1246 = vmatpush.bf16.msra.mxu0 %v2463_v47  ;;  %1899 = vmatpush.bf16.msra.mxu3 %v2474_v48  ;;  %v2501_v30 = vld [vmem:[%s3314_s7 + $0xf0] sm:$0xff]  ;;  %v2487_v47 = vld [vmem:[%s3314_s7 + $0x80] sm:$0xff] }
 0x5b3   :  { %1205 = vmatmul.bf16.vlgmr.msrb.gmra.mxu0 %v991_v0  ;;  %1219 = vmatmul.bf16.vlgmr.msra.gmra.mxu2 %v992_v13  ;;  %v1158_v34 = vpack.c.b16 %v1125_v31, %v1125_v31  ;;  %v2473_v13 = vld [vmem:[%s3314_s7 + $0x10] sm:$0xff]  ;;  %v2483_v0 = vld [vmem:[%s3314_s7 + $0x60] sm:$0xff]  ;;  %v2492_v31 = vld [vmem:[%s3314_s7 + $0xa8] sm:$0xff] }
 0x5b5   :  { %v1195_v40 = vsel %vm621_vm5, %v1158_v34, 0  ;;  %1900 = vmatpush.bf16.msra.mxu3 %v2473_v13  ;;  %v1381_v34 = vld [vmem:[%s3314_s7 + $0x100] sm:$0xf] }
 0x5b6   :  { %1260 = vmatpush.bf16.msrb.mxu2 %v1195_v40 }
 0x5ba   :  { %1909 = vmatpush.bf16.msra.mxu2 %v2486_v39  ;;  %v1823_v39 = vunpack.c.l.b16 %v1381_v34 }
 0x5bc   :  { %v1856_v40 = vpack.c.b16 %v1823_v39, %v1823_v39 }
 0x5be   :  { %1910 = vmatpush.bf16.msra.mxu2 %v2485_v43  ;;  %v1893_v43 = vsel %vm621_vm5, %v1856_v40, 0 }
 0x5c2   :  { %1911 = vmatpush.bf16.msra.mxu2 %v2484_v51 }
 0x5c6   :  { %1912 = vmatpush.bf16.msra.mxu2 %v2483_v0 }
 0x5cf   :  { %v1405_v52 = vpop.trf.xlu1 }
 0x5d0   :  { %2270 = vmatmul.msk.f32.vlgmr.msrb.gmra.mxu1 %vm178_vm1, %v1405_v52 }
 0x5d7   :  { %v1406_v14 = vpop.trf.xlu1 }
 0x5d8   :  { %2271 = vmatmul.msk.f32.gmra.mxu1 %vm178_vm1, %v1406_v14  ;;  %v2472_v14 = vld [vmem:[%s3314_s7 + $0x8] sm:$0xff] }
 0x5d9   :  { %1901 = vmatpush.bf16.msra.mxu3 %v2472_v14 }
 0x5df   :  { %v1407_v57 = vpop.trf.xlu1 }
 0x5e0   :  { %2272 = vmatmul.msk.f32.gmra.mxu1 %vm178_vm1, %v1407_v57  ;;  %v2482_v57 = vld [vmem:[%s3314_s7 + $0x58] sm:$0xff] }
 0x5e1   :  { %1913 = vmatpush.bf16.msra.mxu2 %v2482_v57 }
 0x5e7   :  { %v1408_v16 = vpop.trf.xlu1 }
 0x5e8   :  { %2273 = vmatmul.msk.f32.gmra.mxu1 %vm178_vm1, %v1408_v16  ;;  %v2471_v16 = vld [vmem:[%s3314_s7] sm:$0xff] }
 0x5e9   :  { %1902 = vmatpush.bf16.msra.mxu3 %v2471_v16 }
 0x5ef   :  { %v1437_v58 = vpop.trf.xlu1 }
 0x5f0   :  { %2274 = vmatmul.msk.f32.gmra.mxu1 %vm178_vm1, %v1437_v58  ;;  %v2481_v58 = vld [vmem:[%s3314_s7 + $0x50] sm:$0xff] }
 0x5f1   :  { %1914 = vmatpush.bf16.msra.mxu2 %v2481_v58 }
 0x5f7   :  { %v1438_v59 = vpop.trf.xlu1 }
 0x5f8   :  { %2275 = vmatmul.msk.f32.gmra.mxu1 %vm178_vm1, %v1438_v59 }
 0x5ff   :  { %v1439_v37 = vpop.trf.xlu1 }
 0x600   :  { %2276 = vmatmul.msk.f32.gmra.mxu1 %vm178_vm1, %v1439_v37  ;;  %v2480_v37 = vld [vmem:[%s3314_s7 + $0x48] sm:$0xff] }
 0x601   :  { %1915 = vmatpush.bf16.msra.mxu2 %v2480_v37 }
 0x607   :  { %v1440_v60 = vpop.trf.xlu1 }
 0x608   :  { %2277 = vmatmul.msk.f32.gmra.mxu1 %vm178_vm1, %v1440_v60 }
 0x614   :  { %v3092_v2 = vpop.f32.mrf.mxu1 }
 0x61c   :  { %v3094_v61 = vpop.f32.mrf.mxu1 }
 0x630   :  { %v1206_v37 = vpop.f32.mrf.mxu0 }
 0x64d   :  { %v1497_v6 = vpop.f32.mrf.mxu1 }
 0x64e   :  { %1521 = vxpose.xlu1.b32.start [1/4] (short) (narrow) %v1497_v6, 8  ;;  %v2479_v6 = vld [vmem:[%s3314_s7 + $0x40] sm:$0xff] }
 0x64f   :  { %1916 = vmatpush.bf16.msra.mxu2 %v2479_v6  ;;  %v1208_v6 = vpop.f32.mrf.mxu0 }
 0x655   :  { %v1500_v62 = vpop.f32.mrf.mxu1 }
 0x656   :  { %1522 = vxpose.xlu1.b32.cont [2/4] (short) (narrow) %v1500_v62, 8 }
 0x65d   :  { %v1503_v63 = vpop.f32.mrf.mxu1 }
 0x65e   :  { %1523 = vxpose.xlu1.b32.cont [3/4] (short) (narrow) %v1503_v63, 8 }
 0x665   :  { %v1506_v3 = vpop.f32.mrf.mxu1 }
 0x666   :  { %1524 = vxpose.xlu1.b32.end [4/4] (short) (narrow) %v1506_v3, 8 }
 0x66d   :  { %v1509_v46 = vpop.f32.mrf.mxu1 }
 0x66e   :  { %1553 = vxpose.xlu0.b32.start [1/4] (short) (narrow) %v1509_v46, 8 }
 0x675   :  { %v1512_v49 = vpop.f32.mrf.mxu1 }
 0x676   :  { %1554 = vxpose.xlu0.b32.cont [2/4] (short) (narrow) %v1512_v49, 8 }
 0x67d   :  { %v1515_v54 = vpop.f32.mrf.mxu1 }
 0x67e   :  { %1555 = vxpose.xlu0.b32.cont [3/4] (short) (narrow) %v1515_v54, 8  ;;  %v2494_v54 = vld [vmem:[%s3314_s7 + $0xb8] sm:$0xff] }
 0x67f   :  { %1923 = vmatpush.bf16.msrb.mxu0 %v2494_v54 }
 0x683   :  { %1924 = vmatpush.bf16.msrb.mxu0 %v2493_v29 }
 0x685   :  { %v1518_v4 = vpop.f32.mrf.mxu1 }
 0x686   :  { %1556 = vxpose.xlu0.b32.end [4/4] (short) (narrow) %v1518_v4, 8  ;;  %v2502_v4 = vld [vmem:[%s3314_s7 + $0xf8] sm:$0xff] }
 0x687   :  { %1937 = vmatpush.bf16.msrb.mxu3 %v2502_v4  ;;  %1925 = vmatpush.bf16.msrb.mxu0 %v2492_v31 }
 0x68b   :  { %1938 = vmatpush.bf16.msrb.mxu3 %v2501_v30  ;;  %1926 = vmatpush.bf16.msrb.mxu0 %v2491_v35 }
 0x68f   :  { %1927 = vmatpush.bf16.msrb.mxu0 %v2490_v41 }
 0x6c0   :  { %1601 = vrot.lane.b32.xlu1 %v2965_v38, %s2593_s17  ;;  %v3116_v38 = vld [vmem:[%s3310_s3 + $0x20] sm:$0xff] }
 0x6c1   :  { %v1611_v19 = vmul.f32 %v3116_v38, %v1609_v10 }
 0x6f2   :  { %v1537_v5 = vpop.trf.xlu1 }
 0x6f3   :  { %1617 = vrot.lane.b32.xlu2 %v1537_v5, %s2592_s12 }
 0x6f4   :  { %1623 = vrot.lane.b32.xlu0 %v1537_v5, %s2594_s0 }
 0x6fb   :  { %1629 = vrot.lane.b32.xlu2 %v1537_v5, %s2593_s17 }
 0x712   :  { %v3101_v7 = vpop.trf.xlu0 }
 0x713   :  { %1619 = vrot.lane.b32.xlu2 %v3101_v7, %s2592_s12 }
 0x71b   :  { %1625 = vrot.lane.b32.xlu2 %v3101_v7, %s2594_s0 }
 0x723   :  { %1631 = vrot.lane.b32.xlu2 %v3101_v7, %s2593_s17 }
 0x72b   :  { %2545 = vrot.lane.b32.xlu2 %v2544_v15, %s2595_s26 }
 0x732   :  { %v1602_v17 = vpop.permute.xlu1 %1601 }
 0x733   :  { %v1610_v18 = vsel %vm337_vm4, %v3074_v44, %v1602_v17 }
 0x734   :  { %v1613_v55 = vmul.f32 %v3116_v38, %v1610_v18  ;;  %v1614_v56 = vmul.f32 %v3121_v8, %v1610_v18 }
 0x736   :  { %v2549_v15 = vpack.i.bf16 %v1613_v55, %v1611_v19  ;;  %v2554_v21 = vpack.i.bf16 %v1614_v56, %v1612_v20  ;;  %v2265_v55 = vld [vmem:[%s3312_s2 + $0x10] sm:$0xff] }
 0x738   :  { %2550 = vrot.lane.b32.xlu2 %v2549_v15, %s2595_s26 }
 0x740   :  { %2555 = vrot.lane.b32.xlu2 %v2554_v21, %s2595_s26 }
 0x74d   :  { %v1618_v32 = vpop.permute.xlu2 %1617 }
 0x74e   :  { %v1635_v9 = vsel %vm331_vm2, %v1537_v5, %v1618_v32  ;;  %v2500_v32 = vld [vmem:[%s3314_s7 + $0xe8] sm:$0xff] }
 0x74f   :  { %1939 = vmatpush.bf16.msrb.mxu3 %v2500_v32 }
 0x753   :  { %1940 = vmatpush.bf16.msrb.mxu3 %v2499_v36 }
 0x755   :  { %v1630_v44 = vpop.permute.xlu2 %1629 }
 0x757   :  { %1941 = vmatpush.bf16.msrb.mxu3 %v2498_v42 }
 0x766   :  { %v1624_v10 = vpop.permute.xlu0 %1623 }
 0x767   :  { %v1637_v11 = vsel %vm334_vm3, %v1635_v9, %v1624_v10  ;;  %v2497_v9 = vld [vmem:[%s3314_s7 + $0xd0] sm:$0xff]  ;;  %v2488_v10 = vld [vmem:[%s3314_s7 + $0x88] sm:$0xff] }
 0x768   :  { %v1639_v12 = vsel %vm337_vm4, %v1637_v11, %v1630_v44  ;;  %v2489_v44 = vld [vmem:[%s3314_s7 + $0x90] sm:$0xff]  ;;  %1942 = vmatpush.bf16.msrb.mxu3 %v2497_v9  ;;  %v2496_v11 = vld [vmem:[%s3314_s7 + $0xc8] sm:$0xff] }
 0x769   :  { %v1641_v45 = vmul.f32 %v3116_v38, %v1639_v12  ;;  %v1642_v50 = vmul.f32 %v3121_v8, %v1639_v12  ;;  %1928 = vmatpush.bf16.msrb.mxu0 %v2489_v44  ;;  %v2495_v12 = vld [vmem:[%s3314_s7 + $0xc0] sm:$0xff] }
 0x76b   :  { %v2559_v53 = vpack.i.bf16 %v1642_v50, %v1641_v45 }
 0x76c   :  { %1943 = vmatpush.bf16.msrb.mxu3 %v2496_v11 }
 0x76d   :  { %v1620_v52 = vpop.permute.xlu2 %1619  ;;  %2560 = vrot.lane.b32.xlu2 %v2559_v53, %s2595_s26  ;;  %1929 = vmatpush.bf16.msrb.mxu0 %v2488_v10 }
 0x76e   :  { %v1636_v60 = vsel %vm331_vm2, %v3101_v7, %v1620_v52 }
 0x770   :  { %1944 = vmatpush.bf16.msrb.mxu3 %v2495_v12 }
 0x771   :  { %1930 = vmatpush.bf16.msrb.mxu0 %v2487_v47 }
 0x775   :  { %v1626_v59 = vpop.permute.xlu2 %1625 }
 0x776   :  { %v1638_v62 = vsel %vm334_vm3, %v1636_v60, %v1626_v59  ;;  %v1220_v60 = vpop.f32.mrf.mxu2 }
 0x77d   :  { %v1632_v63 = vpop.permute.xlu2 %1631 }
 0x77e   :  { %v1640_v3 = vsel %vm337_vm4, %v1638_v62, %v1632_v63  ;;  %v1222_v62 = vpop.f32.mrf.mxu2  ;;  %v1221_v63 = vadd.f32 %v1220_v60, %v1206_v37 }
 0x77f   :  { %v1643_v46 = vmul.f32 %v3116_v38, %v1640_v3  ;;  %v1644_v49 = vmul.f32 %v3121_v8, %v1640_v3  ;;  %v1223_v4 = vadd.f32 %v1222_v62, %v1208_v6 }
 0x781   :  { %v2564_v5 = vpack.i.bf16 %v1644_v49, %v1643_v46  ;;  %v1235_v49 = vadd.f32 %v3092_v2, %v1221_v63 }
 0x783   :  { %2565 = vrot.lane.b32.xlu2 %v2564_v5, %s2595_s26 }
 0x785   :  { %v2546_v7 = vpop.permute.xlu2 %2545 }
 0x786   :  { %v2548_v17 = vunpack.i.h.bf16 %v2546_v7  ;;  %v2547_v18 = vunpack.i.l.bf16 %v2546_v7 }
 0x788   :  { %v980_v38 = vsel %vm178_vm1, %v2538_v33, %v2548_v17  ;;  %v979_v8 = vsel %vm178_vm1, %v2537_v1, %v2547_v18  ;;  %v995_v19 = vpack.c.bf16 %v2548_v17, %v2547_v18  ;;  %v1237_v18 = vadd.f32 %v3094_v61, %v1223_v4 }
 0x789   :  { %v994_v20 = vpack.c.bf16 %v980_v38, %v979_v8 }
 0x78a   :  { %2262 = vmatmul.msk.bf16.vlgmr.msrb.gmra.mxu2 %vm178_vm1, %v995_v19 }
 0x78b   :  { %1247 = vmatmul.bf16.vlgmr.msra.gmra.mxu0 %v994_v20  ;;  %1958 = vmatpush.bf16.msrb.mxu2 %v1893_v43 }
 0x792   :  { %v2551_v56 = vpop.permute.xlu2 %2550 }
 0x793   :  { %v2553_v15 = vunpack.i.h.bf16 %v2551_v56  ;;  %v2552_v21 = vunpack.i.l.bf16 %v2551_v56 }
 0x795   :  { %v1686_v22 = vsel %vm178_vm1, %v2265_v55, %v2553_v15  ;;  %v1685_v33 = vsel %vm178_vm1, %v2265_v55, %v2552_v21 }
 0x796   :  { %v1689_v23 = vpack.c.bf16 %v1686_v22, %v1685_v33 }
 0x798   :  { %1903 = vmatmul.bf16.vlgmr.msra.gmra.mxu3 %v1689_v23 }
 0x79a   :  { %v2556_v27 = vpop.permute.xlu2 %2555 }
 0x79b   :  { %v2558_v1 = vunpack.i.h.bf16 %v2556_v27  ;;  %v2557_v24 = vunpack.i.l.bf16 %v2556_v27 }
 0x79d   :  { %v1657_v25 = vsel %vm178_vm1, %v2552_v21, %v2557_v24  ;;  %v1658_v26 = vsel %vm178_vm1, %v2553_v15, %v2558_v1 }
 0x79e   :  { %v1690_v28 = vpack.c.bf16 %v1658_v26, %v1657_v25 }
 0x7a0   :  { %1917 = vmatmul.bf16.vlgmr.msra.gmra.mxu2 %v1690_v28 }
 0x7c7   :  { %v2561_v48 = vpop.permute.xlu2 %2560 }
 0x7c8   :  { %v2563_v51 = vunpack.i.h.bf16 %v2561_v48  ;;  %v2562_v45 = vunpack.i.l.bf16 %v2561_v48 }
 0x7ca   :  { %v1677_v0 = vsel %vm178_vm1, %v2562_v45, %v2563_v51  ;;  %v1687_v52 = vsel %vm178_vm1, %v2557_v24, %v2562_v45 }
 0x7dd   :  { %v2566_v50 = vpop.permute.xlu2 %2565 }
 0x7de   :  { %v2568_v53 = vunpack.i.h.bf16 %v2566_v50  ;;  %v2567_v13 = vunpack.i.l.bf16 %v2566_v50 }
 0x7e0   :  { %v1678_v14 = vsel %vm178_vm1, %v2567_v13, %v2568_v53  ;;  %v1688_v57 = vsel %vm178_vm1, %v2558_v1, %v2567_v13  ;;  %v1693_v16 = vpack.c.bf16 %v2568_v53, %v2563_v51 }
 0x7e1   :  { %v1691_v58 = vpack.c.bf16 %v1688_v57, %v1687_v52  ;;  %v1692_v59 = vpack.c.bf16 %v1678_v14, %v1677_v0  ;;  %v2589_v14 = vld [vmem:[%s3307_s1] sm:$0xff] }
 0x7e2   :  { %2406 = vmatmul.msk.bf16.vlgmr.msrb.gmra.mxu2 %vm178_vm1, %v1693_v16 }
 0x7e3   :  { %1931 = vmatmul.bf16.vlgmr.msrb.gmra.mxu0 %v1691_v58  ;;  %1945 = vmatmul.bf16.vlgmr.msrb.gmra.mxu3 %v1692_v59 }
 0x808   :  { %v1248_v3 = vpop.f32.mrf.mxu0 }
 0x809   :  { %v1249_v54 = vadd.f32 %v1248_v3, %v1235_v49 }
 0x80d   :  { %v1262_v46 = vpop.f32.mrf.mxu2 }
 0x80e   :  { %v1263_v5 = vadd.f32 %v1262_v46, %v1249_v54 }
 0x810   :  { %v1250_v7 = vpop.f32.mrf.mxu0  ;;  %v2263_v17 = vmul.f32 -1.442695, %v1263_v5 }
 0x811   :  { %v1251_v8 = vadd.f32 %v1250_v7, %v1237_v18 }
 0x812   :  { %2577 = vpow2.f32 %v2263_v17 }
 0x815   :  { %v1264_v38 = vpop.f32.mrf.mxu2 }
 0x816   :  { %v1265_v19 = vadd.f32 %v1264_v38, %v1251_v8 }
 0x818   :  { %v2264_v20 = vmul.f32 -1.442695, %v1265_v19  ;;  %v2578_v55 = vpop.eup %2577 }
 0x819   :  { %v1273_v56 = vadd.f32 1.0, %v2578_v55 }
 0x81a   :  { %2579 = vpow2.f32 %v2264_v20 }
 0x81b   :  { %2581 = vrcp.f32 %v1273_v56  ;;  %v1904_v21 = vpop.f32.mrf.mxu3  ;;  %v1286_v36 = vand.u32 2147483648, %v1273_v56  ;;  %vm1280_vm15 = vweird.f32 %v1273_v56  ;;  %v1284_v40 = vand.u32 2147483647, %v1273_v56 }
 0x81d   :  { %v1287_v9 = vor.u32 1.1754944e-38, %v1286_v36  ;;  %vm1285_vm2 = vcmp.eq.f32.partialorder %v1284_v40, 8.507059e+37 }
 0x820   :  { %v2580_v15 = vpop.eup %2579 }
 0x821   :  { %v1274_v2 = vadd.f32 1.0, %v2580_v15  ;;  %v2582_v33 = vpop.eup %2581 }
 0x822   :  { %v1276_v23 = vmul.f32 %v2582_v33, %v1273_v56  ;;  %vm1281_vm14 = vweird.f32 %v2582_v33 }
 0x823   :  { %v1918_v22 = vpop.f32.mrf.mxu2  ;;  %2583 = vrcp.f32 %v1274_v2  ;;  %v1906_v1 = vpop.f32.mrf.mxu3  ;;  %vm1282_vm1 = vmor %vm1280_vm15, %vm1281_vm14  ;;  %v1301_v51 = vand.u32 2147483648, %v1274_v2  ;;  %vm1295_vm4 = vweird.f32 %v1274_v2  ;;  %v1299_v13 = vand.u32 2147483647, %v1274_v2 }
 0x824   :  { %v1277_v27 = vsub.f32 1.0, %v1276_v23  ;;  %v1919_v29 = vadd.f32 %v1918_v22, %v1904_v21 }
 0x825   :  { %v1302_v59 = vor.u32 1.1754944e-38, %v1301_v51  ;;  %vm1300_vm6 = vcmp.eq.f32.partialorder %v1299_v13, 8.507059e+37 }
 0x826   :  { %v1278_v26 = vmul.f32 %v2582_v33, %v1277_v27 }
 0x828   :  { %v1279_v34 = vadd.f32 %v2582_v33, %v1278_v26 }
 0x829   :  { %v2584_v61 = vpop.eup %2583 }
 0x82a   :  { %v1291_v28 = vmul.f32 %v2584_v61, %v1274_v2  ;;  %v1283_v43 = vsel %vm1282_vm1, %v2582_v33, %v1279_v34  ;;  %vm1296_vm3 = vweird.f32 %v2584_v61 }
 0x82b   :  { %v1920_v24 = vpop.f32.mrf.mxu2  ;;  %v1288_v11 = vsel %vm1285_vm2, %v1287_v9, %v1283_v43  ;;  %vm1297_vm5 = vmor %vm1295_vm4, %vm1296_vm3 }
 0x82c   :  { %v1292_v31 = vsub.f32 1.0, %v1291_v28  ;;  %v1921_v10 = vadd.f32 %v1920_v24, %v1906_v1  ;;  %v1969_v50 = vsub.f32 1.0, %v1288_v11  ;;  %v1967_v57 = vmul.f32 %v2589_v14, %v1288_v11 }
 0x82e   :  { %v1293_v42 = vmul.f32 %v2584_v61, %v1292_v31 }
 0x830   :  { %v1294_v12 = vadd.f32 %v2584_v61, %v1293_v42 }
 0x832   :  { %v1298_v58 = vsel %vm1297_vm5, %v2584_v61, %v1294_v12 }
 0x833   :  { %v1303_v60 = vsel %vm1300_vm6, %v1302_v59, %v1298_v58 }
 0x834   :  { %v1970_v6 = vsub.f32 1.0, %v1303_v60 }
 0x860   :  { %v1932_v25 = vpop.f32.mrf.mxu0 }
 0x861   :  { %v1933_v30 = vadd.f32 %v1932_v25, %v1919_v29 }
 0x865   :  { %v1960_v32 = vpop.f32.mrf.mxu2 }
 0x866   :  { %v1946_v35 = vpop.f32.mrf.mxu3 }
 0x867   :  { %v1947_v39 = vadd.f32 %v1946_v35, %v1933_v30 }
 0x868   :  { %v1934_v44 = vpop.f32.mrf.mxu0 }
 0x869   :  { %v1961_v41 = vadd.f32 %v1960_v32, %v1947_v39  ;;  %v1935_v47 = vadd.f32 %v1934_v44, %v1921_v10 }
 0x86b   :  { %2585 = vtanh.f32 %v1961_v41 }
 0x86d   :  { %v1962_v53 = vpop.f32.mrf.mxu2 }
 0x86e   :  { %v1948_v48 = vpop.f32.mrf.mxu3 }
 0x86f   :  { %v1949_v45 = vadd.f32 %v1948_v48, %v1935_v47 }
 0x871   :  { %v2586_v0 = vpop.eup %2585  ;;  %v1963_v52 = vadd.f32 %v1962_v53, %v1949_v45 }
 0x872   :  { %v1971_v16 = vmul.f32 %v2586_v0, %v1969_v50 }
 0x873   :  { %2587 = vtanh.f32 %v1963_v52 }
 0x874   :  { %v1973_v37 = vadd.f32 %v1971_v16, %v1967_v57 }
 0x876   :  { %1975 = vst.msk [vmem:[%s3315_s8] sm:$0xff] %vm42_vm0, %v1973_v37 }
 0x879   :  { %v2588_v62 = vpop.eup %2587 }
 0x87a   :  { %v1972_v46 = vmul.f32 %v2588_v62, %v1970_v6 }
 0x87d   :  { %v2590_v63 = vld [vmem:[%s3307_s1 + $0x8] sm:$0xff] }
 0x87e   :  { %v1968_v3 = vmul.f32 %v2590_v63, %v1303_v60 }
 0x880   :  { %v1974_v49 = vadd.f32 %v1972_v46, %v1968_v3 }
 0x882   :  { %1976 = vst.msk [vmem:[%s3315_s8 + $0x8] sm:$0xff] %vm42_vm0, %v1974_v49 }

</bundles_post_ra>
